<compile_context>
chip_gen: v5e
topology: v5e:2x2
jax: 0.10.0
libtpu: 0.0.40
codegen_flags: <defaults>
</compile_context>

<pallas_src>
import functools

import jax
import jax.numpy as jnp
from jax.experimental import pallas as pl
from jax.experimental.pallas import tpu as pltpu


GENOTYPE = (
    (("nor_conv_3x3", 0),),
    (("nor_conv_1x1", 0), ("avg_pool_3x3", 1)),
    (("skip_connect", 0), ("none", 1), ("nor_conv_3x3", 2)),
)

_CONV_OPS = ("nor_conv_3x3", "nor_conv_1x1")
_HALO = {"nor_conv_3x3": 1, "avg_pool_3x3": 1, "nor_conv_1x1": 0,
         "skip_connect": 0, "none": 0}


# --------------------------------------------------------------------------- #
# Static planning (pure Python ints): per-node canvas halo + per-edge input crop.
# Node features live on an (H + 2p, W + 2p, C) canvas; the halo ring is masked to
# zero right before any 3x3 op, which IS that op's zero padding.
# --------------------------------------------------------------------------- #
def _conv_crop_pad(dst_pad, k, W):
    """Smallest source halo p >= dst_pad + (k-1)//2 such that the im2col slice width
    (W + 2*(p - halo)) is a multiple of 8, keeping the (Ho, Wo, C) -> (Ho*Wo, C)
    reshape layout-trivial.  Falls back to the minimum if W is odd."""
    halo = (k - 1) // 2
    p_min = dst_pad + halo
    for p in range(p_min, p_min + 8):
        if (W + 2 * (p - halo)) % 8 == 0:
            return p
    return p_min


def _plan_halos(genotype, W):
    n_nodes = len(genotype) + 1
    pads = [0] * n_nodes
    offs, n_edges = [], 0
    for node_info in genotype:
        offs.append(n_edges)
        n_edges += len(node_info)
    crops = [0] * n_edges
    # Walk nodes last -> first; a node's consumers all have larger indices.
    for j in range(n_nodes - 1, 0, -1):
        for t, (op_name, op_in) in enumerate(genotype[j - 1]):
            idx = offs[j - 1] + t
            if op_name == "none":
                continue
            if op_name in _CONV_OPS:
                k = 3 if op_name == "nor_conv_3x3" else 1
                c = _conv_crop_pad(pads[j], k, W)
            elif op_name == "avg_pool_3x3":
                c = pads[j] + 1
            else:  # skip_connect
                c = pads[j]
            crops[idx] = c
            pads[op_in] = max(pads[op_in], c)
    return tuple(pads), tuple(crops)


# --------------------------------------------------------------------------- #
# In-kernel helpers (all operate on values; no scratch, no ref slice-stores).
# --------------------------------------------------------------------------- #
def _crop(v, p_from, p_to):
    d = p_from - p_to
    if d == 0:
        return v
    return v[d:v.shape[0] - d, d:v.shape[1] - d, :]


def _zero_halo(v, p, H, W):
    """Zero everything outside the real HxW image of a canvas with halo p."""
    if p == 0:
        return v
    Hc, Wc, C = v.shape
    iy = jax.lax.broadcasted_iota(jnp.int32, (Hc, Wc, C), 0)
    ix = jax.lax.broadcasted_iota(jnp.int32, (Hc, Wc, C), 1)
    inside = (iy >= p) & (iy < p + H) & (ix >= p) & (ix < p + W)
    return jnp.where(inside, v, 0.0)


def _relu_conv_bn(v, p, k, w_ref, b_ref, H, W, mxu_dtype):
    """ReLU -> k x k conv (zero pad (k-1)//2, stride 1) -> folded eval BatchNorm.
    One im2col matmul on the MXU; BN scale is pre-folded into w_ref."""
    C = v.shape[-1]
    r = jnp.maximum(v, 0.0)
    Hc, Wc = v.shape[0], v.shape[1]
    if k == 1:
        Ho, Wo = Hc, Wc
        patches = r.reshape(Ho * Wo, C)
    else:
        r = _zero_halo(r, p, H, W)                 # halo ring == the conv's zero pad
        Ho, Wo = Hc - 2, Wc - 2
        cols = [r[ky:ky + Ho, kx:kx + Wo, :].reshape(Ho * Wo, C)
                for ky in range(3) for kx in range(3)]
        patches = jnp.concatenate(cols, axis=-1)   # im2col: (Ho*Wo, 9*C)
    acc = jnp.dot(patches.astype(mxu_dtype), w_ref[...],   # single MXU matmul
                  preferred_element_type=jnp.float32)
    return (acc + b_ref[...]).reshape(Ho, Wo, C)            # folded-BN shift


def _avg_pool3(v, p, H, W):
    """AvgPool2d(3, stride=1, pad=1, count_include_pad=False) on a halo canvas."""
    C = v.shape[-1]
    vz = _zero_halo(v, p, H, W)                    # out-of-image taps contribute 0
    Hc, Wc = v.shape[0], v.shape[1]
    Ho, Wo = Hc - 2, Wc - 2
    s = None
    for ky in range(3):
        for kx in range(3):
            t = vz[ky:ky + Ho, kx:kx + Wo, :]
            s = t if s is None else s + t
    po = p - 1                                     # halo of the pooled canvas
    iy = jax.lax.broadcasted_iota(jnp.int32, (Ho, Wo, C), 0) - po
    ix = jax.lax.broadcasted_iota(jnp.int32, (Ho, Wo, C), 1) - po
    cy = jnp.minimum(iy + 1, H - 1) - jnp.maximum(iy - 1, 0) + 1
    cx = jnp.minimum(ix + 1, W - 1) - jnp.maximum(ix - 1, 0) + 1
    cnt = jnp.maximum(cy, 1) * jnp.maximum(cx, 1)  # clamp: halo outputs are don't-care
    return s / cnt.astype(jnp.float32)


# --------------------------------------------------------------------------- #
# The fused cell kernel: one grid step == one image of the batch.
# --------------------------------------------------------------------------- #
def _infer_cell_kernel(*refs, genotype, node_pads, edge_crop, conv_slot,
                       H, W, mxu_dtype):
    n_wb = 2 * sum(1 for s in conv_slot if s is not None)
    x_ref = refs[0]
    wb = refs[1:1 + n_wb]
    o_ref = refs[1 + n_wb]

    nodes = [x_ref[...]]                           # node0 canvas (halo node_pads[0])
    e = 0
    for j in range(1, len(genotype) + 1):
        dst = node_pads[j]
        acc = None
        for op_name, op_in in genotype[j - 1]:
            slot, crop = conv_slot[e], edge_crop[e]
            e += 1
            if op_name == "none":
                continue                           # Zero op: dropped at trace time
            v = _crop(nodes[op_in], node_pads[op_in], crop)
            if op_name == "skip_connect":
                out, out_pad = v, crop
            elif op_name == "avg_pool_3x3":
                out, out_pad = _avg_pool3(v, crop, H, W), crop - 1
            else:                                  # nor_conv_3x3 / nor_conv_1x1
                k = 3 if op_name == "nor_conv_3x3" else 1
                out = _relu_conv_bn(v, crop, k, wb[2 * slot], wb[2 * slot + 1],
                                    H, W, mxu_dtype)
                out_pad = crop - _HALO[op_name]
            out = _crop(out, out_pad, dst)
            acc = out if acc is None else acc + out
        if acc is None:                            # degenerate all-'none' node
            C = nodes[0].shape[-1]
            acc = jnp.zeros((H + 2 * dst, W + 2 * dst, C), jnp.float32)
        nodes.append(acc)
    o_ref[...] = nodes[-1]                         # node_pads[-1] == 0 -> exactly HxWxC


# --------------------------------------------------------------------------- #
# Wrapper: parameter folding, single input halo pad, one pallas_call.
# --------------------------------------------------------------------------- #
def _fold_conv_bn(p, k, C, mxu_dtype, eps=1e-5):
    scale = p["gamma"] / jnp.sqrt(p["var"] + eps)                  # (C,)
    shift = (p["beta"] - p["mean"] * scale).reshape(1, C)          # f32 epilogue
    # torch (Cout, Cin, kH, kW) -> im2col rows ordered (ky, kx, cin), BN scale folded.
    w2d = jnp.transpose(p["w"], (2, 3, 1, 0)).reshape(k * k * C, C)
    w2d = (w2d * scale[None, :]).astype(mxu_dtype)
    return w2d, shift.astype(jnp.float32)


def infer_cell_forward(x_nchw, params, genotype=GENOTYPE, mxu_dtype=jnp.bfloat16):
    B, C, H, W = x_nchw.shape
    node_pads, edge_crop = _plan_halos(genotype, W)
    P = node_pads[0]

    # One boundary layout change + ONE halo pad of the input; everything else
    # (intermediate padding, pooling masks, BN) lives inside the fused kernel.
    x = jnp.transpose(x_nchw, (0, 2, 3, 1)).astype(jnp.float32)    # NCHW -> NHWC
    x = jnp.pad(x, ((0, 0), (P, P), (P, P), (0, 0)))

    flat_wb, conv_slot = [], []
    edge = 0
    for node_info in genotype:
        for op_name, _ in node_info:
            if op_name in _CONV_OPS:
                k = 3 if op_name == "nor_conv_3x3" else 1
                w2d, shift = _fold_conv_bn(params[edge], k, C, mxu_dtype)
                conv_slot.append(len(flat_wb) // 2)
                flat_wb += [w2d, shift]
            else:
                conv_slot.append(None)
            edge += 1

    kern = functools.partial(
        _infer_cell_kernel, genotype=genotype, node_pads=node_pads,
        edge_crop=edge_crop, conv_slot=tuple(conv_slot),
        H=H, W=W, mxu_dtype=mxu_dtype)

    in_specs = [pl.BlockSpec((None, H + 2 * P, W + 2 * P, C),
                             lambda b: (b, 0, 0, 0))]
    in_specs += [pl.BlockSpec(a.shape, lambda b: (0, 0)) for a in flat_wb]

    out = pl.pallas_call(
        kern,
        out_shape=jax.ShapeDtypeStruct((B, H, W, C), jnp.float32),
        grid=(B,),                                 # one image per grid step
        in_specs=in_specs,
        out_specs=pl.BlockSpec((None, H, W, C), lambda b: (b, 0, 0, 0)),
        compiler_params=pltpu.CompilerParams(
            dimension_semantics=("parallel",),     # shards batch over v7x's 2 TCs
            vmem_limit_bytes=32 * 1024 * 1024),
    )(x, *flat_wb)
    return jnp.transpose(out, (0, 3, 1, 2))        # NHWC -> NCHW


def init_params(key, C):
    """Deterministic eval-mode parameters for every conv edge of GENOTYPE."""
    params = {}
    edge = 0
    for node_info in GENOTYPE:
        for op_name, _ in node_info:
            if op_name in _CONV_OPS:
                k = 3 if op_name == "nor_conv_3x3" else 1
                key, k1, k2, k3, k4, k5 = jax.random.split(key, 6)
                params[edge] = dict(
                    w=0.1 * jax.random.normal(k1, (C, C, k, k), jnp.float32),
                    gamma=1.0 + 0.1 * jax.random.normal(k2, (C,), jnp.float32),
                    beta=0.1 * jax.random.normal(k3, (C,), jnp.float32),
                    mean=0.1 * jax.random.normal(k4, (C,), jnp.float32),
                    var=jax.random.uniform(k5, (C,), jnp.float32, 0.5, 1.5),
                )
            edge += 1
    return params


if __name__ == "__main__":
    key = jax.random.PRNGKey(0)
    kx_, kp_ = jax.random.split(key)

    B, C, H, W = 2, 16, 16, 16
    x = jax.random.normal(kx_, (B, C, H, W), jnp.float32)
    params = init_params(kp_, C)

    fwd = jax.jit(lambda xx: infer_cell_forward(xx, params))
    out = fwd(x)
    jax.block_until_ready(out)
    assert out.shape == (B, C, H, W) and out.dtype == jnp.float32
    print("KERNEL_OK")
</pallas_src>

<mosaic_0001>
module attributes {stable_mosaic.version = 11 : i64} {
  func.func @_infer_cell_kernel(%arg0: i32, %arg1: memref<1x26x26x16xf32, #tpu.memory_space<vmem>>, %arg2: memref<144x16xbf16, #tpu.memory_space<vmem>>, %arg3: memref<1x16xf32, #tpu.memory_space<vmem>>, %arg4: memref<16x16xbf16, #tpu.memory_space<vmem>>, %arg5: memref<1x16xf32, #tpu.memory_space<vmem>>, %arg6: memref<144x16xbf16, #tpu.memory_space<vmem>>, %arg7: memref<1x16xf32, #tpu.memory_space<vmem>>, %arg8: memref<1x16x16x16xf32, #tpu.memory_space<vmem>>) attributes {dimension_semantics = [#tpu.dimension_semantics<parallel>], iteration_bounds = array<i64: 2>, scalar_prefetch = 0 : i64, scratch_operands = 0 : i64, tpu.core_type = #tpu.core_type<tc>, window_params = [{transform_indices = @transform_0, window_bounds = array<i64: 1, 26, 26, 16>}, {pipeline_mode = #tpu.pipeline_mode<synchronous>, transform_indices = @transform_1, window_bounds = array<i64: 144, 16>}, {pipeline_mode = #tpu.pipeline_mode<synchronous>, transform_indices = @transform_2, window_bounds = array<i64: 1, 16>}, {pipeline_mode = #tpu.pipeline_mode<synchronous>, transform_indices = @transform_3, window_bounds = array<i64: 16, 16>}, {pipeline_mode = #tpu.pipeline_mode<synchronous>, transform_indices = @transform_4, window_bounds = array<i64: 1, 16>}, {pipeline_mode = #tpu.pipeline_mode<synchronous>, transform_indices = @transform_5, window_bounds = array<i64: 144, 16>}, {pipeline_mode = #tpu.pipeline_mode<synchronous>, transform_indices = @transform_6, window_bounds = array<i64: 1, 16>}, {transform_indices = @transform_7, window_bounds = array<i64: 1, 16, 16, 16>}]} {
    %c0 = arith.constant 0 : index
    %c0_0 = arith.constant 0 : index
    %c0_1 = arith.constant 0 : index
    %c0_2 = arith.constant 0 : index
    %0 = vector.load %arg1[%c0, %c0_0, %c0_1, %c0_2] : memref<1x26x26x16xf32, #tpu.memory_space<vmem>>, vector<1x26x26x16xf32>
    %1 = vector.shape_cast %0 : vector<1x26x26x16xf32> to vector<26x26x16xf32>
    %cst = arith.constant 0.000000e+00 : f32
    %2 = vector.broadcast %cst : f32 to vector<26x26x16xf32>
    %3 = arith.maximumf %1, %2 : vector<26x26x16xf32>
    %4 = tpu.iota {dimensions = array<i32: 0>} : vector<26x26x16xi32>
    %5 = tpu.iota {dimensions = array<i32: 1>} : vector<26x26x16xi32>
    %c5_i32 = arith.constant 5 : i32
    %6 = vector.broadcast %c5_i32 : i32 to vector<26x26x16xi32>
    %7 = arith.cmpi sge, %4, %6 : vector<26x26x16xi32>
    %c21_i32 = arith.constant 21 : i32
    %8 = vector.broadcast %c21_i32 : i32 to vector<26x26x16xi32>
    %9 = arith.cmpi slt, %4, %8 : vector<26x26x16xi32>
    %10 = arith.andi %7, %9 : vector<26x26x16xi1>
    %c5_i32_3 = arith.constant 5 : i32
    %11 = vector.broadcast %c5_i32_3 : i32 to vector<26x26x16xi32>
    %12 = arith.cmpi sge, %5, %11 : vector<26x26x16xi32>
    %13 = arith.andi %10, %12 : vector<26x26x16xi1>
    %c21_i32_4 = arith.constant 21 : i32
    %14 = vector.broadcast %c21_i32_4 : i32 to vector<26x26x16xi32>
    %15 = arith.cmpi slt, %5, %14 : vector<26x26x16xi32>
    %16 = arith.andi %13, %15 : vector<26x26x16xi1>
    %cst_5 = arith.constant 0.000000e+00 : f32
    %17 = vector.broadcast %cst_5 : f32 to vector<26x26x16xf32>
    %18 = arith.select %16, %3, %17 : vector<26x26x16xi1>, vector<26x26x16xf32>
    %19 = vector.extract_strided_slice %18 {offsets = [0, 0, 0], sizes = [24, 24, 16], strides = [1, 1, 1]} : vector<26x26x16xf32> to vector<24x24x16xf32>
    %20 = vector.shape_cast %19 : vector<24x24x16xf32> to vector<576x16xf32>
    %21 = vector.extract_strided_slice %18 {offsets = [0, 1, 0], sizes = [24, 24, 16], strides = [1, 1, 1]} : vector<26x26x16xf32> to vector<24x24x16xf32>
    %22 = vector.shape_cast %21 : vector<24x24x16xf32> to vector<576x16xf32>
    %23 = vector.extract_strided_slice %18 {offsets = [0, 2, 0], sizes = [24, 24, 16], strides = [1, 1, 1]} : vector<26x26x16xf32> to vector<24x24x16xf32>
    %24 = vector.shape_cast %23 : vector<24x24x16xf32> to vector<576x16xf32>
    %25 = vector.extract_strided_slice %18 {offsets = [1, 0, 0], sizes = [24, 24, 16], strides = [1, 1, 1]} : vector<26x26x16xf32> to vector<24x24x16xf32>
    %26 = vector.shape_cast %25 : vector<24x24x16xf32> to vector<576x16xf32>
    %27 = vector.extract_strided_slice %18 {offsets = [1, 1, 0], sizes = [24, 24, 16], strides = [1, 1, 1]} : vector<26x26x16xf32> to vector<24x24x16xf32>
    %28 = vector.shape_cast %27 : vector<24x24x16xf32> to vector<576x16xf32>
    %29 = vector.extract_strided_slice %18 {offsets = [1, 2, 0], sizes = [24, 24, 16], strides = [1, 1, 1]} : vector<26x26x16xf32> to vector<24x24x16xf32>
    %30 = vector.shape_cast %29 : vector<24x24x16xf32> to vector<576x16xf32>
    %31 = vector.extract_strided_slice %18 {offsets = [2, 0, 0], sizes = [24, 24, 16], strides = [1, 1, 1]} : vector<26x26x16xf32> to vector<24x24x16xf32>
    %32 = vector.shape_cast %31 : vector<24x24x16xf32> to vector<576x16xf32>
    %33 = vector.extract_strided_slice %18 {offsets = [2, 1, 0], sizes = [24, 24, 16], strides = [1, 1, 1]} : vector<26x26x16xf32> to vector<24x24x16xf32>
    %34 = vector.shape_cast %33 : vector<24x24x16xf32> to vector<576x16xf32>
    %35 = vector.extract_strided_slice %18 {offsets = [2, 2, 0], sizes = [24, 24, 16], strides = [1, 1, 1]} : vector<26x26x16xf32> to vector<24x24x16xf32>
    %36 = vector.shape_cast %35 : vector<24x24x16xf32> to vector<576x16xf32>
    %37 = tpu.concatenate %20, %22, %24, %26, %28, %30, %32, %34, %36 in 1 : vector<576x16xf32>, vector<576x16xf32>, vector<576x16xf32>, vector<576x16xf32>, vector<576x16xf32>, vector<576x16xf32>, vector<576x16xf32>, vector<576x16xf32>, vector<576x16xf32> -> vector<576x144xf32>
    %38 = arith.truncf %37 : vector<576x144xf32> to vector<576x144xbf16>
    %c0_6 = arith.constant 0 : index
    %c0_7 = arith.constant 0 : index
    %39 = vector.load %arg2[%c0_6, %c0_7] : memref<144x16xbf16, #tpu.memory_space<vmem>>, vector<144x16xbf16>
    %cst_8 = arith.constant dense<0.000000e+00> : vector<576x16xf32>
    %40 = tpu.matmul %38, %39, %cst_8 {dimension_numbers = #tpu.dot_dimension_numbers<[1], [0], [0], [1], [0, 0, 1, 1], [], []>} : vector<576x144xbf16>, vector<144x16xbf16>, vector<576x16xf32> -> vector<576x16xf32>
    %c0_9 = arith.constant 0 : index
    %c0_10 = arith.constant 0 : index
    %41 = vector.load %arg3[%c0_9, %c0_10] : memref<1x16xf32, #tpu.memory_space<vmem>>, vector<1x16xf32>
    %42 = vector.broadcast %41 : vector<1x16xf32> to vector<576x16xf32>
    %43 = arith.addf %40, %42 : vector<576x16xf32>
    %44 = vector.shape_cast %43 : vector<576x16xf32> to vector<24x24x16xf32>
    %45 = vector.extract_strided_slice %44 {offsets = [2, 2, 0], sizes = [20, 20, 16], strides = [1, 1, 1]} : vector<24x24x16xf32> to vector<20x20x16xf32>
    %46 = vector.extract_strided_slice %1 {offsets = [1, 1, 0], sizes = [24, 24, 16], strides = [1, 1, 1]} : vector<26x26x16xf32> to vector<24x24x16xf32>
    %cst_11 = arith.constant 0.000000e+00 : f32
    %47 = vector.broadcast %cst_11 : f32 to vector<24x24x16xf32>
    %48 = arith.maximumf %46, %47 : vector<24x24x16xf32>
    %49 = vector.shape_cast %48 : vector<24x24x16xf32> to vector<576x16xf32>
    %50 = arith.truncf %49 : vector<576x16xf32> to vector<576x16xbf16>
    %c0_12 = arith.constant 0 : index
    %c0_13 = arith.constant 0 : index
    %51 = vector.load %arg4[%c0_12, %c0_13] : memref<16x16xbf16, #tpu.memory_space<vmem>>, vector<16x16xbf16>
    %cst_14 = arith.constant dense<0.000000e+00> : vector<576x16xf32>
    %52 = tpu.matmul %50, %51, %cst_14 {dimension_numbers = #tpu.dot_dimension_numbers<[1], [0], [0], [1], [0, 0, 1, 1], [], []>} : vector<576x16xbf16>, vector<16x16xbf16>, vector<576x16xf32> -> vector<576x16xf32>
    %c0_15 = arith.constant 0 : index
    %c0_16 = arith.constant 0 : index
    %53 = vector.load %arg5[%c0_15, %c0_16] : memref<1x16xf32, #tpu.memory_space<vmem>>, vector<1x16xf32>
    %54 = vector.broadcast %53 : vector<1x16xf32> to vector<576x16xf32>
    %55 = arith.addf %52, %54 : vector<576x16xf32>
    %56 = vector.shape_cast %55 : vector<576x16xf32> to vector<24x24x16xf32>
    %57 = vector.extract_strided_slice %56 {offsets = [3, 3, 0], sizes = [18, 18, 16], strides = [1, 1, 1]} : vector<24x24x16xf32> to vector<18x18x16xf32>
    %58 = tpu.iota {dimensions = array<i32: 0>} : vector<20x20x16xi32>
    %59 = tpu.iota {dimensions = array<i32: 1>} : vector<20x20x16xi32>
    %c2_i32 = arith.constant 2 : i32
    %60 = vector.broadcast %c2_i32 : i32 to vector<20x20x16xi32>
    %61 = arith.cmpi sge, %58, %60 : vector<20x20x16xi32>
    %c18_i32 = arith.constant 18 : i32
    %62 = vector.broadcast %c18_i32 : i32 to vector<20x20x16xi32>
    %63 = arith.cmpi slt, %58, %62 : vector<20x20x16xi32>
    %64 = arith.andi %61, %63 : vector<20x20x16xi1>
    %c2_i32_17 = arith.constant 2 : i32
    %65 = vector.broadcast %c2_i32_17 : i32 to vector<20x20x16xi32>
    %66 = arith.cmpi sge, %59, %65 : vector<20x20x16xi32>
    %67 = arith.andi %64, %66 : vector<20x20x16xi1>
    %c18_i32_18 = arith.constant 18 : i32
    %68 = vector.broadcast %c18_i32_18 : i32 to vector<20x20x16xi32>
    %69 = arith.cmpi slt, %59, %68 : vector<20x20x16xi32>
    %70 = arith.andi %67, %69 : vector<20x20x16xi1>
    %cst_19 = arith.constant 0.000000e+00 : f32
    %71 = vector.broadcast %cst_19 : f32 to vector<20x20x16xf32>
    %72 = arith.select %70, %45, %71 : vector<20x20x16xi1>, vector<20x20x16xf32>
    %73 = vector.extract_strided_slice %72 {offsets = [0, 0, 0], sizes = [18, 18, 16], strides = [1, 1, 1]} : vector<20x20x16xf32> to vector<18x18x16xf32>
    %74 = vector.extract_strided_slice %72 {offsets = [0, 1, 0], sizes = [18, 18, 16], strides = [1, 1, 1]} : vector<20x20x16xf32> to vector<18x18x16xf32>
    %75 = arith.addf %73, %74 : vector<18x18x16xf32>
    %76 = vector.extract_strided_slice %72 {offsets = [0, 2, 0], sizes = [18, 18, 16], strides = [1, 1, 1]} : vector<20x20x16xf32> to vector<18x18x16xf32>
    %77 = arith.addf %75, %76 : vector<18x18x16xf32>
    %78 = vector.extract_strided_slice %72 {offsets = [1, 0, 0], sizes = [18, 18, 16], strides = [1, 1, 1]} : vector<20x20x16xf32> to vector<18x18x16xf32>
    %79 = arith.addf %77, %78 : vector<18x18x16xf32>
    %80 = vector.extract_strided_slice %72 {offsets = [1, 1, 0], sizes = [18, 18, 16], strides = [1, 1, 1]} : vector<20x20x16xf32> to vector<18x18x16xf32>
    %81 = arith.addf %79, %80 : vector<18x18x16xf32>
    %82 = vector.extract_strided_slice %72 {offsets = [1, 2, 0], sizes = [18, 18, 16], strides = [1, 1, 1]} : vector<20x20x16xf32> to vector<18x18x16xf32>
    %83 = arith.addf %81, %82 : vector<18x18x16xf32>
    %84 = vector.extract_strided_slice %72 {offsets = [2, 0, 0], sizes = [18, 18, 16], strides = [1, 1, 1]} : vector<20x20x16xf32> to vector<18x18x16xf32>
    %85 = arith.addf %83, %84 : vector<18x18x16xf32>
    %86 = vector.extract_strided_slice %72 {offsets = [2, 1, 0], sizes = [18, 18, 16], strides = [1, 1, 1]} : vector<20x20x16xf32> to vector<18x18x16xf32>
    %87 = arith.addf %85, %86 : vector<18x18x16xf32>
    %88 = vector.extract_strided_slice %72 {offsets = [2, 2, 0], sizes = [18, 18, 16], strides = [1, 1, 1]} : vector<20x20x16xf32> to vector<18x18x16xf32>
    %89 = arith.addf %87, %88 : vector<18x18x16xf32>
    %90 = tpu.iota {dimensions = array<i32: 0>} : vector<18x18x16xi32>
    %c1_i32 = arith.constant 1 : i32
    %91 = vector.broadcast %c1_i32 : i32 to vector<18x18x16xi32>
    %92 = arith.subi %90, %91 : vector<18x18x16xi32>
    %93 = tpu.iota {dimensions = array<i32: 1>} : vector<18x18x16xi32>
    %c1_i32_20 = arith.constant 1 : i32
    %94 = vector.broadcast %c1_i32_20 : i32 to vector<18x18x16xi32>
    %95 = arith.subi %93, %94 : vector<18x18x16xi32>
    %c1_i32_21 = arith.constant 1 : i32
    %96 = vector.broadcast %c1_i32_21 : i32 to vector<18x18x16xi32>
    %97 = arith.addi %92, %96 : vector<18x18x16xi32>
    %c15_i32 = arith.constant 15 : i32
    %98 = vector.broadcast %c15_i32 : i32 to vector<18x18x16xi32>
    %99 = arith.minsi %97, %98 : vector<18x18x16xi32>
    %c1_i32_22 = arith.constant 1 : i32
    %100 = vector.broadcast %c1_i32_22 : i32 to vector<18x18x16xi32>
    %101 = arith.subi %92, %100 : vector<18x18x16xi32>
    %c0_i32 = arith.constant 0 : i32
    %102 = vector.broadcast %c0_i32 : i32 to vector<18x18x16xi32>
    %103 = arith.maxsi %101, %102 : vector<18x18x16xi32>
    %104 = arith.subi %99, %103 : vector<18x18x16xi32>
    %c1_i32_23 = arith.constant 1 : i32
    %105 = vector.broadcast %c1_i32_23 : i32 to vector<18x18x16xi32>
    %106 = arith.addi %104, %105 : vector<18x18x16xi32>
    %c1_i32_24 = arith.constant 1 : i32
    %107 = vector.broadcast %c1_i32_24 : i32 to vector<18x18x16xi32>
    %108 = arith.addi %95, %107 : vector<18x18x16xi32>
    %c15_i32_25 = arith.constant 15 : i32
    %109 = vector.broadcast %c15_i32_25 : i32 to vector<18x18x16xi32>
    %110 = arith.minsi %108, %109 : vector<18x18x16xi32>
    %c1_i32_26 = arith.constant 1 : i32
    %111 = vector.broadcast %c1_i32_26 : i32 to vector<18x18x16xi32>
    %112 = arith.subi %95, %111 : vector<18x18x16xi32>
    %c0_i32_27 = arith.constant 0 : i32
    %113 = vector.broadcast %c0_i32_27 : i32 to vector<18x18x16xi32>
    %114 = arith.maxsi %112, %113 : vector<18x18x16xi32>
    %115 = arith.subi %110, %114 : vector<18x18x16xi32>
    %c1_i32_28 = arith.constant 1 : i32
    %116 = vector.broadcast %c1_i32_28 : i32 to vector<18x18x16xi32>
    %117 = arith.addi %115, %116 : vector<18x18x16xi32>
    %c1_i32_29 = arith.constant 1 : i32
    %118 = vector.broadcast %c1_i32_29 : i32 to vector<18x18x16xi32>
    %119 = arith.maxsi %106, %118 : vector<18x18x16xi32>
    %c1_i32_30 = arith.constant 1 : i32
    %120 = vector.broadcast %c1_i32_30 : i32 to vector<18x18x16xi32>
    %121 = arith.maxsi %117, %120 : vector<18x18x16xi32>
    %122 = arith.muli %119, %121 : vector<18x18x16xi32>
    %123 = arith.sitofp %122 : vector<18x18x16xi32> to vector<18x18x16xf32>
    %124 = arith.divf %89, %123 : vector<18x18x16xf32>
    %125 = arith.addf %57, %124 : vector<18x18x16xf32>
    %126 = vector.extract_strided_slice %1 {offsets = [5, 5, 0], sizes = [16, 16, 16], strides = [1, 1, 1]} : vector<26x26x16xf32> to vector<16x16x16xf32>
    %cst_31 = arith.constant 0.000000e+00 : f32
    %127 = vector.broadcast %cst_31 : f32 to vector<18x18x16xf32>
    %128 = arith.maximumf %125, %127 : vector<18x18x16xf32>
    %129 = tpu.iota {dimensions = array<i32: 0>} : vector<18x18x16xi32>
    %130 = tpu.iota {dimensions = array<i32: 1>} : vector<18x18x16xi32>
    %c1_i32_32 = arith.constant 1 : i32
    %131 = vector.broadcast %c1_i32_32 : i32 to vector<18x18x16xi32>
    %132 = arith.cmpi sge, %129, %131 : vector<18x18x16xi32>
    %c17_i32 = arith.constant 17 : i32
    %133 = vector.broadcast %c17_i32 : i32 to vector<18x18x16xi32>
    %134 = arith.cmpi slt, %129, %133 : vector<18x18x16xi32>
    %135 = arith.andi %132, %134 : vector<18x18x16xi1>
    %c1_i32_33 = arith.constant 1 : i32
    %136 = vector.broadcast %c1_i32_33 : i32 to vector<18x18x16xi32>
    %137 = arith.cmpi sge, %130, %136 : vector<18x18x16xi32>
    %138 = arith.andi %135, %137 : vector<18x18x16xi1>
    %c17_i32_34 = arith.constant 17 : i32
    %139 = vector.broadcast %c17_i32_34 : i32 to vector<18x18x16xi32>
    %140 = arith.cmpi slt, %130, %139 : vector<18x18x16xi32>
    %141 = arith.andi %138, %140 : vector<18x18x16xi1>
    %cst_35 = arith.constant 0.000000e+00 : f32
    %142 = vector.broadcast %cst_35 : f32 to vector<18x18x16xf32>
    %143 = arith.select %141, %128, %142 : vector<18x18x16xi1>, vector<18x18x16xf32>
    %144 = vector.extract_strided_slice %143 {offsets = [0, 0, 0], sizes = [16, 16, 16], strides = [1, 1, 1]} : vector<18x18x16xf32> to vector<16x16x16xf32>
    %145 = vector.shape_cast %144 : vector<16x16x16xf32> to vector<256x16xf32>
    %146 = vector.extract_strided_slice %143 {offsets = [0, 1, 0], sizes = [16, 16, 16], strides = [1, 1, 1]} : vector<18x18x16xf32> to vector<16x16x16xf32>
    %147 = vector.shape_cast %146 : vector<16x16x16xf32> to vector<256x16xf32>
    %148 = vector.extract_strided_slice %143 {offsets = [0, 2, 0], sizes = [16, 16, 16], strides = [1, 1, 1]} : vector<18x18x16xf32> to vector<16x16x16xf32>
    %149 = vector.shape_cast %148 : vector<16x16x16xf32> to vector<256x16xf32>
    %150 = vector.extract_strided_slice %143 {offsets = [1, 0, 0], sizes = [16, 16, 16], strides = [1, 1, 1]} : vector<18x18x16xf32> to vector<16x16x16xf32>
    %151 = vector.shape_cast %150 : vector<16x16x16xf32> to vector<256x16xf32>
    %152 = vector.extract_strided_slice %143 {offsets = [1, 1, 0], sizes = [16, 16, 16], strides = [1, 1, 1]} : vector<18x18x16xf32> to vector<16x16x16xf32>
    %153 = vector.shape_cast %152 : vector<16x16x16xf32> to vector<256x16xf32>
    %154 = vector.extract_strided_slice %143 {offsets = [1, 2, 0], sizes = [16, 16, 16], strides = [1, 1, 1]} : vector<18x18x16xf32> to vector<16x16x16xf32>
    %155 = vector.shape_cast %154 : vector<16x16x16xf32> to vector<256x16xf32>
    %156 = vector.extract_strided_slice %143 {offsets = [2, 0, 0], sizes = [16, 16, 16], strides = [1, 1, 1]} : vector<18x18x16xf32> to vector<16x16x16xf32>
    %157 = vector.shape_cast %156 : vector<16x16x16xf32> to vector<256x16xf32>
    %158 = vector.extract_strided_slice %143 {offsets = [2, 1, 0], sizes = [16, 16, 16], strides = [1, 1, 1]} : vector<18x18x16xf32> to vector<16x16x16xf32>
    %159 = vector.shape_cast %158 : vector<16x16x16xf32> to vector<256x16xf32>
    %160 = vector.extract_strided_slice %143 {offsets = [2, 2, 0], sizes = [16, 16, 16], strides = [1, 1, 1]} : vector<18x18x16xf32> to vector<16x16x16xf32>
    %161 = vector.shape_cast %160 : vector<16x16x16xf32> to vector<256x16xf32>
    %162 = tpu.concatenate %145, %147, %149, %151, %153, %155, %157, %159, %161 in 1 : vector<256x16xf32>, vector<256x16xf32>, vector<256x16xf32>, vector<256x16xf32>, vector<256x16xf32>, vector<256x16xf32>, vector<256x16xf32>, vector<256x16xf32>, vector<256x16xf32> -> vector<256x144xf32>
    %163 = arith.truncf %162 : vector<256x144xf32> to vector<256x144xbf16>
    %c0_36 = arith.constant 0 : index
    %c0_37 = arith.constant 0 : index
    %164 = vector.load %arg6[%c0_36, %c0_37] : memref<144x16xbf16, #tpu.memory_space<vmem>>, vector<144x16xbf16>
    %cst_38 = arith.constant dense<0.000000e+00> : vector<256x16xf32>
    %165 = tpu.matmul %163, %164, %cst_38 {dimension_numbers = #tpu.dot_dimension_numbers<[1], [0], [0], [1], [0, 0, 1, 1], [], []>} : vector<256x144xbf16>, vector<144x16xbf16>, vector<256x16xf32> -> vector<256x16xf32>
    %c0_39 = arith.constant 0 : index
    %c0_40 = arith.constant 0 : index
    %166 = vector.load %arg7[%c0_39, %c0_40] : memref<1x16xf32, #tpu.memory_space<vmem>>, vector<1x16xf32>
    %167 = vector.broadcast %166 : vector<1x16xf32> to vector<256x16xf32>
    %168 = arith.addf %165, %167 : vector<256x16xf32>
    %169 = vector.shape_cast %168 : vector<256x16xf32> to vector<16x16x16xf32>
    %170 = arith.addf %126, %169 : vector<16x16x16xf32>
    %c0_41 = arith.constant 0 : index
    %c0_42 = arith.constant 0 : index
    %c0_43 = arith.constant 0 : index
    %c0_44 = arith.constant 0 : index
    %171 = vector.load %arg8[%c0_41, %c0_42, %c0_43, %c0_44] : memref<1x16x16x16xf32, #tpu.memory_space<vmem>>, vector<1x16x16x16xf32>
    %172 = vector.shape_cast %171 : vector<1x16x16x16xf32> to vector<16x16x16xf32>
    %173 = vector.shape_cast %170 : vector<16x16x16xf32> to vector<1x16x16x16xf32>
    tpu.vector_store %arg8[%c0_41, %c0_42, %c0_43, %c0_44], %173 {strides = array<i32>} : memref<1x16x16x16xf32, #tpu.memory_space<vmem>>, vector<1x16x16x16xf32>,
    return
  }
  func.func @transform_0(%arg0: i32) -> (i32, i32, i32, i32) {
    %c0_i32 = arith.constant 0 : i32
    %c0_i32_0 = arith.constant 0 : i32
    %c0_i32_1 = arith.constant 0 : i32
    %c0_i32_2 = arith.constant 0 : i32
    return %arg0, %c0_i32, %c0_i32_0, %c0_i32_1 : i32, i32, i32, i32
  }
  func.func @transform_1(%arg0: i32) -> (i32, i32) {
    %c0_i32 = arith.constant 0 : i32
    %c0_i32_0 = arith.constant 0 : i32
    %c0_i32_1 = arith.constant 0 : i32
    return %c0_i32, %c0_i32_0 : i32, i32
  }
  func.func @transform_2(%arg0: i32) -> (i32, i32) {
    %c0_i32 = arith.constant 0 : i32
    %c0_i32_0 = arith.constant 0 : i32
    %c0_i32_1 = arith.constant 0 : i32
    return %c0_i32, %c0_i32_0 : i32, i32
  }
  func.func @transform_3(%arg0: i32) -> (i32, i32) {
    %c0_i32 = arith.constant 0 : i32
    %c0_i32_0 = arith.constant 0 : i32
    %c0_i32_1 = arith.constant 0 : i32
    return %c0_i32, %c0_i32_0 : i32, i32
  }
  func.func @transform_4(%arg0: i32) -> (i32, i32) {
    %c0_i32 = arith.constant 0 : i32
    %c0_i32_0 = arith.constant 0 : i32
    %c0_i32_1 = arith.constant 0 : i32
    return %c0_i32, %c0_i32_0 : i32, i32
  }
  func.func @transform_5(%arg0: i32) -> (i32, i32) {
    %c0_i32 = arith.constant 0 : i32
    %c0_i32_0 = arith.constant 0 : i32
    %c0_i32_1 = arith.constant 0 : i32
    return %c0_i32, %c0_i32_0 : i32, i32
  }
  func.func @transform_6(%arg0: i32) -> (i32, i32) {
    %c0_i32 = arith.constant 0 : i32
    %c0_i32_0 = arith.constant 0 : i32
    %c0_i32_1 = arith.constant 0 : i32
    return %c0_i32, %c0_i32_0 : i32, i32
  }
  func.func @transform_7(%arg0: i32) -> (i32, i32, i32, i32) {
    %c0_i32 = arith.constant 0 : i32
    %c0_i32_0 = arith.constant 0 : i32
    %c0_i32_1 = arith.constant 0 : i32
    %c0_i32_2 = arith.constant 0 : i32
    return %arg0, %c0_i32, %c0_i32_0, %c0_i32_1 : i32, i32, i32, i32
  }
}

</mosaic_0001>

<bundles_post_ra>
// kernel: _lambda_.1
= control target key start
LH: loop header
LB: loop body
LE: loop exit
PB: predicated region body
PF: predicated region fallthrough
CT: control target
= control target key end

     0   :  { %s10311_s24 = smov 0   ;;  %s18289_s0 = inlined_call_operand.vmem [shape: f32[2,26,26,16], index: 0, kind: input, shape index: {}]   ;;  %s18290_s1 = inlined_call_operand.vmem [shape: bf16[144,16], index: 1, kind: input, shape index: {}]   ;;  %s18291_s2 = inlined_call_operand.vmem [shape: f32[1,16], index: 2, kind: input, shape index: {}]   ;;  %s18292_s3 = inlined_call_operand.vmem [shape: bf16[16,16], index: 3, kind: input, shape index: {}]   ;;  %s18293_s4 = inlined_call_operand.vmem [shape: f32[1,16], index: 4, kind: input, shape index: {}]   ;;  %s18294_s5 = inlined_call_operand.vmem [shape: bf16[144,16], index: 5, kind: input, shape index: {}]   ;;  %s18295_s6 = inlined_call_operand.vmem [shape: f32[1,16], index: 6, kind: input, shape index: {}]   ;;  %s18296_s7 = inlined_call_operand.vmem [shape: f32[2,16,16,16], index: 7, kind: output, shape index: {}]  }
   0x1 LB: > { %s8149_s25 = sadd.s32 4294967295, %s10261_s24   ;;  %p8153_p0 = scmp.ge.s32.totalorder %s10261_s24, 1  ;;  %s10261_s24 = sphi %s10311_s24, %s17_s24  }
   0x2   : > { %p237_p1 = scmp.lt.s32.totalorder %s10261_s24, 3 }
   0x4   : > { %p238_p2 = pnand %p8153_p0, %p237_p1 }
   0x6   : > { %241 = sbr.rel (%p238_p2) target bundleno = 1902 (0x76e), region = 48 }
   0xb   : > { %p269_p3 = scmp.lt.s32.totalorder %s8149_s25, 1  ;;  %v488_v0 = vlaneseq  ;;  %v18307_v1 = vmov 0.0   ;;  %s10264_s27 = smov 16   ;;  %vm717_vm2 = vcmask 1046528   ;;  %vm886_vm3 = vcmask 1045504  }
   0xc   : > { %v10320_v2 = vrot.slane %v18307_v1, 1  ;;  %s10265_s8 = smov 32   ;;  %s10266_s9 = smov 48   ;;  %vm2675_vm4 = vcmask 130048   ;;  %vm2748_vm5 = vcmask 261120   ;;  %vm2821_vm6 = vcmask 392192  }
   0xd   : > { %s20295_s25 = smov (!%p269_p3, %s8149_s25), 1  ;;  %v10324_v3 = vshrl.u32 %v488_v0, 7  ;;  %s10267_s10 = smov 64   ;;  %vm2894_vm7 = vcmask 523264   ;;  %vm2967_vm8 = vcmask 654336   ;;  %vm18829_vm9 = vcmask 785408  }
   0xe   : > { %18877 = vst [vmem:[#allocation2_spill] sm:$0xff] %v10320_v2  ;;  %v10328_v4 = vpack.i.bf16 %v10320_v2, %v10320_v2  ;;  %s8349_s26 = smul.u32 832, %s20295_s25  ;;  %s10268_s11 = smov 80   ;;  %vm18828_vm10 = vcmask 916480  }
   0xf   : > { %18878 = vst [vmem:[#allocation3_spill] sm:$0xff] %v10324_v3  ;;  %v10332_v5 = vadd.s32 16, %v10324_v3  ;;  %vm493_vm1 = vcmp.ge.s32.totalorder %v10324_v3, 5  ;;  %s10269_s12 = smov 96   ;;  %s10270_s13 = smov 112  }
  0x10   : > { %18879 = vst [vmem:[#allocation4_spill] sm:$0xff] %v10328_v4  ;;  %8387 = vrot.lane.b32.xlu2 %v10328_v4, %s10264_s27  ;;  %8377 = vrot.lane.b32.xlu1 %v10328_v4, %s10264_s27  ;;  %s10343_s30 = scalar_lea.vmem %s18289_s0, %s8349_s26 }
  0x11   : > { %18880 = vst [vmem:[#allocation5_spill] sm:$0xff] %v10332_v5  ;;  %8367 = vrot.lane.b32.xlu0 %v10328_v4, %s10264_s27  ;;  %v301_v6 = vld [vmem:[%s10343_s30 + $0xa8] sm:$0xff]  ;;  %v10347_v7 = vld [vmem:[%s10343_s30 + $0xb0] sm:$0xff]  ;;  %vm507_vm0 = vcmp.lt.s32.totalorder %v10332_v5, 21  ;;  %v10351_v8 = vld [vmem:[%s10343_s30 + $0xa0] sm:$0xff] }
  0x12   : > { %18881 = vst [vmem:[#allocation6_spill] sm:$0xff] %v10347_v7  ;;  %v10354_v9 = vmax.f32 %v301_v6, 0.0  ;;  %v18305_v10 = vmax.f32 %v10347_v7, 0.0  ;;  %v18306_v11 = vmax.f32 %v10351_v8, 0.0  ;;  %v10359_v12 = vld [vmem:[%s10343_s30 + $0xd0] sm:$0xff]  ;;  %v10362_v13 = vld [vmem:[%s10343_s30 + $0xc0] sm:$0xff] }
  0x13   : > { %18882 = vst [vmem:[#allocation7_spill] sm:$0xff] %v10351_v8  ;;  %v309_v14 = vld [vmem:[%s10343_s30 + $0xe8] sm:$0xff]  ;;  %v10366_v15 = vld [vmem:[%s10343_s30 + $0xf0] sm:$0xff]  ;;  %v18303_v21 = vmax.f32 %v10359_v12, 0.0  ;;  %v18304_v23 = vmax.f32 %v10362_v13, 0.0  ;;  %v10392_v26 = vld [vmem:[%s10343_s30 + $0xe0] sm:$0xff] }
  0x14   : > { %18883 = vst [vmem:[#allocation8_spill] sm:$0xff] %v10359_v12  ;;  %v10372_v16 = vsel %vm507_vm0, %v18305_v10, 0.0  ;;  %v10375_v17 = vrot.slane %v10354_v9, 1  ;;  %v10381_v18 = vsel %vm493_vm1, %v18306_v11, 0.0  ;;  %v305_v22 = vld [vmem:[%s10343_s30 + $0xc8] sm:$0xff]  ;;  %v10388_v24 = vmax.f32 %v309_v14, 0.0 }
  0x15   : > { %18884 = vst [vmem:[#allocation9_spill] sm:$0xff] %v10362_v13  ;;  %v756_v19 = vrot.slane %v10372_v16, 1  ;;  %v753_v20 = vrot.slane %v10381_v18, 1  ;;  %v18301_v25 = vmax.f32 %v10366_v15, 0.0  ;;  %v10413_v30 = vld [vmem:[%s10343_s30 + $0x110] sm:$0xff]  ;;  %v10415_v31 = vmax.f32 %v305_v22, 0.0 }
  0x16   : > { %18885 = vst [vmem:[#allocation10_spill] sm:$0xff] %v10366_v15  ;;  %v10421_v32 = vsel %vm507_vm0, %v18303_v21, 0.0  ;;  %v18302_v34 = vmax.f32 %v10392_v26, 0.0  ;;  %v10431_v35 = vld [vmem:[%s10343_s30 + $0x130] sm:$0xff]  ;;  %v10434_v36 = vld [vmem:[%s10343_s30 + $0x120] sm:$0xff]  ;;  %v10444_v38 = vsel %vm493_vm1, %v18304_v23, 0.0 }
  0x17   : > { %18886 = vst [vmem:[#allocation11_spill] sm:$0xff] %v10375_v17  ;;  %v10400_v27 = vsel %vm717_vm2, %v10375_v17, %v756_v19  ;;  %v10404_v28 = vsel %vm717_vm2, %v756_v19, %v10320_v2  ;;  %v10410_v29 = vsel %vm717_vm2, %v753_v20, %v10375_v17  ;;  %v10427_v33 = vsel %vm507_vm0, %v18301_v25, 0.0  ;;  %v10461_v43 = vld [vmem:[%s10343_s30 + $0x100] sm:$0xff]  ;;  %v317_v47 = vld [vmem:[%s10343_s30 + $0x128] sm:$0xff]  ;;  %v10531_v14 = vld [vmem:[%s10343_s30 + $0x150] sm:$0xff] }
  0x18   : > { %18887 = vst [vmem:[#allocation12_spill] sm:$0xff] %v10392_v26  ;;  %8392 = vrot.lane.b32.xlu2 %v10328_v4, %s10264_s27  ;;  %8382 = vrot.lane.b32.xlu1 %v10328_v4, %s10264_s27  ;;  %v10438_v37 = vpack.i.bf16 %v10404_v28, %v10400_v27  ;;  %v10447_v39 = vrot.slane %v10388_v24, 1  ;;  %v10451_v40 = vpack.i.bf16 %v10410_v29, %v10320_v2  ;;  %v770_v41 = vrot.slane %v10427_v33, 1  ;;  %v313_v52 = vld [vmem:[%s10343_s30 + $0x108] sm:$0xff]  ;;  %v10528_v6 = vld [vmem:[%s10343_s30 + $0x140] sm:$0xff] }
  0x19   : > { %18888 = vst [vmem:[#allocation13_spill] sm:$0xff] %v10400_v27  ;;  %8372 = vrot.lane.b32.xlu0 %v10328_v4, %s10264_s27  ;;  %v10458_v42 = vsel %vm493_vm1, %v18302_v34, 0.0  ;;  %v18299_v44 = vmax.f32 %v10413_v30, 0.0  ;;  %v763_v45 = vrot.slane %v10421_v32, 1  ;;  %v18297_v48 = vmax.f32 %v10431_v35, 0.0  ;;  %v325_v21 = vld [vmem:[%s10343_s30 + $0x168] sm:$0xff] }
  0x1a   : > { %18889 = vst [vmem:[#allocation14_spill] sm:$0xff] %v10404_v28  ;;  %v767_v46 = vrot.slane %v10458_v42, 1  ;;  %v18298_v49 = vmax.f32 %v10434_v36, 0.0  ;;  %v760_v50 = vrot.slane %v10444_v38, 1  ;;  %v10471_v51 = vrot.slane %v10415_v31, 1  ;;  %v329_v7 = vld [vmem:[%s10343_s30 + $0x188] sm:$0xff] }
  0x1b   : > { %18890 = vst [vmem:[#allocation15_spill] sm:$0xff] %v10410_v29  ;;  %v18300_v53 = vmax.f32 %v10461_v43, 0.0  ;;  %v10481_v54 = vsel %vm717_vm2, %v10447_v39, %v770_v41  ;;  %v10485_v55 = vsel %vm717_vm2, %v770_v41, %v10320_v2  ;;  %v10491_v56 = vsel %vm507_vm0, %v18299_v44, 0.0  ;;  %v10545_v41 = vld [vmem:[%s10343_s30 + $0x170] sm:$0xff]  ;;  %v357_v29 = vld [vmem:[%s10343_s30 + $0x268] sm:$0xff] }
  0x1c   : > { %18891 = vst [vmem:[#allocation16_spill] sm:$0xff] %v10413_v30  ;;  %v10493_v57 = vmax.f32 %v317_v47, 0.0  ;;  %v10499_v58 = vsel %vm717_vm2, %v763_v45, %v10320_v2  ;;  %v10503_v59 = vsel %vm717_vm2, %v767_v46, %v10447_v39  ;;  %v10509_v60 = vsel %vm507_vm0, %v18297_v48, 0.0  ;;  %v10646_v30 = vld [vmem:[%s10343_s30 + $0x1a0] sm:$0xff] }
  0x1d   : > { %18892 = vst [vmem:[#allocation17_spill] sm:$0xff] %v10431_v35  ;;  %v10515_v61 = vsel %vm493_vm1, %v18298_v49, 0.0  ;;  %v10519_v62 = vsel %vm717_vm2, %v760_v50, %v10471_v51  ;;  %v10523_v63 = vsel %vm717_vm2, %v10471_v51, %v763_v45  ;;  %v10525_v0 = vmax.f32 %v313_v52, 0.0  ;;  %v10548_v45 = vld [vmem:[%s10343_s30 + $0x160] sm:$0xff]  ;;  %v321_v49 = vld [vmem:[%s10343_s30 + $0x148] sm:$0xff] }
  0x1e   : > { %18893 = vst [vmem:[#allocation18_spill] sm:$0xff] %v10434_v36  ;;  %v10535_v19 = vpack.i.bf16 %v10485_v55, %v10481_v54  ;;  %v10541_v20 = vsel %vm493_vm1, %v18300_v53, 0.0  ;;  %v777_v22 = vrot.slane %v10491_v56, 1  ;;  %v10552_v46 = vpack.i.bf16 %v10503_v59, %v10499_v58 }
  0x1f   : > { %18894 = vst [vmem:[#allocation19_spill] sm:$0xff] %v10438_v37  ;;  %v10555_v47 = vrot.slane %v10493_v57, 1  ;;  %v784_v50 = vrot.slane %v10509_v60, 1  ;;  %v781_v52 = vrot.slane %v10515_v61, 1  ;;  %v10561_v48 = vpack.i.bf16 %v10523_v63, %v10519_v62 }
  0x20   : > { %18895 = vst [vmem:[#allocation20_spill] sm:$0xff] %v10447_v39  ;;  %8407 = vrot.lane.b32.xlu2 %v10438_v37, %s10264_s27  ;;  %8402 = vrot.lane.b32.xlu1 %v10451_v40, %s10264_s27  ;;  %v18314_v44 = vmax.f32 %v10528_v6, 0.0  ;;  %v774_v25 = vrot.slane %v10541_v20, 1  ;;  %v10568_v34 = vrot.slane %v10525_v0, 1  ;;  %v10575_v11 = vsel %vm717_vm2, %v777_v22, %v10320_v2  ;;  %v341_v37 = vld [vmem:[%s10343_s30 + $0x1e8] sm:$0xff] }
  0x21   : > { %18896 = vst [vmem:[#allocation21_spill] sm:$0xff] %v10451_v40  ;;  %8397 = vrot.lane.b32.xlu0 %v10328_v4, %s10264_s27  ;;  %v10583_v1 = vsel %vm717_vm2, %v10555_v47, %v784_v50  ;;  %v10587_v23 = vsel %vm717_vm2, %v784_v50, %v10320_v2  ;;  %v10591_v10 = vsel %vm717_vm2, %v781_v52, %v10555_v47  ;;  %v10593_v53 = vmax.f32 %v321_v49, 0.0  ;;  %v10612_v49 = vld [vmem:[%s10343_s30 + $0x190] sm:$0xff] }
  0x22   : > { %18897 = vst [vmem:[#allocation22_spill] sm:$0xff] %v10461_v43  ;;  %v10601_v35 = vsel %vm493_vm1, %v18314_v44, 0.0  ;;  %v18918_v36 = vmax.f32 %v10531_v14, 0.0  ;;  %v10609_v52 = vmax.f32 %v325_v21, 0.0  ;;  %v18922_v44 = vmax.f32 %v10545_v41, 0.0 }
  0x23   : > { %18898 = vst [vmem:[#allocation23_spill] sm:$0xff] %v10471_v51  ;;  %v18923_v21 = vmax.f32 %v10548_v45, 0.0  ;;  %v333_v51 = vld [vmem:[%s10343_s30 + $0x1a8] sm:$0xff]  ;;  %v18935_v43 = vmax.f32 %v10612_v49, 0.0 }
  0x24   : > { %18899 = vst [vmem:[#allocation24_spill] sm:$0xff] %v10481_v54  ;;  %v10607_v50 = vsel %vm507_vm0, %v18918_v36, 0.0  ;;  %v10662_v15 = vrot.slane %v10609_v52, 1 }
  0x25   : > { %18900 = vst [vmem:[#allocation25_spill] sm:$0xff] %v10485_v55  ;;  %v10632_v36 = vsel %vm493_vm1, %v18923_v21, 0.0  ;;  %v791_v21 = vrot.slane %v10607_v50, 1 }
  0x26   : > { %18901 = vst [vmem:[#allocation26_spill] sm:$0xff] %v10499_v58  ;;  %v795_v12 = vrot.slane %v10632_v36, 1  ;;  %v353_v58 = vld [vmem:[%s10343_s30 + $0x248] sm:$0xff] }
  0x27   : > { %18902 = vst [vmem:[#allocation27_spill] sm:$0xff] %v10503_v59  ;;  %v10685_v17 = vsel %vm717_vm2, %v791_v21, %v10320_v2 }
  0x28   : > { %18903 = vst [vmem:[#allocation28_spill] sm:$0xff] %v10519_v62  ;;  %8422 = vrot.lane.b32.xlu2 %v10535_v19, %s10264_s27  ;;  %8417 = vrot.lane.b32.xlu1 %v10552_v46, %s10264_s27 }
  0x29   : > { %18904 = vst [vmem:[#allocation29_spill] sm:$0xff] %v10523_v63  ;;  %8412 = vrot.lane.b32.xlu0 %v10561_v48, %s10264_s27 }
  0x2a   : > { %18905 = vst [vmem:[#allocation30_spill] sm:$0xff] %v10528_v6  ;;  %v10620_v6 = vsel %vm717_vm2, %v10568_v34, %v777_v22  ;;  %v10640_v22 = vpack.i.bf16 %v10591_v10, %v10575_v11 }
  0x2b   : > { %18906 = vst [vmem:[#allocation31_spill] sm:$0xff] %v10531_v14  ;;  %v10626_v14 = vsel %vm507_vm0, %v18922_v44, 0.0  ;;  %v788_v44 = vrot.slane %v10601_v35, 1 }
  0x2c   : > { %18907 = vst [vmem:[#allocation32_spill] sm:$0xff] %v10535_v19  ;;  %v798_v26 = vrot.slane %v10626_v14, 1 }
  0x2d   : > { %18908 = vst [vmem:[#allocation33_spill] sm:$0xff] %v10545_v41  ;;  %v10643_v41 = vld [vmem:[%s10343_s30 + $0x1b0] sm:$0xff] }
  0x2e   : > { %18909 = vst [vmem:[#allocation34_spill] sm:$0xff] %v10548_v45  ;;  %v10650_v45 = vrot.slane %v10593_v53, 1 }
  0x2f   : > { %18910 = vst [vmem:[#allocation35_spill] sm:$0xff] %v10552_v46 }
  0x30   : > { %18911 = vst [vmem:[#allocation36_spill] sm:$0xff] %v10555_v47  ;;  %v10616_v47 = vsel %vm717_vm2, %v774_v25, %v10568_v34  ;;  %v10636_v25 = vpack.i.bf16 %v10587_v23, %v10583_v1  ;;  %8432 = vrot.lane.b32.xlu1 %v10640_v22, %s10264_s27  ;;  %v10677_v8 = vsel %vm717_vm2, %v788_v44, %v10650_v45 }
  0x31   : > { %18912 = vst [vmem:[#allocation37_spill] sm:$0xff] %v10561_v48  ;;  %v10659_v39 = vpack.i.bf16 %v10620_v6, %v10616_v47  ;;  %v10681_v13 = vsel %vm717_vm2, %v10650_v45, %v791_v21  ;;  %v10697_v44 = vsel %vm717_vm2, %v10662_v15, %v798_v26  ;;  %v10705_v21 = vsel %vm717_vm2, %v795_v12, %v10662_v15  ;;  %v10727_v12 = vld [vmem:[%s10343_s30 + $0x1f0] sm:$0xff]  ;;  %v10752_v48 = vld [vmem:[%s10343_s30 + $0x1c0] sm:$0xff] }
  0x32   : > { %18913 = vst [vmem:[#allocation38_spill] sm:$0xff] %v10568_v34  ;;  %v10654_v34 = vld [vmem:[%s10343_s30 + $0x180] sm:$0xff]  ;;  %8437 = vrot.lane.b32.xlu2 %v10636_v25, %s10264_s27 }
  0x33   : > { %18914 = vst [vmem:[#allocation39_spill] sm:$0xff] %v10575_v11  ;;  %8427 = vrot.lane.b32.xlu0 %v10659_v39, %s10264_s27 }
  0x34   : > { %18915 = vst [vmem:[#allocation40_spill] sm:$0xff] %v10583_v1 }
  0x35   : > { %18916 = vst [vmem:[#allocation41_spill] sm:$0xff] %v10587_v23  ;;  %v10769_v23 = vmax.f32 %v341_v37, 0.0 }
  0x36   : > { %18917 = vst [vmem:[#allocation42_spill] sm:$0xff] %v10591_v10 }
  0x37   : > { %18919 = vst [vmem:[#allocation43_spill] sm:$0xff] %v10612_v49  ;;  %v10707_v49 = vmax.f32 %v333_v51, 0.0  ;;  %v10731_v51 = vpack.i.bf16 %v10681_v13, %v10677_v8 }
  0x38   : > { %18920 = vst [vmem:[#allocation44_spill] sm:$0xff] %v10616_v47  ;;  %v345_v47 = vld [vmem:[%s10343_s30 + $0x208] sm:$0xff] }
  0x39   : > { %18921 = vst [vmem:[#allocation45_spill] sm:$0xff] %v10620_v6  ;;  %v10883_v11 = vmax.f32 %v345_v47, 0.0 }
  0x3a   : > { %18924 = vst [vmem:[#allocation46_spill] sm:$0xff] %v10636_v25  ;;  %v10691_v25 = vsel %vm507_vm0, %v18935_v43, 0.0  ;;  %v10710_v43 = vld [vmem:[%s10343_s30 + $0x1d0] sm:$0xff] }
  0x3b   : > { %18925 = vst [vmem:[#allocation47_spill] sm:$0xff] %v10640_v22  ;;  %v10712_v22 = vmax.f32 %v329_v7, 0.0  ;;  %v18944_v7 = vmax.f32 %v10654_v34, 0.0  ;;  %v18952_v10 = vmax.f32 %v10710_v43, 0.0  ;;  %8442 = vrot.lane.b32.xlu0 %v10731_v51, %s10264_s27 }
  0x3c   : > { %18926 = vst [vmem:[#allocation48_spill] sm:$0xff] %v10643_v41 }
  0x3d   : > { %18927 = vst [vmem:[#allocation49_spill] sm:$0xff] %v10646_v30 }
  0x3e   : > { %18928 = vst [vmem:[#allocation50_spill] sm:$0xff] %v10650_v45  ;;  %v10701_v45 = vsel %vm717_vm2, %v798_v26, %v10320_v2  ;;  %v18941_v26 = vmax.f32 %v10646_v30, 0.0 }
  0x3f   : > { %18929 = vst [vmem:[#allocation51_spill] sm:$0xff] %v10654_v34  ;;  %v10744_v30 = vpack.i.bf16 %v10701_v45, %v10697_v44  ;;  %v10783_v34 = vsel %vm507_vm0, %v18952_v10, 0.0 }
  0x40   : > { %18930 = vst [vmem:[#allocation52_spill] sm:$0xff] %v10659_v39  ;;  %v18940_v39 = vmax.f32 %v10643_v41, 0.0  ;;  %v10724_v46 = vsel %vm493_vm1, %v18941_v26, 0.0  ;;  %v10737_v41 = vsel %vm493_vm1, %v18944_v7, 0.0  ;;  %v10748_v26 = vpack.i.bf16 %v10705_v21, %v10685_v17 }
  0x41   : > { %18931 = vst [vmem:[#allocation53_spill] sm:$0xff] %v10662_v15  ;;  %v805_v15 = vrot.slane %v10691_v25, 1  ;;  %v10757_v7 = vrot.slane %v10707_v49, 1  ;;  %v809_v1 = vrot.slane %v10724_v46, 1  ;;  %8452 = vrot.lane.b32.xlu2 %v10744_v30, %s10264_s27 }
  0x42   : > { %18932 = vst [vmem:[#allocation54_spill] sm:$0xff] %v10677_v8  ;;  %v10718_v19 = vsel %vm507_vm0, %v18940_v39, 0.0  ;;  %v10740_v39 = vld [vmem:[%s10343_s30 + $0x1e0] sm:$0xff]  ;;  %v337_v8 = vld [vmem:[%s10343_s30 + $0x1c8] sm:$0xff]  ;;  %8447 = vrot.lane.b32.xlu1 %v10748_v26, %s10264_s27 }
  0x43   : > { %18933 = vst [vmem:[#allocation55_spill] sm:$0xff] %v10681_v13  ;;  %v812_v40 = vrot.slane %v10718_v19, 1 }
  0x44   : > { %18934 = vst [vmem:[#allocation56_spill] sm:$0xff] %v10685_v17 }
  0x45   : > { %18936 = vst [vmem:[#allocation57_spill] sm:$0xff] %v10697_v44  ;;  %v10777_v44 = vsel %vm717_vm2, %v805_v15, %v10320_v2  ;;  %v10789_v37 = vsel %vm717_vm2, %v10757_v7, %v812_v40 }
  0x46   : > { %18937 = vst [vmem:[#allocation58_spill] sm:$0xff] %v10701_v45  ;;  %v802_v45 = vrot.slane %v10737_v41, 1 }
  0x47   : > { %18938 = vst [vmem:[#allocation59_spill] sm:$0xff] %v10705_v21  ;;  %v10764_v21 = vrot.slane %v10712_v22, 1 }
  0x48   : > { %18939 = vst [vmem:[#allocation60_spill] sm:$0xff] %v10710_v43  ;;  %v18956_v43 = vmax.f32 %v10727_v12, 0.0 }
  0x49   : > { %18942 = vst [vmem:[#allocation61_spill] sm:$0xff] %v10727_v12  ;;  %v10811_v17 = vsel %vm717_vm2, %v10764_v21, %v805_v15  ;;  %v10837_v15 = vld [vmem:[%s10343_s30 + $0x230] sm:$0xff] }
  0x4a   : > { %18943 = vst [vmem:[#allocation62_spill] sm:$0xff] %v10731_v51  ;;  %v10803_v10 = vsel %vm507_vm0, %v18956_v43, 0.0  ;;  %v10807_v51 = vsel %vm717_vm2, %v802_v45, %v10764_v21  ;;  %v10825_v43 = vld [vmem:[%s10343_s30 + $0x210] sm:$0xff]  ;;  %v18962_v45 = vmax.f32 %v10752_v48, 0.0 }
  0x4b   : > { %18945 = vst [vmem:[#allocation63_spill] sm:$0xff] %v10740_v39  ;;  %v10854_v54 = vpack.i.bf16 %v10811_v17, %v10807_v51 }
  0x4c   : > { %18946 = vst [vmem:[#allocation64_spill] sm:$0xff] %v10744_v30  ;;  %v10793_v30 = vsel %vm717_vm2, %v812_v40, %v10320_v2  ;;  %v10813_v40 = vmax.f32 %v337_v8, 0.0  ;;  %v10831_v13 = vsel %vm493_vm1, %v18962_v45, 0.0  ;;  %v10834_v8 = vrot.slane %v10769_v23, 1 }
  0x4d   : > { %18947 = vst [vmem:[#allocation65_spill] sm:$0xff] %v10748_v26  ;;  %v10797_v26 = vsel %vm717_vm2, %v809_v1, %v10757_v7  ;;  %v18959_v1 = vmax.f32 %v10740_v39, 0.0  ;;  %v10840_v39 = vld [vmem:[%s10343_s30 + $0x220] sm:$0xff]  ;;  %v826_v45 = vrot.slane %v10803_v10, 1  ;;  %8457 = vrot.lane.b32.xlu0 %v10854_v54, %s10264_s27 }
  0x4e   : > { %18948 = vst [vmem:[#allocation66_spill] sm:$0xff] %v10752_v48  ;;  %v819_v48 = vrot.slane %v10783_v34, 1 }
  0x4f   : > { %18949 = vst [vmem:[#allocation67_spill] sm:$0xff] %v10757_v7  ;;  %v10819_v12 = vsel %vm493_vm1, %v18959_v1, 0.0  ;;  %v10822_v7 = vld [vmem:[%s10343_s30 + $0x200] sm:$0xff]  ;;  %v10844_v1 = vpack.i.bf16 %v10793_v30, %v10789_v37  ;;  %v10877_v55 = vsel %vm717_vm2, %v826_v45, %v10320_v2 }
  0x50   : > { %18950 = vst [vmem:[#allocation68_spill] sm:$0xff] %v10764_v21  ;;  %v10848_v21 = vpack.i.bf16 %v10797_v26, %v10777_v44  ;;  %v823_v59 = vrot.slane %v10819_v12, 1  ;;  %v10881_v6 = vsel %vm717_vm2, %v819_v48, %v10320_v2 }
  0x51   : > { %18951 = vst [vmem:[#allocation69_spill] sm:$0xff] %v10777_v44  ;;  %v349_v44 = vld [vmem:[%s10343_s30 + $0x228] sm:$0xff]  ;;  %8467 = vrot.lane.b32.xlu2 %v10844_v1, %s10264_s27 }
  0x52   : > { %18953 = vst [vmem:[#allocation70_spill] sm:$0xff] %v10789_v37  ;;  %8462 = vrot.lane.b32.xlu1 %v10848_v21, %s10264_s27  ;;  %v10873_v37 = vsel %vm717_vm2, %v10834_v8, %v826_v45 }
  0x53   : > { %18954 = vst [vmem:[#allocation71_spill] sm:$0xff] %v10793_v30  ;;  %v816_v30 = vrot.slane %v10831_v13, 1 }
  0x54   : > { %18955 = vst [vmem:[#allocation72_spill] sm:$0xff] %v10797_v26  ;;  %v10862_v26 = vrot.slane %v10813_v40, 1 }
  0x55   : > { %18957 = vst [vmem:[#allocation73_spill] sm:$0xff] %v10807_v51  ;;  %v18977_v51 = vmax.f32 %v10825_v43, 0.0 }
  0x56   : > { %18958 = vst [vmem:[#allocation74_spill] sm:$0xff] %v10811_v17  ;;  %v10903_v17 = vmax.f32 %v349_v44, 0.0 }
  0x57   : > { %18960 = vst [vmem:[#allocation75_spill] sm:$0xff] %v10822_v7  ;;  %v10901_v47 = vsel %vm507_vm0, %v18977_v51, 0.0  ;;  %v10930_v51 = vld [vmem:[%s10343_s30 + $0x250] sm:$0xff] }
  0x58   : > { %18961 = vst [vmem:[#allocation76_spill] sm:$0xff] %v10825_v43  ;;  %v18983_v43 = vmax.f32 %v10840_v39, 0.0 }
  0x59   : > { %18963 = vst [vmem:[#allocation77_spill] sm:$0xff] %v10834_v8 }
  0x5a   : > { %18964 = vst [vmem:[#allocation78_spill] sm:$0xff] %v10837_v15  ;;  %v10923_v44 = vsel %vm493_vm1, %v18983_v43, 0.0  ;;  %v10944_v43 = vrot.slane %v10883_v11, 1 }
  0x5b   : > { %18965 = vst [vmem:[#allocation79_spill] sm:$0xff] %v10840_v39 }
  0x5c   : > { %18966 = vst [vmem:[#allocation80_spill] sm:$0xff] %v10844_v1  ;;  %v10889_v1 = vsel %vm717_vm2, %v823_v59, %v10834_v8  ;;  %v10911_v59 = vsel %vm717_vm2, %v10862_v26, %v819_v48  ;;  %v10933_v48 = vld [vmem:[%s10343_s30 + $0x270] sm:$0xff]  ;;  %v833_v8 = vrot.slane %v10901_v47, 1 }
  0x5d   : > { %18967 = vst [vmem:[#allocation81_spill] sm:$0xff] %v10848_v21  ;;  %v18975_v21 = vmax.f32 %v10822_v7, 0.0  ;;  %v18982_v7 = vmax.f32 %v10837_v15, 0.0  ;;  %v10936_v15 = vld [vmem:[%s10343_s30 + $0x260] sm:$0xff] }
  0x5e   : > { %18968 = vst [vmem:[#allocation82_spill] sm:$0xff] %v10854_v54  ;;  %v10907_v54 = vsel %vm717_vm2, %v816_v30, %v10862_v26  ;;  %v10927_v30 = vpack.i.bf16 %v10877_v55, %v10873_v37  ;;  %v10979_v28 = vsel %vm717_vm2, %v833_v8, %v10320_v2 }
  0x5f   : > { %18969 = vst [vmem:[#allocation83_spill] sm:$0xff] %v10862_v26  ;;  %v10895_v45 = vsel %vm493_vm1, %v18975_v21, 0.0  ;;  %v10917_v21 = vsel %vm507_vm0, %v18982_v7, 0.0  ;;  %v10940_v7 = vpack.i.bf16 %v10889_v1, %v10881_v6  ;;  %v10948_v26 = vld [vmem:[%s10343_s30 + $0x240] sm:$0xff] }
  0x60   : > { %18970 = vst [vmem:[#allocation84_spill] sm:$0xff] %v10873_v37  ;;  %v830_v39 = vrot.slane %v10895_v45, 1  ;;  %v10952_v37 = vpack.i.bf16 %v10911_v59, %v10907_v54  ;;  %v840_v27 = vrot.slane %v10917_v21, 1  ;;  %8482 = vrot.lane.b32.xlu2 %v10927_v30, %s10264_s27 }
  0x61   : > { %18971 = vst [vmem:[#allocation85_spill] sm:$0xff] %v10877_v55  ;;  %v10955_v55 = vrot.slane %v10903_v17, 1  ;;  %8477 = vrot.lane.b32.xlu1 %v10940_v7, %s10264_s27 }
  0x62   : > { %18972 = vst [vmem:[#allocation86_spill] sm:$0xff] %v10881_v6  ;;  %v10975_v6 = vsel %vm717_vm2, %v10944_v43, %v833_v8  ;;  %8472 = vrot.lane.b32.xlu0 %v10952_v37, %s10264_s27  ;;  %v19002_v8 = vmax.f32 %v10930_v51, 0.0 }
  0x63   : > { %18973 = vst [vmem:[#allocation87_spill] sm:$0xff] %v10883_v11  ;;  %v10985_v63 = vsel %vm717_vm2, %v10955_v55, %v840_v27 }
  0x64   : > { %18974 = vst [vmem:[#allocation88_spill] sm:$0xff] %v10889_v1  ;;  %v837_v1 = vrot.slane %v10923_v44, 1 }
  0x65   : > { %18976 = vst [vmem:[#allocation89_spill] sm:$0xff] %v10895_v45 }
  0x66   : > { %18978 = vst [vmem:[#allocation90_spill] sm:$0xff] %v10901_v47  ;;  %v10993_v62 = vsel %vm717_vm2, %v837_v1, %v10955_v55  ;;  %v19005_v1 = vmax.f32 %v10936_v15, 0.0 }
  0x67   : > { %18979 = vst [vmem:[#allocation91_spill] sm:$0xff] %v10903_v17 }
  0x68   : > { %18980 = vst [vmem:[#allocation92_spill] sm:$0xff] %v10907_v54  ;;  %v10971_v54 = vsel %vm717_vm2, %v830_v39, %v10944_v43  ;;  %v10989_v39 = vsel %vm717_vm2, %v840_v27, %v10320_v2 }
  0x69   : > { %18981 = vst [vmem:[#allocation93_spill] sm:$0xff] %v10911_v59 }
  0x6a   : > { %18984 = vst [vmem:[#allocation94_spill] sm:$0xff] %v10923_v44 }
  0x6b   : > { %18985 = vst [vmem:[#allocation95_spill] sm:$0xff] %v10927_v30  ;;  %v10997_v30 = vmax.f32 %v353_v58, 0.0  ;;  %v19007_v58 = vmax.f32 %v10948_v26, 0.0 }
  0x6c   : > { %18986 = vst [vmem:[#allocation96_spill] sm:$0xff] %v10930_v51 }
  0x6d   : > { %18987 = vst [vmem:[#allocation97_spill] sm:$0xff] %v10933_v48  ;;  %v11021_v51 = vsel %vm493_vm1, %v19007_v58, 0.0 }
  0x6e   : > { %18988 = vst [vmem:[#allocation98_spill] sm:$0xff] %v10936_v15  ;;  %v11039_v15 = vld [vmem:[%s10343_s30 + $0x280] sm:$0xff] }
  0x6f   : > { %18989 = vst [vmem:[#allocation99_spill] sm:$0xff] %v10940_v7  ;;  %v11003_v7 = vsel %vm507_vm0, %v19002_v8, 0.0  ;;  %v11024_v8 = vld [vmem:[%s10343_s30 + $0x290] sm:$0xff] }
  0x70   : > { %18990 = vst [vmem:[#allocation100_spill] sm:$0xff] %v10944_v43  ;;  %v10995_v43 = vmax.f32 %v357_v29, 0.0  ;;  %v11015_v29 = vsel %vm493_vm1, %v19005_v1, 0.0  ;;  %v11036_v1 = vpack.i.bf16 %v10993_v62, %v10979_v28 }
  0x71   : > { %18991 = vst [vmem:[#allocation101_spill] sm:$0xff] %v10948_v26  ;;  %v847_v26 = vrot.slane %v11003_v7, 1 }
  0x72   : > { %18992 = vst [vmem:[#allocation102_spill] sm:$0xff] %v10952_v37  ;;  %v19004_v37 = vmax.f32 %v10933_v48, 0.0  ;;  %v11028_v48 = vpack.i.bf16 %v10975_v6, %v10971_v54  ;;  %v11043_v58 = vrot.slane %v10995_v43, 1  ;;  %8492 = vrot.lane.b32.xlu1 %v11036_v1, %s10264_s27 }
  0x73   : > { %18993 = vst [vmem:[#allocation103_spill] sm:$0xff] %v10955_v55 }
  0x74   : > { %18994 = vst [vmem:[#allocation104_spill] sm:$0xff] %v10971_v54  ;;  %v11009_v27 = vsel %vm507_vm0, %v19004_v37, 0.0  ;;  %v11032_v37 = vpack.i.bf16 %v10989_v39, %v10985_v63  ;;  %v851_v54 = vrot.slane %v11015_v29, 1  ;;  %8487 = vrot.lane.b32.xlu0 %v11028_v48, %s10264_s27 }
  0x75   : > { %18995 = vst [vmem:[#allocation105_spill] sm:$0xff] %v10975_v6  ;;  %v854_v55 = vrot.slane %v11009_v27, 1  ;;  %v844_v6 = vrot.slane %v11021_v51, 1 }
  0x76   : > { %18996 = vst [vmem:[#allocation106_spill] sm:$0xff] %v10979_v28  ;;  %8497 = vrot.lane.b32.xlu2 %v11032_v37, %s10264_s27  ;;  %v11070_v28 = vsel %vm717_vm2, %v847_v26, %v10320_v2 }
  0x77   : > { %18997 = vst [vmem:[#allocation107_spill] sm:$0xff] %v10985_v63  ;;  %v11049_v63 = vrot.slane %v10997_v30, 1  ;;  %v11062_v59 = vsel %vm717_vm2, %v11043_v58, %v854_v55 }
  0x78   : > { %18998 = vst [vmem:[#allocation108_spill] sm:$0xff] %v10989_v39  ;;  %v11074_v39 = vsel %vm717_vm2, %v851_v54, %v11043_v58 }
  0x79   : > { %18999 = vst [vmem:[#allocation109_spill] sm:$0xff] %v10993_v62  ;;  %v361_v62 = vld [vmem:[%s10343_s30 + $0x288] sm:$0xff] }
  0x7a   : > { %19000 = vst [vmem:[#allocation110_spill] sm:$0xff] %v10995_v43 }
  0x7b   : > { %19001 = vst [vmem:[#allocation111_spill] sm:$0xff] %v10997_v30  ;;  %v11066_v30 = vsel %vm717_vm2, %v854_v55, %v10320_v2  ;;  %v19023_v55 = vmax.f32 %v11024_v8, 0.0 }
  0x7c   : > { %19003 = vst [vmem:[#allocation112_spill] sm:$0xff] %v11003_v7 }
  0x7d   : > { %19006 = vst [vmem:[#allocation113_spill] sm:$0xff] %v11015_v29  ;;  %v19025_v29 = vmax.f32 %v11039_v15, 0.0 }
  0x7e   : > { %19008 = vst [vmem:[#allocation114_spill] sm:$0xff] %v11021_v51  ;;  %v11090_v51 = vsel %vm507_vm0, %v19023_v55, 0.0 }
  0x7f   : > { %19009 = vst [vmem:[#allocation115_spill] sm:$0xff] %v11024_v8  ;;  %v11096_v54 = vsel %vm493_vm1, %v19025_v29, 0.0  ;;  %v861_v55 = vrot.slane %v11090_v51, 1 }
  0x80   : > { %19010 = vst [vmem:[#allocation116_spill] sm:$0xff] %v11028_v48  ;;  %v11084_v48 = vmax.f32 %v361_v62, 0.0  ;;  %v11104_v62 = vpack.i.bf16 %v11074_v39, %v11070_v28  ;;  %v858_v8 = vrot.slane %v11096_v54, 1 }
  0x81   : > { %19011 = vst [vmem:[#allocation117_spill] sm:$0xff] %v11032_v37  ;;  %v11078_v37 = vsel %vm717_vm2, %v844_v6, %v11049_v63  ;;  %v11100_v6 = vpack.i.bf16 %v11066_v30, %v11062_v59  ;;  %v11123_v29 = vsel %vm717_vm2, %v861_v55, %v10320_v2 }
  0x82   : > { %19012 = vst [vmem:[#allocation118_spill] sm:$0xff] %v11036_v1  ;;  %v11082_v1 = vsel %vm717_vm2, %v11049_v63, %v847_v26  ;;  %8507 = vrot.lane.b32.xlu1 %v11104_v62, %s10264_s27  ;;  %v11135_v3 = vpack.i.bf16 %v10320_v2, %v11123_v29 }
  0x83   : > { %19013 = vst [vmem:[#allocation119_spill] sm:$0xff] %v11039_v15  ;;  %v11108_v26 = vpack.i.bf16 %v11082_v1, %v11078_v37  ;;  %v11113_v15 = vrot.slane %v11084_v48, 1  ;;  %8512 = vrot.lane.b32.xlu2 %v11100_v6, %s10264_s27 }
  0x84   : > { %19014 = vst [vmem:[#allocation120_spill] sm:$0xff] %v11043_v58 }
  0x85   : > { %19015 = vst [vmem:[#allocation121_spill] sm:$0xff] %v11049_v63  ;;  %8502 = vrot.lane.b32.xlu0 %v11108_v26, %s10264_s27  ;;  %v11127_v58 = vsel %vm717_vm2, %v858_v8, %v11113_v15  ;;  %v11131_v63 = vsel %vm717_vm2, %v11113_v15, %v861_v55  ;;  %v19036_v8 = vmov 0.0  }
  0x86   : > { %19016 = vst [vmem:[#allocation122_spill] sm:$0xff] %v11062_v59  ;;  %v11139_v5 = vpack.i.bf16 %v11131_v63, %v11127_v58  ;;  %v11152_v55 = vrot.slane %v19036_v8, 2 }
  0x87   : > { %19017 = vst [vmem:[#allocation123_spill] sm:$0xff] %v11066_v30  ;;  %v932_v30 = vrot.slane %v10421_v32, 2 }
  0x88   : > { %19018 = vst [vmem:[#allocation124_spill] sm:$0xff] %v11070_v28  ;;  %v11160_v2 = vpack.i.bf16 %v11152_v55, %v11152_v55 }
  0x89   : > { %19019 = vst [vmem:[#allocation125_spill] sm:$0xff] %v11074_v39 }
  0x8a   : > { %19020 = vst [vmem:[#allocation126_spill] sm:$0xff] %v11078_v37  ;;  %8522 = vrot.lane.b32.xlu1 %v11135_v3, %s10264_s27  ;;  %v929_v37 = vrot.slane %v10444_v38, 2 }
  0x8b   : > { %19021 = vst [vmem:[#allocation127_spill] sm:$0xff] %v11082_v1  ;;  %8527 = vrot.lane.b32.xlu2 %v10328_v4, %s10264_s27  ;;  %v11229_v1 = vpop.permute.xlu0 %8367 }
  0x8c   : > { %19022 = vst [vmem:[#allocation128_spill] sm:$0xff] %v11084_v48 }
  0x8d   : > { %19024 = vst [vmem:[#allocation129_spill] sm:$0xff] %v11090_v51  ;;  %8517 = vrot.lane.b32.xlu0 %v11139_v5, %s10264_s27 }
  0x8e   : > { %19026 = vst [vmem:[#allocation130_spill] sm:$0xff] %v11096_v54 }
  0x8f   : > { %19027 = vst [vmem:[#allocation131_spill] sm:$0xff] %v11100_v6  ;;  %v922_v6 = vrot.slane %v10381_v18, 2 }
  0x90   : > { %19028 = vst [vmem:[#allocation132_spill] sm:$0xff] %v11104_v62  ;;  %v925_v62 = vrot.slane %v10372_v16, 2 }
  0x91   : > { %19029 = vst [vmem:[#allocation133_spill] sm:$0xff] %v11108_v26 }
  0x92   : > { %19030 = vst [vmem:[#allocation134_spill] sm:$0xff] %v11113_v15  ;;  %8537 = vrot.lane.b32.xlu1 %v10328_v4, %s10264_s27  ;;  %v11156_v15 = vpop.permute.xlu2 %8387 }
  0x93   : > { %19031 = vst [vmem:[#allocation135_spill] sm:$0xff] %v11123_v29  ;;  %8542 = vrot.lane.b32.xlu2 %v10328_v4, %s10264_s27  ;;  %v937_v29 = vrot.slane %v10388_v24, 2 }
  0x94   : > { %19032 = vst [vmem:[#allocation136_spill] sm:$0xff] %v11127_v58 }
  0x95   : > { %19033 = vst [vmem:[#allocation137_spill] sm:$0xff] %v11131_v63  ;;  %8532 = vrot.lane.b32.xlu0 %v10328_v4, %s10264_s27  ;;  %v939_v63 = vrot.slane %v10427_v33, 2 }
  0x96   : > { %19034 = vst [vmem:[#allocation138_spill] sm:$0xff] %v11135_v3  ;;  %v923_v3 = vrot.slane %v10354_v9, 2 }
  0x97   : > { %19035 = vst [vmem:[#allocation139_spill] sm:$0xff] %v11139_v5 }
  0x98   : > { %19037 = vst [vmem:[#allocation140_spill] sm:$0xff] %v11152_v55  ;;  %v11180_v26 = vsel %vm886_vm3, %v923_v3, %v925_v62 }
  0x99   : > { %19038 = vst [vmem:[#allocation141_spill] sm:$0xff] %v11156_v15  ;;  %v11187_v15 = vsel %vm886_vm3, %v922_v6, %v923_v3  ;;  %v930_v3 = vrot.slane %v10415_v31, 2  ;;  %v11206_v6 = vsel %vm886_vm3, %v937_v29, %v939_v63 }
  0x9a   : > { %19039 = vst [vmem:[#allocation142_spill] sm:$0xff] %v11160_v2  ;;  %8552 = vrot.lane.b32.xlu1 %v11160_v2, %s10265_s8  ;;  %v11168_v5 = vpop.permute.xlu2 %8392  ;;  %v8581_v58 = vpack.i.bf16 %v11187_v15, %v11152_v55 }
  0x9b   : > { %8557 = vrot.lane.b32.xlu2 %v11160_v2, %s10265_s8  ;;  %19040 = vst [vmem:[#allocation143_spill] sm:$0xff] %v11168_v5  ;;  %v11184_v5 = vsel %vm886_vm3, %v925_v62, %v11152_v55  ;;  %v936_v62 = vrot.slane %v10458_v42, 2  ;;  %v11227_v28 = vsel %vm886_vm3, %v930_v3, %v932_v30 }
  0x9c   : > { %19041 = vst [vmem:[#allocation144_spill] sm:$0xff] %v11180_v26  ;;  %v8586_v39 = vpack.i.bf16 %v11184_v5, %v11180_v26  ;;  %v11214_v26 = vsel %vm886_vm3, %v932_v30, %v11152_v55  ;;  %v950_v30 = vrot.slane %v10515_v61, 2 }
  0x9d   : > { %8547 = vrot.lane.b32.xlu0 %v11160_v2, %s10265_s8  ;;  %19042 = vst [vmem:[#allocation145_spill] sm:$0xff] %v11184_v5  ;;  %v11224_v5 = vsel %vm886_vm3, %v929_v37, %v930_v3  ;;  %v946_v37 = vrot.slane %v10491_v56, 2  ;;  %v943_v3 = vrot.slane %v10541_v20, 2 }
  0x9e   : > { %19043 = vst [vmem:[#allocation146_spill] sm:$0xff] %v11187_v15  ;;  %v11217_v15 = vsel %vm886_vm3, %v936_v62, %v937_v29  ;;  %v951_v29 = vrot.slane %v10493_v57, 2  ;;  %v953_v62 = vrot.slane %v10509_v60, 2 }
  0x9f   : > { %19045 = vst [vmem:[#allocation148_spill] sm:$0xff] %v11206_v6  ;;  %v8596_v4 = vpack.i.bf16 %v11217_v15, %v11214_v26 }
  0xa0   : > { %19047 = vst [vmem:[#allocation150_spill] sm:$0xff] %v11214_v26 }
  0xa1   : > { %19048 = vst [vmem:[#allocation151_spill] sm:$0xff] %v11217_v15  ;;  %v11255_v15 = vsel %vm886_vm3, %v946_v37, %v11152_v55 }
  0xa2   : > { %8567 = vrot.lane.b32.xlu1 %v11160_v2, %s10265_s8  ;;  %v11189_v59 = vpop.permute.xlu2 %8407  ;;  %19051 = vst [vmem:[#allocation154_spill] sm:$0xff] %v11224_v5 }
  0xa3   : > { %8572 = vrot.lane.b32.xlu2 %v11160_v2, %s10265_s8  ;;  %19044 = vst [vmem:[#allocation147_spill] sm:$0xff] %v11189_v59  ;;  %v11210_v59 = vsel %vm886_vm3, %v939_v63, %v11152_v55 }
  0xa4   : > { %19046 = vst [vmem:[#allocation149_spill] sm:$0xff] %v11210_v59  ;;  %v8601_v63 = vpack.i.bf16 %v11210_v59, %v11206_v6  ;;  %v11250_v6 = vsel %vm886_vm3, %v953_v62, %v11152_v55  ;;  %v11258_v59 = vsel %vm886_vm3, %v950_v30, %v951_v29  ;;  %v958_v30 = vrot.slane %v10593_v53, 2 }
  0xa5   : > { %8562 = vrot.lane.b32.xlu0 %v11160_v2, %s10265_s8  ;;  %19052 = vst [vmem:[#allocation155_spill] sm:$0xff] %v11227_v28 }
  0xa6   : > { %19053 = vst [vmem:[#allocation156_spill] sm:$0xff] %v11229_v1  ;;  %v944_v1 = vrot.slane %v10525_v0, 2 }
  0xa7   : > { %19055 = vst [vmem:[#allocation158_spill] sm:$0xff] %v11250_v6 }
  0xa8   : > { %19056 = vst [vmem:[#allocation159_spill] sm:$0xff] %v11255_v15  ;;  %v11268_v26 = vsel %vm886_vm3, %v944_v1, %v946_v37  ;;  %v967_v37 = vrot.slane %v10626_v14, 2 }
  0xa9   : > { %19057 = vst [vmem:[#allocation160_spill] sm:$0xff] %v11258_v59 }
  0xaa   : > { %8582 = vrot.lane.b32.xlu1 %v8581_v58, %s10265_s8  ;;  %v11221_v58 = vpop.permute.xlu2 %8422  ;;  %19061 = vst [vmem:[#allocation164_spill] sm:$0xff] %v11268_v26 }
  0xab   : > { %8587 = vrot.lane.b32.xlu2 %v8586_v39, %s10265_s8  ;;  %v11219_v39 = vpop.permute.xlu1 %8377  ;;  %19050 = vst [vmem:[#allocation153_spill] sm:$0xff] %v11221_v58  ;;  %v8591_v58 = vpack.i.bf16 %v11227_v28, %v11224_v5  ;;  %v8611_v28 = vpack.i.bf16 %v11258_v59, %v11255_v15 }
  0xac   : > { %19049 = vst [vmem:[#allocation152_spill] sm:$0xff] %v11219_v39  ;;  %v11246_v39 = vsel %vm886_vm3, %v951_v29, %v953_v62  ;;  %v11270_v62 = vpop.permute.xlu0 %8372  ;;  %v957_v29 = vrot.slane %v10601_v35, 2 }
  0xad   : > { %8577 = vrot.lane.b32.xlu0 %v11160_v2, %s10265_s8  ;;  %19054 = vst [vmem:[#allocation157_spill] sm:$0xff] %v11246_v39 }
  0xae   : > { %19062 = vst [vmem:[#allocation165_spill] sm:$0xff] %v11270_v62  ;;  %v964_v62 = vrot.slane %v10632_v36, 2 }
  0xb2   : > { %8597 = vrot.lane.b32.xlu1 %v8596_v4, %s10265_s8  ;;  %v11265_v4 = vsel %vm886_vm3, %v943_v3, %v944_v1  ;;  %v965_v1 = vrot.slane %v10609_v52, 2 }
  0xb3   : > { %8602 = vrot.lane.b32.xlu2 %v8601_v63, %s10265_s8  ;;  %v11260_v5 = vpop.permute.xlu1 %8382  ;;  %v11262_v63 = vpop.permute.xlu2 %8437  ;;  %19060 = vst [vmem:[#allocation163_spill] sm:$0xff] %v11265_v4  ;;  %v8606_v3 = vpack.i.bf16 %v11268_v26, %v11265_v4 }
  0xb4   : > { %19058 = vst [vmem:[#allocation161_spill] sm:$0xff] %v11260_v5  ;;  %v11287_v5 = vsel %vm886_vm3, %v957_v29, %v958_v30  ;;  %v11294_v59 = vsel %vm886_vm3, %v965_v1, %v967_v37  ;;  %v11311_v4 = vpop.permute.xlu0 %8397 }
  0xb5   : > { %8592 = vrot.lane.b32.xlu0 %v8591_v58, %s10265_s8  ;;  %19059 = vst [vmem:[#allocation162_spill] sm:$0xff] %v11262_v63  ;;  %v8616_v58 = vpack.i.bf16 %v11250_v6, %v11246_v39  ;;  %v960_v63 = vrot.slane %v10607_v50, 2  ;;  %v11298_v6 = vsel %vm886_vm3, %v967_v37, %v11152_v55 }
  0xb6   : > { %19063 = vst [vmem:[#allocation166_spill] sm:$0xff] %v11287_v5  ;;  %v8631_v37 = vpack.i.bf16 %v11298_v6, %v11294_v59 }
  0xb7   : > { %v11290_v39 = vsel %vm886_vm3, %v958_v30, %v960_v63  ;;  %19065 = vst [vmem:[#allocation168_spill] sm:$0xff] %v11294_v59 }
  0xb8   : > { %19064 = vst [vmem:[#allocation167_spill] sm:$0xff] %v11290_v39 }
  0xb9   : > { %19066 = vst [vmem:[#allocation169_spill] sm:$0xff] %v11298_v6 }
  0xba   : > { %8612 = vrot.lane.b32.xlu1 %v8611_v28, %s10265_s8  ;;  %v11305_v28 = vsel %vm886_vm3, %v964_v62, %v965_v1  ;;  %19071 = vst [vmem:[#allocation174_spill] sm:$0xff] %v11311_v4  ;;  %v979_v62 = vrot.slane %v10707_v49, 2  ;;  %v981_v1 = vrot.slane %v10718_v19, 2  ;;  %v972_v4 = vrot.slane %v10712_v22, 2 }
  0xbb   : > { %8617 = vrot.lane.b32.xlu2 %v8616_v58, %s10265_s8  ;;  %v11302_v58 = vsel %vm886_vm3, %v960_v63, %v11152_v55  ;;  %19068 = vst [vmem:[#allocation171_spill] sm:$0xff] %v11305_v28  ;;  %v11307_v29 = vpop.permute.xlu2 %8452  ;;  %v11309_v30 = vpop.permute.xlu1 %8402  ;;  %v974_v63 = vrot.slane %v10691_v25, 2 }
  0xbc   : > { %19067 = vst [vmem:[#allocation170_spill] sm:$0xff] %v11302_v58  ;;  %v8626_v15 = vpack.i.bf16 %v11305_v28, %v11302_v58  ;;  %v11329_v59 = vsel %vm886_vm3, %v979_v62, %v981_v1  ;;  %v11333_v28 = vsel %vm886_vm3, %v981_v1, %v11152_v55 }
  0xbd   : > { %8607 = vrot.lane.b32.xlu0 %v8606_v3, %s10265_s8  ;;  %19069 = vst [vmem:[#allocation172_spill] sm:$0xff] %v11307_v29  ;;  %v8621_v3 = vpack.i.bf16 %v11290_v39, %v11287_v5  ;;  %v978_v29 = vrot.slane %v10724_v46, 2  ;;  %v11337_v6 = vsel %vm886_vm3, %v974_v63, %v11152_v55  ;;  %v11352_v39 = vpop.permute.xlu0 %8412  ;;  %v8646_v1 = vpack.i.bf16 %v11333_v28, %v11329_v59 }
  0xbe   : > { %19070 = vst [vmem:[#allocation173_spill] sm:$0xff] %v11309_v30  ;;  %v971_v30 = vrot.slane %v10737_v41, 2 }
  0xbf   : > { %19072 = vst [vmem:[#allocation175_spill] sm:$0xff] %v11329_v59  ;;  %v11340_v5 = vsel %vm886_vm3, %v978_v29, %v979_v62  ;;  %v993_v29 = vrot.slane %v10769_v23, 2  ;;  %v995_v62 = vrot.slane %v10803_v10, 2 }
  0xc0   : > { %19073 = vst [vmem:[#allocation176_spill] sm:$0xff] %v11333_v28  ;;  %v8641_v26 = vpack.i.bf16 %v11340_v5, %v11337_v6 }
  0xc1   : > { %19074 = vst [vmem:[#allocation177_spill] sm:$0xff] %v11337_v6  ;;  %v11373_v59 = vsel %vm886_vm3, %v995_v62, %v11152_v55 }
  0xc2   : > { %8627 = vrot.lane.b32.xlu1 %v8626_v15, %s10265_s8  ;;  %19075 = vst [vmem:[#allocation178_spill] sm:$0xff] %v11340_v5  ;;  %v11347_v15 = vsel %vm886_vm3, %v971_v30, %v972_v4  ;;  %v988_v30 = vrot.slane %v10783_v34, 2 }
  0xc3   : > { %8632 = vrot.lane.b32.xlu2 %v8631_v37, %s10265_s8  ;;  %v11342_v58 = vpop.permute.xlu2 %8467  ;;  %v11344_v37 = vpop.permute.xlu1 %8417  ;;  %19078 = vst [vmem:[#allocation181_spill] sm:$0xff] %v11347_v15 }
  0xc4   : > { %19076 = vst [vmem:[#allocation179_spill] sm:$0xff] %v11342_v58  ;;  %v11369_v58 = vsel %vm886_vm3, %v993_v29, %v995_v62  ;;  %v11378_v5 = vsel %vm886_vm3, %v988_v30, %v11152_v55 }
  0xc5   : > { %8622 = vrot.lane.b32.xlu0 %v8621_v3, %s10265_s8  ;;  %19077 = vst [vmem:[#allocation180_spill] sm:$0xff] %v11344_v37  ;;  %v11350_v3 = vsel %vm886_vm3, %v972_v4, %v974_v63  ;;  %v992_v4 = vrot.slane %v10819_v12, 2  ;;  %v985_v63 = vrot.slane %v10831_v13, 2  ;;  %v11393_v62 = vpop.permute.xlu0 %8427 }
  0xc6   : > { %19079 = vst [vmem:[#allocation182_spill] sm:$0xff] %v11350_v3  ;;  %v8636_v37 = vpack.i.bf16 %v11350_v3, %v11347_v15 }
  0xc7   : > { %19080 = vst [vmem:[#allocation183_spill] sm:$0xff] %v11352_v39  ;;  %v986_v39 = vrot.slane %v10813_v40, 2  ;;  %v11381_v28 = vsel %vm886_vm3, %v992_v4, %v993_v29  ;;  %v999_v29 = vrot.slane %v10895_v45, 2  ;;  %v1000_v4 = vrot.slane %v10883_v11, 2 }
  0xc8   : > { %19081 = vst [vmem:[#allocation184_spill] sm:$0xff] %v11369_v58  ;;  %v8656_v3 = vpack.i.bf16 %v11381_v28, %v11378_v5 }
  0xc9   : > { %19082 = vst [vmem:[#allocation185_spill] sm:$0xff] %v11373_v59  ;;  %v11391_v6 = vsel %vm886_vm3, %v986_v39, %v988_v30  ;;  %v1009_v30 = vrot.slane %v10917_v21, 2 }
  0xca   : > { %8642 = vrot.lane.b32.xlu1 %v8641_v26, %s10265_s8  ;;  %19083 = vst [vmem:[#allocation186_spill] sm:$0xff] %v11378_v5  ;;  %v11388_v26 = vsel %vm886_vm3, %v985_v63, %v986_v39  ;;  %v1007_v39 = vrot.slane %v10903_v17, 2 }
  0xcb   : > { %8647 = vrot.lane.b32.xlu2 %v8646_v1, %s10265_s8  ;;  %19084 = vst [vmem:[#allocation187_spill] sm:$0xff] %v11381_v28  ;;  %v11383_v15 = vpop.permute.xlu2 %8482  ;;  %v11385_v1 = vpop.permute.xlu1 %8432  ;;  %v8651_v63 = vpack.i.bf16 %v11391_v6, %v11388_v26 }
  0xcc   : > { %19085 = vst [vmem:[#allocation188_spill] sm:$0xff] %v11383_v15  ;;  %v11410_v15 = vsel %vm886_vm3, %v999_v29, %v1000_v4  ;;  %v11417_v28 = vsel %vm886_vm3, %v1007_v39, %v1009_v30 }
  0xcd   : > { %8637 = vrot.lane.b32.xlu0 %v8636_v37, %s10265_s8  ;;  %19086 = vst [vmem:[#allocation189_spill] sm:$0xff] %v11385_v1  ;;  %v8661_v37 = vpack.i.bf16 %v11373_v59, %v11369_v58  ;;  %v1002_v1 = vrot.slane %v10901_v47, 2  ;;  %v11421_v59 = vsel %vm886_vm3, %v1009_v30, %v11152_v55 }
  0xce   : > { %19087 = vst [vmem:[#allocation190_spill] sm:$0xff] %v11388_v26  ;;  %v11434_v26 = vpop.permute.xlu0 %8442  ;;  %v8676_v30 = vpack.i.bf16 %v11421_v59, %v11417_v28 }
  0xcf   : > { %19088 = vst [vmem:[#allocation191_spill] sm:$0xff] %v11391_v6  ;;  %v11413_v58 = vsel %vm886_vm3, %v1000_v4, %v1002_v1 }
  0xd0   : > { %19089 = vst [vmem:[#allocation192_spill] sm:$0xff] %v11393_v62  ;;  %v1006_v62 = vrot.slane %v10923_v44, 2 }
  0xd1   : > { %19090 = vst [vmem:[#allocation193_spill] sm:$0xff] %v11410_v15 }
  0xd2   : > { %8657 = vrot.lane.b32.xlu1 %v8656_v3, %s10265_s8  ;;  %19091 = vst [vmem:[#allocation194_spill] sm:$0xff] %v11413_v58  ;;  %v11428_v3 = vsel %vm886_vm3, %v1006_v62, %v1007_v39  ;;  %v1021_v62 = vrot.slane %v10995_v43, 2  ;;  %v1023_v39 = vrot.slane %v11009_v27, 2 }
  0xd3   : > { %8662 = vrot.lane.b32.xlu2 %v8661_v37, %s10265_s8  ;;  %19092 = vst [vmem:[#allocation195_spill] sm:$0xff] %v11417_v28  ;;  %v11425_v37 = vsel %vm886_vm3, %v1002_v1, %v11152_v55  ;;  %v11430_v29 = vpop.permute.xlu2 %8497  ;;  %v11432_v4 = vpop.permute.xlu1 %8447  ;;  %v1016_v1 = vrot.slane %v11003_v7, 2 }
  0xd4   : > { %19093 = vst [vmem:[#allocation196_spill] sm:$0xff] %v11421_v59  ;;  %v8671_v5 = vpack.i.bf16 %v11428_v3, %v11425_v37  ;;  %v11452_v28 = vsel %vm886_vm3, %v1021_v62, %v1023_v39 }
  0xd5   : > { %8652 = vrot.lane.b32.xlu0 %v8651_v63, %s10265_s8  ;;  %19094 = vst [vmem:[#allocation197_spill] sm:$0xff] %v11425_v37  ;;  %v8666_v63 = vpack.i.bf16 %v11413_v58, %v11410_v15  ;;  %v11460_v59 = vsel %vm886_vm3, %v1016_v1, %v11152_v55 }
  0xd6   : > { %19095 = vst [vmem:[#allocation198_spill] sm:$0xff] %v11428_v3  ;;  %v11456_v3 = vsel %vm886_vm3, %v1023_v39, %v11152_v55  ;;  %v11475_v58 = vpop.permute.xlu0 %8457 }
  0xd7   : > { %19096 = vst [vmem:[#allocation199_spill] sm:$0xff] %v11430_v29  ;;  %v19099_v29 = vld [vmem:[#allocation113_spill] sm:$0xff]  ;;  %v8691_v39 = vpack.i.bf16 %v11456_v3, %v11452_v28 }
  0xd8   : > { %19097 = vst [vmem:[#allocation200_spill] sm:$0xff] %v11432_v4  ;;  %v1020_v6 = vrot.slane %v19099_v29, 2  ;;  %v19100_v4 = vld [vmem:[#allocation114_spill] sm:$0xff] }
  0xd9   : > { %19098 = vst [vmem:[#allocation201_spill] sm:$0xff] %v11434_v26  ;;  %v1013_v17 = vrot.slane %v19100_v4, 2  ;;  %v19101_v26 = vld [vmem:[#allocation111_spill] sm:$0xff] }
  0xda   : > { %v1014_v44 = vrot.slane %v19101_v26, 2  ;;  %8672 = vrot.lane.b32.xlu1 %v8671_v5, %s10265_s8  ;;  %19102 = vst [vmem:[#allocation202_spill] sm:$0xff] %v11452_v28  ;;  %v11463_v15 = vsel %vm886_vm3, %v1020_v6, %v1021_v62  ;;  %v1030_v62 = vrot.slane %v11090_v51, 2 }
  0xdb   : > { %8677 = vrot.lane.b32.xlu2 %v8676_v30, %s10265_s8  ;;  %19103 = vst [vmem:[#allocation203_spill] sm:$0xff] %v11456_v3  ;;  %v11467_v30 = vpop.permute.xlu1 %8462  ;;  %v8686_v43 = vpack.i.bf16 %v11463_v15, %v11460_v59 }
  0xdc   : > { %19104 = vst [vmem:[#allocation204_spill] sm:$0xff] %v11460_v59  ;;  %v11470_v5 = vsel %vm886_vm3, %v1013_v17, %v1014_v44  ;;  %v1028_v17 = vrot.slane %v11084_v48, 2 }
  0xdd   : > { %8667 = vrot.lane.b32.xlu0 %v8666_v63, %s10265_s8  ;;  %19105 = vst [vmem:[#allocation205_spill] sm:$0xff] %v11463_v15  ;;  %v11465_v37 = vpop.permute.xlu2 %8512  ;;  %v11473_v63 = vsel %vm886_vm3, %v1014_v44, %v1016_v1  ;;  %v11491_v44 = vsel %vm886_vm3, %v1030_v62, %v11152_v55 }
  0xde   : > { %19106 = vst [vmem:[#allocation206_spill] sm:$0xff] %v11465_v37  ;;  %v8681_v6 = vpack.i.bf16 %v11473_v63, %v11470_v5  ;;  %v11501_v28 = vsel %vm886_vm3, %v1028_v17, %v1030_v62  ;;  %v11503_v15 = vpop.permute.xlu0 %8472 }
  0xdf   : > { %19107 = vst [vmem:[#allocation207_spill] sm:$0xff] %v11467_v30  ;;  %v1027_v30 = vrot.slane %v11096_v54, 2 }
  0xe0   : > { %19108 = vst [vmem:[#allocation208_spill] sm:$0xff] %v11470_v5 }
  0xe1   : > { %19109 = vst [vmem:[#allocation209_spill] sm:$0xff] %v11473_v63  ;;  %v11498_v37 = vsel %vm886_vm3, %v1027_v30, %v1028_v17 }
  0xe2   : > { %19110 = vst [vmem:[#allocation210_spill] sm:$0xff] %v11475_v58  ;;  %8687 = vrot.lane.b32.xlu1 %v8686_v43, %s10265_s8  ;;  %v8701_v43 = vpack.i.bf16 %v11152_v55, %v11491_v44 }
  0xe3   : > { %8692 = vrot.lane.b32.xlu2 %v8691_v39, %s10265_s8  ;;  %19111 = vst [vmem:[#allocation211_spill] sm:$0xff] %v11491_v44  ;;  %v11495_v58 = vpop.permute.xlu1 %8477  ;;  %v8696_v39 = vpack.i.bf16 %v11501_v28, %v11498_v37 }
  0xe4   : > { %19113 = vst [vmem:[#allocation213_spill] sm:$0xff] %v11495_v58  ;;  %v8771_v58 = vpack.i.bf16 %v10388_v24, %v10458_v42 }
  0xe5   : > { %8682 = vrot.lane.b32.xlu0 %v8681_v6, %s10265_s8  ;;  %v11493_v1 = vpop.permute.xlu2 %8527  ;;  %19114 = vst [vmem:[#allocation214_spill] sm:$0xff] %v11498_v37 }
  0xe6   : > { %19112 = vst [vmem:[#allocation212_spill] sm:$0xff] %v11493_v1  ;;  %v11517_v62 = vpop.permute.xlu0 %8487 }
  0xe7   : > { %19115 = vst [vmem:[#allocation215_spill] sm:$0xff] %v11501_v28 }
  0xe8   : > { %19116 = vst [vmem:[#allocation216_spill] sm:$0xff] %v11503_v15  ;;  %v8776_v15 = vpack.i.bf16 %v10541_v20, %v10427_v33 }
  0xe9   : > { %19119 = vst [vmem:[#allocation219_spill] sm:$0xff] %v11517_v62 }
  0xea   : > { %8702 = vrot.lane.b32.xlu1 %v8701_v43, %s10265_s8 }
  0xeb   : > { %8707 = vrot.lane.b32.xlu2 %v11160_v2, %s10265_s8  ;;  %v11515_v6 = vpop.permute.xlu1 %8492 }
  0xec   : > { %19118 = vst [vmem:[#allocation218_spill] sm:$0xff] %v11515_v6  ;;  %v8781_v6 = vpack.i.bf16 %v10491_v56, %v10525_v0 }
  0xed   : > { %8697 = vrot.lane.b32.xlu0 %v8696_v39, %s10265_s8  ;;  %v11513_v30 = vpop.permute.xlu2 %8542 }
  0xee   : > { %19117 = vst [vmem:[#allocation217_spill] sm:$0xff] %v11513_v30 }
  0xf2   : > { %8717 = vrot.lane.b32.xlu1 %v11160_v2, %s10265_s8 }
  0xf3   : > { %8722 = vrot.lane.b32.xlu2 %v11160_v2, %s10265_s8 }
  0xf4   : > { %v11527_v43 = vpop.permute.xlu1 %8507 }
  0xf5   : > { %8712 = vrot.lane.b32.xlu0 %v11160_v2, %s10265_s8  ;;  %v11525_v17 = vpop.permute.xlu2 %8557  ;;  %19121 = vst [vmem:[#allocation221_spill] sm:$0xff] %v11527_v43 }
  0xf6   : > { %19120 = vst [vmem:[#allocation220_spill] sm:$0xff] %v11525_v17 }
  0xf7   : > { %v11529_v39 = vpop.permute.xlu0 %8502 }
  0xf8   : > { %19122 = vst [vmem:[#allocation222_spill] sm:$0xff] %v11529_v39 }
  0xfa   : > { %8732 = vrot.lane.b32.xlu1 %v19036_v8, %s10266_s9 }
  0xfb   : > { %8737 = vrot.lane.b32.xlu2 %v19036_v8, %s10266_s9 }
  0xfc   : > { %v11539_v1 = vpop.permute.xlu1 %8522 }
  0xfd   : > { %8727 = vrot.lane.b32.xlu0 %v19036_v8, %s10266_s9  ;;  %v11537_v30 = vpop.permute.xlu2 %8572  ;;  %19124 = vst [vmem:[#allocation224_spill] sm:$0xff] %v11539_v1  ;;  %v8766_v1 = vpack.i.bf16 %v10421_v32, %v10415_v31 }
  0xfe   : > { %19123 = vst [vmem:[#allocation223_spill] sm:$0xff] %v11537_v30  ;;  %v8756_v30 = vpack.i.bf16 %v10354_v9, %v10381_v18 }
  0xff   : > { %v11541_v62 = vpop.permute.xlu0 %8517 }
 0x100   : > { %19125 = vst [vmem:[#allocation225_spill] sm:$0xff] %v11541_v62  ;;  %v8761_v62 = vpack.i.bf16 %v10444_v38, %v10372_v16 }
 0x102   : > { %8747 = vrot.lane.b32.xlu1 %v19036_v8, %s10266_s9 }
 0x103   : > { %8752 = vrot.lane.b32.xlu2 %v19036_v8, %s10266_s9 }
 0x104   : > { %v11551_v43 = vpop.permute.xlu1 %8537 }
 0x105   : > { %8742 = vrot.lane.b32.xlu0 %v19036_v8, %s10266_s9  ;;  %v11549_v39 = vpop.permute.xlu2 %8587  ;;  %19127 = vst [vmem:[#allocation227_spill] sm:$0xff] %v11551_v43 }
 0x106   : > { %19126 = vst [vmem:[#allocation226_spill] sm:$0xff] %v11549_v39 }
 0x107   : > { %v11553_v17 = vpop.permute.xlu0 %8532 }
 0x108   : > { %19128 = vst [vmem:[#allocation228_spill] sm:$0xff] %v11553_v17 }
 0x10a   : > { %8762 = vrot.lane.b32.xlu1 %v8761_v62, %s10266_s9 }
 0x10b   : > { %8767 = vrot.lane.b32.xlu2 %v8766_v1, %s10266_s9 }
 0x10c   : > { %v11566_v43 = vpop.permute.xlu1 %8552 }
 0x10d   : > { %8757 = vrot.lane.b32.xlu0 %v8756_v30, %s10266_s9  ;;  %v11564_v39 = vpop.permute.xlu2 %8602  ;;  %19130 = vst [vmem:[#allocation230_spill] sm:$0xff] %v11566_v43  ;;  %v8796_v43 = vpack.i.bf16 %v10607_v50, %v10593_v53 }
 0x10e   : > { %19129 = vst [vmem:[#allocation229_spill] sm:$0xff] %v11564_v39  ;;  %v8791_v39 = vpack.i.bf16 %v10601_v35, %v10509_v60 }
 0x10f   : > { %v11568_v17 = vpop.permute.xlu0 %8547 }
 0x110   : > { %19131 = vst [vmem:[#allocation231_spill] sm:$0xff] %v11568_v17  ;;  %v8786_v17 = vpack.i.bf16 %v10493_v57, %v10515_v61 }
 0x112   : > { %8777 = vrot.lane.b32.xlu1 %v8776_v15, %s10266_s9 }
 0x113   : > { %8782 = vrot.lane.b32.xlu2 %v8781_v6, %s10266_s9 }
 0x114   : > { %v11581_v30 = vpop.permute.xlu1 %8567 }
 0x115   : > { %8772 = vrot.lane.b32.xlu0 %v8771_v58, %s10266_s9  ;;  %v11579_v1 = vpop.permute.xlu2 %8617  ;;  %19133 = vst [vmem:[#allocation233_spill] sm:$0xff] %v11581_v30  ;;  %v8806_v30 = vpack.i.bf16 %v10737_v41, %v10626_v14 }
 0x116   : > { %19132 = vst [vmem:[#allocation232_spill] sm:$0xff] %v11579_v1  ;;  %v8801_v1 = vpack.i.bf16 %v10609_v52, %v10632_v36 }
 0x117   : > { %v11583_v62 = vpop.permute.xlu0 %8562 }
 0x118   : > { %19134 = vst [vmem:[#allocation234_spill] sm:$0xff] %v11583_v62  ;;  %v8811_v62 = vpack.i.bf16 %v10691_v25, %v10712_v22 }
 0x11a   : > { %8792 = vrot.lane.b32.xlu1 %v8791_v39, %s10266_s9 }
 0x11b   : > { %8797 = vrot.lane.b32.xlu2 %v8796_v43, %s10266_s9 }
 0x11c   : > { %v11596_v15 = vpop.permute.xlu1 %8582 }
 0x11d   : > { %8787 = vrot.lane.b32.xlu0 %v8786_v17, %s10266_s9  ;;  %v11594_v58 = vpop.permute.xlu2 %8632  ;;  %19136 = vst [vmem:[#allocation236_spill] sm:$0xff] %v11596_v15  ;;  %v8821_v15 = vpack.i.bf16 %v10831_v13, %v10718_v19 }
 0x11e   : > { %19135 = vst [vmem:[#allocation235_spill] sm:$0xff] %v11594_v58  ;;  %v8816_v58 = vpack.i.bf16 %v10707_v49, %v10724_v46 }
 0x11f   : > { %v11598_v6 = vpop.permute.xlu0 %8577 }
 0x120   : > { %19137 = vst [vmem:[#allocation237_spill] sm:$0xff] %v11598_v6  ;;  %v8826_v6 = vpack.i.bf16 %v10783_v34, %v10813_v40 }
 0x122   : > { %8807 = vrot.lane.b32.xlu1 %v8806_v30, %s10266_s9 }
 0x123   : > { %8812 = vrot.lane.b32.xlu2 %v8811_v62, %s10266_s9 }
 0x124   : > { %v11611_v43 = vpop.permute.xlu1 %8597 }
 0x125   : > { %8802 = vrot.lane.b32.xlu0 %v8801_v1, %s10266_s9  ;;  %v11609_v17 = vpop.permute.xlu2 %8647  ;;  %19139 = vst [vmem:[#allocation239_spill] sm:$0xff] %v11611_v43  ;;  %v8836_v43 = vpack.i.bf16 %v10895_v45, %v10803_v10  ;;  %v19148_v45 = vld [vmem:[#allocation91_spill] sm:$0xff] }
 0x126   : > { %19138 = vst [vmem:[#allocation238_spill] sm:$0xff] %v11609_v17  ;;  %v8831_v17 = vpack.i.bf16 %v10769_v23, %v10819_v12 }
 0x127   : > { %v11613_v39 = vpop.permute.xlu0 %8592 }
 0x128   : > { %19140 = vst [vmem:[#allocation240_spill] sm:$0xff] %v11613_v39  ;;  %v8841_v39 = vpack.i.bf16 %v10901_v47, %v10883_v11  ;;  %v19182_v47 = vld [vmem:[#allocation27_spill] sm:$0xff] }
 0x12a   : > { %8822 = vrot.lane.b32.xlu1 %v8821_v15, %s10266_s9 }
 0x12b   : > { %8827 = vrot.lane.b32.xlu2 %v8826_v6, %s10266_s9 }
 0x12c   : > { %v11626_v30 = vpop.permute.xlu1 %8612 }
 0x12d   : > { %8817 = vrot.lane.b32.xlu0 %v8816_v58, %s10266_s9  ;;  %v11624_v1 = vpop.permute.xlu2 %8662  ;;  %19142 = vst [vmem:[#allocation242_spill] sm:$0xff] %v11626_v30  ;;  %v8851_v30 = vpack.i.bf16 %v19100_v4, %v10917_v21  ;;  %v19178_v4 = vld [vmem:[#allocation45_spill] sm:$0xff] }
 0x12e   : > { %19141 = vst [vmem:[#allocation241_spill] sm:$0xff] %v11624_v1  ;;  %v19147_v1 = vld [vmem:[#allocation94_spill] sm:$0xff] }
 0x12f   : > { %v11628_v62 = vpop.permute.xlu0 %8607  ;;  %v8846_v11 = vpack.i.bf16 %v19148_v45, %v19147_v1 }
 0x130   : > { %19143 = vst [vmem:[#allocation243_spill] sm:$0xff] %v11628_v62  ;;  %v8856_v62 = vpack.i.bf16 %v11003_v7, %v19101_v26  ;;  %v19180_v26 = vld [vmem:[#allocation25_spill] sm:$0xff] }
 0x132   : > { %8837 = vrot.lane.b32.xlu1 %v8836_v43, %s10266_s9 }
 0x133   : > { %8842 = vrot.lane.b32.xlu2 %v8841_v39, %s10266_s9 }
 0x134   : > { %v11641_v15 = vpop.permute.xlu1 %8627 }
 0x135   : > { %8832 = vrot.lane.b32.xlu0 %v8831_v17, %s10266_s9  ;;  %v11639_v58 = vpop.permute.xlu2 %8677  ;;  %19145 = vst [vmem:[#allocation245_spill] sm:$0xff] %v11641_v15  ;;  %v8866_v15 = vpack.i.bf16 %v11096_v54, %v11009_v27 }
 0x136   : > { %19144 = vst [vmem:[#allocation244_spill] sm:$0xff] %v11639_v58  ;;  %v19152_v58 = vld [vmem:[#allocation110_spill] sm:$0xff] }
 0x137   : > { %v11643_v6 = vpop.permute.xlu0 %8622  ;;  %v8861_v7 = vpack.i.bf16 %v19152_v58, %v19099_v29 }
 0x138   : > { %19146 = vst [vmem:[#allocation246_spill] sm:$0xff] %v11643_v6  ;;  %v8871_v6 = vpack.i.bf16 %v11090_v51, %v11084_v48  ;;  %v19173_v51 = vld [vmem:[#allocation15_spill] sm:$0xff]  ;;  %v19174_v48 = vld [vmem:[#allocation13_spill] sm:$0xff] }
 0x139   : > { %v8936_v29 = vpack.i.bf16 %v19174_v48, %v19173_v51  ;;  %v19183_v51 = vld [vmem:[#allocation24_spill] sm:$0xff] }
 0x13a   : > { %8852 = vrot.lane.b32.xlu1 %v8851_v30, %s10266_s9  ;;  %v8951_v48 = vpack.i.bf16 %v19183_v51, %v19182_v47  ;;  %v19192_v47 = vld [vmem:[#allocation40_spill] sm:$0xff] }
 0x13b   : > { %8857 = vrot.lane.b32.xlu2 %v8856_v62, %s10266_s9 }
 0x13c   : > { %v11656_v43 = vpop.permute.xlu1 %8642 }
 0x13d   : > { %8847 = vrot.lane.b32.xlu0 %v8846_v11, %s10266_s9  ;;  %v11654_v17 = vpop.permute.xlu2 %8692  ;;  %19150 = vst [vmem:[#allocation91_spill] sm:$0xff] %v11656_v43 }
 0x13e   : > { %19149 = vst [vmem:[#allocation94_spill] sm:$0xff] %v11654_v17  ;;  %v19170_v17 = vld [vmem:[#allocation26_spill] sm:$0xff] }
 0x13f   : > { %v11658_v39 = vpop.permute.xlu0 %8637 }
 0x140   : > { %19151 = vst [vmem:[#allocation247_spill] sm:$0xff] %v11658_v39 }
 0x142   : > { %8867 = vrot.lane.b32.xlu1 %v8866_v15, %s10266_s9 }
 0x143   : > { %8872 = vrot.lane.b32.xlu2 %v8871_v6, %s10266_s9 }
 0x144   : > { %v11671_v30 = vpop.permute.xlu1 %8657 }
 0x145   : > { %8862 = vrot.lane.b32.xlu0 %v8861_v7, %s10266_s9  ;;  %v11669_v11 = vpop.permute.xlu2 %8707  ;;  %19154 = vst [vmem:[#allocation248_spill] sm:$0xff] %v11671_v30 }
 0x146   : > { %19153 = vst [vmem:[#allocation110_spill] sm:$0xff] %v11669_v11 }
 0x147   : > { %v11673_v62 = vpop.permute.xlu0 %8652 }
 0x148   : > { %19155 = vst [vmem:[#allocation249_spill] sm:$0xff] %v11673_v62 }
 0x14a   : > { %8882 = vrot.lane.b32.xlu1 %v19036_v8, %s10266_s9 }
 0x14b   : > { %8887 = vrot.lane.b32.xlu2 %v19036_v8, %s10266_s9 }
 0x14c   : > { %v11683_v15 = vpop.permute.xlu1 %8672 }
 0x14d   : > { %8877 = vrot.lane.b32.xlu0 %v19036_v8, %s10266_s9  ;;  %v11681_v6 = vpop.permute.xlu2 %8722  ;;  %19157 = vst [vmem:[#allocation251_spill] sm:$0xff] %v11683_v15 }
 0x14e   : > { %19156 = vst [vmem:[#allocation250_spill] sm:$0xff] %v11681_v6  ;;  %v19162_v6 = vld [vmem:[#allocation4_spill] sm:$0xff] }
 0x14f   : > { %v11685_v7 = vpop.permute.xlu0 %8667 }
 0x150   : > { %19158 = vst [vmem:[#allocation252_spill] sm:$0xff] %v11685_v7 }
 0x152   : > { %8897 = vrot.lane.b32.xlu1 %v19036_v8, %s10266_s9 }
 0x153   : > { %8902 = vrot.lane.b32.xlu2 %v19036_v8, %s10266_s9 }
 0x154   : > { %v11695_v30 = vpop.permute.xlu1 %8687 }
 0x155   : > { %8892 = vrot.lane.b32.xlu0 %v19036_v8, %s10266_s9  ;;  %v11693_v62 = vpop.permute.xlu2 %8737  ;;  %19160 = vst [vmem:[#allocation254_spill] sm:$0xff] %v11695_v30 }
 0x156   : > { %19159 = vst [vmem:[#allocation253_spill] sm:$0xff] %v11693_v62  ;;  %v19171_v62 = vld [vmem:[#allocation14_spill] sm:$0xff] }
 0x157   : > { %v11697_v11 = vpop.permute.xlu0 %8682 }
 0x158   : > { %19161 = vst [vmem:[#allocation255_spill] sm:$0xff] %v11697_v11 }
 0x15a   : > { %8912 = vrot.lane.b32.xlu1 %v19162_v6, %s10267_s10 }
 0x15b   : > { %8917 = vrot.lane.b32.xlu2 %v19162_v6, %s10267_s10 }
 0x15c   : > { %v11707_v15 = vpop.permute.xlu1 %8702 }
 0x15d   : > { %8907 = vrot.lane.b32.xlu0 %v19162_v6, %s10267_s10  ;;  %v11705_v7 = vpop.permute.xlu2 %8752  ;;  %19164 = vst [vmem:[#allocation257_spill] sm:$0xff] %v11707_v15 }
 0x15e   : > { %19163 = vst [vmem:[#allocation256_spill] sm:$0xff] %v11705_v7  ;;  %v19169_v7 = vld [vmem:[#allocation29_spill] sm:$0xff] }
 0x15f   : > { %v11709_v39 = vpop.permute.xlu0 %8697  ;;  %v8946_v15 = vpack.i.bf16 %v19170_v17, %v19169_v7  ;;  %v19179_v17 = vld [vmem:[#allocation39_spill] sm:$0xff] }
 0x160   : > { %19165 = vst [vmem:[#allocation258_spill] sm:$0xff] %v11709_v39  ;;  %v19172_v39 = vld [vmem:[#allocation28_spill] sm:$0xff]  ;;  %v8961_v7 = vpack.i.bf16 %v19179_v17, %v19178_v4 }
 0x161   : > { %v8941_v54 = vpack.i.bf16 %v19172_v39, %v19171_v62  ;;  %v19181_v39 = vld [vmem:[#allocation44_spill] sm:$0xff] }
 0x162   : > { %8927 = vrot.lane.b32.xlu1 %v19162_v6, %s10267_s10  ;;  %v8956_v62 = vpack.i.bf16 %v19181_v39, %v19180_v26  ;;  %v19188_v4 = vld [vmem:[#allocation56_spill] sm:$0xff]  ;;  %v19190_v26 = vld [vmem:[#allocation54_spill] sm:$0xff] }
 0x163   : > { %8932 = vrot.lane.b32.xlu2 %v19162_v6, %s10267_s10 }
 0x164   : > { %v11719_v30 = vpop.permute.xlu1 %8717 }
 0x165   : > { %8922 = vrot.lane.b32.xlu0 %v19162_v6, %s10267_s10  ;;  %v11717_v11 = vpop.permute.xlu2 %8767  ;;  %19167 = vst [vmem:[#allocation260_spill] sm:$0xff] %v11719_v30 }
 0x166   : > { %19166 = vst [vmem:[#allocation259_spill] sm:$0xff] %v11717_v11 }
 0x167   : > { %v11721_v43 = vpop.permute.xlu0 %8712 }
 0x168   : > { %19168 = vst [vmem:[#allocation261_spill] sm:$0xff] %v11721_v43 }
 0x16a   : > { %8942 = vrot.lane.b32.xlu1 %v8941_v54, %s10267_s10 }
 0x16b   : > { %8947 = vrot.lane.b32.xlu2 %v8946_v15, %s10267_s10 }
 0x16c   : > { %v11734_v30 = vpop.permute.xlu1 %8732 }
 0x16d   : > { %8937 = vrot.lane.b32.xlu0 %v8936_v29, %s10267_s10  ;;  %v11732_v11 = vpop.permute.xlu2 %8782  ;;  %19176 = vst [vmem:[#allocation26_spill] sm:$0xff] %v11734_v30  ;;  %v19189_v30 = vld [vmem:[#allocation41_spill] sm:$0xff] }
 0x16e   : > { %19175 = vst [vmem:[#allocation29_spill] sm:$0xff] %v11732_v11  ;;  %v19187_v11 = vld [vmem:[#allocation55_spill] sm:$0xff]  ;;  %v8971_v39 = vpack.i.bf16 %v19190_v26, %v19189_v30  ;;  %v19199_v30 = vld [vmem:[#allocation73_spill] sm:$0xff] }
 0x16f   : > { %v11736_v43 = vpop.permute.xlu0 %8727  ;;  %v8976_v17 = vpack.i.bf16 %v19188_v4, %v19187_v11  ;;  %v19197_v11 = vld [vmem:[#allocation69_spill] sm:$0xff] }
 0x170   : > { %19177 = vst [vmem:[#allocation14_spill] sm:$0xff] %v11736_v43  ;;  %v19191_v43 = vld [vmem:[#allocation42_spill] sm:$0xff] }
 0x171   : > { %v8966_v51 = vpack.i.bf16 %v19192_v47, %v19191_v43  ;;  %v19201_v43 = vld [vmem:[#allocation57_spill] sm:$0xff] }
 0x172   : > { %8957 = vrot.lane.b32.xlu1 %v8956_v62, %s10267_s10 }
 0x173   : > { %8962 = vrot.lane.b32.xlu2 %v8961_v7, %s10267_s10 }
 0x174   : > { %v11749_v29 = vpop.permute.xlu1 %8747 }
 0x175   : > { %8952 = vrot.lane.b32.xlu0 %v8951_v48, %s10267_s10  ;;  %v11747_v54 = vpop.permute.xlu2 %8797  ;;  %19185 = vst [vmem:[#allocation15_spill] sm:$0xff] %v11749_v29  ;;  %v19198_v29 = vld [vmem:[#allocation58_spill] sm:$0xff] }
 0x176   : > { %19184 = vst [vmem:[#allocation28_spill] sm:$0xff] %v11747_v54  ;;  %v19196_v54 = vld [vmem:[#allocation74_spill] sm:$0xff]  ;;  %v8986_v26 = vpack.i.bf16 %v19199_v30, %v19198_v29  ;;  %v19208_v29 = vld [vmem:[#allocation92_spill] sm:$0xff] }
 0x177   : > { %v11751_v15 = vpop.permute.xlu0 %8742  ;;  %v8991_v4 = vpack.i.bf16 %v19197_v11, %v19196_v54  ;;  %v19206_v54 = vld [vmem:[#allocation86_spill] sm:$0xff] }
 0x178   : > { %19186 = vst [vmem:[#allocation13_spill] sm:$0xff] %v11751_v15  ;;  %v19200_v15 = vld [vmem:[#allocation59_spill] sm:$0xff] }
 0x179   : > { %v8981_v47 = vpack.i.bf16 %v19201_v43, %v19200_v15  ;;  %v19210_v15 = vld [vmem:[#allocation70_spill] sm:$0xff] }
 0x17a   : > { %8972 = vrot.lane.b32.xlu1 %v8971_v39, %s10267_s10 }
 0x17b   : > { %8977 = vrot.lane.b32.xlu2 %v8976_v17, %s10267_s10 }
 0x17c   : > { %v11764_v62 = vpop.permute.xlu1 %8762 }
 0x17d   : > { %8967 = vrot.lane.b32.xlu0 %v8966_v51, %s10267_s10  ;;  %v11762_v7 = vpop.permute.xlu2 %8812  ;;  %19194 = vst [vmem:[#allocation39_spill] sm:$0xff] %v11764_v62  ;;  %v19205_v62 = vld [vmem:[#allocation93_spill] sm:$0xff] }
 0x17e   : > { %19193 = vst [vmem:[#allocation45_spill] sm:$0xff] %v11762_v7  ;;  %v9006_v11 = vpack.i.bf16 %v19206_v54, %v19205_v62  ;;  %v19209_v7 = vld [vmem:[#allocation72_spill] sm:$0xff]  ;;  %v19215_v62 = vld [vmem:[#allocation106_spill] sm:$0xff] }
 0x17f   : > { %v11766_v48 = vpop.permute.xlu0 %8757  ;;  %v8996_v43 = vpack.i.bf16 %v19210_v15, %v19209_v7  ;;  %v19219_v7 = vld [vmem:[#allocation84_spill] sm:$0xff] }
 0x180   : > { %19195 = vst [vmem:[#allocation25_spill] sm:$0xff] %v11766_v48  ;;  %v19207_v48 = vld [vmem:[#allocation71_spill] sm:$0xff] }
 0x181   : > { %v9001_v30 = vpack.i.bf16 %v19208_v29, %v19207_v48  ;;  %v19217_v48 = vld [vmem:[#allocation104_spill] sm:$0xff] }
 0x182   : > { %8987 = vrot.lane.b32.xlu1 %v8986_v26, %s10267_s10 }
 0x183   : > { %8992 = vrot.lane.b32.xlu2 %v8991_v4, %s10267_s10 }
 0x184   : > { %v11779_v39 = vpop.permute.xlu1 %8777 }
 0x185   : > { %8982 = vrot.lane.b32.xlu0 %v8981_v47, %s10267_s10  ;;  %v11777_v17 = vpop.permute.xlu2 %8827  ;;  %19203 = vst [vmem:[#allocation27_spill] sm:$0xff] %v11779_v39  ;;  %v19214_v39 = vld [vmem:[#allocation105_spill] sm:$0xff] }
 0x186   : > { %19202 = vst [vmem:[#allocation44_spill] sm:$0xff] %v11777_v17  ;;  %v9021_v54 = vpack.i.bf16 %v19215_v62, %v19214_v39  ;;  %v19218_v17 = vld [vmem:[#allocation88_spill] sm:$0xff] }
 0x187   : > { %v11781_v51 = vpop.permute.xlu0 %8772  ;;  %v9011_v15 = vpack.i.bf16 %v19219_v7, %v19218_v17  ;;  %v19224_v39 = vld [vmem:[#allocation124_spill] sm:$0xff]  ;;  %v19228_v17 = vld [vmem:[#allocation107_spill] sm:$0xff] }
 0x188   : > { %19204 = vst [vmem:[#allocation24_spill] sm:$0xff] %v11781_v51  ;;  %v19216_v51 = vld [vmem:[#allocation85_spill] sm:$0xff] }
 0x189   : > { %v9016_v29 = vpack.i.bf16 %v19217_v48, %v19216_v51  ;;  %v19226_v51 = vld [vmem:[#allocation126_spill] sm:$0xff] }
 0x18a   : > { %9002 = vrot.lane.b32.xlu1 %v9001_v30, %s10267_s10 }
 0x18b   : > { %9007 = vrot.lane.b32.xlu2 %v9006_v11, %s10267_s10 }
 0x18c   : > { %v11794_v26 = vpop.permute.xlu1 %8792 }
 0x18d   : > { %8997 = vrot.lane.b32.xlu0 %v8996_v43, %s10267_s10  ;;  %v11792_v4 = vpop.permute.xlu2 %8842  ;;  %19212 = vst [vmem:[#allocation56_spill] sm:$0xff] %v11794_v26  ;;  %v19225_v26 = vld [vmem:[#allocation108_spill] sm:$0xff] }
 0x18e   : > { %19211 = vst [vmem:[#allocation55_spill] sm:$0xff] %v11792_v4  ;;  %v9031_v48 = vpack.i.bf16 %v19226_v51, %v19225_v26  ;;  %v19227_v4 = vld [vmem:[#allocation109_spill] sm:$0xff]  ;;  %v19235_v26 = vld [vmem:[#allocation136_spill] sm:$0xff] }
 0x18f   : > { %v11796_v47 = vpop.permute.xlu0 %8787  ;;  %v9026_v7 = vpack.i.bf16 %v19228_v17, %v19227_v4  ;;  %v19237_v4 = vld [vmem:[#allocation122_spill] sm:$0xff] }
 0x190   : > { %19213 = vst [vmem:[#allocation41_spill] sm:$0xff] %v11796_v47  ;;  %v19223_v47 = vld [vmem:[#allocation127_spill] sm:$0xff] }
 0x191   : > { %v9036_v62 = vpack.i.bf16 %v19224_v39, %v19223_v47  ;;  %v19233_v47 = vld [vmem:[#allocation135_spill] sm:$0xff] }
 0x192   : > { %9017 = vrot.lane.b32.xlu1 %v9016_v29, %s10267_s10 }
 0x193   : > { %9022 = vrot.lane.b32.xlu2 %v9021_v54, %s10267_s10 }
 0x194   : > { %v11809_v30 = vpop.permute.xlu1 %8807 }
 0x195   : > { %9012 = vrot.lane.b32.xlu0 %v9011_v15, %s10267_s10  ;;  %v11807_v11 = vpop.permute.xlu2 %8857  ;;  %19221 = vst [vmem:[#allocation42_spill] sm:$0xff] %v11809_v30  ;;  %v19232_v30 = vld [vmem:[#allocation137_spill] sm:$0xff] }
 0x196   : > { %19220 = vst [vmem:[#allocation54_spill] sm:$0xff] %v11807_v11  ;;  %v9051_v39 = vpack.i.bf16 %v19233_v47, %v19232_v30  ;;  %v19236_v11 = vld [vmem:[#allocation125_spill] sm:$0xff] }
 0x197   : > { %v11811_v43 = vpop.permute.xlu0 %8802  ;;  %v9041_v17 = vpack.i.bf16 %v19237_v4, %v19236_v11 }
 0x198   : > { %19222 = vst [vmem:[#allocation40_spill] sm:$0xff] %v11811_v43  ;;  %v19234_v43 = vld [vmem:[#allocation123_spill] sm:$0xff] }
 0x199   : > { %v9046_v51 = vpack.i.bf16 %v19235_v26, %v19234_v43 }
 0x19a   : > { %9032 = vrot.lane.b32.xlu1 %v9031_v48, %s10267_s10 }
 0x19b   : > { %9037 = vrot.lane.b32.xlu2 %v9036_v62, %s10267_s10 }
 0x19c   : > { %v11824_v29 = vpop.permute.xlu1 %8822 }
 0x19d   : > { %9027 = vrot.lane.b32.xlu0 %v9026_v7, %s10267_s10  ;;  %v11822_v54 = vpop.permute.xlu2 %8872  ;;  %19230 = vst [vmem:[#allocation69_spill] sm:$0xff] %v11824_v29 }
 0x19e   : > { %19229 = vst [vmem:[#allocation74_spill] sm:$0xff] %v11822_v54  ;;  %v19262_v54 = vld [vmem:[#allocation164_spill] sm:$0xff] }
 0x19f   : > { %v11826_v15 = vpop.permute.xlu0 %8817 }
 0x1a0   : > { %19231 = vst [vmem:[#allocation58_spill] sm:$0xff] %v11826_v15  ;;  %v19258_v15 = vld [vmem:[#allocation144_spill] sm:$0xff] }
 0x1a2   : > { %9047 = vrot.lane.b32.xlu1 %v9046_v51, %s10267_s10 }
 0x1a3   : > { %9052 = vrot.lane.b32.xlu2 %v9051_v39, %s10267_s10 }
 0x1a4   : > { %v11839_v48 = vpop.permute.xlu1 %8837 }
 0x1a5   : > { %9042 = vrot.lane.b32.xlu0 %v9041_v17, %s10267_s10  ;;  %v11837_v62 = vpop.permute.xlu2 %8887  ;;  %19239 = vst [vmem:[#allocation59_spill] sm:$0xff] %v11839_v48 }
 0x1a6   : > { %19238 = vst [vmem:[#allocation73_spill] sm:$0xff] %v11837_v62  ;;  %v19257_v62 = vld [vmem:[#allocation146_spill] sm:$0xff] }
 0x1a7   : > { %v11841_v7 = vpop.permute.xlu0 %8832  ;;  %v9116_v29 = vpack.i.bf16 %v19258_v15, %v19257_v62  ;;  %v19267_v15 = vld [vmem:[#allocation148_spill] sm:$0xff] }
 0x1a8   : > { %19240 = vst [vmem:[#allocation57_spill] sm:$0xff] %v11841_v7  ;;  %v19255_v7 = vld [vmem:[#allocation145_spill] sm:$0xff] }
 0x1aa   : > { %9062 = vrot.lane.b32.xlu1 %v19162_v6, %s10267_s10 }
 0x1ab   : > { %9067 = vrot.lane.b32.xlu2 %v19162_v6, %s10267_s10 }
 0x1ac   : > { %v11851_v30 = vpop.permute.xlu1 %8852 }
 0x1ad   : > { %9057 = vrot.lane.b32.xlu0 %v19162_v6, %s10267_s10  ;;  %v11849_v11 = vpop.permute.xlu2 %8902  ;;  %19242 = vst [vmem:[#allocation86_spill] sm:$0xff] %v11851_v30  ;;  %v19254_v30 = vld [vmem:[#allocation150_spill] sm:$0xff] }
 0x1ae   : > { %19241 = vst [vmem:[#allocation93_spill] sm:$0xff] %v11849_v11 }
 0x1af   : > { %v11853_v43 = vpop.permute.xlu0 %8847 }
 0x1b0   : > { %19243 = vst [vmem:[#allocation71_spill] sm:$0xff] %v11853_v43  ;;  %v19253_v43 = vld [vmem:[#allocation155_spill] sm:$0xff] }
 0x1b2   : > { %9077 = vrot.lane.b32.xlu1 %v19162_v6, %s10267_s10 }
 0x1b3   : > { %9082 = vrot.lane.b32.xlu2 %v19162_v6, %s10267_s10 }
 0x1b4   : > { %v11863_v39 = vpop.permute.xlu1 %8867 }
 0x1b5   : > { %9072 = vrot.lane.b32.xlu0 %v19162_v6, %s10267_s10  ;;  %v11861_v47 = vpop.permute.xlu2 %8917  ;;  %19245 = vst [vmem:[#allocation72_spill] sm:$0xff] %v11863_v39 }
 0x1b6   : > { %19244 = vst [vmem:[#allocation92_spill] sm:$0xff] %v11861_v47  ;;  %v19266_v47 = vld [vmem:[#allocation151_spill] sm:$0xff] }
 0x1b7   : > { %v11865_v26 = vpop.permute.xlu0 %8862  ;;  %v9131_v62 = vpack.i.bf16 %v19267_v15, %v19266_v47  ;;  %v19276_v15 = vld [vmem:[#allocation157_spill] sm:$0xff] }
 0x1b8   : > { %19246 = vst [vmem:[#allocation70_spill] sm:$0xff] %v11865_v26 }
 0x1ba   : > { %9092 = vrot.lane.b32.xlu1 %v11160_v2, %s10268_s11 }
 0x1bb   : > { %9097 = vrot.lane.b32.xlu2 %v11160_v2, %s10268_s11 }
 0x1bc   : > { %v11875_v4 = vpop.permute.xlu1 %8882 }
 0x1bd   : > { %9087 = vrot.lane.b32.xlu0 %v11160_v2, %s10268_s11  ;;  %v11873_v51 = vpop.permute.xlu2 %8932  ;;  %19248 = vst [vmem:[#allocation106_spill] sm:$0xff] %v11875_v4  ;;  %v9126_v4 = vpack.i.bf16 %v19254_v30, %v19253_v43  ;;  %v19263_v30 = vld [vmem:[#allocation159_spill] sm:$0xff]  ;;  %v19264_v43 = vld [vmem:[#allocation149_spill] sm:$0xff] }
 0x1be   : > { %19247 = vst [vmem:[#allocation105_spill] sm:$0xff] %v11873_v51  ;;  %v9141_v51 = vpack.i.bf16 %v19263_v30, %v19262_v54  ;;  %v19272_v30 = vld [vmem:[#allocation170_spill] sm:$0xff] }
 0x1bf   : > { %v11877_v17 = vpop.permute.xlu0 %8877 }
 0x1c0   : > { %19249 = vst [vmem:[#allocation85_spill] sm:$0xff] %v11877_v17  ;;  %v19256_v17 = vld [vmem:[#allocation154_spill] sm:$0xff] }
 0x1c1   : > { %v9121_v48 = vpack.i.bf16 %v19256_v17, %v19255_v7  ;;  %v19265_v17 = vld [vmem:[#allocation163_spill] sm:$0xff] }
 0x1c2   : > { %9107 = vrot.lane.b32.xlu1 %v11160_v2, %s10268_s11  ;;  %v9136_v7 = vpack.i.bf16 %v19265_v17, %v19264_v43  ;;  %v19274_v17 = vld [vmem:[#allocation166_spill] sm:$0xff] }
 0x1c3   : > { %9112 = vrot.lane.b32.xlu2 %v11160_v2, %s10268_s11 }
 0x1c4   : > { %v11887_v26 = vpop.permute.xlu1 %8897 }
 0x1c5   : > { %9102 = vrot.lane.b32.xlu0 %v11160_v2, %s10268_s11  ;;  %v11885_v11 = vpop.permute.xlu2 %8947  ;;  %19251 = vst [vmem:[#allocation88_spill] sm:$0xff] %v11887_v26 }
 0x1c6   : > { %19250 = vst [vmem:[#allocation104_spill] sm:$0xff] %v11885_v11 }
 0x1c7   : > { %v11889_v39 = vpop.permute.xlu0 %8892 }
 0x1c8   : > { %19252 = vst [vmem:[#allocation84_spill] sm:$0xff] %v11889_v39 }
 0x1ca   : > { %9122 = vrot.lane.b32.xlu1 %v9121_v48, %s10268_s11 }
 0x1cb   : > { %9127 = vrot.lane.b32.xlu2 %v9126_v4, %s10268_s11 }
 0x1cc   : > { %v11902_v26 = vpop.permute.xlu1 %8912 }
 0x1cd   : > { %9117 = vrot.lane.b32.xlu0 %v9116_v29, %s10268_s11  ;;  %v11900_v11 = vpop.permute.xlu2 %8962  ;;  %19260 = vst [vmem:[#allocation124_spill] sm:$0xff] %v11902_v26  ;;  %v19273_v26 = vld [vmem:[#allocation158_spill] sm:$0xff] }
 0x1ce   : > { %19259 = vst [vmem:[#allocation127_spill] sm:$0xff] %v11900_v11  ;;  %v19271_v11 = vld [vmem:[#allocation167_spill] sm:$0xff]  ;;  %v9151_v43 = vpack.i.bf16 %v19274_v17, %v19273_v26  ;;  %v19283_v17 = vld [vmem:[#allocation181_spill] sm:$0xff] }
 0x1cf   : > { %v11904_v39 = vpop.permute.xlu0 %8907  ;;  %v9156_v54 = vpack.i.bf16 %v19272_v30, %v19271_v11  ;;  %v19281_v30 = vld [vmem:[#allocation177_spill] sm:$0xff] }
 0x1d0   : > { %19261 = vst [vmem:[#allocation108_spill] sm:$0xff] %v11904_v39  ;;  %v19275_v39 = vld [vmem:[#allocation160_spill] sm:$0xff] }
 0x1d1   : > { %v9146_v47 = vpack.i.bf16 %v19276_v15, %v19275_v39  ;;  %v19285_v15 = vld [vmem:[#allocation168_spill] sm:$0xff] }
 0x1d2   : > { %9137 = vrot.lane.b32.xlu1 %v9136_v7, %s10268_s11 }
 0x1d3   : > { %9142 = vrot.lane.b32.xlu2 %v9141_v51, %s10268_s11 }
 0x1d4   : > { %v11917_v48 = vpop.permute.xlu1 %8927 }
 0x1d5   : > { %9132 = vrot.lane.b32.xlu0 %v9131_v62, %s10268_s11  ;;  %v11915_v29 = vpop.permute.xlu2 %8977  ;;  %19269 = vst [vmem:[#allocation109_spill] sm:$0xff] %v11917_v48  ;;  %v19282_v48 = vld [vmem:[#allocation169_spill] sm:$0xff] }
 0x1d6   : > { %19268 = vst [vmem:[#allocation126_spill] sm:$0xff] %v11915_v29  ;;  %v19280_v29 = vld [vmem:[#allocation182_spill] sm:$0xff]  ;;  %v9166_v26 = vpack.i.bf16 %v19283_v17, %v19282_v48 }
 0x1d7   : > { %v11919_v4 = vpop.permute.xlu0 %8922  ;;  %v9171_v11 = vpack.i.bf16 %v19281_v30, %v19280_v29  ;;  %v19290_v30 = vld [vmem:[#allocation186_spill] sm:$0xff] }
 0x1d8   : > { %19270 = vst [vmem:[#allocation107_spill] sm:$0xff] %v11919_v4  ;;  %v19284_v4 = vld [vmem:[#allocation171_spill] sm:$0xff]  ;;  %v19292_v17 = vld [vmem:[#allocation190_spill] sm:$0xff] }
 0x1d9   : > { %v9161_v39 = vpack.i.bf16 %v19285_v15, %v19284_v4  ;;  %v19294_v15 = vld [vmem:[#allocation175_spill] sm:$0xff] }
 0x1da   : > { %9152 = vrot.lane.b32.xlu1 %v9151_v43, %s10268_s11 }
 0x1db   : > { %9157 = vrot.lane.b32.xlu2 %v9156_v54, %s10268_s11 }
 0x1dc   : > { %v11932_v7 = vpop.permute.xlu1 %8942 }
 0x1dd   : > { %9147 = vrot.lane.b32.xlu0 %v9146_v47, %s10268_s11  ;;  %v11930_v62 = vpop.permute.xlu2 %8992  ;;  %19278 = vst [vmem:[#allocation135_spill] sm:$0xff] %v11932_v7  ;;  %v19291_v7 = vld [vmem:[#allocation176_spill] sm:$0xff] }
 0x1de   : > { %19277 = vst [vmem:[#allocation137_spill] sm:$0xff] %v11930_v62  ;;  %v19289_v62 = vld [vmem:[#allocation191_spill] sm:$0xff]  ;;  %v9181_v48 = vpack.i.bf16 %v19292_v17, %v19291_v7  ;;  %v19301_v17 = vld [vmem:[#allocation193_spill] sm:$0xff] }
 0x1df   : > { %v11934_v51 = vpop.permute.xlu0 %8937  ;;  %v9186_v29 = vpack.i.bf16 %v19290_v30, %v19289_v62  ;;  %v19299_v30 = vld [vmem:[#allocation197_spill] sm:$0xff] }
 0x1e0   : > { %19279 = vst [vmem:[#allocation123_spill] sm:$0xff] %v11934_v51  ;;  %v19293_v51 = vld [vmem:[#allocation178_spill] sm:$0xff] }
 0x1e1   : > { %v9176_v4 = vpack.i.bf16 %v19294_v15, %v19293_v51  ;;  %v19303_v15 = vld [vmem:[#allocation184_spill] sm:$0xff] }
 0x1e2   : > { %9167 = vrot.lane.b32.xlu1 %v9166_v26, %s10268_s11 }
 0x1e3   : > { %9172 = vrot.lane.b32.xlu2 %v9171_v11, %s10268_s11 }
 0x1e4   : > { %v11947_v43 = vpop.permute.xlu1 %8957 }
 0x1e5   : > { %9162 = vrot.lane.b32.xlu0 %v9161_v39, %s10268_s11  ;;  %v11945_v54 = vpop.permute.xlu2 %9007  ;;  %19287 = vst [vmem:[#allocation125_spill] sm:$0xff] %v11947_v43  ;;  %v19300_v43 = vld [vmem:[#allocation185_spill] sm:$0xff] }
 0x1e6   : > { %19286 = vst [vmem:[#allocation136_spill] sm:$0xff] %v11945_v54  ;;  %v9196_v7 = vpack.i.bf16 %v19301_v17, %v19300_v43  ;;  %v19302_v54 = vld [vmem:[#allocation187_spill] sm:$0xff]  ;;  %v19308_v43 = vld [vmem:[#allocation198_spill] sm:$0xff] }
 0x1e7   : > { %v11949_v47 = vpop.permute.xlu0 %8952  ;;  %v9191_v51 = vpack.i.bf16 %v19303_v15, %v19302_v54  ;;  %v19309_v15 = vld [vmem:[#allocation195_spill] sm:$0xff] }
 0x1e8   : > { %19288 = vst [vmem:[#allocation122_spill] sm:$0xff] %v11949_v47  ;;  %v19298_v47 = vld [vmem:[#allocation194_spill] sm:$0xff]  ;;  %v9206_v54 = vpack.i.bf16 %v19309_v15, %v19308_v43  ;;  %v9286_v15 = vpack.i.bf16 %v10381_v18, %v19036_v8  ;;  %v19327_v43 = vld [vmem:[#allocation21_spill] sm:$0xff] }
 0x1e9   : > { %v9201_v62 = vpack.i.bf16 %v19299_v30, %v19298_v47  ;;  %v9216_v30 = vpack.i.bf16 %v11460_v59, %v11473_v63  ;;  %v19307_v47 = vld [vmem:[#allocation196_spill] sm:$0xff]  ;;  %v9226_v59 = vpack.i.bf16 %v11498_v37, %v11456_v3  ;;  %v19313_v63 = vld [vmem:[#allocation205_spill] sm:$0xff]  ;;  %v9241_v37 = vpack.i.bf16 %v11491_v44, %v11501_v28 }
 0x1ea   : > { %9182 = vrot.lane.b32.xlu1 %v9181_v48, %s10268_s11  ;;  %v9211_v17 = vpack.i.bf16 %v11470_v5, %v19307_v47  ;;  %v19314_v5 = vld [vmem:[#allocation202_spill] sm:$0xff] }
 0x1eb   : > { %9187 = vrot.lane.b32.xlu2 %v9186_v29, %s10268_s11  ;;  %v9221_v47 = vpack.i.bf16 %v19314_v5, %v19313_v63 }
 0x1ec   : > { %v11962_v39 = vpop.permute.xlu1 %8972 }
 0x1ed   : > { %9177 = vrot.lane.b32.xlu0 %v9176_v4, %s10268_s11  ;;  %v11960_v11 = vpop.permute.xlu2 %9022  ;;  %19296 = vst [vmem:[#allocation263_spill] sm:$0xff] %v11962_v39  ;;  %v19352_v39 = vld [vmem:[#allocation147_spill] sm:$0xff] }
 0x1ee   : > { %19295 = vst [vmem:[#allocation262_spill] sm:$0xff] %v11960_v11  ;;  %v8409_v11 = vunpack.i.l.bf16 %v19352_v39 }
 0x1ef   : > { %v11964_v26 = vpop.permute.xlu0 %8967 }
 0x1f0   : > { %19297 = vst [vmem:[#allocation264_spill] sm:$0xff] %v11964_v26  ;;  %v8410_v26 = vunpack.i.h.bf16 %v19352_v39 }
 0x1f2   : > { %9197 = vrot.lane.b32.xlu1 %v9196_v7, %s10268_s11 }
 0x1f3   : > { %9202 = vrot.lane.b32.xlu2 %v9201_v62, %s10268_s11 }
 0x1f4   : > { %v11977_v48 = vpop.permute.xlu1 %8987 }
 0x1f5   : > { %9192 = vrot.lane.b32.xlu0 %v9191_v51, %s10268_s11  ;;  %v11975_v29 = vpop.permute.xlu2 %9037  ;;  %19305 = vst [vmem:[#allocation266_spill] sm:$0xff] %v11977_v48 }
 0x1f6   : > { %19304 = vst [vmem:[#allocation265_spill] sm:$0xff] %v11975_v29 }
 0x1f7   : > { %v11979_v4 = vpop.permute.xlu0 %8982 }
 0x1f8   : > { %19306 = vst [vmem:[#allocation267_spill] sm:$0xff] %v11979_v4 }
 0x1fa   : > { %9212 = vrot.lane.b32.xlu1 %v9211_v17, %s10268_s11 }
 0x1fb   : > { %9217 = vrot.lane.b32.xlu2 %v9216_v30, %s10268_s11 }
 0x1fc   : > { %v11992_v7 = vpop.permute.xlu1 %9002 }
 0x1fd   : > { %9207 = vrot.lane.b32.xlu0 %v9206_v54, %s10268_s11  ;;  %v11990_v62 = vpop.permute.xlu2 %9052  ;;  %19311 = vst [vmem:[#allocation269_spill] sm:$0xff] %v11992_v7 }
 0x1fe   : > { %19310 = vst [vmem:[#allocation268_spill] sm:$0xff] %v11990_v62  ;;  %v8336_v62 = vld [vmem:[%s18290_s1 + $0x30] sm:$0xff] }
 0x1ff   : > { %v11994_v51 = vpop.permute.xlu0 %8997 }
 0x200   : > { %19312 = vst [vmem:[#allocation270_spill] sm:$0xff] %v11994_v51  ;;  %v9351_v51 = vpack.i.bf16 %v10525_v0, %v10541_v20 }
 0x202   : > { %9227 = vrot.lane.b32.xlu1 %v9226_v59, %s10268_s11 }
 0x203   : > { %9232 = vrot.lane.b32.xlu2 %v19036_v8, %s10269_s12 }
 0x204   : > { %v12006_v17 = vpop.permute.xlu1 %9017 }
 0x205   : > { %9222 = vrot.lane.b32.xlu0 %v9221_v47, %s10268_s11  ;;  %v12004_v30 = vpop.permute.xlu2 %9067  ;;  %19316 = vst [vmem:[#allocation272_spill] sm:$0xff] %v12006_v17  ;;  %v9326_v17 = vpack.i.bf16 %v10458_v42, %v10421_v32 }
 0x206   : > { %19315 = vst [vmem:[#allocation271_spill] sm:$0xff] %v12004_v30  ;;  %v19338_v30 = vld [vmem:[#allocation35_spill] sm:$0xff] }
 0x207   : > { %v12008_v54 = vpop.permute.xlu0 %9012 }
 0x208   : > { %19317 = vst [vmem:[#allocation273_spill] sm:$0xff] %v12008_v54  ;;  %v9336_v54 = vpack.i.bf16 %v10427_v33, %v10388_v24 }
 0x20a   : > { %9242 = vrot.lane.b32.xlu1 %v9241_v37, %s10268_s11 }
 0x20b   : > { %9247 = vrot.lane.b32.xlu2 %v19036_v8, %s10269_s12 }
 0x20c   : > { %v12019_v47 = vpop.permute.xlu1 %9032 }
 0x20d   : > { %9237 = vrot.lane.b32.xlu0 %v19162_v6, %s10270_s13  ;;  %v12017_v59 = vpop.permute.xlu2 %9082  ;;  %19319 = vst [vmem:[#allocation275_spill] sm:$0xff] %v12019_v47 }
 0x20e   : > { %19318 = vst [vmem:[#allocation274_spill] sm:$0xff] %v12017_v59 }
 0x20f   : > { %v12021_v3 = vpop.permute.xlu0 %9027 }
 0x210   : > { %19320 = vst [vmem:[#allocation276_spill] sm:$0xff] %v12021_v3 }
 0x212   : > { %9257 = vrot.lane.b32.xlu1 %v19036_v8, %s10269_s12 }
 0x213   : > { %9262 = vrot.lane.b32.xlu2 %v19162_v6, %s10270_s13 }
 0x214   : > { %v12031_v44 = vpop.permute.xlu1 %9047 }
 0x215   : > { %9252 = vrot.lane.b32.xlu0 %v19162_v6, %s10270_s13  ;;  %v12029_v37 = vpop.permute.xlu2 %9097  ;;  %19322 = vst [vmem:[#allocation278_spill] sm:$0xff] %v12031_v44 }
 0x216   : > { %19321 = vst [vmem:[#allocation277_spill] sm:$0xff] %v12029_v37 }
 0x217   : > { %v12033_v28 = vpop.permute.xlu0 %9042 }
 0x218   : > { %19323 = vst [vmem:[#allocation279_spill] sm:$0xff] %v12033_v28 }
 0x21a   : > { %9272 = vrot.lane.b32.xlu1 %v19036_v8, %s10269_s12 }
 0x21b   : > { %9277 = vrot.lane.b32.xlu2 %v19162_v6, %s10270_s13 }
 0x21c   : > { %v12043_v5 = vpop.permute.xlu1 %9062 }
 0x21d   : > { %9267 = vrot.lane.b32.xlu0 %v11160_v2, %s10268_s11  ;;  %v12041_v59 = vpop.permute.xlu2 %9112  ;;  %19325 = vst [vmem:[#allocation281_spill] sm:$0xff] %v12043_v5  ;;  %v9296_v5 = vpack.i.bf16 %v10372_v16, %v10354_v9 }
 0x21e   : > { %19324 = vst [vmem:[#allocation280_spill] sm:$0xff] %v12041_v59 }
 0x21f   : > { %v12045_v63 = vpop.permute.xlu0 %9057 }
 0x220   : > { %19326 = vst [vmem:[#allocation282_spill] sm:$0xff] %v12045_v63  ;;  %v19331_v63 = vld [vmem:[#allocation19_spill] sm:$0xff] }
 0x222   : > { %9287 = vrot.lane.b32.xlu1 %v9286_v15, %s10269_s12 }
 0x223   : > { %9292 = vrot.lane.b32.xlu2 %v19327_v43, %s10270_s13 }
 0x224   : > { %v12056_v44 = vpop.permute.xlu1 %9077 }
 0x225   : > { %9282 = vrot.lane.b32.xlu0 %v11160_v2, %s10268_s11  ;;  %v12054_v28 = vpop.permute.xlu2 %9127  ;;  %19329 = vst [vmem:[#allocation283_spill] sm:$0xff] %v12056_v44  ;;  %v9311_v44 = vpack.i.bf16 %v10415_v31, %v10444_v38 }
 0x226   : > { %19328 = vst [vmem:[#allocation21_spill] sm:$0xff] %v12054_v28 }
 0x227   : > { %v12058_v47 = vpop.permute.xlu0 %9072 }
 0x228   : > { %19330 = vst [vmem:[#allocation284_spill] sm:$0xff] %v12058_v47  ;;  %v19334_v47 = vld [vmem:[#allocation37_spill] sm:$0xff] }
 0x22a   : > { %9302 = vrot.lane.b32.xlu1 %v19331_v63, %s10270_s13 }
 0x22b   : > { %9307 = vrot.lane.b32.xlu2 %v11160_v2, %s10268_s11 }
 0x22c   : > { %v12069_v43 = vpop.permute.xlu1 %9092 }
 0x22d   : > { %9297 = vrot.lane.b32.xlu0 %v9296_v5, %s10269_s12  ;;  %v12067_v15 = vpop.permute.xlu2 %9142  ;;  %19333 = vst [vmem:[#allocation285_spill] sm:$0xff] %v12069_v43 }
 0x22e   : > { %19332 = vst [vmem:[#allocation19_spill] sm:$0xff] %v12067_v15 }
 0x22f   : > { %v12071_v3 = vpop.permute.xlu0 %9087 }
 0x232   : > { %9317 = vrot.lane.b32.xlu1 %v19334_v47, %s10270_s13 }
 0x233   : > { %9322 = vrot.lane.b32.xlu2 %v11160_v2, %s10268_s11 }
 0x234   : > { %v12082_v5 = vpop.permute.xlu1 %9107 }
 0x235   : > { %9312 = vrot.lane.b32.xlu0 %v9311_v44, %s10269_s12  ;;  %v12080_v63 = vpop.permute.xlu2 %9157  ;;  %19336 = vst [vmem:[#allocation286_spill] sm:$0xff] %v12082_v5 }
 0x236   : > { %19335 = vst [vmem:[#allocation37_spill] sm:$0xff] %v12080_v63 }
 0x237   : > { %v12084_v15 = vpop.permute.xlu0 %9102 }
 0x238   : > { %19337 = vst [vmem:[#allocation287_spill] sm:$0xff] %v12084_v15  ;;  %v19365_v15 = vld [vmem:[#allocation165_spill] sm:$0xff] }
 0x239   : > { %v8374_v8 = vunpack.i.l.bf16 %v19365_v15 }
 0x23a   : > { %9332 = vrot.lane.b32.xlu1 %v19338_v30, %s10270_s13  ;;  %v8337_v30 = vld [vmem:[%s18290_s1 + $0x38] sm:$0xff] }
 0x23b   : > { %9337 = vrot.lane.b32.xlu2 %v9336_v54, %s10269_s12  ;;  %3442 = vmatpush.bf16.msra.mxu0 %v8337_v30  ;;  %v19346_v30 = vld [vmem:[#allocation52_spill] sm:$0xff] }
 0x23c   : > { %v12096_v47 = vpop.permute.xlu1 %9122 }
 0x23d   : > { %9327 = vrot.lane.b32.xlu0 %v9326_v17, %s10269_s12  ;;  %v12094_v44 = vpop.permute.xlu2 %9172  ;;  %19340 = vst [vmem:[#allocation288_spill] sm:$0xff] %v12096_v47  ;;  %v19342_v17 = vld [vmem:[#allocation32_spill] sm:$0xff]  ;;  %v12162_v47 = vsel %vm2675_vm4, %v10372_v16, %v8410_v26 }
 0x23e   : > { %19339 = vst [vmem:[#allocation35_spill] sm:$0xff] %v12094_v44 }
 0x23f   : > { %v12098_v63 = vpop.permute.xlu0 %9117  ;;  %3443 = vmatpush.bf16.msra.mxu0 %v8336_v62 }
 0x240   : > { %19341 = vst [vmem:[#allocation289_spill] sm:$0xff] %v12098_v63  ;;  %v19360_v63 = vld [vmem:[#allocation153_spill] sm:$0xff] }
 0x241   : > { %v8425_v16 = vunpack.i.h.bf16 %v19360_v63  ;;  %v8424_v26 = vunpack.i.l.bf16 %v19360_v63  ;;  %v8375_v63 = vunpack.i.h.bf16 %v19365_v15 }
 0x242   : > { %9347 = vrot.lane.b32.xlu1 %v11160_v2, %s10268_s11 }
 0x243   : > { %9352 = vrot.lane.b32.xlu2 %v9351_v51, %s10269_s12  ;;  %v9366_v51 = vpack.i.bf16 %v10515_v61, %v10491_v56  ;;  %v12210_v15 = vsel %vm2675_vm4, %v10427_v33, %v8425_v16  ;;  %v12232_v33 = vsel %vm2675_vm4, 0.0, %v8375_v63  ;;  %v12235_v16 = vsel %vm2675_vm4, 0.0, %v8374_v8 }
 0x244   : > { %v12112_v44 = vpop.permute.xlu1 %9137  ;;  %19372 = vst [vmem:[#allocation165_spill] sm:$0xff] %v12232_v33 }
 0x245   : > { %9342 = vrot.lane.b32.xlu0 %v19342_v17, %s10270_s13  ;;  %v12110_v54 = vpop.permute.xlu2 %9187  ;;  %19344 = vst [vmem:[#allocation290_spill] sm:$0xff] %v12112_v44  ;;  %v8335_v17 = vld [vmem:[%s18290_s1 + $0x28] sm:$0xff] }
 0x246   : > { %19343 = vst [vmem:[#allocation32_spill] sm:$0xff] %v12110_v54  ;;  %3444 = vmatpush.bf16.msra.mxu0 %v8335_v17  ;;  %v8334_v17 = vld [vmem:[%s18290_s1 + $0x20] sm:$0xff] }
 0x247   : > { %v12114_v7 = vpop.permute.xlu0 %9132 }
 0x248   : > { %19345 = vst [vmem:[#allocation291_spill] sm:$0xff] %v12114_v7  ;;  %v19349_v7 = vld [vmem:[#allocation141_spill] sm:$0xff] }
 0x249   : > { %v8390_v4 = vunpack.i.h.bf16 %v19349_v7  ;;  %v8389_v62 = vunpack.i.l.bf16 %v19349_v7 }
 0x24a   : > { %9362 = vrot.lane.b32.xlu1 %v11160_v2, %s10268_s11  ;;  %3445 = vmatpush.bf16.msra.mxu0 %v8334_v17 }
 0x24b   : > { %9367 = vrot.lane.b32.xlu2 %v9366_v51, %s10269_s12  ;;  %v19350_v51 = vld [vmem:[#allocation143_spill] sm:$0xff] }
 0x24c   : > { %v12131_v54 = vpop.permute.xlu1 %9152  ;;  %v8395_v48 = vunpack.i.h.bf16 %v19350_v51  ;;  %v8394_v2 = vunpack.i.l.bf16 %v19350_v51  ;;  %v12149_v51 = vsel %vm2675_vm4, 0.0, %v8390_v4  ;;  %v19358_v4 = vld [vmem:[#allocation46_spill] sm:$0xff] }
 0x24d   : > { %9357 = vrot.lane.b32.xlu0 %v19346_v30, %s10270_s13  ;;  %v12129_v44 = vpop.permute.xlu2 %9202  ;;  %19348 = vst [vmem:[#allocation292_spill] sm:$0xff] %v12131_v54  ;;  %v9376_v30 = vpack.i.bf16 %v10509_v60, %v10493_v57  ;;  %v19353_v54 = vld [vmem:[#allocation152_spill] sm:$0xff] }
 0x24e   : > { %19347 = vst [vmem:[#allocation52_spill] sm:$0xff] %v12129_v44  ;;  %v8380_v7 = vunpack.i.h.bf16 %v19353_v54  ;;  %v8379_v44 = vunpack.i.l.bf16 %v19353_v54  ;;  %v12155_v39 = vsel %vm2675_vm4, 0.0, %v8395_v48  ;;  %v12158_v28 = vsel %vm2675_vm4, 0.0, %v8394_v2  ;;  %v8333_v48 = vld [vmem:[%s18290_s1 + $0x18] sm:$0xff] }
 0x24f   : > { %v12137_v29 = vpop.permute.xlu0 %9147  ;;  %19354 = vst [vmem:[#allocation143_spill] sm:$0xff] %v12149_v51  ;;  %v12166_v54 = vsel %vm2675_vm4, %v10354_v9, %v8409_v11  ;;  %v19361_v9 = vld [vmem:[#allocation47_spill] sm:$0xff]  ;;  %3446 = vmatpush.bf16.msra.mxu0 %v8333_v48  ;;  %v8332_v48 = vld [vmem:[%s18290_s1 + $0x10] sm:$0xff] }
 0x250   : > { %19351 = vst [vmem:[#allocation141_spill] sm:$0xff] %v12137_v29  ;;  %v12152_v29 = vsel %vm2675_vm4, 0.0, %v8389_v62  ;;  %v19359_v62 = vld [vmem:[#allocation156_spill] sm:$0xff]  ;;  %v12181_v11 = vsel %vm2675_vm4, 0.0, %v8380_v7 }
 0x251   : > { %19355 = vst [vmem:[#allocation147_spill] sm:$0xff] %v12152_v29  ;;  %v8370_v2 = vunpack.i.h.bf16 %v19359_v62  ;;  %v8369_v17 = vunpack.i.l.bf16 %v19359_v62 }
 0x252   : > { %19356 = vst [vmem:[#allocation152_spill] sm:$0xff] %v12162_v47  ;;  %9377 = vrot.lane.b32.xlu1 %v9376_v30, %s10269_s12  ;;  %v12184_v30 = vsel %vm2675_vm4, 0.0, %v8379_v44  ;;  %v19368_v44 = vld [vmem:[#allocation172_spill] sm:$0xff]  ;;  %v19371_v47 = vld [vmem:[#allocation173_spill] sm:$0xff] }
 0x253   : > { %19357 = vst [vmem:[#allocation293_spill] sm:$0xff] %v12166_v54  ;;  %9382 = vrot.lane.b32.xlu2 %v19358_v4, %s10270_s13  ;;  %v19362_v4 = vld [vmem:[#allocation161_spill] sm:$0xff]  ;;  %v8455_v51 = vunpack.i.h.bf16 %v19368_v44  ;;  %v8454_v43 = vunpack.i.l.bf16 %v19368_v44  ;;  %v9386_v44 = vpack.i.bf16 %v10593_v53, %v10601_v35  ;;  %v8405_v54 = vunpack.i.h.bf16 %v19371_v47  ;;  %3447 = vmatpush.bf16.msra.mxu0 %v8332_v48 }
 0x254   : > { %v8385_v59 = vunpack.i.h.bf16 %v19362_v4  ;;  %v8384_v6 = vunpack.i.l.bf16 %v19362_v4  ;;  %v12190_v62 = vpop.permute.xlu1 %9167  ;;  %v9396_v4 = vpack.i.bf16 %v10632_v36, %v10607_v50 }
 0x255   : > { %9372 = vrot.lane.b32.xlu0 %v19361_v9, %s10270_s13  ;;  %v12188_v5 = vpop.permute.xlu2 %9217  ;;  %19364 = vst [vmem:[#allocation156_spill] sm:$0xff] %v12190_v62  ;;  %v19366_v9 = vld [vmem:[#allocation162_spill] sm:$0xff]  ;;  %v12206_v62 = vsel %vm2675_vm4, 0.0, %v8370_v2  ;;  %v12248_v48 = vsel %vm2675_vm4, %v10626_v14, %v8455_v51  ;;  %v12252_v63 = vsel %vm2675_vm4, %v10609_v52, %v8454_v43  ;;  %v12267_v43 = vpack.c.bf16 %v11152_v55, %v11152_v55 }
 0x256   : > { %19363 = vst [vmem:[#allocation46_spill] sm:$0xff] %v12188_v5  ;;  %v8440_v37 = vunpack.i.h.bf16 %v19366_v9  ;;  %v8439_v7 = vunpack.i.l.bf16 %v19366_v9  ;;  %v12214_v9 = vsel %vm2675_vm4, %v10388_v24, %v8424_v26  ;;  %v12222_v5 = vsel %vm2675_vm4, 0.0, %v8385_v59  ;;  %v8338_v24 = vld [vmem:[%s18290_s1 + $0x40] sm:$0xff]  ;;  %v19381_v26 = vld [vmem:[#allocation180_spill] sm:$0xff] }
 0x257   : > { %v12196_v29 = vpop.permute.xlu0 %9162  ;;  %19369 = vst [vmem:[#allocation47_spill] sm:$0xff] %v12222_v5  ;;  %v12225_v2 = vsel %vm2675_vm4, 0.0, %v8384_v6  ;;  %3626 = vmatpush.bf16.msra.mxu1 %v8338_v24 }
 0x258   : > { %19367 = vst [vmem:[#allocation153_spill] sm:$0xff] %v12196_v29  ;;  %v12219_v29 = vsel %vm2675_vm4, 0.0, %v8369_v17  ;;  %v12239_v59 = vsel %vm2675_vm4, %v10509_v60, %v8440_v37  ;;  %v12243_v6 = vsel %vm2675_vm4, %v10493_v57, %v8439_v7  ;;  %v19376_v17 = vld [vmem:[#allocation174_spill] sm:$0xff]  ;;  %v8331_v57 = vld [vmem:[%s18290_s1 + $0x8] sm:$0xff] }
 0x259   : > { %19370 = vst [vmem:[#allocation161_spill] sm:$0xff] %v12225_v2  ;;  %v19379_v60 = vld [vmem:[#allocation62_spill] sm:$0xff]  ;;  %v19380_v37 = vld [vmem:[#allocation179_spill] sm:$0xff]  ;;  %v8419_v2 = vunpack.i.l.bf16 %v19381_v26  ;;  %3448 = vmatpush.bf16.msra.mxu0 %v8331_v57 }
 0x25a   : > { %19373 = vst [vmem:[#allocation162_spill] sm:$0xff] %v12235_v16  ;;  %9392 = vrot.lane.b32.xlu1 %v19379_v60, %s10270_s13  ;;  %v8470_v7 = vunpack.i.h.bf16 %v19380_v37  ;;  %v8469_v51 = vunpack.i.l.bf16 %v19380_v37  ;;  %v19384_v60 = vld [vmem:[#allocation183_spill] sm:$0xff]  ;;  %8193 = vmatmul.msk.bf16.vlgmr.msra.gmra.mxu1 %vm2675_vm4, %v12267_v43  ;;  %v8330_v57 = vld [vmem:[%s18290_s1] sm:$0xff] }
 0x25b   : > { %19374 = vst [vmem:[#allocation172_spill] sm:$0xff] %v12239_v59  ;;  %9397 = vrot.lane.b32.xlu2 %v9396_v4, %s10269_s12  ;;  %v12271_v4 = vsel %vm2675_vm4, %v10381_v18, %v8405_v54  ;;  %v8415_v8 = vunpack.i.h.bf16 %v19384_v60  ;;  %v19387_v59 = vld [vmem:[#allocation189_spill] sm:$0xff]  ;;  %v12315_v33 = vsel %vm2675_vm4, %v10421_v32, %v8419_v2 }
 0x25c   : > { %19375 = vst [vmem:[#allocation173_spill] sm:$0xff] %v12243_v6  ;;  %v12278_v5 = vpop.permute.xlu1 %9182  ;;  %v8435_v6 = vunpack.i.h.bf16 %v19387_v59  ;;  %v8434_v18 = vunpack.i.l.bf16 %v19387_v59  ;;  %v12301_v59 = vsel %vm2675_vm4, %v10707_v49, %v8469_v51 }
 0x25d   : > { %19377 = vst [vmem:[#allocation174_spill] sm:$0xff] %v12248_v48  ;;  %v8420_v48 = vunpack.i.h.bf16 %v19381_v26  ;;  %9387 = vrot.lane.b32.xlu0 %v9386_v44, %s10269_s12  ;;  %v12276_v37 = vpop.permute.xlu2 %9232  ;;  %v19386_v44 = vld [vmem:[#allocation188_spill] sm:$0xff]  ;;  %v9411_v26 = vpack.i.bf16 %v10712_v22, %v10737_v41  ;;  %3449 = vmatpush.bf16.msra.mxu0 %v8330_v57 }
 0x25e   : > { %19378 = vst [vmem:[#allocation294_spill] sm:$0xff] %v12252_v63  ;;  %v8414_v63 = vunpack.i.l.bf16 %v19384_v60  ;;  %v8485_v24 = vunpack.i.h.bf16 %v19386_v44  ;;  %v8484_v55 = vunpack.i.l.bf16 %v19386_v44  ;;  %v12297_v44 = vsel %vm2675_vm4, %v10718_v19, %v8470_v7  ;;  %v19391_v7 = vld [vmem:[#allocation199_spill] sm:$0xff] }
 0x25f   : > { %19382 = vst [vmem:[#allocation62_spill] sm:$0xff] %v12267_v43  ;;  %v12284_v54 = vpop.permute.xlu0 %9177  ;;  %v8499_v51 = vunpack.i.l.bf16 %v19391_v7  ;;  %v12333_v32 = vsel %vm2675_vm4, %v10515_v61, %v8435_v6  ;;  %v19395_v61 = vld [vmem:[#allocation201_spill] sm:$0xff] }
 0x260   : > { %19383 = vst [vmem:[#allocation179_spill] sm:$0xff] %v12271_v4  ;;  %v19389_v4 = vld [vmem:[#allocation192_spill] sm:$0xff]  ;;  %v8445_v6 = vunpack.i.h.bf16 %v19395_v61 }
 0x261   : > { %19385 = vst [vmem:[#allocation180_spill] sm:$0xff] %v12278_v5  ;;  %v8430_v16 = vunpack.i.h.bf16 %v19389_v4  ;;  %v8429_v60 = vunpack.i.l.bf16 %v19389_v4  ;;  %v12305_v4 = vsel %vm2675_vm4, %v10458_v42, %v8420_v48  ;;  %v12311_v5 = vsel %vm2675_vm4, %v10415_v31, %v8415_v8  ;;  %v19396_v8 = vld [vmem:[#allocation200_spill] sm:$0xff] }
 0x262   : > { %19388 = vst [vmem:[#allocation183_spill] sm:$0xff] %v12284_v54  ;;  %v9401_v54 = vpack.i.bf16 %v10626_v14, %v10609_v52  ;;  %v12321_v42 = vsel %vm2675_vm4, %v10444_v38, %v8414_v63  ;;  %v12325_v14 = vsel %vm2675_vm4, %v10803_v10, %v8485_v24  ;;  %v12329_v31 = vsel %vm2675_vm4, %v10769_v23, %v8484_v55  ;;  %v19394_v55 = vld [vmem:[#allocation65_spill] sm:$0xff]  ;;  %v19399_v24 = vld [vmem:[#allocation206_spill] sm:$0xff] }
 0x263   : > { %19390 = vst [vmem:[#allocation188_spill] sm:$0xff] %v12297_v44  ;;  %v8500_v44 = vunpack.i.h.bf16 %v19391_v7  ;;  %v12338_v2 = vsel %vm2675_vm4, %v10525_v0, %v8430_v16  ;;  %v12342_v38 = vsel %vm2675_vm4, %v10541_v20, %v8429_v60  ;;  %v12346_v48 = vsel %vm2675_vm4, %v10491_v56, %v8434_v18  ;;  %9412 = vrot.lane.b32.xlu2 %v9411_v26, %s10269_s12  ;;  %v19401_v7 = vld [vmem:[#allocation210_spill] sm:$0xff] }
 0x264   : > { %19392 = vst [vmem:[#allocation189_spill] sm:$0xff] %v12338_v2  ;;  %9407 = vrot.lane.b32.xlu1 %v19394_v55, %s10270_s13  ;;  %v8444_v63 = vunpack.i.l.bf16 %v19395_v61  ;;  %v8450_v0 = vunpack.i.h.bf16 %v19396_v8  ;;  %v8449_v16 = vunpack.i.l.bf16 %v19396_v8  ;;  %v12362_v56 = vsel %vm2675_vm4, %v19148_v45, %v8499_v51  ;;  %v12368_v57 = vpop.permute.xlu1 %9197  ;;  %v19402_v61 = vld [vmem:[#allocation207_spill] sm:$0xff]  ;;  %v19404_v51 = vld [vmem:[#allocation213_spill] sm:$0xff]  ;;  %v19405_v2 = vld [vmem:[#allocation216_spill] sm:$0xff] }
 0x265   : > { %19393 = vst [vmem:[#allocation192_spill] sm:$0xff] %v12342_v38  ;;  %9402 = vrot.lane.b32.xlu0 %v9401_v54, %s10269_s12  ;;  %v12358_v20 = vsel %vm2675_vm4, %v10917_v21, %v8500_v44  ;;  %v8515_v18 = vunpack.i.h.bf16 %v19399_v24  ;;  %v8514_v60 = vunpack.i.l.bf16 %v19399_v24  ;;  %v12366_v26 = vpop.permute.xlu2 %9247  ;;  %v8460_v55 = vunpack.i.h.bf16 %v19401_v7 }
 0x266   : > { %19397 = vst [vmem:[#allocation199_spill] sm:$0xff] %v12358_v20  ;;  %v8459_v54 = vunpack.i.l.bf16 %v19401_v7  ;;  %v8465_v8 = vunpack.i.h.bf16 %v19402_v61  ;;  %v8464_v44 = vunpack.i.l.bf16 %v19402_v61  ;;  %v8480_v20 = vunpack.i.h.bf16 %v19404_v51 }
 0x267   : > { %19398 = vst [vmem:[#allocation65_spill] sm:$0xff] %v12362_v56  ;;  %v12374_v52 = vpop.permute.xlu0 %9192  ;;  %v8479_v56 = vunpack.i.l.bf16 %v19404_v51  ;;  %v9426_v24 = vpack.i.bf16 %v10718_v19, %v10707_v49  ;;  %v12386_v7 = vsel %vm2675_vm4, %v10607_v50, %v8449_v16  ;;  %v8475_v38 = vunpack.i.h.bf16 %v19405_v2  ;;  %v285_v16 = vld [vmem:[%s10343_s30 + $0x28] sm:$0xff] }
 0x268   : > { %19400 = vst [vmem:[#allocation201_spill] sm:$0xff] %v12368_v57  ;;  %v12382_v57 = vsel %vm2675_vm4, %v10632_v36, %v8450_v0  ;;  %v9416_v61 = vpack.i.bf16 %v10724_v46, %v10691_v25  ;;  %v12393_v51 = vsel %vm2675_vm4, %v10593_v53, %v8445_v6  ;;  %v12397_v19 = vsel %vm2675_vm4, %v10601_v35, %v8444_v63 }
 0x269   : > { %19403 = vst [vmem:[#allocation200_spill] sm:$0xff] %v12374_v52  ;;  %v12401_v49 = vsel %vm2675_vm4, %v11009_v27, %v8515_v18  ;;  %v12405_v50 = vsel %vm2675_vm4, %v10712_v22, %v8460_v55  ;;  %v12409_v36 = vsel %vm2675_vm4, %v19152_v58, %v8514_v60  ;;  %v12413_v53 = vsel %vm2675_vm4, %v10724_v46, %v8465_v8  ;;  %v19413_v46 = vld [vmem:[#allocation64_spill] sm:$0xff] }
 0x26a   : > { %19406 = vst [vmem:[#allocation206_spill] sm:$0xff] %v12401_v49  ;;  %v12417_v35 = vsel %vm2675_vm4, %v10691_v25, %v8464_v44  ;;  %v12421_v6 = vsel %vm2675_vm4, %v10737_v41, %v8459_v54  ;;  %v8474_v63 = vunpack.i.l.bf16 %v19405_v2  ;;  %v12426_v22 = vsel %vm2675_vm4, %v10819_v12, %v8480_v20  ;;  %v284_v25 = vld [vmem:[%s10343_s30 + $0x20] sm:$0xff]  ;;  %v286_v20 = vld [vmem:[%s10343_s30 + $0x30] sm:$0xff]  ;;  %8194 = vmatmul.msk.bf16.gmra.mxu1 %vm2675_vm4, %v12267_v43 }
 0x26b   : > { %19407 = vst [vmem:[#allocation210_spill] sm:$0xff] %v12405_v50  ;;  %v12430_v0 = vsel %vm2675_vm4, %v10783_v34, %v8479_v56  ;;  %9427 = vrot.lane.b32.xlu2 %v9426_v24, %s10269_s12  ;;  %v12439_v41 = vsel %vm2675_vm4, %v10813_v40, %v8475_v38  ;;  %v19415_v2 = vld [vmem:[#allocation218_spill] sm:$0xff]  ;;  %v388_v60 = vmax.f32 %v284_v25, 0.0  ;;  %v389_v55 = vmax.f32 %v285_v16, 0.0  ;;  %v19416_v56 = vld [vmem:[#allocation219_spill] sm:$0xff]  ;;  %v19418_v38 = vld [vmem:[#allocation220_spill] sm:$0xff] }
 0x26c   : > { %19408 = vst [vmem:[#allocation207_spill] sm:$0xff] %v12413_v53  ;;  %9422 = vrot.lane.b32.xlu1 %v19413_v46, %s10270_s13  ;;  %v8495_v18 = vunpack.i.h.bf16 %v19415_v2  ;;  %v8490_v54 = vunpack.i.h.bf16 %v19416_v56  ;;  %v8489_v8 = vunpack.i.l.bf16 %v19416_v56  ;;  %v8494_v44 = vunpack.i.l.bf16 %v19415_v2  ;;  %v12449_v46 = vpop.permute.xlu1 %9212  ;;  %v8339_v56 = vld [vmem:[%s18292_s3] sm:$0xff] }
 0x26d   : > { %19409 = vst [vmem:[#allocation213_spill] sm:$0xff] %v12417_v35  ;;  %9417 = vrot.lane.b32.xlu0 %v9416_v61, %s10269_s12  ;;  %v12447_v24 = vpop.permute.xlu2 %9262  ;;  %v390_v52 = vmax.f32 %v286_v20, 0.0  ;;  %v9441_v2 = vpack.i.bf16 %v10819_v12, %v10783_v34  ;;  %v9436_v20 = vpack.i.bf16 %v10813_v40, %v10831_v13  ;;  %v19421_v50 = vld [vmem:[#allocation222_spill] sm:$0xff]  ;;  %4295 = vmatpush.bf16.msra.mxu2 %v8339_v56 }
 0x26e   : > { %19410 = vst [vmem:[#allocation216_spill] sm:$0xff] %v12421_v6  ;;  %v8505_v6 = vunpack.i.h.bf16 %v19421_v50  ;;  %v12472_v53 = vsel %vm2675_vm4, %v10831_v13, %v8474_v63  ;;  %v12476_v34 = vsel %vm2675_vm4, %v19147_v1, %v8495_v18  ;;  %v19424_v12 = vld [vmem:[#allocation90_spill] sm:$0xff]  ;;  %v19430_v13 = vld [vmem:[#allocation223_spill] sm:$0xff] }
 0x26f   : > { %19411 = vst [vmem:[#allocation295_spill] sm:$0xff] %v12426_v22  ;;  %v8560_v22 = vunpack.i.h.bf16 %v19418_v38  ;;  %v12455_v16 = vpop.permute.xlu0 %9207  ;;  %v12480_v40 = vsel %vm2675_vm4, %v19424_v12, %v8494_v44  ;;  %v8575_v63 = vunpack.i.h.bf16 %v19430_v13 }
 0x270   : > { %19412 = vst [vmem:[#allocation296_spill] sm:$0xff] %v12430_v0  ;;  %v19419_v0 = vld [vmem:[#allocation221_spill] sm:$0xff] }
 0x271   : > { %19414 = vst [vmem:[#allocation64_spill] sm:$0xff] %v12439_v41  ;;  %v8559_v41 = vunpack.i.l.bf16 %v19418_v38  ;;  %v8510_v61 = vunpack.i.h.bf16 %v19419_v0  ;;  %v8509_v25 = vunpack.i.l.bf16 %v19419_v0  ;;  %v3892_v38 = vrot.slane %v388_v60, 1 }
 0x272   : > { %19417 = vst [vmem:[#allocation218_spill] sm:$0xff] %v12449_v46  ;;  %v3893_v46 = vrot.slane %v389_v55, 1  ;;  %v8504_v0 = vunpack.i.l.bf16 %v19421_v50  ;;  %v19426_v55 = vld [vmem:[#allocation87_spill] sm:$0xff] }
 0x273   : > { %19420 = vst [vmem:[#allocation219_spill] sm:$0xff] %v12455_v16  ;;  %v12468_v16 = vrot.slane %v390_v52, 1  ;;  %v12485_v50 = vsel %vm2675_vm4, %v19426_v55, %v8490_v54  ;;  %v19428_v52 = vld [vmem:[#allocation89_spill] sm:$0xff]  ;;  %v12505_v54 = vsel %vm2748_vm5, %v12184_v30, %v8559_v41  ;;  %9442 = vrot.lane.b32.xlu2 %v9441_v2, %s10269_s12  ;;  %v19440_v41 = vld [vmem:[#allocation82_spill] sm:$0xff] }
 0x274   : > { %19422 = vst [vmem:[#allocation220_spill] sm:$0xff] %v12472_v53  ;;  %v3894_v60 = vsel %vm717_vm2, %v3892_v38, %v3893_v46  ;;  %v12489_v56 = vsel %vm2675_vm4, %v19428_v52, %v8489_v8  ;;  %v12501_v38 = vsel %vm2748_vm5, %v12181_v11, %v8560_v22  ;;  %9437 = vrot.lane.b32.xlu1 %v9436_v20, %s10269_s12  ;;  %v19438_v22 = vld [vmem:[#allocation112_spill] sm:$0xff]  ;;  %v19441_v2 = vld [vmem:[#allocation225_spill] sm:$0xff]  ;;  %v19446_v20 = vld [vmem:[#allocation14_spill] sm:$0xff] }
 0x275   : > { %19423 = vst [vmem:[#allocation221_spill] sm:$0xff] %v12476_v34  ;;  %v3896_v18 = vsel %vm717_vm2, %v3893_v46, %v12468_v16  ;;  %v19431_v34 = vunpack.i.l.bf16 %v19371_v47  ;;  %v19434_v47 = vld [vmem:[#allocation114_spill] sm:$0xff]  ;;  %v12523_v30 = vsel %vm2675_vm4, %v19438_v22, %v8509_v25  ;;  %9432 = vrot.lane.b32.xlu0 %v19440_v41, %s10270_s13  ;;  %v12539_v25 = vsel %vm2748_vm5, %v12155_v39, %v8575_v63  ;;  %v19450_v63 = vld [vmem:[#allocation229_spill] sm:$0xff] }
 0x276   : > { %19425 = vst [vmem:[#allocation222_spill] sm:$0xff] %v12480_v40  ;;  %v4132_v8 = vpack.c.bf16 %v3896_v18, %v3894_v60  ;;  %v19442_v60 = vld [vmem:[#allocation224_spill] sm:$0xff]  ;;  %v12533_v40 = vpop.permute.xlu1 %9227  ;;  %v8730_v18 = vunpack.i.h.bf16 %v19446_v20 }
 0x277   : > { %19427 = vst [vmem:[#allocation90_spill] sm:$0xff] %v12485_v50  ;;  %v12497_v44 = vsel %vm2675_vm4, 0.0, %v19431_v34  ;;  %v19432_v50 = vld [vmem:[#allocation111_spill] sm:$0xff]  ;;  %v12515_v34 = vsel %vm2675_vm4, %v19434_v47, %v8504_v0 }
 0x278   : > { %19429 = vst [vmem:[#allocation87_spill] sm:$0xff] %v12489_v56  ;;  %v12511_v46 = vsel %vm2675_vm4, %v19432_v50, %v8505_v6  ;;  %v19436_v56 = vld [vmem:[#allocation113_spill] sm:$0xff]  ;;  %8233 = vmatmul.msk.bf16.vlgmr.msra.gmra.mxu2 %vm2675_vm4, %v4132_v8  ;;  %v8729_v6 = vunpack.i.l.bf16 %v19446_v20  ;;  %v9451_v8 = vpack.i.bf16 %v10803_v10, %v10769_v23 }
 0x279   : > { %19433 = vst [vmem:[#allocation89_spill] sm:$0xff] %v12511_v46  ;;  %v12519_v11 = vsel %vm2675_vm4, %v19436_v56, %v8510_v61  ;;  %v19443_v46 = vld [vmem:[#allocation231_spill] sm:$0xff]  ;;  %v19449_v61 = vld [vmem:[#allocation226_spill] sm:$0xff] }
 0x27a   : > { %19435 = vst [vmem:[#allocation223_spill] sm:$0xff] %v12515_v34  ;;  %v8549_v0 = vunpack.i.l.bf16 %v19443_v46  ;;  %v12531_v34 = vpop.permute.xlu2 %9277  ;;  %v8550_v41 = vunpack.i.h.bf16 %v19443_v46  ;;  %v8590_v35 = vunpack.i.h.bf16 %v19449_v61  ;;  %v8589_v39 = vunpack.i.l.bf16 %v19449_v61  ;;  %8195 = vmatmul.msk.bf16.gmra.mxu1 %vm2675_vm4, %v12267_v43 }
 0x27b   : > { %19437 = vst [vmem:[#allocation111_spill] sm:$0xff] %v12519_v11  ;;  %v12543_v11 = vpop.permute.xlu0 %9222 }
 0x27c   : > { %19439 = vst [vmem:[#allocation114_spill] sm:$0xff] %v12523_v30  ;;  %v19448_v30 = vld [vmem:[#allocation108_spill] sm:$0xff]  ;;  %v2750_v23 = vsel %vm2748_vm5, %v12206_v62, %v8550_v41  ;;  %9452 = vrot.lane.b32.xlu1 %v9451_v8, %s10269_s12  ;;  %v9235_v62 = vunpack.i.h.bf16 %v12276_v37 }
 0x27d   : > { %19444 = vst [vmem:[#allocation113_spill] sm:$0xff] %v12533_v40  ;;  %v8909_v53 = vunpack.i.l.bf16 %v19448_v30  ;;  %v9456_v40 = vpack.i.bf16 %v19426_v55, %v19428_v52  ;;  %v8910_v20 = vunpack.i.h.bf16 %v19448_v30  ;;  %v9090_v55 = vunpack.i.h.bf16 %v12071_v3  ;;  %v287_v30 = vld [vmem:[%s10343_s30 + $0x38] sm:$0x3] }
 0x27e   : > { %19445 = vst [vmem:[#allocation112_spill] sm:$0xff] %v12539_v25  ;;  %v9089_v25 = vunpack.i.l.bf16 %v12071_v3  ;;  %v8604_v52 = vunpack.i.l.bf16 %v19450_v63  ;;  %v2823_v61 = vsel %vm2821_vm6, %v2750_v23, %v8730_v18  ;;  %v289_v3 = vld [vmem:[%s10343_s30 + $0x48] sm:$0xff]  ;;  %v391_v41 = vmax.f32 %v287_v30, 0.0  ;;  %v12577_v23 = vpop.permute.xlu1 %9242 }
 0x27f   : > { %19447 = vst [vmem:[#allocation82_spill] sm:$0xff] %v12543_v11  ;;  %v2749_v11 = vsel %vm2748_vm5, %v12219_v29, %v8549_v0  ;;  %9457 = vrot.lane.b32.xlu2 %v9456_v40, %s10269_s12  ;;  %v288_v0 = vld [vmem:[%s10343_s30 + $0x40] sm:$0xff]  ;;  %v2896_v18 = vsel %vm2894_vm7, %v2823_v61, %v8910_v20  ;;  %v393_v8 = vmax.f32 %v289_v3, 0.0 }
 0x280   : > { %v2822_v10 = vsel %vm2821_vm6, %v2749_v11, %v8729_v6  ;;  %v9234_v11 = vunpack.i.l.bf16 %v12276_v37  ;;  %v19451_v6 = vld [vmem:[#allocation81_spill] sm:$0xff]  ;;  %v392_v46 = vmax.f32 %v288_v0, 0.0  ;;  %19452 = vst [vmem:[#allocation225_spill] sm:$0xff] %v12577_v23  ;;  %v2969_v49 = vsel %vm2967_vm8, %v2896_v18, %v9090_v55  ;;  %v19453_v3 = vld [vmem:[#allocation230_spill] sm:$0xff] }
 0x281   : > { %v2895_v29 = vsel %vm2894_vm7, %v2822_v10, %v8909_v53  ;;  %9447 = vrot.lane.b32.xlu0 %v19451_v6, %s10270_s13  ;;  %v9466_v37 = vpack.i.bf16 %v19147_v1, %v19424_v12  ;;  %v3897_v20 = vrot.slane %v391_v41, 1  ;;  %v8555_v23 = vunpack.i.h.bf16 %v19453_v3 }
 0x282   : > { %v12575_v53 = vpop.permute.xlu2 %9292  ;;  %v2968_v40 = vsel %vm2967_vm8, %v2895_v29, %v9089_v25  ;;  %v3899_v61 = vrot.slane %v392_v46, 1  ;;  %v3042_v25 = vsel %vm18829_vm9, %v2969_v49, %v9235_v62  ;;  %v12587_v29 = vrot.slane %v393_v8, 1 }
 0x283   : > { %v9238_v10 = vpop.permute.xlu0 %9237  ;;  %v3041_v0 = vsel %vm18829_vm9, %v2968_v40, %v9234_v11  ;;  %v3898_v1 = vsel %vm717_vm2, %v12468_v16, %v3897_v20  ;;  %v19454_v12 = vunpack.i.l.bf16 %v19430_v13  ;;  %v8554_v11 = vunpack.i.l.bf16 %v19453_v3  ;;  %v19457_v16 = vld [vmem:[#allocation128_spill] sm:$0xff]  ;;  %v19465_v3 = vld [vmem:[#allocation130_spill] sm:$0xff] }
 0x284   : > { %v9240_v6 = vunpack.i.h.bf16 %v9238_v10  ;;  %v9239_v30 = vunpack.i.l.bf16 %v9238_v10  ;;  %v3901_v62 = vsel %vm717_vm2, %v3899_v61, %v12587_v29  ;;  %v19455_v41 = vunpack.i.h.bf16 %v19376_v17  ;;  %v19460_v10 = vld [vmem:[#allocation129_spill] sm:$0xff]  ;;  %9467 = vrot.lane.b32.xlu1 %v9466_v37, %s10269_s12  ;;  %v19471_v37 = vld [vmem:[#allocation80_spill] sm:$0xff] }
 0x285   : > { %v12598_v46 = vsel %vm2748_vm5, %v12158_v28, %v19454_v12  ;;  %v19456_v8 = vunpack.i.h.bf16 %v19441_v2  ;;  %v19459_v28 = vunpack.i.l.bf16 %v19442_v60  ;;  %v4133_v20 = vpack.c.bf16 %v3901_v62, %v3898_v1 }
 0x286   : > { %v3114_v55 = vsel %vm18828_vm10, %v3041_v0, %v9239_v30  ;;  %v3115_v18 = vsel %vm18828_vm10, %v3042_v25, %v9240_v6  ;;  %v12606_v40 = vsel %vm2675_vm4, 0.0, %v19455_v41  ;;  %v19462_v30 = vld [vmem:[#allocation102_spill] sm:$0xff]  ;;  %v19463_v61 = vunpack.i.l.bf16 %v19376_v17  ;;  %v19469_v41 = vld [vmem:[#allocation152_spill] sm:$0xff] }
 0x287   : > { %v3186_v49 = vpack.c.bf16 %v3115_v18, %v3114_v55  ;;  %v12612_v13 = vsel %vm2675_vm4, %v19457_v16, %v19456_v8  ;;  %v12618_v6 = vsel %vm2675_vm4, %v19460_v10, %v19459_v28  ;;  %9472 = vrot.lane.b32.xlu2 %v19462_v30, %s10270_s13  ;;  %v19464_v25 = vunpack.i.l.bf16 %v19441_v2  ;;  %v19467_v18 = vld [vmem:[#allocation293_spill] sm:$0xff]  ;;  %v19476_v28 = vld [vmem:[#allocation232_spill] sm:$0xff] }
 0x288   : > { %19458 = vst [vmem:[#allocation224_spill] sm:$0xff] %v12612_v13  ;;  %v12626_v0 = vsel %vm2675_vm4, 0.0, %v19463_v61  ;;  %v12636_v12 = vsel %vm2748_vm5, %v19467_v18, %v8589_v39  ;;  %v12640_v8 = vsel %vm2748_vm5, %v19469_v41, %v8590_v35  ;;  %v12646_v17 = vsel %vm2748_vm5, %v12214_v9, %v8604_v52  ;;  %v19475_v39 = vld [vmem:[#allocation165_spill] sm:$0xff]  ;;  %v12659_v61 = vpop.permute.xlu1 %9257  ;;  %8234 = vmatmul.msk.bf16.gmra.mxu2 %vm2675_vm4, %v4133_v20  ;;  %v19480_v18 = vld [vmem:[#allocation26_spill] sm:$0xff]  ;;  %v19482_v20 = vld [vmem:[#allocation124_spill] sm:$0xff] }
 0x289   : > { %19461 = vst [vmem:[#allocation231_spill] sm:$0xff] %v12618_v6  ;;  %v12632_v55 = vsel %vm2675_vm4, %v19465_v3, %v19464_v25  ;;  %9462 = vrot.lane.b32.xlu0 %v19471_v37, %s10270_s13  ;;  %3450 = vmatmul.bf16.vlgmr.msra.gmra.mxu0 %v3186_v49  ;;  %v19473_v2 = vunpack.i.h.bf16 %v19450_v63  ;;  %v2752_v62 = vsel %vm2748_vm5, %v19475_v39, %v8555_v23  ;;  %v8619_v35 = vunpack.i.l.bf16 %v19476_v28  ;;  %v19478_v49 = vld [vmem:[#allocation162_spill] sm:$0xff]  ;;  %v19479_v52 = vld [vmem:[#allocation233_spill] sm:$0xff] }
 0x28a   : > { %19466 = vst [vmem:[#allocation14_spill] sm:$0xff] %v12632_v55  ;;  %v12657_v30 = vpop.permute.xlu2 %9307  ;;  %v2751_v9 = vsel %vm2748_vm5, %v19478_v49, %v8554_v11  ;;  %v8620_v63 = vunpack.i.h.bf16 %v19476_v28  ;;  %v8570_v25 = vunpack.i.h.bf16 %v19479_v52  ;;  %v8735_v41 = vunpack.i.h.bf16 %v19480_v18  ;;  %v19481_v39 = vld [vmem:[#allocation234_spill] sm:$0xff]  ;;  %8196 = vmatmul.msk.bf16.gmra.mxu1 %vm2675_vm4, %v12267_v43 }
 0x28b   : > { %19468 = vst [vmem:[#allocation108_spill] sm:$0xff] %v12636_v12  ;;  %v12652_v1 = vsel %vm2748_vm5, %v12210_v15, %v19473_v2  ;;  %v8569_v15 = vunpack.i.l.bf16 %v19479_v52  ;;  %v8734_v23 = vunpack.i.l.bf16 %v19480_v18  ;;  %v9253_v37 = vpop.permute.xlu0 %9252  ;;  %v9481_v2 = vpack.i.bf16 %v19432_v50, %v19434_v47  ;;  %v19483_v52 = vld [vmem:[#allocation173_spill] sm:$0xff]  ;;  %v19486_v47 = vld [vmem:[#allocation172_spill] sm:$0xff] }
 0x28c   : > { %19470 = vst [vmem:[#allocation226_spill] sm:$0xff] %v12640_v8  ;;  %v8914_v11 = vunpack.i.l.bf16 %v19482_v20  ;;  %v9476_v28 = vpack.i.bf16 %v10917_v21, %v19148_v45  ;;  %v8564_v49 = vunpack.i.l.bf16 %v19481_v39  ;;  %v12679_v18 = vsel %vm2748_vm5, %v19483_v52, %v8619_v35 }
 0x28d   : > { %19472 = vst [vmem:[#allocation229_spill] sm:$0xff] %v12646_v17  ;;  %v19485_v17 = vld [vmem:[#allocation285_spill] sm:$0xff]  ;;  %v12685_v12 = vsel %vm2748_vm5, %v19486_v47, %v8620_v63  ;;  %v9250_v55 = vunpack.i.h.bf16 %v12366_v26  ;;  %v9249_v45 = vunpack.i.l.bf16 %v12366_v26  ;;  %v2824_v21 = vsel %vm2821_vm6, %v2751_v9, %v8734_v23  ;;  %9482 = vrot.lane.b32.xlu1 %v9481_v2, %s10269_s12 }
 0x28e   : > { %19474 = vst [vmem:[#allocation81_spill] sm:$0xff] %v12652_v1  ;;  %v8915_v1 = vunpack.i.h.bf16 %v19482_v20  ;;  %v9095_v8 = vunpack.i.h.bf16 %v19485_v17  ;;  %v9094_v50 = vunpack.i.l.bf16 %v19485_v17  ;;  %v19488_v20 = vld [vmem:[#allocation235_spill] sm:$0xff]  ;;  %v9255_v35 = vunpack.i.h.bf16 %v9253_v37  ;;  %v290_v17 = vld [vmem:[%s10343_s30 + $0x50] sm:$0xff]  ;;  %v291_v63 = vld [vmem:[%s10343_s30 + $0x58] sm:$0x3] }
 0x28f   : > { %19477 = vst [vmem:[#allocation230_spill] sm:$0xff] %v12657_v30  ;;  %v8565_v30 = vunpack.i.h.bf16 %v19481_v39  ;;  %v8635_v13 = vunpack.i.h.bf16 %v19488_v20  ;;  %v2825_v39 = vsel %vm2821_vm6, %v2752_v62, %v8735_v41  ;;  %v9254_v52 = vunpack.i.l.bf16 %v9253_v37  ;;  %v19490_v62 = vld [vmem:[#allocation236_spill] sm:$0xff] }
 0x290   : > { %19484 = vst [vmem:[#allocation128_spill] sm:$0xff] %v12679_v18  ;;  %v19489_v18 = vld [vmem:[#allocation99_spill] sm:$0xff]  ;;  %v2897_v47 = vsel %vm2894_vm7, %v2824_v21, %v8914_v11  ;;  %v394_v26 = vmax.f32 %v290_v17, 0.0  ;;  %v395_v6 = vmax.f32 %v291_v63, 0.0  ;;  %v8634_v9 = vunpack.i.l.bf16 %v19488_v20  ;;  %v19492_v17 = vld [vmem:[#allocation237_spill] sm:$0xff] }
 0x291   : > { %19487 = vst [vmem:[#allocation129_spill] sm:$0xff] %v12685_v12  ;;  %9487 = vrot.lane.b32.xlu2 %v19489_v18, %s10270_s13  ;;  %v2898_v12 = vsel %vm2894_vm7, %v2825_v39, %v8915_v1  ;;  %9477 = vrot.lane.b32.xlu0 %v9476_v28, %s10269_s12  ;;  %v8584_v41 = vunpack.i.l.bf16 %v19490_v62  ;;  %v2970_v37 = vsel %vm2967_vm8, %v2897_v47, %v9094_v50  ;;  %v12710_v28 = vpop.permute.xlu1 %9272 }
 0x292   : > { %v12702_v23 = vpop.permute.xlu2 %9322  ;;  %v2971_v2 = vsel %vm2967_vm8, %v2898_v12, %v9095_v8  ;;  %v9496_v18 = vpack.i.bf16 %v11009_v27, %v19152_v58  ;;  %v3043_v11 = vsel %vm18829_vm9, %v2970_v37, %v9249_v45  ;;  %v3902_v39 = vrot.slane %v394_v26, 1  ;;  %v19496_v26 = vld [vmem:[#allocation47_spill] sm:$0xff] }
 0x293   : > { %19491 = vst [vmem:[#allocation102_spill] sm:$0xff] %v12702_v23  ;;  %v3044_v1 = vsel %vm18829_vm9, %v2971_v2, %v9250_v55  ;;  %v3116_v21 = vsel %vm18828_vm10, %v3043_v11, %v9254_v52  ;;  %v3904_v50 = vrot.slane %v395_v6, 1  ;;  %v8580_v12 = vunpack.i.h.bf16 %v19492_v17  ;;  %v19493_v55 = vld [vmem:[#allocation143_spill] sm:$0xff]  ;;  %v12729_v63 = vpop.permute.xlu0 %9267  ;;  %v19498_v2 = vld [vmem:[#allocation212_spill] sm:$0xff]  ;;  %v19499_v11 = vld [vmem:[#allocation294_spill] sm:$0xff] }
 0x294   : > { %v3117_v20 = vsel %vm18828_vm10, %v3044_v1, %v9255_v35  ;;  %v8579_v8 = vunpack.i.l.bf16 %v19492_v17  ;;  %v8585_v27 = vunpack.i.h.bf16 %v19490_v62  ;;  %v9491_v58 = vpack.i.bf16 %v19436_v56, %v19438_v22  ;;  %v19494_v52 = vld [vmem:[#allocation147_spill] sm:$0xff]  ;;  %19495 = vst [vmem:[#allocation130_spill] sm:$0xff] %v12729_v63  ;;  %v19497_v56 = vld [vmem:[#allocation161_spill] sm:$0xff]  ;;  %v19500_v17 = vld [vmem:[#allocation174_spill] sm:$0xff] }
 0x295   : > { %v12723_v45 = vsel %vm2748_vm5, %v19493_v55, %v8570_v25  ;;  %v12727_v35 = vsel %vm2748_vm5, %v19494_v52, %v8569_v15  ;;  %v3903_v6 = vsel %vm717_vm2, %v12587_v29, %v3902_v39  ;;  %v3905_v47 = vsel %vm717_vm2, %v3902_v39, %v3904_v50  ;;  %v19501_v39 = vld [vmem:[#allocation95_spill] sm:$0xff]  ;;  %9497 = vrot.lane.b32.xlu1 %v9496_v18, %s10269_s12  ;;  %v19504_v50 = vld [vmem:[#allocation253_spill] sm:$0xff]  ;;  %v19507_v52 = vld [vmem:[#allocation92_spill] sm:$0xff] }
 0x296   : > { %v12736_v62 = vsel %vm2748_vm5, %v19496_v26, %v8565_v30  ;;  %v12740_v22 = vsel %vm2748_vm5, %v19497_v56, %v8564_v49  ;;  %v3188_v25 = vpack.c.bf16 %v3117_v20, %v3116_v21  ;;  %v4134_v37 = vpack.c.bf16 %v3905_v47, %v3903_v6  ;;  %v19508_v47 = vld [vmem:[#allocation277_spill] sm:$0xff] }
 0x297   : > { %v12745_v1 = vsel %vm2748_vm5, %v19499_v11, %v8634_v9  ;;  %v12749_v29 = vsel %vm2748_vm5, %v19500_v17, %v8635_v13  ;;  %v12753_v30 = vsel %vm2748_vm5, %v12497_v44, %v8584_v41  ;;  %v12761_v21 = vsel %vm2748_vm5, %v12606_v40, %v8580_v12  ;;  %v19502_v13 = vld [vmem:[#allocation179_spill] sm:$0xff]  ;;  %v19503_v44 = vld [vmem:[#allocation238_spill] sm:$0xff]  ;;  %v19509_v11 = vld [vmem:[#allocation240_spill] sm:$0xff] }
 0x298   : > { %v12765_v9 = vsel %vm2748_vm5, %v12626_v0, %v8579_v8  ;;  %v12769_v20 = vsel %vm2748_vm5, %v19502_v13, %v8585_v27  ;;  %v8650_v41 = vunpack.i.h.bf16 %v19503_v44  ;;  %v8649_v18 = vunpack.i.l.bf16 %v19503_v44  ;;  %8235 = vmatmul.msk.bf16.gmra.mxu2 %vm2675_vm4, %v4134_v37  ;;  %v19506_v0 = vld [vmem:[#allocation239_spill] sm:$0xff]  ;;  %v295_v63 = vld [vmem:[%s10343_s30 + $0x78] sm:$0x3] }
 0x299   : > { %9502 = vrot.lane.b32.xlu2 %v19501_v39, %s10270_s13  ;;  %9492 = vrot.lane.b32.xlu0 %v9491_v58, %s10269_s12  ;;  %v8740_v55 = vunpack.i.h.bf16 %v19504_v50  ;;  %v8739_v40 = vunpack.i.l.bf16 %v19504_v50  ;;  %v8600_v8 = vunpack.i.h.bf16 %v19506_v0  ;;  %v8599_v27 = vunpack.i.l.bf16 %v19506_v0 }
 0x29a   : > { %3453 = vmatmul.bf16.gmra.mxu0 %v3188_v25  ;;  %v12776_v12 = vpop.permute.xlu2 %9337  ;;  %v8920_v6 = vunpack.i.h.bf16 %v19507_v52  ;;  %v8919_v58 = vunpack.i.l.bf16 %v19507_v52  ;;  %v9100_v26 = vunpack.i.h.bf16 %v19508_v47  ;;  %v9099_v56 = vunpack.i.l.bf16 %v19508_v47  ;;  %v12800_v52 = vpop.permute.xlu1 %9287  ;;  %v19510_v47 = vld [vmem:[#allocation188_spill] sm:$0xff] }
 0x29b   : > { %19505 = vst [vmem:[#allocation293_spill] sm:$0xff] %v12776_v12  ;;  %v9516_v25 = vpack.i.bf16 0.0, %v19460_v10  ;;  %v8595_v17 = vunpack.i.h.bf16 %v19509_v11  ;;  %v9260_v39 = vunpack.i.h.bf16 %v12659_v61  ;;  %v9259_v37 = vunpack.i.l.bf16 %v12659_v61 }
 0x29c   : > { %v9506_v13 = vpack.i.bf16 %v19457_v16, %v19465_v3  ;;  %v8594_v44 = vunpack.i.l.bf16 %v19509_v11  ;;  %v12794_v50 = vsel %vm2748_vm5, %v12301_v59, %v8649_v18  ;;  %v2826_v0 = vsel %vm2821_vm6, %v12505_v54, %v8739_v40  ;;  %v12814_v18 = vpop.permute.xlu0 %9282  ;;  %v19513_v40 = vld [vmem:[#allocation241_spill] sm:$0xff]  ;;  %v19515_v11 = vld [vmem:[#allocation146_spill] sm:$0xff] }
 0x29d   : > { %v2827_v10 = vsel %vm2821_vm6, %v12501_v38, %v8740_v55  ;;  %v12804_v61 = vsel %vm2748_vm5, %v19510_v47, %v8650_v41  ;;  %v12808_v16 = vsel %vm2748_vm5, %v12315_v33, %v8599_v27  ;;  %v2899_v59 = vsel %vm2894_vm7, %v2826_v0, %v8919_v58  ;;  %19511 = vst [vmem:[#allocation152_spill] sm:$0xff] %v12814_v18  ;;  %v19512_v41 = vld [vmem:[#allocation116_spill] sm:$0xff] }
 0x29e   : > { %v2900_v54 = vsel %vm2894_vm7, %v2827_v10, %v8920_v6  ;;  %v9265_v3 = vunpack.i.h.bf16 %v12447_v24  ;;  %v9264_v38 = vunpack.i.l.bf16 %v12447_v24  ;;  %9512 = vrot.lane.b32.xlu1 %v19512_v41, %s10270_s13  ;;  %v2972_v33 = vsel %vm2967_vm8, %v2899_v59, %v9099_v56  ;;  %v19514_v24 = vld [vmem:[#allocation140_spill] sm:$0xff]  ;;  %v292_v10 = vld [vmem:[%s10343_s30 + $0x60] sm:$0xff] }
 0x29f   : > { %v2973_v55 = vsel %vm2967_vm8, %v2900_v54, %v9100_v26  ;;  %v8665_v27 = vunpack.i.h.bf16 %v19513_v40  ;;  %v3045_v6 = vsel %vm18829_vm9, %v2972_v33, %v9259_v37  ;;  %v3195_v0 = vpack.c.bf16 %v19515_v11, %v19514_v24  ;;  %v294_v47 = vld [vmem:[%s10343_s30 + $0x70] sm:$0xff]  ;;  %v19517_v54 = vld [vmem:[#allocation242_spill] sm:$0xff]  ;;  %v19518_v11 = vld [vmem:[#allocation243_spill] sm:$0xff] }
 0x2a0   : > { %v3046_v58 = vsel %vm18829_vm9, %v2973_v55, %v9260_v39  ;;  %v8664_v41 = vunpack.i.l.bf16 %v19513_v40  ;;  %v396_v56 = vmax.f32 %v292_v10, 0.0  ;;  %v398_v59 = vmax.f32 %v294_v47, 0.0  ;;  %v19522_v47 = vld [vmem:[#allocation192_spill] sm:$0xff]  ;;  %v19532_v24 = vld [vmem:[#allocation199_spill] sm:$0xff] }
 0x2a1   : > { %9517 = vrot.lane.b32.xlu2 %v9516_v25, %s10269_s12  ;;  %9507 = vrot.lane.b32.xlu0 %v9506_v13, %s10269_s12  ;;  %v293_v25 = vld [vmem:[%s10343_s30 + $0x68] sm:$0xff]  ;;  %v8615_v15 = vunpack.i.h.bf16 %v19517_v54  ;;  %v8614_v13 = vunpack.i.l.bf16 %v19517_v54  ;;  %v3118_v37 = vsel %vm18828_vm10, %v3045_v6, %v9264_v38  ;;  %v3119_v39 = vsel %vm18828_vm10, %v3046_v58, %v9265_v3 }
 0x2a2   : > { %v12831_v49 = vpop.permute.xlu2 %9352  ;;  %v397_v26 = vmax.f32 %v293_v25, 0.0  ;;  %8197 = vmatmul.msk.bf16.gmra.mxu1 %vm2675_vm4, %v3195_v0  ;;  %v3906_v33 = vrot.slane %v396_v56, 1  ;;  %v8610_v23 = vunpack.i.h.bf16 %v19518_v11  ;;  %v8609_v40 = vunpack.i.l.bf16 %v19518_v11  ;;  %v19523_v56 = vld [vmem:[#allocation189_spill] sm:$0xff]  ;;  %v19528_v11 = vld [vmem:[#allocation246_spill] sm:$0xff] }
 0x2a3   : > { %19516 = vst [vmem:[#allocation80_spill] sm:$0xff] %v12831_v49  ;;  %v12840_v43 = vrot.slane %v398_v59, 1  ;;  %v12844_v10 = vsel %vm2748_vm5, %v12321_v42, %v8594_v44  ;;  %v12848_v25 = vsel %vm2748_vm5, %v12311_v5, %v8595_v17  ;;  %v12852_v3 = vsel %vm2748_vm5, %v12305_v4, %v8600_v8  ;;  %v12878_v8 = vpop.permute.xlu1 %9302  ;;  %v19525_v59 = vld [vmem:[#allocation245_spill] sm:$0xff]  ;;  %v297_v49 = vld [vmem:[%s10343_s30 + $0x88] sm:$0xff] }
 0x2a4   : > { %v3907_v55 = vrot.slane %v397_v26, 1  ;;  %v12857_v6 = vsel %vm2748_vm5, %v12329_v31, %v8664_v41  ;;  %v12861_v58 = vsel %vm2748_vm5, %v12325_v14, %v8665_v27  ;;  %v3190_v42 = vpack.c.bf16 %v3119_v39, %v3118_v37  ;;  %v19521_v27 = vld [vmem:[#allocation118_spill] sm:$0xff]  ;;  %v19524_v26 = vld [vmem:[#allocation244_spill] sm:$0xff]  ;;  %v19526_v37 = vld [vmem:[#allocation13_spill] sm:$0xff] }
 0x2a5   : > { %v19519_v5 = vunpack.i.h.bf16 %v19498_v2  ;;  %v12872_v4 = vsel %vm2748_vm5, %v12346_v48, %v8614_v13  ;;  %v12876_v31 = vsel %vm2748_vm5, %v12333_v32, %v8615_v15  ;;  %v19520_v14 = vmov 0.0  }
 0x2a6   : > { %v3908_v38 = vsel %vm717_vm2, %v3906_v33, %v3907_v55  ;;  %v3910_v44 = vsel %vm717_vm2, %v3907_v55, %v12840_v43  ;;  %9527 = vrot.lane.b32.xlu1 %v19521_v27, %s10270_s13  ;;  %v12886_v41 = vsel %vm2748_vm5, %v19522_v47, %v8609_v40  ;;  %v12890_v48 = vsel %vm2748_vm5, %v19523_v56, %v8610_v23  ;;  %v12900_v55 = vpop.permute.xlu0 %9297  ;;  %v19530_v27 = vld [vmem:[#allocation287_spill] sm:$0xff] }
 0x2a7   : > { %v12868_v17 = vsel %vm2675_vm4, 0.0, %v19519_v5  ;;  %v4135_v0 = vpack.c.bf16 %v3910_v44, %v3908_v38  ;;  %v8680_v32 = vunpack.i.h.bf16 %v19524_v26  ;;  %v8679_v15 = vunpack.i.l.bf16 %v19524_v26  ;;  %v19529_v44 = vld [vmem:[#allocation107_spill] sm:$0xff]  ;;  %v19531_v26 = vld [vmem:[#allocation65_spill] sm:$0xff] }
 0x2a8   : > { %v8630_v54 = vunpack.i.h.bf16 %v19525_v59  ;;  %v8629_v13 = vunpack.i.l.bf16 %v19525_v59  ;;  %v8745_v39 = vunpack.i.h.bf16 %v19526_v37  ;;  %v8744_v33 = vunpack.i.l.bf16 %v19526_v37 }
 0x2a9   : > { %9532 = vrot.lane.b32.xlu2 %v19520_v14, %s10269_s12  ;;  %9522 = vrot.lane.b32.xlu0 %v19520_v14, %s10269_s12  ;;  %v8625_v40 = vunpack.i.h.bf16 %v19528_v11  ;;  %v8624_v38 = vunpack.i.l.bf16 %v19528_v11  ;;  %v8924_v5 = vunpack.i.l.bf16 %v19529_v44  ;;  %v9105_v47 = vunpack.i.h.bf16 %v19530_v27 }
 0x2aa   : > { %3456 = vmatmul.bf16.gmra.mxu0 %v3190_v42  ;;  %v12902_v23 = vpop.permute.xlu2 %9367  ;;  %8236 = vmatmul.msk.bf16.gmra.mxu2 %vm2675_vm4, %v4135_v0  ;;  %v8925_v42 = vunpack.i.h.bf16 %v19529_v44  ;;  %v9104_v56 = vunpack.i.l.bf16 %v19530_v27  ;;  %v12913_v59 = vsel %vm2748_vm5, %v19531_v26, %v8679_v15  ;;  %v9275_v37 = vunpack.i.h.bf16 %v12710_v28  ;;  %v19535_v15 = vld [vmem:[#allocation94_spill] sm:$0xff] }
 0x2ab   : > { %19527 = vst [vmem:[#allocation165_spill] sm:$0xff] %v12902_v23  ;;  %v9274_v0 = vunpack.i.l.bf16 %v12710_v28  ;;  %v12919_v18 = vsel %vm2748_vm5, %v19532_v24, %v8680_v32  ;;  %v12923_v11 = vsel %vm2748_vm5, %v12386_v7, %v8629_v13  ;;  %v2828_v44 = vsel %vm2821_vm6, %v12740_v22, %v8744_v33  ;;  %v19537_v33 = vld [vmem:[#allocation91_spill] sm:$0xff]  ;;  %v296_v23 = vld [vmem:[%s10343_s30 + $0x80] sm:$0xff] }
 0x2ac   : > { %19533 = vst [vmem:[#allocation232_spill] sm:$0xff] %v12919_v18  ;;  %v2829_v27 = vsel %vm2821_vm6, %v12736_v62, %v8745_v39  ;;  %v8695_v26 = vunpack.i.h.bf16 %v19535_v15  ;;  %v8694_v28 = vunpack.i.l.bf16 %v19535_v15  ;;  %v2901_v32 = vsel %vm2894_vm7, %v2828_v44, %v8924_v5  ;;  %v19536_v62 = vld [vmem:[#allocation117_spill] sm:$0xff] }
 0x2ad   : > { %19534 = vst [vmem:[#allocation162_spill] sm:$0xff] %v12923_v11  ;;  %v2902_v24 = vsel %vm2894_vm7, %v2829_v27, %v8925_v42  ;;  %v9280_v7 = vunpack.i.h.bf16 %v12531_v34  ;;  %v9279_v13 = vunpack.i.l.bf16 %v12531_v34  ;;  %v2974_v22 = vsel %vm2967_vm8, %v2901_v32, %v9104_v56  ;;  %v19538_v34 = vld [vmem:[#allocation144_spill] sm:$0xff]  ;;  %v19539_v44 = vld [vmem:[#allocation145_spill] sm:$0xff]  ;;  %v12952_v56 = vpop.permute.xlu1 %9317  ;;  %v19541_v11 = vld [vmem:[#allocation247_spill] sm:$0xff] }
 0x2ae   : > { %9542 = vrot.lane.b32.xlu1 %v19536_v62, %s10270_s13  ;;  %v2975_v39 = vsel %vm2967_vm8, %v2902_v24, %v9105_v47  ;;  %v8645_v15 = vunpack.i.h.bf16 %v19537_v33  ;;  %v3047_v42 = vsel %vm18829_vm9, %v2974_v22, %v9274_v0  ;;  %v3197_v27 = vpack.c.bf16 %v19539_v44, %v19538_v34 }
 0x2af   : > { %v3048_v5 = vsel %vm18829_vm9, %v2975_v39, %v9275_v37  ;;  %v8644_v62 = vunpack.i.l.bf16 %v19537_v33  ;;  %v399_v24 = vmax.f32 %v295_v63, 0.0  ;;  %v400_v32 = vmax.f32 %v296_v23, 0.0  ;;  %v12958_v37 = vpop.permute.xlu0 %9312 }
 0x2b0   : > { %v401_v12 = vmax.f32 %v297_v49, 0.0  ;;  %v8640_v18 = vunpack.i.h.bf16 %v19541_v11  ;;  %v8639_v0 = vunpack.i.l.bf16 %v19541_v11  ;;  %v3120_v22 = vsel %vm18828_vm10, %v3047_v42, %v9279_v13 }
 0x2b1   : > { %9547 = vrot.lane.b32.xlu2 %v19520_v14, %s10269_s12  ;;  %9537 = vrot.lane.b32.xlu0 %v19520_v14, %s10269_s12  ;;  %v3121_v39 = vsel %vm18828_vm10, %v3048_v5, %v9280_v7  ;;  %v3911_v33 = vrot.slane %v399_v24, 1  ;;  %v3913_v34 = vrot.slane %v400_v32, 1  ;;  %v12965_v44 = vsel %vm2748_vm5, %v12397_v19, %v8624_v38  ;;  %v19542_v7 = vld [vmem:[#allocation206_spill] sm:$0xff]  ;;  %v19543_v38 = vld [vmem:[#allocation213_spill] sm:$0xff]  ;;  %v19549_v24 = vld [vmem:[#allocation15_spill] sm:$0xff] }
 0x2b2   : > { %v12954_v47 = vpop.permute.xlu2 %9382  ;;  %8198 = vmatmul.msk.bf16.gmra.mxu1 %vm2675_vm4, %v3197_v27  ;;  %v12969_v63 = vsel %vm2748_vm5, %v12382_v57, %v8630_v54  ;;  %v12971_v49 = vrot.slane %v401_v12, 1  ;;  %v12975_v23 = vsel %vm2748_vm5, %v12393_v51, %v8625_v40  ;;  %v12979_v11 = vsel %vm2748_vm5, %v12409_v36, %v8694_v28  ;;  %v19544_v12 = vld [vmem:[#allocation207_spill] sm:$0xff]  ;;  %v19546_v28 = vld [vmem:[#allocation216_spill] sm:$0xff]  ;;  %v19548_v27 = vld [vmem:[#allocation110_spill] sm:$0xff] }
 0x2b3   : > { %19540 = vst [vmem:[#allocation233_spill] sm:$0xff] %v12954_v47  ;;  %v12983_v13 = vsel %vm2748_vm5, %v19542_v7, %v8695_v26  ;;  %v3912_v19 = vsel %vm717_vm2, %v12840_v43, %v3911_v33  ;;  %v12989_v57 = vsel %vm2748_vm5, %v19543_v38, %v8644_v62  ;;  %v12993_v54 = vsel %vm2748_vm5, %v19544_v12, %v8645_v15  ;;  %v19547_v43 = vld [vmem:[#allocation210_spill] sm:$0xff]  ;;  %v19554_v12 = vld [vmem:[#allocation249_spill] sm:$0xff] }
 0x2b4   : > { %v3192_v51 = vpack.c.bf16 %v3121_v39, %v3120_v22  ;;  %v3915_v36 = vsel %vm717_vm2, %v3913_v34, %v12971_v49  ;;  %v19545_v40 = vunpack.i.l.bf16 %v19498_v2  ;;  %v13002_v42 = vsel %vm2748_vm5, %v19546_v28, %v8639_v0  ;;  %v19550_v22 = vld [vmem:[#allocation133_spill] sm:$0xff]  ;;  %v19555_v28 = vld [vmem:[#allocation286_spill] sm:$0xff] }
 0x2b5   : > { %v13006_v5 = vsel %vm2748_vm5, %v19547_v43, %v8640_v18  ;;  %v4136_v15 = vpack.c.bf16 %v3915_v36, %v3912_v19  ;;  %v8710_v62 = vunpack.i.h.bf16 %v19548_v27  ;;  %v8709_v2 = vunpack.i.l.bf16 %v19548_v27  ;;  %v19551_v18 = vld [vmem:[#allocation248_spill] sm:$0xff]  ;;  %v19552_v34 = vld [vmem:[#allocation109_spill] sm:$0xff] }
 0x2b6   : > { %v2740_v26 = vsel %vm2675_vm4, 0.0, %v19545_v40  ;;  %9557 = vrot.lane.b32.xlu1 %v19520_v14, %s10269_s12  ;;  %v8750_v32 = vunpack.i.h.bf16 %v19549_v24  ;;  %v8749_v0 = vunpack.i.l.bf16 %v19549_v24  ;;  %v8660_v39 = vunpack.i.h.bf16 %v19551_v18 }
 0x2b7   : > { %v8659_v33 = vunpack.i.l.bf16 %v19551_v18  ;;  %v8930_v7 = vunpack.i.h.bf16 %v19552_v34  ;;  %v8929_v19 = vunpack.i.l.bf16 %v19552_v34  ;;  %v8655_v36 = vunpack.i.h.bf16 %v19554_v12 }
 0x2b8   : > { %v8654_v40 = vunpack.i.l.bf16 %v19554_v12  ;;  %v9110_v43 = vunpack.i.h.bf16 %v19555_v28  ;;  %v9290_v27 = vunpack.i.h.bf16 %v12800_v52  ;;  %v9289_v24 = vunpack.i.l.bf16 %v12800_v52 }
 0x2b9   : > { %9562 = vrot.lane.b32.xlu2 %v19520_v14, %s10269_s12  ;;  %9552 = vrot.lane.b32.xlu0 %v19550_v22, %s10270_s13  ;;  %v13031_v22 = vpop.permute.xlu1 %9332  ;;  %v13034_v18 = vsel %vm2748_vm5, %v2740_v26, %v8709_v2  ;;  %v2831_v34 = vsel %vm2821_vm6, %v12723_v45, %v8750_v32  ;;  %v13042_v12 = vsel %vm2748_vm5, %v12868_v17, %v8710_v62  ;;  %v13050_v26 = vpop.permute.xlu0 %9327  ;;  %v9294_v45 = vunpack.i.l.bf16 %v12575_v53  ;;  %v19558_v32 = vld [vmem:[#allocation131_spill] sm:$0xff] }
 0x2ba   : > { %3459 = vmatmul.bf16.gmra.mxu0 %v3192_v51  ;;  %v13022_v38 = vpop.permute.xlu2 %9397  ;;  %8237 = vmatmul.msk.bf16.gmra.mxu2 %vm2675_vm4, %v4136_v15  ;;  %v9109_v51 = vunpack.i.l.bf16 %v19555_v28  ;;  %19556 = vst [vmem:[#allocation234_spill] sm:$0xff] %v13031_v22  ;;  %v2830_v15 = vsel %vm2821_vm6, %v12727_v35, %v8749_v0  ;;  %v19557_v28 = vld [vmem:[#allocation296_spill] sm:$0xff]  ;;  %v2904_v47 = vsel %vm2894_vm7, %v2831_v34, %v8930_v7  ;;  %v9295_v35 = vunpack.i.h.bf16 %v12575_v53  ;;  %v19559_v7 = vld [vmem:[#allocation154_spill] sm:$0xff]  ;;  %v19574_v22 = vld [vmem:[#allocation221_spill] sm:$0xff] }
 0x2bb   : > { %19553 = vst [vmem:[#allocation26_spill] sm:$0xff] %v13022_v38  ;;  %v13046_v38 = vsel %vm2748_vm5, %v19557_v28, %v8659_v33  ;;  %v2903_v52 = vsel %vm2894_vm7, %v2830_v15, %v8929_v19  ;;  %v2977_v17 = vsel %vm2967_vm8, %v2904_v47, %v9110_v43  ;;  %v8525_v62 = vunpack.i.h.bf16 %v19442_v60  ;;  %v19560_v19 = vld [vmem:[#allocation155_spill] sm:$0xff]  ;;  %v19561_v53 = vld [vmem:[#allocation220_spill] sm:$0xff] }
 0x2bc   : > { %v2976_v2 = vsel %vm2967_vm8, %v2903_v52, %v9109_v51  ;;  %v3050_v33 = vsel %vm18829_vm9, %v2977_v17, %v9290_v27  ;;  %v3199_v15 = vpack.c.bf16 %v19560_v19, %v19559_v7  ;;  %v13067_v51 = vsel %vm2748_vm5, %v19561_v53, %v8654_v40  ;;  %v19563_v47 = vld [vmem:[#allocation64_spill] sm:$0xff]  ;;  %v19565_v43 = vld [vmem:[#allocation295_spill] sm:$0xff]  ;;  %v19570_v53 = vld [vmem:[#allocation254_spill] sm:$0xff] }
 0x2bd   : > { %v3049_v0 = vsel %vm18829_vm9, %v2976_v2, %v9289_v24  ;;  %19562 = vst [vmem:[#allocation124_spill] sm:$0xff] %v13067_v51  ;;  %v13071_v60 = vsel %vm2748_vm5, %v19563_v47, %v8655_v36  ;;  %v13075_v34 = vsel %vm2748_vm5, %v19565_v43, %v8660_v39  ;;  %v19567_v28 = vld [vmem:[#allocation251_spill] sm:$0xff]  ;;  %v19568_v24 = vld [vmem:[#allocation132_spill] sm:$0xff]  ;;  %v299_v2 = vld [vmem:[%s10343_s30 + $0x98] sm:$0x3]  ;;  %v8689_v47 = vunpack.i.l.bf16 %v19570_v53 }
 0x2be   : > { %9572 = vrot.lane.b32.xlu1 %v19520_v14, %s10269_s12  ;;  %19564 = vst [vmem:[#allocation173_spill] sm:$0xff] %v13071_v60  ;;  %v8675_v52 = vunpack.i.h.bf16 %v19567_v28  ;;  %v298_v27 = vld [vmem:[%s10343_s30 + $0x90] sm:$0xff]  ;;  %v8674_v40 = vunpack.i.l.bf16 %v19567_v28  ;;  %v403_v19 = vmax.f32 %v299_v2, 0.0  ;;  %v3122_v39 = vsel %vm18828_vm10, %v3049_v0, %v9294_v45  ;;  %v19573_v2 = vld [vmem:[#allocation222_spill] sm:$0xff] }
 0x2bf   : > { %19566 = vst [vmem:[#allocation285_spill] sm:$0xff] %v13075_v34  ;;  %v19569_v17 = vld [vmem:[#allocation252_spill] sm:$0xff]  ;;  %v402_v7 = vmax.f32 %v298_v27, 0.0  ;;  %v3123_v43 = vsel %vm18828_vm10, %v3050_v33, %v9295_v35  ;;  %v19572_v34 = vld [vmem:[#allocation255_spill] sm:$0xff]  ;;  %v8690_v27 = vunpack.i.h.bf16 %v19570_v53 }
 0x2c0   : > { %v8669_v36 = vunpack.i.l.bf16 %v19569_v17  ;;  %v3918_v51 = vrot.slane %v403_v19, 1  ;;  %v8685_v60 = vunpack.i.h.bf16 %v19572_v34  ;;  %v8684_v28 = vunpack.i.l.bf16 %v19572_v34 }
 0x2c1   : > { %9577 = vrot.lane.b32.xlu2 %v19558_v32, %s10270_s13  ;;  %9567 = vrot.lane.b32.xlu0 %v19568_v24, %s10270_s13  ;;  %v8670_v32 = vunpack.i.h.bf16 %v19569_v17  ;;  %v3916_v24 = vrot.slane %v402_v7, 1  ;;  %v13096_v17 = vsel %vm2748_vm5, %v19573_v2, %v8674_v40  ;;  %v13100_v45 = vsel %vm2748_vm5, %v19574_v22, %v8675_v52  ;;  %v13102_v35 = vpop.permute.xlu1 %9347  ;;  %v19580_v2 = vld [vmem:[#allocation90_spill] sm:$0xff] }
 0x2c2   : > { %v13088_v14 = vpop.permute.xlu2 %9412  ;;  %8199 = vmatmul.msk.bf16.gmra.mxu1 %vm2675_vm4, %v3199_v15  ;;  %19575 = vst [vmem:[#allocation235_spill] sm:$0xff] %v13100_v45  ;;  %v19577_v15 = vld [vmem:[#allocation256_spill] sm:$0xff]  ;;  %v3194_v19 = vpack.c.bf16 %v3123_v43, %v3122_v39  ;;  %v19582_v52 = vld [vmem:[#allocation114_spill] sm:$0xff]  ;;  %v19590_v43 = vld [vmem:[#allocation89_spill] sm:$0xff] }
 0x2c3   : > { %19571 = vst [vmem:[#allocation172_spill] sm:$0xff] %v13088_v14  ;;  %v3917_v0 = vsel %vm717_vm2, %v12971_v49, %v3916_v24  ;;  %v3919_v33 = vsel %vm717_vm2, %v3916_v24, %v3918_v51  ;;  %v8755_v7 = vunpack.i.h.bf16 %v19577_v15  ;;  %v8754_v34 = vunpack.i.l.bf16 %v19577_v15  ;;  %v19578_v14 = vld [vmem:[#allocation87_spill] sm:$0xff]  ;;  %v19584_v49 = vld [vmem:[#allocation257_spill] sm:$0xff]  ;;  %v13122_v24 = vpop.permute.xlu0 %9342  ;;  %v19586_v15 = vld [vmem:[#allocation4_spill] sm:$0xff] }
 0x2c4   : > { %19576 = vst [vmem:[#allocation99_spill] sm:$0xff] %v13102_v35  ;;  %v4137_v53 = vpack.c.bf16 %v3919_v33, %v3917_v0  ;;  %v13111_v40 = vsel %vm2748_vm5, %v19578_v14, %v8669_v36  ;;  %v13115_v22 = vsel %vm2748_vm5, %v19580_v2, %v8670_v32  ;;  %v13119_v35 = vsel %vm2748_vm5, %v19582_v52, %v8689_v47  ;;  %v19587_v39 = vld [vmem:[#allocation138_spill] sm:$0xff]  ;;  %v19588_v36 = vld [vmem:[#allocation223_spill] sm:$0xff] }
 0x2c5   : > { %19579 = vst [vmem:[#allocation236_spill] sm:$0xff] %v13111_v40  ;;  %v8704_v51 = vunpack.i.l.bf16 %v19584_v49  ;;  %v2739_v14 = vsel %vm2675_vm4, 0.0, %v8525_v62  ;;  %v13131_v32 = vsel %vm2748_vm5, %v19588_v36, %v8684_v28  ;;  %v13135_v47 = vsel %vm2748_vm5, %v19590_v43, %v8685_v60  ;;  %v19592_v0 = vld [vmem:[#allocation111_spill] sm:$0xff]  ;;  %v19595_v52 = vld [vmem:[#allocation258_spill] sm:$0xff]  ;;  %v19596_v28 = vld [vmem:[#allocation105_spill] sm:$0xff] }
 0x2c6   : > { %19581 = vst [vmem:[#allocation237_spill] sm:$0xff] %v13115_v22  ;;  %9587 = vrot.lane.b32.xlu1 %v19587_v39, %s10270_s13  ;;  %v13139_v33 = vsel %vm2748_vm5, %v19592_v0, %v8690_v27  ;;  %v19594_v2 = vld [vmem:[#allocation139_spill] sm:$0xff]  ;;  %v8700_v39 = vunpack.i.h.bf16 %v19595_v52  ;;  %v8699_v62 = vunpack.i.l.bf16 %v19595_v52  ;;  %v8934_v36 = vunpack.i.l.bf16 %v19596_v28  ;;  %v19597_v43 = vld [vmem:[#allocation112_spill] sm:$0xff] }
 0x2c7   : > { %19583 = vst [vmem:[#allocation143_spill] sm:$0xff] %v13119_v35  ;;  %v2832_v60 = vsel %vm2821_vm6, %v12598_v46, %v8754_v34  ;;  %v2833_v27 = vsel %vm2821_vm6, %v19597_v43, %v8755_v7  ;;  %v8935_v0 = vunpack.i.h.bf16 %v19596_v28  ;;  %v19601_v52 = vld [vmem:[#allocation259_spill] sm:$0xff]  ;;  %v19602_v34 = vld [vmem:[#allocation29_spill] sm:$0xff] }
 0x2c8   : > { %19585 = vst [vmem:[#allocation147_spill] sm:$0xff] %v13122_v24  ;;  %v8705_v24 = vunpack.i.h.bf16 %v19584_v49  ;;  %v8769_v46 = vunpack.i.l.bf16 %v19601_v52  ;;  %v8785_v7 = vunpack.i.h.bf16 %v19602_v34  ;;  %v8784_v28 = vunpack.i.l.bf16 %v19602_v34 }
 0x2c9   : > { %9592 = vrot.lane.b32.xlu2 %v19586_v15, %s10270_s13  ;;  %19589 = vst [vmem:[#allocation47_spill] sm:$0xff] %v13131_v32  ;;  %9582 = vrot.lane.b32.xlu0 %v19594_v2, %s10270_s13  ;;  %v19598_v2 = vld [vmem:[#allocation280_spill] sm:$0xff]  ;;  %v8770_v32 = vunpack.i.h.bf16 %v19601_v52  ;;  %v2905_v43 = vsel %vm2894_vm7, %v2832_v60, %v8934_v36  ;;  %v9304_v52 = vunpack.i.l.bf16 %v12878_v8  ;;  %v13176_v22 = vpop.permute.xlu1 %9362  ;;  %v19607_v36 = vld [vmem:[#allocation151_spill] sm:$0xff] }
 0x2ca   : > { %19591 = vst [vmem:[#allocation161_spill] sm:$0xff] %v13135_v47  ;;  %3464 = vmatmul.bf16.gmra.mxu0 %v3194_v19  ;;  %8238 = vmatmul.msk.bf16.gmra.mxu2 %vm2675_vm4, %v4137_v53  ;;  %v9114_v19 = vunpack.i.l.bf16 %v19598_v2  ;;  %v9115_v49 = vunpack.i.h.bf16 %v19598_v2  ;;  %v9300_v53 = vunpack.i.h.bf16 %v12900_v55  ;;  %v9299_v47 = vunpack.i.l.bf16 %v12900_v55  ;;  %v13166_v40 = vpop.permute.xlu2 %9427 }
 0x2cb   : > { %19593 = vst [vmem:[#allocation212_spill] sm:$0xff] %v13139_v33  ;;  %v19599_v33 = vld [vmem:[#allocation231_spill] sm:$0xff]  ;;  %v9305_v55 = vunpack.i.h.bf16 %v12878_v8 }
 0x2cc   : > { %v13156_v35 = vsel %vm2748_vm5, %v19599_v33, %v8704_v51  ;;  %19603 = vst [vmem:[#allocation174_spill] sm:$0xff] %v13166_v40  ;;  %v13169_v51 = vsel %vm2748_vm5, %v2739_v14, %v8705_v24  ;;  %v19604_v33 = vld [vmem:[#allocation28_spill] sm:$0xff]  ;;  %v2978_v45 = vsel %vm2967_vm8, %v2905_v43, %v9114_v19  ;;  %v19606_v14 = vld [vmem:[#allocation150_spill] sm:$0xff]  ;;  %v19626_v40 = vld [vmem:[#allocation25_spill] sm:$0xff] }
 0x2cd   : > { %19600 = vst [vmem:[#allocation294_spill] sm:$0xff] %v13156_v35  ;;  %v8799_v2 = vunpack.i.l.bf16 %v19604_v33  ;;  %v2906_v35 = vsel %vm2894_vm7, %v2833_v27, %v8935_v0  ;;  %v3201_v60 = vpack.c.bf16 %v19607_v36, %v19606_v14  ;;  %v19608_v27 = vld [vmem:[#allocation14_spill] sm:$0xff]  ;;  %v19609_v19 = vld [vmem:[#allocation224_spill] sm:$0xff]  ;;  %v3051_v34 = vsel %vm18829_vm9, %v2978_v45, %v9299_v47 }
 0x2ce   : > { %19605 = vst [vmem:[#allocation95_spill] sm:$0xff] %v13176_v22  ;;  %9602 = vrot.lane.b32.xlu1 %v19586_v15, %s10270_s13  ;;  %v2979_v24 = vsel %vm2967_vm8, %v2906_v35, %v9115_v49  ;;  %v13187_v0 = vsel %vm2748_vm5, %v19608_v27, %v8699_v62  ;;  %v13191_v8 = vsel %vm2748_vm5, %v19609_v19, %v8700_v39  ;;  %v19610_v22 = vld [vmem:[#allocation108_spill] sm:$0xff]  ;;  %v19612_v49 = vld [vmem:[#allocation226_spill] sm:$0xff]  ;;  %v19614_v62 = vld [vmem:[#allocation229_spill] sm:$0xff]  ;;  %v13213_v19 = vpop.permute.xlu0 %9357  ;;  %v8800_v45 = vunpack.i.h.bf16 %v19604_v33 }
 0x2cf   : > { %v3052_v43 = vsel %vm18829_vm9, %v2979_v24, %v9300_v53  ;;  %v13199_v35 = vsel %vm2821_vm6, %v19610_v22, %v8769_v46  ;;  %v13203_v14 = vsel %vm2821_vm6, %v19612_v49, %v8770_v32  ;;  %v13207_v36 = vsel %vm2821_vm6, %v19614_v62, %v8784_v28  ;;  %v19616_v39 = vld [vmem:[#allocation81_spill] sm:$0xff]  ;;  %19618 = vst [vmem:[#allocation92_spill] sm:$0xff] %v13213_v19  ;;  %v19619_v47 = vld [vmem:[#allocation128_spill] sm:$0xff]  ;;  %v19627_v19 = vld [vmem:[#allocation39_spill] sm:$0xff] }
 0x2d0   : > { %19611 = vst [vmem:[#allocation179_spill] sm:$0xff] %v13199_v35  ;;  %v13211_v27 = vsel %vm2821_vm6, %v19616_v39, %v8785_v7  ;;  %v13218_v22 = vsel %vm2821_vm6, %v19619_v47, %v8799_v2  ;;  %v19621_v53 = vld [vmem:[#allocation45_spill] sm:$0xff]  ;;  %v3124_v24 = vsel %vm18828_vm10, %v3051_v34, %v9304_v52  ;;  %v3125_v28 = vsel %vm18828_vm10, %v3052_v43, %v9305_v55  ;;  %v19622_v7 = vld [vmem:[#allocation7_spill] sm:$0xff]  ;;  %v19624_v39 = vld [vmem:[#allocation6_spill] sm:$0xff] }
 0x2d1   : > { %9607 = vrot.lane.b32.xlu2 %v19586_v15, %s10270_s13  ;;  %9597 = vrot.lane.b32.xlu0 %v19586_v15, %s10270_s13  ;;  %19613 = vst [vmem:[#allocation238_spill] sm:$0xff] %v13203_v14  ;;  %v8815_v46 = vunpack.i.h.bf16 %v19621_v53  ;;  %v8814_v32 = vunpack.i.l.bf16 %v19621_v53  ;;  %v19623_v49 = vmax.f32 %v19622_v7, 0.0  ;;  %v19625_v15 = vmax.f32 %v19624_v39, 0.0  ;;  %v19628_v52 = vld [vmem:[#allocation44_spill] sm:$0xff]  ;;  %v19630_v7 = vld [vmem:[#allocation129_spill] sm:$0xff] }
 0x2d2   : > { %19615 = vst [vmem:[#allocation253_spill] sm:$0xff] %v13207_v36  ;;  %8200 = vmatmul.msk.bf16.gmra.mxu1 %vm2675_vm4, %v3201_v60  ;;  %v8760_v2 = vunpack.i.h.bf16 %v19626_v40  ;;  %v8759_v47 = vunpack.i.l.bf16 %v19626_v40  ;;  %v8764_v53 = vunpack.i.l.bf16 %v19627_v19  ;;  %v8830_v34 = vunpack.i.h.bf16 %v19628_v52  ;;  %v19629_v60 = vld [vmem:[#allocation11_spill] sm:$0xff]  ;;  %v13257_v35 = vpop.permute.xlu2 %9442 }
 0x2d3   : > { %19617 = vst [vmem:[#allocation239_spill] sm:$0xff] %v13211_v27  ;;  %v3920_v62 = vrot.slane %v19623_v49, 1  ;;  %v13229_v33 = vrot.slane %v19625_v15, 1  ;;  %v8829_v55 = vunpack.i.l.bf16 %v19628_v52  ;;  %v13244_v49 = vsel %vm2821_vm6, %v19630_v7, %v8800_v45  ;;  %v19631_v27 = vld [vmem:[#allocation24_spill] sm:$0xff]  ;;  %v19632_v36 = vld [vmem:[#allocation27_spill] sm:$0xff] }
 0x2d4   : > { %19620 = vst [vmem:[#allocation277_spill] sm:$0xff] %v13218_v22  ;;  %v8765_v22 = vunpack.i.h.bf16 %v19627_v19  ;;  %v13248_v40 = vsel %vm2821_vm6, %v12745_v1, %v8814_v32  ;;  %v3196_v19 = vpack.c.bf16 %v3125_v28, %v3124_v24  ;;  %v13252_v52 = vsel %vm2821_vm6, %v12749_v29, %v8815_v46  ;;  %v13281_v28 = vpop.permute.xlu1 %9377 }
 0x2d5   : > { %v3922_v43 = vsel %vm717_vm2, %v3920_v62, %v19629_v60  ;;  %v3924_v15 = vsel %vm717_vm2, %v19629_v60, %v13229_v33  ;;  %v8775_v62 = vunpack.i.h.bf16 %v19631_v27  ;;  %v8780_v14 = vunpack.i.h.bf16 %v19632_v36  ;;  %19633 = vst [vmem:[#allocation240_spill] sm:$0xff] %v13257_v35 }
 0x2d6   : > { %v4138_v39 = vpack.c.bf16 %v3924_v15, %v3922_v43  ;;  %v8779_v60 = vunpack.i.l.bf16 %v19632_v36  ;;  %v2835_v45 = vsel %vm2821_vm6, %v12761_v21, %v8760_v2  ;;  %v13263_v1 = vsel %vm2821_vm6, %v12753_v30, %v8764_v53  ;;  %v19634_v30 = vld [vmem:[#allocation123_spill] sm:$0xff]  ;;  %19635 = vst [vmem:[#allocation188_spill] sm:$0xff] %v13281_v28  ;;  %v19637_v2 = vld [vmem:[#allocation289_spill] sm:$0xff]  ;;  %v19639_v15 = vld [vmem:[#allocation56_spill] sm:$0xff] }
 0x2d7   : > { %v13267_v32 = vsel %vm2821_vm6, %v12769_v20, %v8765_v22  ;;  %v8774_v29 = vunpack.i.l.bf16 %v19631_v27  ;;  %v2834_v46 = vsel %vm2821_vm6, %v12765_v9, %v8759_v47  ;;  %v13274_v36 = vsel %vm2821_vm6, %v12794_v50, %v8829_v55  ;;  %v19636_v20 = vld [vmem:[#allocation55_spill] sm:$0xff]  ;;  %v13301_v55 = vpop.permute.xlu0 %9372  ;;  %v19684_v28 = vld [vmem:[#allocation85_spill] sm:$0xff] }
 0x2d8   : > { %v13278_v21 = vsel %vm2821_vm6, %v12804_v61, %v8830_v34  ;;  %v8939_v24 = vunpack.i.l.bf16 %v19634_v30  ;;  %v8845_v27 = vunpack.i.h.bf16 %v19636_v20  ;;  %v8844_v22 = vunpack.i.l.bf16 %v19636_v20  ;;  %19638 = vst [vmem:[#allocation116_spill] sm:$0xff] %v13301_v55  ;;  %v19687_v55 = vld [vmem:[#allocation236_spill] sm:$0xff] }
 0x2d9   : > { %v8940_v9 = vunpack.i.h.bf16 %v19634_v30  ;;  %v9119_v47 = vunpack.i.l.bf16 %v19637_v2  ;;  %v13290_v50 = vsel %vm2821_vm6, %v12848_v25, %v8775_v62  ;;  %v13294_v61 = vsel %vm2821_vm6, %v12808_v16, %v8779_v60  ;;  %v19640_v16 = vld [vmem:[#allocation41_spill] sm:$0xff] }
 0x2da   : > { %3469 = vmatmul.bf16.gmra.mxu0 %v3196_v19  ;;  %8239 = vmatmul.msk.bf16.gmra.mxu2 %vm2675_vm4, %v4138_v39  ;;  %v13298_v53 = vsel %vm2821_vm6, %v12852_v3, %v8780_v14  ;;  %v9120_v34 = vunpack.i.h.bf16 %v19637_v2  ;;  %v13305_v43 = vsel %vm2821_vm6, %v12844_v10, %v8774_v29  ;;  %v8794_v7 = vunpack.i.l.bf16 %v19639_v15 }
 0x2db   : > { %v9315_v25 = vunpack.i.h.bf16 %v12958_v37  ;;  %v9314_v19 = vunpack.i.l.bf16 %v12958_v37  ;;  %v8790_v39 = vunpack.i.h.bf16 %v19640_v16  ;;  %v8789_v62 = vunpack.i.l.bf16 %v19640_v16 }
 0x2dc   : > { %v8795_v3 = vunpack.i.h.bf16 %v19639_v15  ;;  %v2907_v14 = vsel %vm2894_vm7, %v2834_v46, %v8939_v24  ;;  %v13316_v60 = vsel %vm2821_vm6, %v12857_v6, %v8844_v22  ;;  %v13320_v10 = vsel %vm2821_vm6, %v12861_v58, %v8845_v27  ;;  %v19641_v15 = vld [vmem:[#allocation148_spill] sm:$0xff]  ;;  %v19642_v46 = vld [vmem:[#allocation149_spill] sm:$0xff]  ;;  %v19643_v22 = vld [vmem:[#allocation54_spill] sm:$0xff] }
 0x2dd   : > { %v2908_v29 = vsel %vm2894_vm7, %v2835_v45, %v8940_v9  ;;  %v2980_v37 = vsel %vm2967_vm8, %v2907_v14, %v9119_v47  ;;  %v9320_v30 = vunpack.i.h.bf16 %v12952_v56  ;;  %v9319_v20 = vunpack.i.l.bf16 %v12952_v56  ;;  %v3628_v9 = vpop.f32.mrf.mxu1  ;;  %v303_v47 = vld [vmem:[%s10343_s30 + $0xb8] sm:$0x3] }
 0x2de   : > { %v2981_v2 = vsel %vm2967_vm8, %v2908_v29, %v9120_v34  ;;  %v3203_v24 = vpack.c.bf16 %v19642_v46, %v19641_v15  ;;  %v13331_v6 = vsel %vm2821_vm6, %v12872_v4, %v8794_v7  ;;  %v8859_v58 = vunpack.i.l.bf16 %v19643_v22  ;;  %v13346_v4 = vpop.permute.xlu2 %9457  ;;  %v19646_v29 = vld [vmem:[#allocation42_spill] sm:$0xff]  ;;  %v19648_v15 = vld [vmem:[#allocation9_spill] sm:$0xff] }
 0x2df   : > { %v3053_v27 = vsel %vm18829_vm9, %v2980_v37, %v9314_v19  ;;  %v3054_v45 = vsel %vm18829_vm9, %v2981_v2, %v9315_v25  ;;  %v13339_v56 = vsel %vm2821_vm6, %v12890_v48, %v8790_v39  ;;  %v13343_v34 = vsel %vm2821_vm6, %v12876_v31, %v8795_v3  ;;  %19644 = vst [vmem:[#allocation241_spill] sm:$0xff] %v13346_v4  ;;  %v19645_v25 = vld [vmem:[#allocation40_spill] sm:$0xff]  ;;  %v13355_v39 = vpop.permute.xlu1 %9392  ;;  %v19650_v9 = vld [vmem:[#allocation74_spill] sm:$0xff] }
 0x2e0   : > { %v8860_v16 = vunpack.i.h.bf16 %v19643_v22  ;;  %v407_v7 = vmax.f32 %v303_v47, 0.0  ;;  %v13350_v19 = vsel %vm2821_vm6, %v12886_v41, %v8789_v62  ;;  %v8805_v14 = vunpack.i.h.bf16 %v19645_v25  ;;  %19647 = vst [vmem:[#allocation146_spill] sm:$0xff] %v13355_v39  ;;  %v19651_v4 = vld [vmem:[#allocation232_spill] sm:$0xff]  ;;  %v19670_v39 = vld [vmem:[#allocation173_spill] sm:$0xff] }
 0x2e1   : > { %v8810_v37 = vunpack.i.h.bf16 %v19646_v29  ;;  %v8809_v48 = vunpack.i.l.bf16 %v19646_v29  ;;  %v3126_v31 = vsel %vm18828_vm10, %v3053_v27, %v9319_v20  ;;  %v3127_v3 = vsel %vm18828_vm10, %v3054_v45, %v9320_v30  ;;  %v19652_v30 = vld [vmem:[#allocation69_spill] sm:$0xff]  ;;  %v13374_v27 = vpop.permute.xlu0 %9387 }
 0x2e2   : > { %8201 = vmatmul.msk.bf16.gmra.mxu1 %vm2675_vm4, %v3203_v24  ;;  %v3925_v2 = vrot.slane %v407_v7, 1  ;;  %v19649_v46 = vmax.f32 %v19648_v15, 0.0  ;;  %v13364_v41 = vsel %vm2821_vm6, %v12913_v59, %v8859_v58  ;;  %v8804_v62 = vunpack.i.l.bf16 %v19645_v25  ;;  %19653 = vst [vmem:[#allocation242_spill] sm:$0xff] %v13374_v27  ;;  %v19654_v7 = vld [vmem:[#allocation23_spill] sm:$0xff]  ;;  %v19655_v58 = vld [vmem:[#allocation58_spill] sm:$0xff] }
 0x2e3   : > { %v8875_v47 = vunpack.i.h.bf16 %v19650_v9  ;;  %v8874_v29 = vunpack.i.l.bf16 %v19650_v9  ;;  %v13371_v20 = vsel %vm2821_vm6, %v19651_v4, %v8860_v16  ;;  %v8824_v24 = vunpack.i.l.bf16 %v19652_v30  ;;  %v19656_v4 = vld [vmem:[#allocation162_spill] sm:$0xff] }
 0x2e4   : > { %v3927_v22 = vrot.slane %v19649_v46, 1  ;;  %v3926_v45 = vsel %vm717_vm2, %v13229_v33, %v3925_v2  ;;  %v8820_v25 = vunpack.i.h.bf16 %v19655_v58  ;;  %v8825_v15 = vunpack.i.h.bf16 %v19652_v30  ;;  %v19659_v30 = vld [vmem:[#allocation135_spill] sm:$0xff] }
 0x2e5   : > { %v3198_v46 = vpack.c.bf16 %v3127_v3, %v3126_v31  ;;  %v13384_v16 = vsel %vm2821_vm6, %v12975_v23, %v8805_v14  ;;  %v13388_v35 = vsel %vm2821_vm6, %v19656_v4, %v8809_v48  ;;  %v13392_v33 = vsel %vm2821_vm6, %v12969_v63, %v8810_v37  ;;  %v19657_v14 = vld [vmem:[#allocation73_spill] sm:$0xff]  ;;  %v3629_v3 = vpop.f32.mrf.mxu1 }
 0x2e6   : > { %v3929_v59 = vsel %vm717_vm2, %v3927_v22, %v19654_v7  ;;  %v8819_v2 = vunpack.i.l.bf16 %v19655_v58  ;;  %v13397_v22 = vsel %vm2821_vm6, %v12965_v44, %v8804_v62  ;;  %v13401_v31 = vsel %vm2821_vm6, %v12979_v11, %v8874_v29  ;;  %v19658_v44 = vld [vmem:[#allocation59_spill] sm:$0xff] }
 0x2e7   : > { %v4139_v9 = vpack.c.bf16 %v3929_v59, %v3926_v45  ;;  %v13405_v23 = vsel %vm2821_vm6, %v12983_v13, %v8875_v47  ;;  %v8889_v48 = vunpack.i.l.bf16 %v19657_v14  ;;  %v13410_v63 = vsel %vm2821_vm6, %v12989_v57, %v8824_v24  ;;  %v19660_v57 = vld [vmem:[#allocation288_spill] sm:$0xff]  ;;  %v19661_v59 = vld [vmem:[#allocation57_spill] sm:$0xff] }
 0x2e8   : > { %v8890_v37 = vunpack.i.h.bf16 %v19657_v14  ;;  %v8839_v62 = vunpack.i.l.bf16 %v19658_v44  ;;  %v8944_v45 = vunpack.i.l.bf16 %v19659_v30  ;;  %v13418_v11 = vsel %vm2821_vm6, %v13006_v5, %v8820_v25  ;;  %v13433_v5 = vpop.permute.xlu2 %9472  ;;  %v19663_v14 = vld [vmem:[#allocation86_spill] sm:$0xff] }
 0x2e9   : > { %v13422_v13 = vsel %vm2821_vm6, %v12993_v54, %v8825_v15  ;;  %v8945_v47 = vunpack.i.h.bf16 %v19659_v30  ;;  %v9124_v29 = vunpack.i.l.bf16 %v19660_v57  ;;  %v13428_v24 = vsel %vm2821_vm6, %v13002_v42, %v8819_v2  ;;  %19662 = vst [vmem:[#allocation243_spill] sm:$0xff] %v13433_v5  ;;  %v19669_v5 = vld [vmem:[#allocation164_spill] sm:$0xff] }
 0x2ea   : > { %3474 = vmatmul.bf16.gmra.mxu0 %v3198_v46  ;;  %8240 = vmatmul.msk.bf16.gmra.mxu2 %vm2675_vm4, %v4139_v9  ;;  %v8835_v58 = vunpack.i.h.bf16 %v19661_v59  ;;  %v8840_v46 = vunpack.i.h.bf16 %v19658_v44  ;;  %v9125_v9 = vunpack.i.h.bf16 %v19660_v57  ;;  %v13437_v54 = vsel %vm2821_vm6, %v13034_v18, %v8889_v48  ;;  %v13453_v48 = vpop.permute.xlu1 %9407  ;;  %v19665_v44 = vld [vmem:[#allocation71_spill] sm:$0xff]  ;;  %v19666_v57 = vld [vmem:[#allocation234_spill] sm:$0xff] }
 0x2eb   : > { %v8834_v25 = vunpack.i.l.bf16 %v19661_v59  ;;  %v9330_v15 = vunpack.i.h.bf16 %v13050_v26  ;;  %v9329_v4 = vunpack.i.l.bf16 %v13050_v26  ;;  %v13444_v42 = vsel %vm2821_vm6, %v13042_v12, %v8890_v37  ;;  %19664 = vst [vmem:[#allocation118_spill] sm:$0xff] %v13453_v48  ;;  %v13462_v59 = vpop.permute.xlu0 %9402 }
 0x2ec   : > { %v13448_v2 = vsel %vm2821_vm6, %v13046_v38, %v8839_v62  ;;  %v8854_v3 = vunpack.i.l.bf16 %v19663_v14  ;;  %v2909_v18 = vsel %vm2894_vm7, %v13263_v1, %v8944_v45  ;;  %v8850_v30 = vunpack.i.h.bf16 %v19665_v44  ;;  %19667 = vst [vmem:[#allocation192_spill] sm:$0xff] %v13462_v59  ;;  %v19668_v45 = vld [vmem:[#allocation163_spill] sm:$0xff]  ;;  %v19672_v59 = vld [vmem:[#allocation124_spill] sm:$0xff] }
 0x2ed   : > { %v8855_v26 = vunpack.i.h.bf16 %v19663_v14  ;;  %v2910_v12 = vsel %vm2894_vm7, %v13267_v32, %v8945_v47  ;;  %v2982_v37 = vsel %vm2967_vm8, %v2909_v18, %v9124_v29  ;;  %v9335_v38 = vunpack.i.h.bf16 %v19666_v57  ;;  %v19671_v14 = vld [vmem:[#allocation285_spill] sm:$0xff]  ;;  %v3631_v18 = vpop.f32.mrf.mxu1 }
 0x2ee   : > { %v9334_v62 = vunpack.i.l.bf16 %v19666_v57  ;;  %v2983_v1 = vsel %vm2967_vm8, %v2910_v12, %v9125_v9  ;;  %v3205_v48 = vpack.c.bf16 %v19669_v5, %v19668_v45  ;;  %v13469_v27 = vsel %vm2821_vm6, %v19670_v39, %v8835_v58  ;;  %v307_v57 = vld [vmem:[%s10343_s30 + $0xd8] sm:$0x3] }
 0x2ef   : > { %v13473_v32 = vsel %vm2821_vm6, %v19671_v14, %v8840_v46  ;;  %v3055_v47 = vsel %vm18829_vm9, %v2982_v37, %v9329_v4  ;;  %v3056_v29 = vsel %vm18829_vm9, %v2983_v1, %v9330_v15  ;;  %v13480_v9 = vsel %vm2821_vm6, %v19672_v59, %v8834_v25  ;;  %v19675_v12 = vld [vmem:[#allocation237_spill] sm:$0xff]  ;;  %v19677_v4 = vld [vmem:[#allocation235_spill] sm:$0xff]  ;;  %v19679_v37 = vld [vmem:[#allocation72_spill] sm:$0xff] }
 0x2f0   : > { %19673 = vst [vmem:[#allocation189_spill] sm:$0xff] %v13480_v9  ;;  %v8849_v5 = vunpack.i.l.bf16 %v19665_v44  ;;  %v13485_v39 = vsel %vm2821_vm6, %v13096_v17, %v8854_v3  ;;  %v411_v58 = vmax.f32 %v307_v57, 0.0  ;;  %v13489_v46 = vsel %vm2821_vm6, %v19675_v12, %v8850_v30  ;;  %v19680_v17 = vld [vmem:[#allocation8_spill] sm:$0xff]  ;;  %v19682_v30 = vld [vmem:[#allocation70_spill] sm:$0xff] }
 0x2f1   : > { %19674 = vst [vmem:[#allocation244_spill] sm:$0xff] %v13485_v39  ;;  %v13493_v15 = vsel %vm2821_vm6, %v19677_v4, %v8855_v26  ;;  %v8870_v1 = vunpack.i.h.bf16 %v19679_v37  ;;  %v8869_v25 = vunpack.i.l.bf16 %v19679_v37  ;;  %v3128_v59 = vsel %vm18828_vm10, %v3055_v47, %v9334_v62  ;;  %v19683_v26 = vld [vmem:[#allocation106_spill] sm:$0xff]  ;;  %v13508_v47 = vpop.permute.xlu2 %9487 }
 0x2f2   : > { %19676 = vst [vmem:[#allocation245_spill] sm:$0xff] %v13489_v46  ;;  %v3129_v44 = vsel %vm18828_vm10, %v3056_v29, %v9335_v38  ;;  %8202 = vmatmul.msk.bf16.gmra.mxu1 %vm2675_vm4, %v3205_v48  ;;  %v19681_v3 = vmax.f32 %v19680_v17, 0.0  ;;  %v3932_v14 = vrot.slane %v411_v58, 1  ;;  %v8865_v18 = vunpack.i.h.bf16 %v19682_v30  ;;  %v19686_v29 = vld [vmem:[#allocation104_spill] sm:$0xff]  ;;  %v13522_v9 = vpop.permute.xlu1 %9422 }
 0x2f3   : > { %19678 = vst [vmem:[#allocation13_spill] sm:$0xff] %v13493_v15  ;;  %v8864_v57 = vunpack.i.l.bf16 %v19682_v30  ;;  %v8885_v12 = vunpack.i.h.bf16 %v19683_v26  ;;  %v8884_v4 = vunpack.i.l.bf16 %v19683_v26  ;;  %v8880_v37 = vunpack.i.h.bf16 %v19684_v28  ;;  %v19688_v15 = vld [vmem:[#allocation127_spill] sm:$0xff] }
 0x2f4   : > { %v3930_v45 = vrot.slane %v19681_v3, 1  ;;  %v8879_v62 = vunpack.i.l.bf16 %v19684_v28  ;;  %19685 = vst [vmem:[#allocation246_spill] sm:$0xff] %v13508_v47  ;;  %v8950_v58 = vunpack.i.h.bf16 %v19686_v29  ;;  %v8949_v17 = vunpack.i.l.bf16 %v19686_v29  ;;  %v19689_v47 = vld [vmem:[#allocation126_spill] sm:$0xff] }
 0x2f5   : > { %v3200_v3 = vpack.c.bf16 %v3129_v44, %v3128_v59  ;;  %v13517_v26 = vsel %vm2821_vm6, %v19687_v55, %v8849_v5  ;;  %v8965_v39 = vunpack.i.h.bf16 %v19688_v15  ;;  %v8964_v28 = vunpack.i.l.bf16 %v19688_v15  ;;  %19690 = vst [vmem:[#allocation107_spill] sm:$0xff] %v13522_v9  ;;  %v19693_v44 = vld [vmem:[#allocation143_spill] sm:$0xff]  ;;  %v19694_v5 = vld [vmem:[#allocation212_spill] sm:$0xff]  ;;  %v3632_v15 = vpop.f32.mrf.mxu1 }
 0x2f6   : > { %v3931_v48 = vsel %vm717_vm2, %v19654_v7, %v3930_v45  ;;  %v3933_v38 = vsel %vm717_vm2, %v3930_v45, %v3932_v14  ;;  %v8979_v46 = vunpack.i.l.bf16 %v19689_v47  ;;  %v19691_v7 = vld [vmem:[#allocation161_spill] sm:$0xff]  ;;  %v19692_v14 = vld [vmem:[#allocation47_spill] sm:$0xff]  ;;  %v13534_v55 = vsel %vm2821_vm6, %v19693_v44, %v8869_v25  ;;  %v19706_v15 = vld [vmem:[#allocation136_spill] sm:$0xff] }
 0x2f7   : > { %v4140_v30 = vpack.c.bf16 %v3933_v38, %v3931_v48  ;;  %v13526_v45 = vsel %vm2821_vm6, %v19691_v7, %v8865_v18  ;;  %v13530_v59 = vsel %vm2821_vm6, %v19692_v14, %v8864_v57  ;;  %v13538_v48 = vsel %vm2821_vm6, %v19694_v5, %v8870_v1  ;;  %v19695_v57 = vld [vmem:[#allocation294_spill] sm:$0xff]  ;;  %v13556_v1 = vpop.permute.xlu0 %9417  ;;  %v19704_v5 = vld [vmem:[#allocation277_spill] sm:$0xff] }
 0x2f8   : > { %v13542_v38 = vsel %vm2821_vm6, %v13191_v8, %v8880_v37  ;;  %v13546_v18 = vsel %vm2821_vm6, %v13187_v0, %v8879_v62  ;;  %v13550_v29 = vsel %vm2821_vm6, %v19695_v57, %v8884_v4  ;;  %v13554_v25 = vsel %vm2821_vm6, %v13169_v51, %v8885_v12  ;;  %19696 = vst [vmem:[#allocation287_spill] sm:$0xff] %v13556_v1  ;;  %v19698_v37 = vld [vmem:[#allocation238_spill] sm:$0xff]  ;;  %v19699_v62 = vld [vmem:[#allocation137_spill] sm:$0xff]  ;;  %v19702_v51 = vld [vmem:[#allocation239_spill] sm:$0xff] }
 0x2f9   : > { %v2912_v7 = vsel %vm2894_vm7, %v19698_v37, %v8950_v58  ;;  %v8980_v0 = vunpack.i.h.bf16 %v19689_v47  ;;  %v8994_v14 = vunpack.i.l.bf16 %v19699_v62  ;;  %v19700_v4 = vld [vmem:[#allocation253_spill] sm:$0xff]  ;;  %v13571_v12 = vsel %vm2894_vm7, %v19702_v51, %v8965_v39 }
 0x2fa   : > { %3479 = vmatmul.bf16.gmra.mxu0 %v3200_v3  ;;  %8241 = vmatmul.msk.bf16.gmra.mxu2 %vm2675_vm4, %v4140_v30  ;;  %v19697_v3 = vld [vmem:[#allocation179_spill] sm:$0xff]  ;;  %v13567_v44 = vsel %vm2894_vm7, %v19700_v4, %v8964_v28  ;;  %19703 = vst [vmem:[#allocation199_spill] sm:$0xff] %v13571_v12  ;;  %v13575_v30 = vsel %vm2894_vm7, %v19704_v5, %v8979_v46  ;;  %v9010_v58 = vunpack.i.h.bf16 %v19706_v15  ;;  %v9009_v47 = vunpack.i.l.bf16 %v19706_v15  ;;  %v19707_v57 = vld [vmem:[#allocation125_spill] sm:$0xff]  ;;  %v19708_v4 = vld [vmem:[#allocation122_spill] sm:$0xff] }
 0x2fb   : > { %v2911_v8 = vsel %vm2894_vm7, %v19697_v3, %v8949_v17  ;;  %19701 = vst [vmem:[#allocation65_spill] sm:$0xff] %v13567_v44  ;;  %v8995_v17 = vunpack.i.h.bf16 %v19699_v62  ;;  %v8960_v3 = vunpack.i.h.bf16 %v19707_v57  ;;  %v8959_v37 = vunpack.i.l.bf16 %v19707_v57  ;;  %v4297_v28 = vpop.f32.mrf.mxu2  ;;  %v19709_v51 = vld [vmem:[#allocation21_spill] sm:$0xff]  ;;  %v13602_v44 = vpop.permute.xlu2 %9502 }
 0x2fc   : > { %19705 = vst [vmem:[#allocation94_spill] sm:$0xff] %v13575_v30  ;;  %v8955_v1 = vunpack.i.h.bf16 %v19708_v4  ;;  %v8954_v39 = vunpack.i.l.bf16 %v19708_v4  ;;  %v9130_v9 = vunpack.i.h.bf16 %v19709_v51  ;;  %v9129_v46 = vunpack.i.l.bf16 %v19709_v51  ;;  %v19711_v15 = vld [vmem:[#allocation293_spill] sm:$0xff]  ;;  %v19712_v4 = vld [vmem:[#allocation147_spill] sm:$0xff] }
 0x2fd   : > { %v13588_v62 = vsel %vm2894_vm7, %v13244_v49, %v8980_v0  ;;  %v13592_v5 = vsel %vm2894_vm7, %v13248_v40, %v8994_v14  ;;  %v9340_v30 = vunpack.i.h.bf16 %v19711_v15  ;;  %v9339_v57 = vunpack.i.l.bf16 %v19711_v15  ;;  %19713 = vst [vmem:[#allocation91_spill] sm:$0xff] %v13602_v44  ;;  %v19714_v49 = vld [vmem:[#allocation159_spill] sm:$0xff]  ;;  %v19715_v0 = vld [vmem:[#allocation160_spill] sm:$0xff]  ;;  %v3634_v15 = vpop.f32.mrf.mxu1 }
 0x2fe   : > { %19710 = vst [vmem:[#allocation117_spill] sm:$0xff] %v13588_v62  ;;  %v13598_v28 = vsel %vm2894_vm7, %v13252_v52, %v8995_v17  ;;  %v9345_v12 = vunpack.i.h.bf16 %v19712_v4  ;;  %v9344_v51 = vunpack.i.l.bf16 %v19712_v4  ;;  %v3207_v62 = vpack.c.bf16 %v19715_v0, %v19714_v49  ;;  %v19724_v15 = vld [vmem:[#allocation264_spill] sm:$0xff] }
 0x2ff   : > { %v13608_v40 = vsel %vm2894_vm7, %v13274_v36, %v9009_v47  ;;  %v13612_v14 = vsel %vm2894_vm7, %v13278_v21, %v9010_v58  ;;  %v13616_v52 = vsel %vm2894_vm7, %v13294_v61, %v8959_v37  ;;  %v13620_v17 = vsel %vm2894_vm7, %v13298_v53, %v8960_v3  ;;  %v13630_v47 = vpop.permute.xlu1 %9437  ;;  %v19718_v58 = vld [vmem:[#allocation262_spill] sm:$0xff] }
 0x300   : > { %19716 = vst [vmem:[#allocation144_spill] sm:$0xff] %v13620_v17  ;;  %v13624_v4 = vsel %vm2894_vm7, %v13290_v50, %v8955_v1  ;;  %v13628_v36 = vsel %vm2894_vm7, %v13305_v43, %v8954_v39  ;;  %v2984_v21 = vsel %vm2967_vm8, %v2911_v8, %v9129_v46  ;;  %v2985_v61 = vsel %vm2967_vm8, %v2912_v7, %v9130_v9  ;;  %v13638_v50 = vpop.permute.xlu0 %9432  ;;  %v19720_v39 = vld [vmem:[#allocation12_spill] sm:$0xff]  ;;  %v19722_v9 = vld [vmem:[#allocation10_spill] sm:$0xff] }
 0x301   : > { %19717 = vst [vmem:[#allocation145_spill] sm:$0xff] %v13630_v47  ;;  %v9025_v37 = vunpack.i.h.bf16 %v19718_v58  ;;  %v9024_v53 = vunpack.i.l.bf16 %v19718_v58  ;;  %v3057_v3 = vsel %vm18829_vm9, %v2984_v21, %v9339_v57  ;;  %v3058_v49 = vsel %vm18829_vm9, %v2985_v61, %v9340_v30  ;;  %v19725_v30 = vld [vmem:[#allocation263_spill] sm:$0xff]  ;;  %v19730_v17 = vld [vmem:[#allocation268_spill] sm:$0xff] }
 0x302   : > { %19719 = vst [vmem:[#allocation247_spill] sm:$0xff] %v13638_v50  ;;  %v3130_v1 = vsel %vm18828_vm10, %v3057_v3, %v9344_v51  ;;  %v3131_v43 = vsel %vm18828_vm10, %v3058_v49, %v9345_v12  ;;  %8203 = vmatmul.msk.bf16.gmra.mxu1 %vm2675_vm4, %v3207_v62  ;;  %v19721_v8 = vmax.f32 %v19720_v39, 0.0  ;;  %v19723_v7 = vmax.f32 %v19722_v9, 0.0  ;;  %v19726_v3 = vld [vmem:[#allocation265_spill] sm:$0xff]  ;;  %v19727_v39 = vld [vmem:[#allocation20_spill] sm:$0xff] }
 0x303   : > { %v8970_v58 = vunpack.i.h.bf16 %v19724_v15  ;;  %v8969_v57 = vunpack.i.l.bf16 %v19724_v15  ;;  %v8975_v21 = vunpack.i.h.bf16 %v19725_v30  ;;  %v8974_v61 = vunpack.i.l.bf16 %v19725_v30  ;;  %v4298_v51 = vpop.f32.mrf.mxu2 }
 0x304   : > { %v3934_v46 = vrot.slane %v19721_v8, 1  ;;  %v13647_v0 = vrot.slane %v19723_v7, 1  ;;  %v9040_v12 = vunpack.i.h.bf16 %v19726_v3  ;;  %v9039_v62 = vunpack.i.l.bf16 %v19726_v3  ;;  %v19728_v7 = vld [vmem:[#allocation266_spill] sm:$0xff]  ;;  %v19729_v3 = vld [vmem:[#allocation267_spill] sm:$0xff] }
 0x305   : > { %v8990_v44 = vunpack.i.h.bf16 %v19728_v7  ;;  %v8989_v15 = vunpack.i.l.bf16 %v19728_v7  ;;  %v3202_v50 = vpack.c.bf16 %v3131_v43, %v3130_v1  ;;  %v13664_v30 = vsel %vm2894_vm7, %v13316_v60, %v9024_v53  ;;  %v19731_v43 = vld [vmem:[#allocation269_spill] sm:$0xff]  ;;  %v3635_v60 = vpop.f32.mrf.mxu1 }
 0x306   : > { %v3451_v49 = vpop.f32.mrf.mxu0  ;;  %v3936_v8 = vsel %vm717_vm2, %v3934_v46, %v19727_v39  ;;  %v3938_v9 = vsel %vm717_vm2, %v19727_v39, %v13647_v0  ;;  %v13668_v51 = vsel %vm2894_vm7, %v13320_v10, %v9025_v37  ;;  %v8985_v46 = vunpack.i.h.bf16 %v19729_v3 }
 0x307   : > { %v4141_v47 = vpack.c.bf16 %v3938_v9, %v3936_v8  ;;  %v8984_v49 = vunpack.i.l.bf16 %v19729_v3  ;;  %v13674_v39 = vsel %vm2894_vm7, %v13331_v6, %v8974_v61  ;;  %v9055_v7 = vunpack.i.h.bf16 %v19730_v17  ;;  %v13692_v61 = vpop.permute.xlu2 %9517  ;;  %v19736_v9 = vld [vmem:[#allocation291_spill] sm:$0xff] }
 0x308   : > { %v9054_v1 = vunpack.i.l.bf16 %v19730_v17  ;;  %v9004_v8 = vunpack.i.l.bf16 %v19731_v43  ;;  %v13681_v10 = vsel %vm2894_vm7, %v13339_v56, %v8970_v58  ;;  %v13685_v37 = vsel %vm2894_vm7, %v13350_v19, %v8969_v57  ;;  %19732 = vst [vmem:[#allocation206_spill] sm:$0xff] %v13692_v61  ;;  %v13721_v57 = vpop.permute.xlu1 %9452  ;;  %v311_v61 = vld [vmem:[%s10343_s30 + $0xf8] sm:$0x3] }
 0x309   : > { %v13689_v6 = vsel %vm2894_vm7, %v13343_v34, %v8975_v21  ;;  %v9005_v53 = vunpack.i.h.bf16 %v19731_v43  ;;  %v13697_v17 = vsel %vm2894_vm7, %v13364_v41, %v9039_v62  ;;  %v13701_v56 = vsel %vm2894_vm7, %v13371_v20, %v9040_v12  ;;  %19734 = vst [vmem:[#allocation213_spill] sm:$0xff] %v13721_v57 }
 0x30a   : > { %3484 = vmatmul.bf16.gmra.mxu0 %v3202_v50  ;;  %8242 = vmatmul.msk.bf16.gmra.mxu2 %vm2675_vm4, %v4141_v47  ;;  %v13705_v19 = vsel %vm2894_vm7, %v13388_v35, %v8989_v15  ;;  %v13709_v34 = vsel %vm2894_vm7, %v13392_v33, %v8990_v44  ;;  %v13713_v50 = vsel %vm2894_vm7, %v13384_v16, %v8985_v46  ;;  %v19733_v47 = vld [vmem:[#allocation270_spill] sm:$0xff]  ;;  %v9134_v15 = vunpack.i.l.bf16 %v19736_v9  ;;  %v19738_v46 = vld [vmem:[#allocation272_spill] sm:$0xff] }
 0x30b   : > { %v13717_v41 = vsel %vm2894_vm7, %v13397_v22, %v8984_v49  ;;  %v9000_v58 = vunpack.i.h.bf16 %v19733_v47  ;;  %v8999_v20 = vunpack.i.l.bf16 %v19733_v47  ;;  %v13725_v35 = vsel %vm2894_vm7, %v13401_v31, %v9054_v1  ;;  %v19735_v22 = vld [vmem:[#allocation271_spill] sm:$0xff]  ;;  %v4300_v21 = vpop.f32.mrf.mxu2  ;;  %v19741_v47 = vld [vmem:[#allocation157_spill] sm:$0xff] }
 0x30c   : > { %v13729_v33 = vsel %vm2894_vm7, %v13405_v23, %v9055_v7  ;;  %v13733_v16 = vsel %vm2894_vm7, %v13410_v63, %v9004_v8  ;;  %v9069_v44 = vunpack.i.l.bf16 %v19735_v22  ;;  %v13738_v12 = vsel %vm2894_vm7, %v13422_v13, %v9005_v53  ;;  %v13743_v23 = vpop.permute.xlu0 %9447  ;;  %v19739_v7 = vld [vmem:[#allocation80_spill] sm:$0xff] }
 0x30d   : > { %v9070_v62 = vunpack.i.h.bf16 %v19735_v22  ;;  %v9135_v31 = vunpack.i.h.bf16 %v19736_v9  ;;  %19737 = vst [vmem:[#allocation207_spill] sm:$0xff] %v13743_v23  ;;  %v9020_v63 = vunpack.i.h.bf16 %v19738_v46  ;;  %v9019_v49 = vunpack.i.l.bf16 %v19738_v46  ;;  %v19740_v8 = vld [vmem:[#allocation92_spill] sm:$0xff]  ;;  %v19742_v22 = vld [vmem:[#allocation158_spill] sm:$0xff]  ;;  %v19744_v46 = vld [vmem:[#allocation273_spill] sm:$0xff] }
 0x30e   : > { %v3452_v3 = vpop.f32.mrf.mxu0  ;;  %v9355_v1 = vunpack.i.h.bf16 %v19739_v7  ;;  %v9354_v43 = vunpack.i.l.bf16 %v19739_v7  ;;  %v13751_v13 = vsel %vm2894_vm7, %v13418_v11, %v9000_v58  ;;  %v9360_v60 = vunpack.i.h.bf16 %v19740_v8  ;;  %v3637_v58 = vpop.f32.mrf.mxu1 }
 0x30f   : > { %v9359_v53 = vunpack.i.l.bf16 %v19740_v8  ;;  %v3209_v21 = vpack.c.bf16 %v19742_v22, %v19741_v47  ;;  %v13759_v9 = vsel %vm2894_vm7, %v13428_v24, %v8999_v20  ;;  %v13763_v3 = vsel %vm2894_vm7, %v13437_v54, %v9069_v44 }
 0x310   : > { %19743 = vst [vmem:[#allocation216_spill] sm:$0xff] %v13763_v3  ;;  %v9015_v7 = vunpack.i.h.bf16 %v19744_v46  ;;  %v9014_v11 = vunpack.i.l.bf16 %v19744_v46  ;;  %v13770_v8 = vsel %vm2894_vm7, %v13444_v42, %v9070_v62  ;;  %v2986_v47 = vsel %vm2967_vm8, %v13628_v36, %v9134_v15  ;;  %v13786_v62 = vpop.permute.xlu2 %9532  ;;  %v19758_v3 = vld [vmem:[#allocation245_spill] sm:$0xff] }
 0x311   : > { %v2987_v24 = vsel %vm2967_vm8, %v13624_v4, %v9135_v31  ;;  %v415_v20 = vmax.f32 %v311_v61, 0.0  ;;  %v13778_v54 = vsel %vm2894_vm7, %v13448_v2, %v9019_v49  ;;  %v13782_v44 = vsel %vm2894_vm7, %v13473_v32, %v9020_v63  ;;  %19745 = vst [vmem:[#allocation210_spill] sm:$0xff] %v13786_v62  ;;  %v19746_v61 = vld [vmem:[#allocation22_spill] sm:$0xff]  ;;  %v19748_v49 = vld [vmem:[#allocation276_spill] sm:$0xff]  ;;  %v19749_v63 = vld [vmem:[#allocation275_spill] sm:$0xff] }
 0x312   : > { %v3059_v22 = vsel %vm18829_vm9, %v2986_v47, %v9354_v43  ;;  %v3060_v42 = vsel %vm18829_vm9, %v2987_v24, %v9355_v1  ;;  %8204 = vmatmul.msk.bf16.gmra.mxu1 %vm2675_vm4, %v3209_v21  ;;  %v19747_v2 = vmax.f32 %v19746_v61, 0.0  ;;  %v9030_v46 = vunpack.i.h.bf16 %v19748_v49  ;;  %v19750_v47 = vld [vmem:[#allocation278_spill] sm:$0xff]  ;;  %v19753_v61 = vld [vmem:[#allocation279_spill] sm:$0xff] }
 0x313   : > { %v3132_v36 = vsel %vm18828_vm10, %v3059_v22, %v9359_v53  ;;  %v3133_v15 = vsel %vm18828_vm10, %v3060_v42, %v9360_v60  ;;  %v3939_v4 = vrot.slane %v415_v20, 1  ;;  %v9029_v32 = vunpack.i.l.bf16 %v19748_v49  ;;  %v4301_v58 = vpop.f32.mrf.mxu2  ;;  %v13799_v60 = vpop.permute.xlu1 %9467  ;;  %v19752_v22 = vld [vmem:[#allocation38_spill] sm:$0xff] }
 0x314   : > { %v3941_v31 = vrot.slane %v19747_v2, 1  ;;  %v9035_v43 = vunpack.i.h.bf16 %v19749_v63  ;;  %v9034_v1 = vunpack.i.l.bf16 %v19749_v63  ;;  %v9050_v24 = vunpack.i.h.bf16 %v19750_v47  ;;  %19751 = vst [vmem:[#allocation110_spill] sm:$0xff] %v13799_v60  ;;  %v19755_v60 = vld [vmem:[#allocation281_spill] sm:$0xff] }
 0x315   : > { %v9049_v53 = vunpack.i.l.bf16 %v19750_v47  ;;  %v3940_v20 = vsel %vm717_vm2, %v13647_v0, %v3939_v4  ;;  %v9045_v2 = vunpack.i.h.bf16 %v19753_v61  ;;  %v9044_v49 = vunpack.i.l.bf16 %v19753_v61  ;;  %v19754_v47 = vld [vmem:[#allocation282_spill] sm:$0xff]  ;;  %v13814_v0 = vpop.permute.xlu0 %9462  ;;  %v19757_v4 = vld [vmem:[#allocation189_spill] sm:$0xff]  ;;  %v19766_v61 = vld [vmem:[#allocation35_spill] sm:$0xff] }
 0x316   : > { %v3943_v42 = vsel %vm717_vm2, %v3941_v31, %v19752_v22  ;;  %v3204_v62 = vpack.c.bf16 %v3133_v15, %v3132_v36  ;;  %v13809_v58 = vsel %vm2894_vm7, %v13469_v27, %v9015_v7  ;;  %v9060_v23 = vunpack.i.h.bf16 %v19754_v47  ;;  %19756 = vst [vmem:[#allocation15_spill] sm:$0xff] %v13814_v0  ;;  %v19759_v15 = vld [vmem:[#allocation244_spill] sm:$0xff]  ;;  %v19760_v7 = vld [vmem:[#allocation13_spill] sm:$0xff] }
 0x317   : > { %v3454_v21 = vpop.f32.mrf.mxu0  ;;  %v4142_v63 = vpack.c.bf16 %v3943_v42, %v3940_v20  ;;  %v9064_v57 = vunpack.i.l.bf16 %v19755_v60  ;;  %v13818_v31 = vsel %vm2894_vm7, %v19757_v4, %v9014_v11  ;;  %v13822_v36 = vsel %vm2894_vm7, %v19758_v3, %v9030_v46 }
 0x318   : > { %v9065_v21 = vunpack.i.h.bf16 %v19755_v60  ;;  %v13826_v27 = vsel %vm2894_vm7, %v19759_v15, %v9034_v1  ;;  %v13830_v20 = vsel %vm2894_vm7, %v19760_v7, %v9035_v43  ;;  %v3639_v60 = vpop.f32.mrf.mxu1  ;;  %v13834_v42 = vsel %vm2894_vm7, %v13517_v26, %v9029_v32  ;;  %v19761_v32 = vld [vmem:[#allocation19_spill] sm:$0xff]  ;;  %v13880_v4 = vpop.permute.xlu2 %9547  ;;  %v19770_v7 = vld [vmem:[#allocation165_spill] sm:$0xff] }
 0x319   : > { %v13838_v11 = vsel %vm2894_vm7, %v13534_v55, %v9049_v53  ;;  %v13842_v3 = vsel %vm2894_vm7, %v13538_v48, %v9050_v24  ;;  %v9059_v46 = vunpack.i.l.bf16 %v19754_v47  ;;  %v13852_v26 = vsel %vm2894_vm7, %v13530_v59, %v9044_v49  ;;  %v19765_v24 = vld [vmem:[#allocation37_spill] sm:$0xff]  ;;  %19769 = vst [vmem:[#allocation249_spill] sm:$0xff] %v13880_v4 }
 0x31a   : > { %3489 = vmatmul.bf16.gmra.mxu0 %v3204_v62  ;;  %8243 = vmatmul.msk.bf16.gmra.mxu2 %vm2675_vm4, %v4142_v63  ;;  %v13848_v62 = vsel %vm2894_vm7, %v13526_v45, %v9045_v2  ;;  %v9145_v43 = vunpack.i.h.bf16 %v19761_v32  ;;  %v9144_v55 = vunpack.i.l.bf16 %v19761_v32  ;;  %v13858_v48 = vsel %vm2894_vm7, %v13542_v38, %v9060_v23  ;;  %v19767_v63 = vld [vmem:[#allocation32_spill] sm:$0xff] }
 0x31b   : > { %19762 = vst [vmem:[#allocation133_spill] sm:$0xff] %v13858_v48  ;;  %v13862_v1 = vsel %vm2894_vm7, %v13550_v29, %v9064_v57  ;;  %v13866_v45 = vsel %vm2894_vm7, %v13554_v25, %v9065_v21  ;;  %v9159_v53 = vunpack.i.l.bf16 %v19765_v24  ;;  %v9160_v59 = vunpack.i.h.bf16 %v19765_v24  ;;  %v4303_v38 = vpop.f32.mrf.mxu2  ;;  %v19768_v57 = vld [vmem:[#allocation290_spill] sm:$0xff]  ;;  %v19771_v24 = vld [vmem:[#allocation65_spill] sm:$0xff]  ;;  %v13898_v4 = vpop.permute.xlu1 %9482 }
 0x31c   : > { %19763 = vst [vmem:[#allocation248_spill] sm:$0xff] %v13862_v1  ;;  %v9175_v2 = vunpack.i.h.bf16 %v19766_v61  ;;  %v9174_v49 = vunpack.i.l.bf16 %v19766_v61  ;;  %v9189_v47 = vunpack.i.l.bf16 %v19767_v63  ;;  %v13875_v23 = vsel %vm2894_vm7, %v13546_v18, %v9059_v46  ;;  %v19772_v18 = vld [vmem:[#allocation199_spill] sm:$0xff]  ;;  %v19778_v48 = vld [vmem:[#allocation117_spill] sm:$0xff] }
 0x31d   : > { %19764 = vst [vmem:[#allocation109_spill] sm:$0xff] %v13866_v45  ;;  %v9190_v29 = vunpack.i.h.bf16 %v19767_v63  ;;  %v9140_v25 = vunpack.i.h.bf16 %v19768_v57  ;;  %v9139_v21 = vunpack.i.l.bf16 %v19768_v57  ;;  %v9370_v60 = vunpack.i.h.bf16 %v19770_v7  ;;  %v19773_v63 = vld [vmem:[#allocation94_spill] sm:$0xff]  ;;  %v19774_v57 = vld [vmem:[#allocation116_spill] sm:$0xff] }
 0x31e   : > { %v9369_v32 = vunpack.i.l.bf16 %v19770_v7  ;;  %v13886_v61 = vsel %vm2967_vm8, %v19771_v24, %v9144_v55  ;;  %v13890_v46 = vsel %vm2967_vm8, %v19772_v18, %v9145_v43  ;;  %v13894_v38 = vsel %vm2967_vm8, %v19773_v63, %v9159_v53  ;;  %19775 = vst [vmem:[#allocation286_spill] sm:$0xff] %v13898_v4  ;;  %v19776_v45 = vld [vmem:[#allocation166_spill] sm:$0xff]  ;;  %v19777_v7 = vld [vmem:[#allocation167_spill] sm:$0xff]  ;;  %v315_v63 = vld [vmem:[%s10343_s30 + $0x118] sm:$0x3] }
 0x31f   : > { %v3455_v15 = vpop.f32.mrf.mxu0  ;;  %v9375_v0 = vunpack.i.h.bf16 %v19774_v57  ;;  %v3211_v1 = vpack.c.bf16 %v19777_v7, %v19776_v45  ;;  %v13904_v55 = vsel %vm2967_vm8, %v19778_v48, %v9160_v59  ;;  %v13908_v43 = vsel %vm2967_vm8, %v13592_v5, %v9174_v49  ;;  %v13923_v48 = vpop.permute.xlu0 %9477  ;;  %v19783_v59 = vld [vmem:[#allocation144_spill] sm:$0xff] }
 0x320   : > { %v9374_v15 = vunpack.i.l.bf16 %v19774_v57  ;;  %19779 = vst [vmem:[#allocation296_spill] sm:$0xff] %v13904_v55  ;;  %v13912_v53 = vsel %vm2967_vm8, %v13598_v28, %v9175_v2  ;;  %v13916_v24 = vsel %vm2967_vm8, %v13608_v40, %v9189_v47  ;;  %v3642_v18 = vpop.f32.mrf.mxu1  ;;  %v13921_v45 = vsel %vm2967_vm8, %v13612_v14, %v9190_v29  ;;  %v19784_v2 = vld [vmem:[#allocation52_spill] sm:$0xff]  ;;  %v13956_v55 = vpop.permute.xlu2 %9562 }
 0x321   : > { %19780 = vst [vmem:[#allocation131_spill] sm:$0xff] %v13916_v24  ;;  %v2988_v5 = vsel %vm2967_vm8, %v13616_v52, %v9139_v21  ;;  %v2989_v49 = vsel %vm2967_vm8, %v19783_v59, %v9140_v25  ;;  %v419_v28 = vmax.f32 %v315_v63, 0.0  ;;  %v9205_v57 = vunpack.i.h.bf16 %v19784_v2  ;;  %v19785_v18 = vld [vmem:[#allocation16_spill] sm:$0xff]  ;;  %v19787_v25 = vld [vmem:[#allocation141_spill] sm:$0xff] }
 0x322   : > { %19781 = vst [vmem:[#allocation154_spill] sm:$0xff] %v13921_v45  ;;  %v9204_v40 = vunpack.i.l.bf16 %v19784_v2  ;;  %v3061_v47 = vsel %vm18829_vm9, %v2988_v5, %v9369_v32  ;;  %v3062_v7 = vsel %vm18829_vm9, %v2989_v49, %v9370_v60  ;;  %8205 = vmatmul.msk.bf16.gmra.mxu1 %vm2675_vm4, %v3211_v1  ;;  %v19786_v52 = vmax.f32 %v19785_v18, 0.0  ;;  %v19788_v4 = vld [vmem:[#allocation292_spill] sm:$0xff]  ;;  %v19789_v60 = vld [vmem:[#allocation46_spill] sm:$0xff] }
 0x323   : > { %19782 = vst [vmem:[#allocation155_spill] sm:$0xff] %v13923_v48  ;;  %v3134_v14 = vsel %vm18828_vm10, %v3061_v47, %v9374_v15  ;;  %v3135_v29 = vsel %vm18828_vm10, %v3062_v7, %v9375_v0  ;;  %v3946_v48 = vrot.slane %v419_v28, 1  ;;  %v9150_v63 = vunpack.i.h.bf16 %v19787_v25  ;;  %v4304_v5 = vpop.f32.mrf.mxu2  ;;  %v19790_v28 = vld [vmem:[#allocation156_spill] sm:$0xff] }
 0x324   : > { %v3944_v21 = vrot.slane %v19786_v52, 1  ;;  %v9149_v59 = vunpack.i.l.bf16 %v19787_v25  ;;  %v9155_v2 = vunpack.i.h.bf16 %v19788_v4  ;;  %v9154_v32 = vunpack.i.l.bf16 %v19788_v4  ;;  %v19791_v5 = vld [vmem:[#allocation153_spill] sm:$0xff]  ;;  %19793 = vst [vmem:[#allocation220_spill] sm:$0xff] %v13956_v55  ;;  %v19816_v55 = vld [vmem:[#allocation242_spill] sm:$0xff] }
 0x325   : > { %v9220_v49 = vunpack.i.h.bf16 %v19789_v60  ;;  %v9219_v15 = vunpack.i.l.bf16 %v19789_v60  ;;  %v9170_v7 = vunpack.i.h.bf16 %v19790_v28  ;;  %v9169_v18 = vunpack.i.l.bf16 %v19790_v28 }
 0x326   : > { %v3945_v1 = vsel %vm717_vm2, %v19752_v22, %v3944_v21  ;;  %v3947_v47 = vsel %vm717_vm2, %v3944_v21, %v3946_v48  ;;  %v3206_v52 = vpack.c.bf16 %v3135_v29, %v3134_v14  ;;  %v13951_v4 = vsel %vm2967_vm8, %v13664_v30, %v9204_v40  ;;  %v19794_v21 = vld [vmem:[#allocation183_spill] sm:$0xff] }
 0x327   : > { %v3457_v0 = vpop.f32.mrf.mxu0  ;;  %v4143_v25 = vpack.c.bf16 %v3947_v47, %v3945_v1  ;;  %v9165_v24 = vunpack.i.h.bf16 %v19791_v5  ;;  %v9164_v60 = vunpack.i.l.bf16 %v19791_v5  ;;  %v13960_v22 = vsel %vm2967_vm8, %v13668_v51, %v9205_v57  ;;  %v13987_v57 = vpop.permute.xlu1 %9497  ;;  %v19799_v5 = vld [vmem:[#allocation219_spill] sm:$0xff] }
 0x328   : > { %v19792_v0 = vld [vmem:[#allocation180_spill] sm:$0xff]  ;;  %v13964_v48 = vsel %vm2967_vm8, %v13674_v39, %v9154_v32  ;;  %v13968_v30 = vsel %vm2967_vm8, %v13689_v6, %v9155_v2  ;;  %v3644_v14 = vpop.f32.mrf.mxu1  ;;  %v13973_v29 = vsel %vm2967_vm8, %v13685_v37, %v9149_v59  ;;  %v13977_v51 = vsel %vm2967_vm8, %v13681_v10, %v9150_v63  ;;  %v19795_v2 = vld [vmem:[#allocation201_spill] sm:$0xff] }
 0x329   : > { %v9184_v45 = vunpack.i.l.bf16 %v19792_v0  ;;  %v9185_v40 = vunpack.i.h.bf16 %v19792_v0  ;;  %v13981_v39 = vsel %vm2967_vm8, %v13697_v17, %v9219_v15  ;;  %v13985_v6 = vsel %vm2967_vm8, %v13701_v56, %v9220_v49  ;;  %v19800_v14 = vld [vmem:[#allocation233_spill] sm:$0xff] }
 0x32a   : > { %3494 = vmatmul.bf16.gmra.mxu0 %v3206_v52  ;;  %8244 = vmatmul.msk.bf16.gmra.mxu2 %vm2675_vm4, %v4143_v25  ;;  %v13992_v37 = vsel %vm2967_vm8, %v13705_v19, %v9169_v18  ;;  %v13996_v10 = vsel %vm2967_vm8, %v13709_v34, %v9170_v7  ;;  %v9180_v63 = vunpack.i.h.bf16 %v19794_v21  ;;  %v9179_v17 = vunpack.i.l.bf16 %v19794_v21  ;;  %v14013_v34 = vpop.permute.xlu0 %9492 }
 0x32b   : > { %v14002_v56 = vsel %vm2967_vm8, %v13717_v41, %v9164_v60  ;;  %v14006_v59 = vsel %vm2967_vm8, %v13713_v50, %v9165_v24  ;;  %v14010_v19 = vsel %vm2967_vm8, %v13733_v16, %v9184_v45  ;;  %v9199_v32 = vunpack.i.l.bf16 %v19795_v2  ;;  %v19796_v41 = vld [vmem:[#allocation188_spill] sm:$0xff]  ;;  %v19798_v45 = vld [vmem:[#allocation218_spill] sm:$0xff] }
 0x32c   : > { %v14017_v49 = vsel %vm2967_vm8, %v13738_v12, %v9185_v40  ;;  %v9200_v15 = vunpack.i.h.bf16 %v19795_v2  ;;  %v9380_v1 = vunpack.i.h.bf16 %v19796_v41  ;;  %v9379_v47 = vunpack.i.l.bf16 %v19796_v41  ;;  %v19797_v24 = vld [vmem:[#allocation200_spill] sm:$0xff]  ;;  %v19801_v41 = vld [vmem:[#allocation170_spill] sm:$0xff] }
 0x32d   : > { %v4306_v50 = vpop.f32.mrf.mxu2  ;;  %v9195_v28 = vunpack.i.h.bf16 %v19797_v24  ;;  %v9194_v16 = vunpack.i.l.bf16 %v19797_v24  ;;  %v9215_v7 = vunpack.i.h.bf16 %v19798_v45  ;;  %v9214_v18 = vunpack.i.l.bf16 %v19798_v45 }
 0x32e   : > { %v14028_v12 = vsel %vm2967_vm8, %v13759_v9, %v9179_v17  ;;  %v14032_v25 = vsel %vm2967_vm8, %v13751_v13, %v9180_v63  ;;  %v9210_v60 = vunpack.i.h.bf16 %v19799_v5  ;;  %v9209_v0 = vunpack.i.l.bf16 %v19799_v5  ;;  %v19802_v50 = vld [vmem:[#allocation171_spill] sm:$0xff]  ;;  %v19803_v13 = vld [vmem:[#allocation113_spill] sm:$0xff] }
 0x32f   : > { %v3458_v52 = vpop.f32.mrf.mxu0  ;;  %v14038_v40 = vsel %vm2967_vm8, %v13778_v54, %v9199_v32  ;;  %v9385_v21 = vunpack.i.h.bf16 %v19800_v14  ;;  %v9384_v2 = vunpack.i.l.bf16 %v19800_v14  ;;  %v3213_v9 = vpack.c.bf16 %v19802_v50, %v19801_v41  ;;  %v19811_v14 = vld [vmem:[#allocation225_spill] sm:$0xff]  ;;  %v19812_v50 = vld [vmem:[#allocation230_spill] sm:$0xff] }
 0x330   : > { %v14046_v17 = vsel %vm2967_vm8, %v13782_v44, %v9200_v15  ;;  %v9229_v63 = vunpack.i.l.bf16 %v19803_v13  ;;  %v3063_v24 = vsel %vm18829_vm9, %v13886_v61, %v9379_v47  ;;  %v3064_v54 = vsel %vm18829_vm9, %v13890_v46, %v9380_v1  ;;  %v3647_v32 = vpop.f32.mrf.mxu1  ;;  %v14069_v61 = vpop.permute.xlu2 %9577 }
 0x331   : > { %v14055_v45 = vsel %vm2967_vm8, %v13818_v31, %v9194_v16  ;;  %v14059_v52 = vsel %vm2967_vm8, %v13809_v58, %v9195_v28  ;;  %v14063_v44 = vsel %vm2967_vm8, %v13826_v27, %v9214_v18  ;;  %v14067_v15 = vsel %vm2967_vm8, %v13830_v20, %v9215_v7  ;;  %19805 = vst [vmem:[#allocation295_spill] sm:$0xff] %v14069_v61  ;;  %v19806_v58 = vld [vmem:[#allocation82_spill] sm:$0xff]  ;;  %v14081_v27 = vpop.permute.xlu1 %9512  ;;  %v19809_v18 = vld [vmem:[#allocation17_spill] sm:$0xff]  ;;  %v19813_v32 = vld [vmem:[#allocation36_spill] sm:$0xff] }
 0x332   : > { %19804 = vst [vmem:[#allocation64_spill] sm:$0xff] %v14067_v15  ;;  %v14073_v46 = vsel %vm2967_vm8, %v13834_v42, %v9209_v0  ;;  %v14077_v31 = vsel %vm2967_vm8, %v13822_v36, %v9210_v60  ;;  %v9225_v1 = vunpack.i.h.bf16 %v19806_v58  ;;  %v9230_v47 = vunpack.i.h.bf16 %v19803_v13  ;;  %8206 = vmatmul.msk.bf16.gmra.mxu1 %vm2675_vm4, %v3213_v9  ;;  %v19807_v16 = vld [vmem:[#allocation18_spill] sm:$0xff] }
 0x333   : > { %v3136_v28 = vsel %vm18828_vm10, %v3063_v24, %v9384_v2  ;;  %v3137_v20 = vsel %vm18828_vm10, %v3064_v54, %v9385_v21  ;;  %v19808_v7 = vmax.f32 %v19807_v16, 0.0  ;;  %v19810_v5 = vmax.f32 %v19809_v18, 0.0  ;;  %v14101_v24 = vpop.permute.xlu0 %9507 }
 0x334   : > { %v9224_v36 = vunpack.i.l.bf16 %v19806_v58  ;;  %v14095_v60 = vsel %vm2967_vm8, %v13838_v11, %v9229_v63  ;;  %v9245_v41 = vunpack.i.h.bf16 %v19811_v14  ;;  %v9244_v2 = vunpack.i.l.bf16 %v19811_v14  ;;  %v19814_v63 = vld [vmem:[#allocation130_spill] sm:$0xff] }
 0x335   : > { %v3948_v42 = vrot.slane %v19808_v7, 1  ;;  %v14090_v0 = vrot.slane %v19810_v5, 1  ;;  %v4307_v21 = vpop.f32.mrf.mxu2  ;;  %v9310_v9 = vunpack.i.h.bf16 %v19812_v50  ;;  %v9309_v13 = vunpack.i.l.bf16 %v19812_v50 }
 0x336   : > { %v9270_v58 = vunpack.i.h.bf16 %v19814_v63  ;;  %v9269_v7 = vunpack.i.l.bf16 %v19814_v63  ;;  %v3208_v18 = vpack.c.bf16 %v3137_v20, %v3136_v28  ;;  %v14112_v14 = vsel %vm2967_vm8, %v13842_v3, %v9230_v47  ;;  %v19815_v21 = vld [vmem:[#allocation152_spill] sm:$0xff]  ;;  %v19819_v28 = vld [vmem:[#allocation26_spill] sm:$0xff]  ;;  %v19827_v63 = vld [vmem:[#allocation109_spill] sm:$0xff] }
 0x337   : > { %v3460_v54 = vpop.f32.mrf.mxu0  ;;  %v3950_v16 = vsel %vm717_vm2, %v3948_v42, %v19813_v32  ;;  %v3952_v11 = vsel %vm717_vm2, %v19813_v32, %v14090_v0  ;;  %v9285_v50 = vunpack.i.h.bf16 %v19815_v21  ;;  %v9389_v42 = vunpack.i.l.bf16 %v19816_v55 }
 0x338   : > { %v4144_v5 = vpack.c.bf16 %v3952_v11, %v3950_v16  ;;  %v9284_v54 = vunpack.i.l.bf16 %v19815_v21  ;;  %v14119_v61 = vsel %vm2967_vm8, %v13852_v26, %v9224_v36  ;;  %v14123_v32 = vsel %vm2967_vm8, %v13848_v62, %v9225_v1  ;;  %v3649_v3 = vpop.f32.mrf.mxu1  ;;  %v19822_v1 = vld [vmem:[#allocation216_spill] sm:$0xff]  ;;  %v19823_v36 = vld [vmem:[#allocation133_spill] sm:$0xff] }
 0x339   : > { %19817 = vst [vmem:[#allocation251_spill] sm:$0xff] %v14119_v61  ;;  %v9399_v20 = vunpack.i.l.bf16 %v19819_v28  ;;  %v9390_v16 = vunpack.i.h.bf16 %v19816_v55  ;;  %v14129_v47 = vsel %vm2967_vm8, %v13729_v33, %v9245_v41  ;;  %v14133_v11 = vsel %vm2967_vm8, %v13725_v35, %v9244_v2  ;;  %v19824_v41 = vld [vmem:[#allocation146_spill] sm:$0xff] }
 0x33a   : > { %19818 = vst [vmem:[#allocation132_spill] sm:$0xff] %v14123_v32  ;;  %3499 = vmatmul.bf16.gmra.mxu0 %v3208_v18  ;;  %v14137_v26 = vsel %vm2967_vm8, %v13770_v8, %v9310_v9  ;;  %v9400_v62 = vunpack.i.h.bf16 %v19819_v28  ;;  %8245 = vmatmul.msk.bf16.gmra.mxu2 %vm2675_vm4, %v4144_v5  ;;  %v14143_v55 = vsel %vm2967_vm8, %v19822_v1, %v9309_v13  ;;  %v9394_v2 = vunpack.i.l.bf16 %v19824_v41  ;;  %v19825_v8 = vld [vmem:[#allocation248_spill] sm:$0xff]  ;;  %v14163_v5 = vpop.permute.xlu2 %9592 }
 0x33b   : > { %19820 = vst [vmem:[#allocation252_spill] sm:$0xff] %v14129_v47  ;;  %v14147_v33 = vsel %vm2967_vm8, %v13875_v23, %v9269_v7  ;;  %v14151_v35 = vsel %vm2967_vm8, %v19823_v36, %v9270_v58  ;;  %v14156_v9 = vsel %vm2967_vm8, %v19825_v8, %v9284_v54  ;;  %v14160_v18 = vsel %vm2967_vm8, %v19827_v63, %v9285_v50  ;;  %v19830_v7 = vld [vmem:[#allocation172_spill] sm:$0xff]  ;;  %v19831_v50 = vld [vmem:[#allocation174_spill] sm:$0xff]  ;;  %v14176_v63 = vpop.permute.xlu1 %9527  ;;  %v19837_v47 = vld [vmem:[#allocation169_spill] sm:$0xff] }
 0x33c   : > { %19821 = vst [vmem:[#allocation254_spill] sm:$0xff] %v14133_v11  ;;  %v9395_v13 = vunpack.i.h.bf16 %v19824_v41  ;;  %v3065_v23 = vsel %vm18829_vm9, %v13973_v29, %v9389_v42  ;;  %v9415_v58 = vunpack.i.h.bf16 %v19830_v7  ;;  %v9414_v21 = vunpack.i.l.bf16 %v19830_v7  ;;  %v19832_v41 = vld [vmem:[#allocation240_spill] sm:$0xff] }
 0x33d   : > { %19826 = vst [vmem:[#allocation255_spill] sm:$0xff] %v14156_v9  ;;  %v3066_v28 = vsel %vm18829_vm9, %v13977_v51, %v9390_v16  ;;  %v3067_v54 = vsel %vm18829_vm9, %v13964_v48, %v9399_v20  ;;  %v4309_v3 = vpop.f32.mrf.mxu2  ;;  %v9430_v1 = vunpack.i.h.bf16 %v19831_v50  ;;  %v9429_v36 = vunpack.i.l.bf16 %v19831_v50  ;;  %v19833_v51 = vld [vmem:[#allocation118_spill] sm:$0xff]  ;;  %v14186_v9 = vpop.permute.xlu0 %9522 }
 0x33e   : > { %19828 = vst [vmem:[#allocation222_spill] sm:$0xff] %v14160_v18  ;;  %v9444_v8 = vunpack.i.l.bf16 %v19832_v41  ;;  %v3068_v42 = vsel %vm18829_vm9, %v13968_v30, %v9400_v62  ;;  %v9445_v7 = vunpack.i.h.bf16 %v19832_v41  ;;  %v9410_v16 = vunpack.i.h.bf16 %v19833_v51  ;;  %v19834_v3 = vld [vmem:[#allocation241_spill] sm:$0xff]  ;;  %v19838_v30 = vld [vmem:[#allocation192_spill] sm:$0xff] }
 0x33f   : > { %19829 = vst [vmem:[#allocation221_spill] sm:$0xff] %v14163_v5  ;;  %v3462_v29 = vpop.f32.mrf.mxu0  ;;  %v9409_v48 = vunpack.i.l.bf16 %v19833_v51  ;;  %v3138_v20 = vsel %vm18828_vm10, %v3065_v23, %v9394_v2  ;;  %v9460_v18 = vunpack.i.h.bf16 %v19834_v3  ;;  %v9459_v50 = vunpack.i.l.bf16 %v19834_v3  ;;  %v319_v51 = vld [vmem:[%s10343_s30 + $0x138] sm:$0x3] }
 0x340   : > { %19835 = vst [vmem:[#allocation256_spill] sm:$0xff] %v14186_v9  ;;  %v3139_v5 = vsel %vm18828_vm10, %v3066_v28, %v9395_v13  ;;  %v19836_v29 = vld [vmem:[#allocation168_spill] sm:$0xff]  ;;  %v9405_v62 = vunpack.i.h.bf16 %v19838_v30  ;;  %v9404_v41 = vunpack.i.l.bf16 %v19838_v30  ;;  %v14193_v32 = vpop.f32.mrf.mxu1  ;;  %v14198_v2 = vsel %vm18829_vm9, %v14002_v56, %v9414_v21 }
 0x341   : > { %v3215_v11 = vpack.c.bf16 %v19837_v47, %v19836_v29  ;;  %19839 = vst [vmem:[#allocation87_spill] sm:$0xff] %v14193_v32  ;;  %v14202_v23 = vsel %vm18829_vm9, %v14006_v59, %v9415_v58  ;;  %v423_v3 = vmax.f32 %v319_v51, 0.0  ;;  %v14206_v13 = vsel %vm18829_vm9, %v13908_v43, %v9429_v36  ;;  %v19853_v32 = vld [vmem:[#allocation213_spill] sm:$0xff] }
 0x342   : > { %v14210_v47 = vsel %vm18829_vm9, %v13912_v53, %v9430_v1  ;;  %v14214_v28 = vsel %vm18829_vm9, %v14010_v19, %v9444_v8  ;;  %v3210_v29 = vpack.c.bf16 %v3139_v5, %v3138_v20  ;;  %v14217_v56 = vsel %vm18828_vm10, %v3067_v54, %v9409_v48  ;;  %v19841_v5 = vld [vmem:[#allocation30_spill] sm:$0xff]  ;;  %v19843_v1 = vld [vmem:[#allocation107_spill] sm:$0xff] }
 0x343   : > { %v14220_v59 = vsel %vm18828_vm10, %v3068_v42, %v9410_v16  ;;  %v3080_v58 = vsel %vm18829_vm9, %v14017_v49, %v9445_v7  ;;  %v14226_v43 = vsel %vm18829_vm9, %v14055_v45, %v9459_v50  ;;  %v14230_v53 = vsel %vm18829_vm9, %v14059_v52, %v9460_v18  ;;  %8207 = vmatmul.msk.bf16.gmra.mxu1 %vm2675_vm4, %v3215_v11  ;;  %v19844_v45 = vld [vmem:[#allocation296_spill] sm:$0xff]  ;;  %v19845_v16 = vld [vmem:[#allocation243_spill] sm:$0xff]  ;;  %v9608_v18 = vpop.permute.xlu2 %9607  ;;  %v19846_v50 = vld [vmem:[#allocation50_spill] sm:$0xff]  ;;  %v14255_v11 = vpop.permute.xlu1 %9542 }
 0x344   : > { %19840 = vst [vmem:[#allocation90_spill] sm:$0xff] %v14230_v53  ;;  %v3953_v19 = vrot.slane %v423_v3, 1  ;;  %v19842_v21 = vmax.f32 %v19841_v5, 0.0  ;;  %v9425_v36 = vunpack.i.h.bf16 %v19843_v1  ;;  %v9424_v8 = vunpack.i.l.bf16 %v19843_v1  ;;  %v19847_v3 = vld [vmem:[#allocation145_spill] sm:$0xff]  ;;  %v19848_v5 = vld [vmem:[#allocation287_spill] sm:$0xff] }
 0x345   : > { %v4310_v42 = vpop.f32.mrf.mxu2  ;;  %v3069_v49 = vsel %vm18829_vm9, %v13894_v38, %v9404_v41  ;;  %v3070_v7 = vsel %vm18829_vm9, %v19844_v45, %v9405_v62  ;;  %v9475_v52 = vunpack.i.h.bf16 %v19845_v16  ;;  %v9474_v51 = vunpack.i.l.bf16 %v19845_v16  ;;  %19850 = vst [vmem:[#allocation114_spill] sm:$0xff] %v14255_v11  ;;  %v14269_v11 = vpop.permute.xlu0 %9537  ;;  %v19861_v53 = vld [vmem:[#allocation131_spill] sm:$0xff] }
 0x346   : > { %v3955_v54 = vrot.slane %v19842_v21, 1  ;;  %v3954_v20 = vsel %vm717_vm2, %v14090_v0, %v3953_v19  ;;  %v9440_v38 = vunpack.i.h.bf16 %v19847_v3  ;;  %v9439_v41 = vunpack.i.l.bf16 %v19847_v3  ;;  %v19849_v42 = vld [vmem:[#allocation249_spill] sm:$0xff]  ;;  %19854 = vst [vmem:[#allocation138_spill] sm:$0xff] %v14269_v11 }
 0x347   : > { %v3465_v48 = vpop.f32.mrf.mxu0  ;;  %v9420_v21 = vunpack.i.h.bf16 %v19848_v5  ;;  %v9419_v1 = vunpack.i.l.bf16 %v19848_v5  ;;  %v9550_v45 = vunpack.i.h.bf16 %v19849_v42  ;;  %v9610_v0 = vunpack.i.h.bf16 %v9608_v18 }
 0x348   : > { %v3957_v30 = vsel %vm717_vm2, %v3955_v54, %v19846_v50  ;;  %v9549_v48 = vunpack.i.l.bf16 %v19849_v42  ;;  %v9609_v19 = vunpack.i.l.bf16 %v9608_v18  ;;  %v14257_v54 = vpop.f32.mrf.mxu1  ;;  %v14260_v16 = vsel %vm18828_vm10, %v3069_v49, %v9424_v8 }
 0x349   : > { %v4145_v62 = vpack.c.bf16 %v3957_v30, %v3954_v20  ;;  %19851 = vst [vmem:[#allocation257_spill] sm:$0xff] %v14257_v54  ;;  %v14263_v20 = vsel %vm18828_vm10, %v3070_v7, %v9425_v36  ;;  %v19852_v30 = vld [vmem:[#allocation246_spill] sm:$0xff]  ;;  %v9455_v61 = vunpack.i.h.bf16 %v19853_v32  ;;  %v9454_v42 = vunpack.i.l.bf16 %v19853_v32  ;;  %v19856_v7 = vld [vmem:[#allocation91_spill] sm:$0xff] }
 0x34a   : > { %3504 = vmatmul.bf16.gmra.mxu0 %v3210_v29  ;;  %v9490_v3 = vunpack.i.h.bf16 %v19852_v30  ;;  %v9489_v5 = vunpack.i.l.bf16 %v19852_v30  ;;  %v19855_v29 = vld [vmem:[#allocation247_spill] sm:$0xff]  ;;  %v3077_v36 = vsel %vm18829_vm9, %v14028_v12, %v9439_v41  ;;  %v3078_v49 = vsel %vm18829_vm9, %v14032_v25, %v9440_v38  ;;  %v19860_v38 = vld [vmem:[#allocation154_spill] sm:$0xff] }
 0x34b   : > { %8246 = vmatmul.msk.bf16.gmra.mxu2 %vm2675_vm4, %v4145_v62  ;;  %v9435_v18 = vunpack.i.h.bf16 %v19855_v29  ;;  %v9434_v8 = vunpack.i.l.bf16 %v19855_v29  ;;  %v9505_v30 = vunpack.i.h.bf16 %v19856_v7  ;;  %v19857_v54 = vld [vmem:[#allocation207_spill] sm:$0xff]  ;;  %v3105_v32 = vsel %vm18829_vm9, %v14143_v55, %v9549_v48 }
 0x34c   : > { %v9449_v9 = vunpack.i.l.bf16 %v19857_v54  ;;  %v3106_v62 = vsel %vm18829_vm9, %v14137_v26, %v9550_v45  ;;  %v9504_v11 = vunpack.i.l.bf16 %v19856_v7  ;;  %v9450_v29 = vunpack.i.h.bf16 %v19857_v54  ;;  %v19889_v7 = vld [vmem:[#allocation254_spill] sm:$0xff] }
 0x34d   : > { %v4313_v15 = vpop.f32.mrf.mxu2  ;;  %v14287_v12 = vsel %vm18828_vm10, %v3105_v32, %v9609_v19  ;;  %v14290_v25 = vsel %vm18828_vm10, %v3106_v62, %v9610_v0  ;;  %v3082_v41 = vsel %vm18829_vm9, %v19860_v38, %v9455_v61  ;;  %v3081_v55 = vsel %vm18829_vm9, %v19861_v53, %v9454_v42  ;;  %v19867_v42 = vld [vmem:[#allocation181_spill] sm:$0xff]  ;;  %v19869_v32 = vld [vmem:[#allocation110_spill] sm:$0xff] }
 0x34e   : > { %19858 = vst [vmem:[#allocation223_spill] sm:$0xff] %v14287_v12  ;;  %v3073_v26 = vsel %vm18829_vm9, %v13992_v37, %v9419_v1  ;;  %v14302_v15 = vsel %vm18828_vm10, %v14198_v2, %v9434_v8  ;;  %v3074_v0 = vsel %vm18829_vm9, %v13996_v10, %v9420_v21  ;;  %v14308_v61 = vsel %vm18828_vm10, %v14214_v28, %v9489_v5  ;;  %v19862_v21 = vld [vmem:[#allocation206_spill] sm:$0xff]  ;;  %v14341_v5 = vpop.permute.xlu1 %9557  ;;  %v19900_v12 = vld [vmem:[#allocation53_spill] sm:$0xff] }
 0x34f   : > { %19859 = vst [vmem:[#allocation89_spill] sm:$0xff] %v14290_v25  ;;  %v3467_v48 = vpop.f32.mrf.mxu0  ;;  %v14311_v53 = vsel %vm18828_vm10, %v3080_v58, %v9490_v3  ;;  %v14315_v37 = vsel %vm18828_vm10, %v14202_v23, %v9435_v18  ;;  %v14318_v1 = vsel %vm18828_vm10, %v3073_v26, %v9449_v9  ;;  %v14321_v2 = vsel %vm18828_vm10, %v3077_v36, %v9474_v51  ;;  %v19865_v51 = vld [vmem:[#allocation15_spill] sm:$0xff]  ;;  %v19868_v18 = vld [vmem:[#allocation182_spill] sm:$0xff]  ;;  %v323_v36 = vld [vmem:[%s10343_s30 + $0x158] sm:$0x3] }
 0x350   : > { %v14324_v10 = vsel %vm18828_vm10, %v3078_v49, %v9475_v52  ;;  %v9519_v28 = vunpack.i.l.bf16 %v19862_v21  ;;  %v14327_v19 = vpop.f32.mrf.mxu1  ;;  %v14330_v58 = vsel %vm18828_vm10, %v3074_v0, %v9450_v29  ;;  %v14333_v54 = vsel %vm18828_vm10, %v3081_v55, %v9504_v11  ;;  %19866 = vst [vmem:[#allocation258_spill] sm:$0xff] %v14341_v5  ;;  %v14353_v29 = vpop.permute.xlu0 %9552 }
 0x351   : > { %19863 = vst [vmem:[#allocation111_spill] sm:$0xff] %v14333_v54  ;;  %v14336_v23 = vsel %vm18828_vm10, %v3082_v41, %v9505_v30  ;;  %v9520_v9 = vunpack.i.h.bf16 %v19862_v21  ;;  %v9465_v3 = vunpack.i.h.bf16 %v19865_v51  ;;  %v9464_v52 = vunpack.i.l.bf16 %v19865_v51  ;;  %v19870_v21 = vld [vmem:[#allocation31_spill] sm:$0xff] }
 0x352   : > { %19864 = vst [vmem:[#allocation139_spill] sm:$0xff] %v14336_v23  ;;  %v3217_v8 = vpack.c.bf16 %v19868_v18, %v19867_v42  ;;  %v427_v11 = vmax.f32 %v323_v36, 0.0  ;;  %v9470_v62 = vunpack.i.h.bf16 %v19869_v32  ;;  %v14364_v48 = vsel %vm18829_vm9, %v14095_v60, %v9519_v28  ;;  %v19872_v36 = vld [vmem:[#allocation210_spill] sm:$0xff] }
 0x353   : > { %v9469_v26 = vunpack.i.l.bf16 %v19869_v32  ;;  %v19871_v51 = vmax.f32 %v19870_v21, 0.0  ;;  %v9535_v45 = vunpack.i.h.bf16 %v19872_v36  ;;  %v14376_v55 = vsel %vm18828_vm10, %v14206_v13, %v9464_v52  ;;  %v19873_v32 = vld [vmem:[#allocation286_spill] sm:$0xff] }
 0x354   : > { %8208 = vmatmul.msk.bf16.gmra.mxu1 %vm2675_vm4, %v3217_v8  ;;  %v3960_v18 = vrot.slane %v427_v11, 1  ;;  %v14371_v8 = vsel %vm18829_vm9, %v14112_v14, %v9520_v9  ;;  %v14380_v60 = vsel %vm18828_vm10, %v14210_v47, %v9465_v3  ;;  %v9534_v28 = vunpack.i.l.bf16 %v19872_v36  ;;  %v19874_v9 = vld [vmem:[#allocation155_spill] sm:$0xff] }
 0x355   : > { %v4315_v0 = vpop.f32.mrf.mxu2  ;;  %v3958_v42 = vrot.slane %v19871_v51, 1  ;;  %v9480_v21 = vunpack.i.h.bf16 %v19874_v9  ;;  %v9484_v13 = vunpack.i.l.bf16 %v19873_v32  ;;  %v3085_v47 = vsel %vm18829_vm9, %v14038_v40, %v9469_v26 }
 0x356   : > { %v9485_v0 = vunpack.i.h.bf16 %v19873_v32  ;;  %v3086_v3 = vsel %vm18829_vm9, %v14046_v17, %v9470_v62  ;;  %v9500_v51 = vunpack.i.h.bf16 %v13987_v57  ;;  %v9499_v36 = vunpack.i.l.bf16 %v13987_v57 }
 0x357   : > { %v3470_v30 = vpop.f32.mrf.mxu0  ;;  %v3959_v11 = vsel %vm717_vm2, %v19846_v50, %v3958_v42  ;;  %v3961_v14 = vsel %vm717_vm2, %v3958_v42, %v3960_v18  ;;  %v19875_v50 = vpack.c.bf16 %v14220_v59, %v14217_v56  ;;  %v9494_v42 = vunpack.i.l.bf16 %v14013_v34 }
 0x358   : > { %v9479_v30 = vunpack.i.l.bf16 %v19874_v9  ;;  %v4146_v52 = vpack.c.bf16 %v3961_v14, %v3959_v11  ;;  %v9515_v18 = vunpack.i.h.bf16 %v14081_v27  ;;  %v9514_v32 = vunpack.i.l.bf16 %v14081_v27  ;;  %v14402_v11 = vpop.f32.mrf.mxu1  ;;  %v19880_v9 = vld [vmem:[#allocation64_spill] sm:$0xff] }
 0x359   : > { %v14409_v57 = vsel %vm18829_vm9, %v14147_v33, %v9534_v28  ;;  %v14413_v17 = vsel %vm18829_vm9, %v14151_v35, %v9535_v45  ;;  %v14417_v56 = vsel %vm18829_vm9, %v14077_v31, %v9485_v0  ;;  %v9495_v27 = vunpack.i.h.bf16 %v14013_v34  ;;  %v14433_v45 = vpop.permute.xlu1 %9572  ;;  %v14448_v0 = vpop.permute.xlu0 %9567 }
 0x35a   : > { %3509 = vmatmul.bf16.gmra.mxu0 %v19875_v50  ;;  %v14422_v59 = vsel %vm18829_vm9, %v13960_v22, %v9480_v21  ;;  %v14426_v62 = vsel %vm18829_vm9, %v13951_v4, %v9479_v30  ;;  %v14430_v33 = vsel %vm18829_vm9, %v14073_v46, %v9484_v13  ;;  %v9509_v35 = vunpack.i.l.bf16 %v14101_v24  ;;  %19876 = vst [vmem:[#allocation105_spill] sm:$0xff] %v14433_v45  ;;  %v19881_v30 = vld [vmem:[#allocation295_spill] sm:$0xff] }
 0x35b   : > { %8247 = vmatmul.msk.bf16.gmra.mxu2 %vm2675_vm4, %v4146_v52  ;;  %v3094_v31 = vsel %vm18829_vm9, %v13985_v6, %v9500_v51  ;;  %v3093_v34 = vsel %vm18829_vm9, %v13981_v39, %v9499_v36  ;;  %v9510_v22 = vunpack.i.h.bf16 %v14101_v24  ;;  %v9529_v26 = vunpack.i.l.bf16 %v14176_v63  ;;  %v19878_v39 = vld [vmem:[#allocation90_spill] sm:$0xff]  ;;  %v19883_v51 = vld [vmem:[#allocation251_spill] sm:$0xff] }
 0x35c   : > { %v14445_v46 = vsel %vm18829_vm9, %v14063_v44, %v9494_v42  ;;  %v9530_v28 = vunpack.i.h.bf16 %v14176_v63  ;;  %v14452_v6 = vsel %vm18828_vm10, %v14226_v43, %v9514_v32  ;;  %v14456_v24 = vsel %vm18828_vm10, %v19878_v39, %v9515_v18  ;;  %v19882_v63 = vld [vmem:[#allocation256_spill] sm:$0xff]  ;;  %v19884_v43 = vld [vmem:[#allocation5_spill] sm:$0xff]  ;;  %v19885_v42 = vld [vmem:[#allocation3_spill] sm:$0xff] }
 0x35d   : > { %v14441_v4 = vpop.f32.mrf.mxu2  ;;  %19877 = vst [vmem:[#allocation112_spill] sm:$0xff] %v14452_v6  ;;  %v14460_v21 = vsel %vm18829_vm9, %v19880_v9, %v9495_v27  ;;  %v9580_v44 = vunpack.i.h.bf16 %v19881_v30  ;;  %v9579_v13 = vunpack.i.l.bf16 %v19881_v30  ;;  %v9524_v52 = vunpack.i.l.bf16 %v19882_v63 }
 0x35e   : > { %19879 = vst [vmem:[#allocation280_spill] sm:$0xff] %v14456_v24  ;;  %v14467_v36 = vsel %vm18829_vm9, %v19883_v51, %v9509_v35  ;;  %v8271_v50 = vadd.s32 4294967295, %v19884_v43  ;;  %v490_v32 = vadd.s32 8, %v19885_v42  ;;  %v8269_v18 = vadd.s32 4294967295, %v19885_v42  ;;  %v19936_v24 = vld [vmem:[#allocation190_spill] sm:$0xff] }
 0x35f   : > { %v3472_v14 = vpop.f32.mrf.mxu0  ;;  %v9525_v39 = vunpack.i.h.bf16 %v19882_v63  ;;  %v14480_v30 = vsel %vm18828_vm10, %v3085_v47, %v9529_v26  ;;  %v14485_v38 = vsel %vm18828_vm10, %v3086_v3, %v9530_v28  ;;  %v19891_v63 = vld [vmem:[#allocation178_spill] sm:$0xff]  ;;  %v14494_v9 = vsel %vm18828_vm10, %v3093_v34, %v9579_v13 }
 0x360   : > { %v19886_v14 = vld [vmem:[#allocation132_spill] sm:$0xff]  ;;  %19887 = vst [vmem:[#allocation231_spill] sm:$0xff] %v14480_v30  ;;  %v14482_v35 = vpop.f32.mrf.mxu1  ;;  %v8274_v51 = vadd.s32 4294967295, %v8271_v50  ;;  %v8270_v41 = vadd.s32 4294967295, %v490_v32  ;;  %v8272_v40 = vadd.s32 4294967295, %v8269_v18  ;;  %v14497_v47 = vsel %vm18828_vm10, %v3094_v31, %v9580_v44  ;;  %v19894_v28 = vld [vmem:[#allocation34_spill] sm:$0xff] }
 0x361   : > { %v14474_v27 = vsel %vm18829_vm9, %v19886_v14, %v9510_v22  ;;  %19888 = vst [vmem:[#allocation259_spill] sm:$0xff] %v14485_v38  ;;  %v14489_v22 = vsel %vm18829_vm9, %v19889_v7, %v9524_v52  ;;  %v19890_v14 = vld [vmem:[#allocation177_spill] sm:$0xff]  ;;  %vm5574_vm11 = vcmp.lt.s32.totalorder %v490_v32, 15  ;;  %v19895_v7 = vmax.f32 %v19894_v28, 0.0  ;;  %v14510_v44 = vpop.permute.xlu1 %9587  ;;  %v19899_v28 = vld [vmem:[#allocation114_spill] sm:$0xff] }
 0x362   : > { %v3219_v49 = vpack.c.bf16 %v19891_v63, %v19890_v14  ;;  %19892 = vst [vmem:[#allocation29_spill] sm:$0xff] %v14494_v9  ;;  %v5589_v26 = vsub.s32 15, %v8274_v51  ;;  %v8273_v50 = vadd.s32 4294967295, %v8270_v41  ;;  %vm5581_vm12 = vcmp.gt.s32.totalorder %v8272_v40, 0  ;;  %v19896_v18 = vld [vmem:[#allocation33_spill] sm:$0xff]  ;;  %v19898_v63 = vld [vmem:[#allocation252_spill] sm:$0xff] }
 0x363   : > { %19893 = vst [vmem:[#allocation28_spill] sm:$0xff] %v14497_v47  ;;  %v3962_v52 = vrot.slane %v19895_v7, 1  ;;  %v19897_v45 = vmax.f32 %v19896_v18, 0.0  ;;  %v5575_v34 = vsel %vm5574_vm11, %v490_v32, 15  ;;  %v5582_v13 = vsel %vm5581_vm12, %v8272_v40, 0  ;;  %v14522_v18 = vpop.permute.xlu0 %9582 }
 0x364   : > { %8209 = vmatmul.msk.bf16.gmra.mxu1 %vm2675_vm4, %v3219_v49  ;;  %v3100_v31 = vsel %vm18829_vm9, %v19898_v63, %v9525_v39  ;;  %v5592_v51 = vadd.s32 1, %v5589_v26  ;;  %v5587_v49 = vsub.s32 %v19885_v42, %v5582_v13  ;;  %v9545_v7 = vunpack.i.h.bf16 %v19899_v28 }
 0x365   : > { %v14500_v3 = vpop.f32.mrf.mxu2  ;;  %v14506_v14 = vrot.slane %v19897_v45, 1  ;;  %v3964_v45 = vsel %vm717_vm2, %v3962_v52, %v19900_v12  ;;  %v5588_v32 = vsub.s32 %v5575_v34, %v8273_v50  ;;  %v9544_v39 = vunpack.i.l.bf16 %v19899_v28 }
 0x366   : > { %vm5597_vm13 = vcmp.gt.s32.totalorder %v5592_v51, 1  ;;  %v5590_v13 = vadd.s32 1, %v5587_v49  ;;  %v9555_v63 = vunpack.i.h.bf16 %v14353_v29  ;;  %v9554_v5 = vunpack.i.l.bf16 %v14353_v29  ;;  %v19902_v49 = vld [vmem:[#allocation138_spill] sm:$0xff] }
 0x367   : > { %v3475_v41 = vpop.f32.mrf.mxu0  ;;  %v3966_v40 = vsel %vm717_vm2, %v19900_v12, %v14506_v14  ;;  %v19901_v25 = vpack.c.bf16 %v14263_v20, %v14260_v16  ;;  %v14529_v52 = vsel %vm5597_vm13, %v5592_v51, 1  ;;  %v5591_v30 = vadd.s32 1, %v5588_v32  ;;  %v19903_v20 = vld [vmem:[#allocation221_spill] sm:$0xff] }
 0x368   : > { %v4147_v26 = vpack.c.bf16 %v3966_v40, %v3964_v45  ;;  %v9570_v12 = vunpack.i.h.bf16 %v14448_v0  ;;  %v9569_v50 = vunpack.i.l.bf16 %v14448_v0  ;;  %v5601_v34 = vmul.u32 2, %v14529_v52  ;;  %v14544_v0 = vld [vmem:[%s18291_s2] ss:$0 sm:$0xff]  ;;  %v14546_v45 = vpop.f32.mrf.mxu1 }
 0x369   : > { %vm5593_vm14 = vcmp.gt.s32.totalorder %v5590_v13, 1  ;;  %v9540_v28 = vunpack.i.h.bf16 %v19902_v49  ;;  %v9539_v29 = vunpack.i.l.bf16 %v19902_v49  ;;  %vm5595_vm15 = vcmp.gt.s32.totalorder %v5591_v30, 1 }
 0x36a   : > { %3514 = vmatmul.bf16.gmra.mxu0 %v19901_v25  ;;  %v9595_v25 = vunpack.i.h.bf16 %v19903_v20  ;;  %v9594_v51 = vunpack.i.l.bf16 %v19903_v20  ;;  %v14548_v40 = vcvt.s32.f32 %v5601_v34  ;;  %v14550_v32 = vsel %vm5595_vm15, %v5591_v30, 1 }
 0x36b   : > { %8248 = vmatmul.msk.bf16.gmra.mxu2 %vm2675_vm4, %v4147_v26  ;;  %v14554_v49 = vsel %vm5593_vm14, %v5590_v13, 1  ;;  %v14558_v16 = vsel %vm18828_vm10, %v14426_v62, %v9544_v39  ;;  %v14562_v20 = vsel %vm18828_vm10, %v14422_v59, %v9545_v7  ;;  %v14566_v9 = vsel %vm18828_vm10, %v14430_v33, %v9554_v5  ;;  %v19910_v59 = vld [vmem:[#allocation255_spill] sm:$0xff]  ;;  %v19911_v5 = vld [vmem:[#allocation222_spill] sm:$0xff] }
 0x36c   : > { %19904 = vst [vmem:[#allocation150_spill] sm:$0xff] %v14558_v16  ;;  %10189 = vrcp.f32 %v14548_v40  ;;  %v14571_v30 = vsel %vm18828_vm10, %v14417_v56, %v9555_v63  ;;  %v14575_v13 = vsel %vm18828_vm10, %v14445_v46, %v9569_v50  ;;  %v14579_v62 = vsel %vm18828_vm10, %v14460_v21, %v9570_v12  ;;  %v14591_v63 = vpop.permute.xlu1 %9602 }
 0x36d   : > { %v14552_v26 = vpop.f32.mrf.mxu2  ;;  %19905 = vst [vmem:[#allocation151_spill] sm:$0xff] %v14562_v20  ;;  %v14583_v7 = vsel %vm18829_vm9, %v19910_v59, %v9539_v29  ;;  %v14587_v33 = vsel %vm18829_vm9, %v19911_v5, %v9540_v28  ;;  %v5600_v56 = vmul.u32 2, %v14550_v32  ;;  %v3476_v46 = vadd.f32 %v14544_v0, %v3475_v41 }
 0x36e   : > { %19906 = vst [vmem:[#allocation14_spill] sm:$0xff] %v14566_v9  ;;  %v5599_v50 = vmul.u32 2, %v14554_v49  ;;  %v14597_v21 = vsel %vm18828_vm10, %v14489_v22, %v9594_v51  ;;  %v14600_v12 = vsel %vm18828_vm10, %v3100_v31, %v9595_v25  ;;  %v9584_v28 = vunpack.i.l.bf16 %v14522_v18  ;;  %v9598_v31 = vpop.permute.xlu0 %9597  ;;  %v19914_v25 = vld [vmem:[#allocation257_spill] sm:$0xff]  ;;  %v19915_v9 = vld [vmem:[#allocation87_spill] sm:$0xff] }
 0x36f   : > { %v3477_v34 = vpop.f32.mrf.mxu0  ;;  %19907 = vst [vmem:[#allocation224_spill] sm:$0xff] %v14571_v30  ;;  %v9585_v59 = vunpack.i.h.bf16 %v14522_v18  ;;  %v9590_v22 = vunpack.i.h.bf16 %v14510_v44  ;;  %v9589_v51 = vunpack.i.l.bf16 %v14510_v44  ;;  %v9605_v47 = vunpack.i.h.bf16 %v14591_v63  ;;  %v19917_v18 = vld [vmem:[#allocation176_spill] sm:$0xff]  ;;  %v327_v30 = vld [vmem:[%s10343_s30 + $0x178] sm:$0x3] }
 0x370   : > { %19908 = vst [vmem:[#allocation108_spill] sm:$0xff] %v14575_v13  ;;  %v3478_v39 = vadd.f32 %v14544_v0, %v3477_v34  ;;  %v14614_v38 = vcvt.s32.f32 %v5600_v56  ;;  %v3653_v41 = vadd.f32 %v19915_v9, %v3476_v46  ;;  %v19916_v13 = vld [vmem:[#allocation175_spill] sm:$0xff]  ;;  %v14624_v16 = vcvt.s32.f32 %v5599_v50  ;;  %v14633_v9 = vpop.f32.mrf.mxu1 }
 0x371   : > { %19909 = vst [vmem:[#allocation226_spill] sm:$0xff] %v14579_v62  ;;  %v3221_v62 = vpack.c.bf16 %v19917_v18, %v19916_v13  ;;  %v9600_v44 = vunpack.i.h.bf16 %v9598_v31  ;;  %v431_v56 = vmax.f32 %v327_v30, 0.0  ;;  %v14631_v29 = vsel %vm18828_vm10, %v14467_v36, %v9584_v28  ;;  %v19920_v13 = vld [vmem:[#allocation142_spill] sm:$0xff] }
 0x372   : > { %19912 = vst [vmem:[#allocation229_spill] sm:$0xff] %v14597_v21  ;;  %v3655_v5 = vadd.f32 %v19914_v25, %v3478_v39  ;;  %v14618_v34 = vpop.eup %10189  ;;  %v9604_v39 = vunpack.i.l.bf16 %v14591_v63  ;;  %v19918_v25 = vld [vmem:[#allocation4_spill] sm:$0xff]  ;;  %9617 = vrot.lane.b32.xlu1 %v19920_v13, %s10265_s8  ;;  %v14640_v63 = vsel %vm18828_vm10, %v14474_v27, %v9585_v59  ;;  %v14644_v30 = vsel %vm18828_vm10, %v14364_v48, %v9589_v51 }
 0x373   : > { %19913 = vst [vmem:[#allocation81_spill] sm:$0xff] %v14600_v12  ;;  %9612 = vrot.lane.b32.xlu0 %v19918_v25, %s10264_s27  ;;  %v14648_v36 = vsel %vm18828_vm10, %v14371_v8, %v9590_v22  ;;  %v9599_v46 = vunpack.i.l.bf16 %v9598_v31  ;;  %10191 = vrcp.f32 %v14614_v38  ;;  %v4547_v27 = vrot.slane %v3653_v41, 2  ;;  %v14673_v31 = vld [vmem:[%s18293_s4] ss:$0 sm:$0xff] }
 0x374   : > { %19919 = vst [vmem:[#allocation128_spill] sm:$0xff] %v14631_v29  ;;  %v4548_v21 = vrot.slane %v3655_v5, 2  ;;  %8210 = vmatmul.msk.bf16.gmra.mxu1 %vm2675_vm4, %v3221_v62  ;;  %v5690_v62 = vmul.f32 %v14618_v34, %v14548_v40  ;;  %v3967_v59 = vrot.slane %v431_v56, 1  ;;  %v19924_v5 = vld [vmem:[#allocation51_spill] sm:$0xff]  ;;  %10193 = vrcp.f32 %v14624_v16 }
 0x375   : > { %19921 = vst [vmem:[#allocation45_spill] sm:$0xff] %v14640_v63  ;;  %v14653_v28 = vpop.f32.mrf.mxu2  ;;  %v19925_v18 = vmax.f32 %v19924_v5, 0.0  ;;  %vm4459_vm0 = vcmp.ge.s32.totalorder %v19885_v42, 2  ;;  %vm18854_vm1 = vcmp.lt.s32.totalorder %v19884_v43, 18  ;;  %v19930_v5 = vld [vmem:[#allocation2_spill] sm:$0xff]  ;;  %vm5694_vm11 = vweird.f32 %v14548_v40 }
 0x376   : > { %19922 = vst [vmem:[#allocation7_spill] sm:$0xff] %v14644_v30  ;;  %v4549_v51 = vsel %vm886_vm3, %v4547_v27, %v4548_v21  ;;  %v5691_v13 = vsub.f32 1.0, %v5690_v62  ;;  %v14685_v27 = vsel %vm18828_vm10, %v14413_v17, %v9600_v44  ;;  %vm5695_vm12 = vweird.f32 %v14618_v34 }
 0x377   : > { %v3480_v12 = vpop.f32.mrf.mxu0  ;;  %19923 = vst [vmem:[#allocation6_spill] sm:$0xff] %v14648_v36  ;;  %v3969_v48 = vrot.slane %v19925_v18, 1  ;;  %v19931_v18 = vld [vmem:[#allocation140_spill] sm:$0xff]  ;;  %v5602_v54 = vmul.u32 3, %v14554_v49  ;;  %vm14760_vm14 = vmor %vm5694_vm11, %vm5695_vm12  ;;  %vm5679_vm15 = vweird.f32 %v14614_v38 }
 0x378   : > { %v3481_v50 = vadd.f32 %v14544_v0, %v3480_v12  ;;  %v19926_v12 = vpack.c.bf16 %v14315_v37, %v14302_v15  ;;  %v19927_v15 = vld [vmem:[#allocation68_spill] sm:$0xff]  ;;  %19929 = vst [vmem:[#allocation39_spill] sm:$0xff] %v14685_v27 }
 0x379   : > { %v3971_v37 = vsel %vm717_vm2, %v3969_v48, %v19927_v15  ;;  %v14697_v62 = vpop.eup %10191 }
 0x37a   : > { %v3658_v8 = vadd.f32 %v14327_v19, %v3481_v50  ;;  %3519 = vmatmul.bf16.gmra.mxu0 %v19926_v12  ;;  %v3968_v19 = vsel %vm717_vm2, %v14506_v14, %v3967_v59  ;;  %v14681_v50 = vsel %vm18828_vm10, %v14409_v57, %v9599_v46  ;;  %v5156_v12 = vadd.f32 %v19931_v18, %v19930_v5  ;;  %v14705_v48 = vpop.eup %10193 }
 0x37b   : > { %19928 = vst [vmem:[#allocation25_spill] sm:$0xff] %v14681_v50  ;;  %v4148_v41 = vpack.c.bf16 %v3971_v37, %v3968_v19  ;;  %v14691_v14 = vsel %vm18828_vm10, %v14583_v7, %v9604_v39  ;;  %v14695_v59 = vsel %vm18828_vm10, %v14587_v33, %v9605_v47  ;;  %v4703_v57 = vsel %vm4459_vm0, %v4549_v51, 0.0 }
 0x37c   : > { %v4550_v56 = vrot.slane %v3658_v8, 2  ;;  %19932 = vst [vmem:[#allocation44_spill] sm:$0xff] %v14691_v14  ;;  %v5604_v46 = vmul.u32 3, %v14529_v52  ;;  %v14709_v47 = vadd.f32 %v14673_v31, %v14441_v4  ;;  %v5692_v52 = vmul.f32 %v14618_v34, %v5691_v13 }
 0x37d   : > { %19933 = vst [vmem:[#allocation11_spill] sm:$0xff] %v14695_v59  ;;  %8249 = vmatmul.msk.bf16.gmra.mxu2 %vm2675_vm4, %v4148_v41  ;;  %v5700_v51 = vand.u32 2147483648, %v14548_v40  ;;  %v4821_v37 = vrot.slane %v4703_v57, 1  ;;  %v5019_v4 = vrot.slane %v4703_v57, 2  ;;  %v14726_v41 = vpop.f32.mrf.mxu1  ;;  %v5675_v8 = vmul.f32 %v14697_v62, %v14614_v38  ;;  %v14733_v13 = vpop.f32.mrf.mxu2 }
 0x37e   : > { %v4551_v17 = vsel %vm886_vm3, %v4548_v21, %v4550_v56  ;;  %v4705_v44 = vsel %vm18854_vm1, %v4550_v56, 0.0  ;;  %v14716_v21 = vadd.f32 %v14673_v31, %v14500_v3  ;;  %v14724_v56 = vadd.f32 %v14673_v31, %v14552_v26 }
 0x37f   : > { %v4822_v7 = vrot.slane %v4551_v17, 1  ;;  %v4824_v39 = vrot.slane %v4705_v44, 1  ;;  %v3482_v33 = vpop.f32.mrf.mxu0  ;;  %v5210_v3 = vadd.f32 %v5156_v12, %v4703_v57  ;;  %v14730_v22 = vcvt.s32.f32 %v5604_v46 }
 0x380   : > { %v14737_v19 = vmul.f32 %v14705_v48, %v14624_v16  ;;  %v5698_v5 = vand.u32 2147483647, %v14548_v40  ;;  %v5020_v14 = vrot.slane %v4551_v17, 2  ;;  %v5022_v59 = vrot.slane %v4705_v44, 2 }
 0x381   : > { %v4823_v25 = vsel %vm717_vm2, %v4821_v37, %v4822_v7  ;;  %v4825_v26 = vsel %vm717_vm2, %v4822_v7, %v4824_v39  ;;  %v5693_v46 = vadd.f32 %v14618_v34, %v5692_v52  ;;  %v5701_v50 = vor.u32 1.1754944e-38, %v5700_v51  ;;  %v19937_v52 = vld [vmem:[#allocation191_spill] sm:$0xff] }
 0x382   : > { %v4963_v27 = vadd.f32 %v4824_v39, %v4705_v44  ;;  %v5211_v18 = vadd.f32 %v5156_v12, %v4551_v17  ;;  %v5212_v30 = vadd.f32 %v5156_v12, %v4705_v44  ;;  %v5676_v36 = vsub.f32 1.0, %v5675_v8  ;;  %v331_v44 = vld [vmem:[%s10343_s30 + $0x198] sm:$0x3] }
 0x383   : > { %v4961_v29 = vadd.f32 %v4823_v25, %v4703_v57  ;;  %v4962_v63 = vadd.f32 %v4825_v26, %v4551_v17  ;;  %v3483_v37 = vadd.f32 %v14544_v0, %v3482_v33  ;;  %10195 = vrcp.f32 %v14730_v22 }
 0x384   : > { %v5275_v7 = vadd.f32 %v5210_v3, %v4823_v25  ;;  %vm14746_vm13 = vcmp.eq.f32.partialorder %v5698_v5, 8.507059e+37  ;;  %v3223_v51 = vpack.c.bf16 %v19937_v52, %v19936_v24  ;;  %v5021_v12 = vsel %vm886_vm3, %v5019_v4, %v5020_v14 }
 0x385   : > { %v5023_v57 = vsel %vm886_vm3, %v5020_v14, %v5022_v59  ;;  %v5603_v5 = vmul.u32 3, %v14550_v32  ;;  %v14766_v24 = vadd.f32 %v5022_v59, %v4963_v27  ;;  %v5276_v49 = vadd.f32 %v5211_v18, %v4825_v26 }
 0x386   : > { %v5277_v33 = vadd.f32 %v5212_v30, %v4824_v39  ;;  %8211 = vmatmul.msk.bf16.gmra.mxu1 %vm2675_vm4, %v3223_v51  ;;  %v14769_v14 = vcvt.s32.f32 %v5602_v54  ;;  %v3660_v8 = vadd.f32 %v14402_v11, %v3483_v37  ;;  %v14777_v4 = vadd.f32 %v5021_v12, %v4961_v29  ;;  %v14787_v30 = vpop.f32.mrf.mxu1  ;;  %v4330_v29 = vpop.f32.mrf.mxu2 }
 0x387   : > { %v3485_v20 = vpop.f32.mrf.mxu0  ;;  %v19940_v32 = vpack.c.bf16 %v14330_v58, %v14318_v1  ;;  %v14782_v27 = vadd.f32 %v5275_v7, %v5021_v12  ;;  %v5697_v54 = vsel %vm14760_vm14, %v14618_v34, %v5693_v46  ;;  %v435_v11 = vmax.f32 %v331_v44, 0.0  ;;  %v19941_v1 = vld [vmem:[#allocation43_spill] sm:$0xff] }
 0x388   : > { %v3486_v17 = vadd.f32 %v14544_v0, %v3485_v20  ;;  %v14771_v20 = vadd.f32 %v5023_v57, %v4962_v63  ;;  %v5677_v63 = vmul.f32 %v14697_v62, %v5676_v36  ;;  %v14793_v39 = vcvt.s32.f32 %v5603_v5 }
 0x389   : > { %v14790_v18 = vpop.eup %10195  ;;  %10197 = vrcp.f32 %v14769_v14  ;;  %v19942_v58 = vmax.f32 %v19941_v1, 0.0  ;;  %v5338_v26 = vadd.f32 %v5276_v49, %v5023_v57  ;;  %vm5680_vm11 = vweird.f32 %v14697_v62 }
 0x38a   : > { %v14775_v40 = vadd.f32 %v14482_v35, %v3486_v17  ;;  %3524 = vmatmul.bf16.gmra.mxu0 %v19940_v32  ;;  %v5735_v34 = vmul.f32 %v14790_v18, %v14730_v22  ;;  %v4552_v36 = vrot.slane %v3660_v8, 2  ;;  %v5683_v46 = vand.u32 2147483647, %v14614_v38  ;;  %vm14813_vm12 = vmor %vm5679_vm15, %vm5680_vm11 }
 0x38b   : > { %v3972_v3 = vrot.slane %v19942_v58, 1  ;;  %v5685_v37 = vand.u32 2147483648, %v14614_v38  ;;  %v3974_v7 = vrot.slane %v435_v11, 1  ;;  %v5339_v52 = vadd.f32 %v5277_v33, %v5022_v59 }
 0x38c   : > { %v4553_v35 = vrot.slane %v14775_v40, 2  ;;  %v5736_v12 = vsub.f32 1.0, %v5735_v34  ;;  %v5678_v17 = vadd.f32 %v14697_v62, %v5677_v63  ;;  %v14810_v5 = vsel %vm14746_vm13, %v5701_v50, %v5697_v54 }
 0x38d   : > { %v3973_v57 = vsel %vm717_vm2, %v19927_v15, %v3972_v3  ;;  %19943 = vst [vmem:[#allocation129_spill] sm:$0xff] %v14810_v5  ;;  %v5743_v44 = vand.u32 2147483647, %v14730_v22  ;;  %10199 = vrcp.f32 %v14793_v39  ;;  %vm5739_vm14 = vweird.f32 %v14730_v22 }
 0x38e   : > { %v4554_v25 = vsel %vm886_vm3, %v4552_v36, %v4553_v35  ;;  %v5745_v15 = vand.u32 2147483648, %v14730_v22  ;;  %v3975_v59 = vsel %vm717_vm2, %v3972_v3, %v3974_v7  ;;  %v5737_v6 = vmul.f32 %v14790_v18, %v5736_v12  ;;  %v14857_v36 = vpop.f32.mrf.mxu1  ;;  %v14867_v7 = vpop.f32.mrf.mxu2 }
 0x38f   : > { %v3487_v51 = vpop.f32.mrf.mxu0  ;;  %v14822_v33 = vpop.eup %10197  ;;  %vm14825_vm13 = vcmp.eq.f32.partialorder %v5683_v46, 8.507059e+37  ;;  %v5686_v8 = vor.u32 1.1754944e-38, %v5685_v37  ;;  %v4149_v40 = vpack.c.bf16 %v3975_v59, %v3973_v57  ;;  %v14831_v32 = vsel %vm4459_vm0, %v4554_v25, 0.0 }
 0x390   : > { %v3488_v38 = vadd.f32 %v14544_v0, %v3487_v51  ;;  %v5682_v63 = vsel %vm14813_vm12, %v14697_v62, %v5678_v17  ;;  %v5661_v11 = vsub.f32 1.0, %v14737_v19  ;;  %vm5740_vm15 = vweird.f32 %v14790_v18 }
 0x391   : > { %vm14839_vm11 = vcmp.eq.f32.partialorder %v5743_v44, 8.507059e+37  ;;  %v14845_v58 = vadd.f32 %v14673_v31, %v14653_v28  ;;  %v14849_v3 = vadd.f32 %v14673_v31, %v14733_v13  ;;  %8250 = vmatmul.msk.bf16.gmra.mxu2 %vm2675_vm4, %v4149_v40  ;;  %v5746_v62 = vor.u32 1.1754944e-38, %v5745_v15  ;;  %vm14877_vm10 = vmor %vm5739_vm14, %vm5740_vm15 }
 0x392   : > { %v3665_v54 = vadd.f32 %v14546_v45, %v3488_v38  ;;  %v14853_v19 = vadd.f32 %v14673_v31, %v4330_v29  ;;  %v5705_v34 = vmul.f32 %v14822_v33, %v14769_v14  ;;  %v4826_v28 = vrot.slane %v14831_v32, 1 }
 0x393   : > { %19950 = vst [vmem:[#allocation24_spill] sm:$0xff] %v14849_v3  ;;  %v14859_v46 = vpop.eup %10199  ;;  %v5738_v37 = vadd.f32 %v14790_v18, %v5737_v6  ;;  %v14865_v13 = vsel %vm14825_vm13, %v5686_v8, %v5682_v63  ;;  %vm5664_vm12 = vweird.f32 %v14624_v16  ;;  %v5662_v57 = vmul.f32 %v14705_v48, %v5661_v11 }
 0x394   : > { %v4555_v45 = vrot.slane %v3665_v54, 2  ;;  %19951 = vst [vmem:[#allocation27_spill] sm:$0xff] %v14865_v13  ;;  %v5668_v25 = vand.u32 2147483647, %v14624_v16  ;;  %v5024_v44 = vrot.slane %v14831_v32, 2  ;;  %v5706_v6 = vsub.f32 1.0, %v5705_v34 }
 0x395   : > { %v5720_v22 = vmul.f32 %v14859_v46, %v14793_v39  ;;  %v5742_v54 = vsel %vm14877_vm10, %v14790_v18, %v5738_v37  ;;  %v19954_v63 = vpack.c.bf16 %v14380_v60, %v14376_v55  ;;  %vm5665_vm14 = vweird.f32 %v14705_v48 }
 0x396   : > { %v4556_v29 = vsel %vm886_vm3, %v4553_v35, %v4555_v45  ;;  %v4708_v51 = vsel %vm18854_vm1, %v4555_v45, 0.0  ;;  %v5213_v35 = vadd.f32 %v14777_v4, %v14831_v32  ;;  %v5391_v4 = vadd.f32 %v14782_v27, %v14831_v32  ;;  %vm14931_vm9 = vmor %vm5664_vm12, %vm5665_vm14 }
 0x397   : > { %v3490_v17 = vpop.f32.mrf.mxu0  ;;  %v4827_v49 = vrot.slane %v4556_v29, 1  ;;  %v4829_v38 = vrot.slane %v4708_v51, 1  ;;  %v5392_v15 = vadd.f32 %v5338_v26, %v4556_v29  ;;  %v5393_v59 = vadd.f32 %v5339_v52, %v4708_v51 }
 0x398   : > { %v5025_v8 = vrot.slane %v4556_v29, 2  ;;  %v5027_v40 = vrot.slane %v4708_v51, 2  ;;  %v5663_v26 = vadd.f32 %v14705_v48, %v5662_v57  ;;  %vm14899_vm13 = vcmp.eq.f32.partialorder %v5668_v25, 8.507059e+37 }
 0x399   : > { %v4830_v50 = vsel %vm717_vm2, %v4827_v49, %v4829_v38  ;;  %v4828_v11 = vsel %vm717_vm2, %v4826_v28, %v4827_v49  ;;  %v5458_v34 = vadd.f32 %v5393_v59, %v4829_v38  ;;  %v5670_v18 = vand.u32 2147483648, %v14624_v16 }
 0x39a   : > { %3529 = vmatmul.bf16.gmra.mxu0 %v19954_v63  ;;  %v5457_v45 = vadd.f32 %v5392_v15, %v4830_v50  ;;  %v14907_v55 = vsel %vm14839_vm11, %v5746_v62, %v5742_v54  ;;  %v5715_v60 = vand.u32 2147483648, %v14769_v14  ;;  %v5721_v27 = vsub.f32 1.0, %v5720_v22  ;;  %v14916_v62 = vpop.f32.mrf.mxu1 }
 0x39b   : > { %vm5848_vm10 = vcmask 1042432   ;;  %v5520_v37 = vadd.f32 %v5458_v34, %v5027_v40  ;;  %v3491_v12 = vadd.f32 %v14544_v0, %v3490_v17  ;;  %v5028_v57 = vsel %vm886_vm3, %v5025_v8, %v5027_v40 }
 0x39c   : > { %v5707_v25 = vmul.f32 %v14822_v33, %v5706_v6  ;;  %v5214_v28 = vadd.f32 %v14771_v20, %v4556_v29  ;;  %v5215_v49 = vadd.f32 %v14766_v24, %v4708_v51  ;;  %v5456_v15 = vadd.f32 %v5391_v4, %v4828_v11  ;;  %v14922_v6 = vpop.f32.mrf.mxu2 }
 0x39d   : > { %v5519_v1 = vadd.f32 %v5457_v45, %v5028_v57  ;;  %vm5709_vm15 = vweird.f32 %v14769_v14  ;;  %v5703_v22 = vmul.f32 %v14810_v5, %v5520_v37  ;;  %vm5710_vm11 = vweird.f32 %v14822_v33  ;;  %v19967_v45 = vld [vmem:[#allocation48_spill] sm:$0xff] }
 0x39e   : > { %v5713_v17 = vand.u32 2147483647, %v14769_v14  ;;  %v4966_v20 = vadd.f32 %v4829_v38, %v4708_v51  ;;  %v5026_v24 = vsel %vm886_vm3, %v5024_v44, %v5025_v8  ;;  %v4964_v63 = vadd.f32 %v4828_v11, %v14831_v32  ;;  %vm14972_vm14 = vmor %vm5709_vm15, %vm5710_vm11 }
 0x39f   : > { %v3492_v59 = vpop.f32.mrf.mxu0  ;;  %v5688_v4 = vmul.f32 %v14865_v13, %v5519_v1  ;;  %v4965_v34 = vadd.f32 %v4830_v50, %v4556_v29  ;;  %v3668_v37 = vadd.f32 %v14633_v9, %v3491_v12  ;;  %v5278_v51 = vadd.f32 %v5213_v35, %v4828_v11 }
 0x3a0   : > { %v3493_v54 = vadd.f32 %v14544_v0, %v3492_v59  ;;  %v5279_v5 = vadd.f32 %v5214_v28, %v4830_v50  ;;  %v5280_v44 = vadd.f32 %v5215_v49, %v4829_v38  ;;  %v5518_v8 = vadd.f32 %v5456_v15, %v5026_v24 }
 0x3a1   : > { %v5857_v32 = vrot.slane %v5703_v22, 5  ;;  %v14937_v1 = vor.u32 1.1754944e-38, %v5715_v60  ;;  %v5667_v16 = vsel %vm14931_vm9, %v14705_v48, %v5663_v26  ;;  %v5671_v13 = vor.u32 1.1754944e-38, %v5670_v18 }
 0x3a2   : > { %v3670_v59 = vadd.f32 %v14726_v41, %v3493_v54  ;;  %v14942_v3 = vadd.f32 %v5026_v24, %v4964_v63  ;;  %v14944_v29 = vadd.f32 %v5027_v40, %v4966_v20  ;;  %v5722_v9 = vmul.f32 %v14859_v46, %v5721_v27  ;;  %v14955_v18 = vpop.f32.mrf.mxu1  ;;  %v19963_v54 = vld [vmem:[#allocation186_spill] sm:$0xff]  ;;  %v19964_v20 = vld [vmem:[#allocation187_spill] sm:$0xff]  ;;  %v19965_v63 = vld [vmem:[#allocation49_spill] sm:$0xff] }
 0x3a3   : > { %v5855_v41 = vrot.slane %v5688_v4, 5  ;;  %v4557_v35 = vrot.slane %v3668_v37, 2  ;;  %v5340_v50 = vadd.f32 %v5278_v51, %v5026_v24  ;;  %v14947_v38 = vadd.f32 %v5028_v57, %v4965_v34 }
 0x3a4   : > { %v4558_v23 = vrot.slane %v3670_v59, 2  ;;  %v14951_v11 = vsel %vm14899_vm13, %v5671_v13, %v5667_v16  ;;  %v5341_v12 = vadd.f32 %v5279_v5, %v5028_v57  ;;  %v5342_v28 = vadd.f32 %v5280_v44, %v5027_v40  ;;  %v14963_v13 = vpop.f32.mrf.mxu2 }
 0x3a5   : > { %19959 = vst [vmem:[#allocation123_spill] sm:$0xff] %v14951_v11  ;;  %v5673_v48 = vmul.f32 %v14951_v11, %v5518_v8  ;;  %v5858_v26 = vsel %vm5848_vm10, %v5855_v41, %v5857_v32  ;;  %v14959_v49 = vadd.f32 %v14822_v33, %v5707_v25  ;;  %vm5724_vm9 = vweird.f32 %v14793_v39  ;;  %v19971_v32 = vld [vmem:[#allocation67_spill] sm:$0xff] }
 0x3a6   : > { %v4559_v27 = vsel %vm886_vm3, %v4557_v35, %v4558_v23  ;;  %vm5725_vm12 = vweird.f32 %v14859_v46  ;;  %v5723_v40 = vadd.f32 %v14859_v46, %v5722_v9  ;;  %v5998_v57 = vadd.f32 %v5858_v26, %v14724_v56 }
 0x3a7   : > { %v3495_v60 = vpop.f32.mrf.mxu0  ;;  %v5854_v52 = vrot.slane %v5673_v48, 5  ;;  %v5730_v15 = vand.u32 2147483648, %v14793_v39  ;;  %v19962_v22 = vpack.c.bf16 %v14324_v10, %v14321_v2  ;;  %v3225_v24 = vpack.c.bf16 %v19964_v20, %v19963_v54  ;;  %vm14995_vm13 = vmor %vm5724_vm9, %vm5725_vm12 }
 0x3a8   : > { %v3496_v5 = vadd.f32 %v14544_v0, %v3495_v60  ;;  %v19966_v4 = vmax.f32 %v19965_v63, 0.0  ;;  %v19968_v34 = vmax.f32 %v19967_v45, 0.0  ;;  %v14990_v14 = vsel %vm4459_vm0, %v4559_v27, 0.0 }
 0x3a9   : > { %v5856_v10 = vsel %vm5848_vm10, %v5854_v52, %v5855_v41  ;;  %v5996_v51 = vadd.f32 %v5854_v52, %v14709_v47  ;;  %v6052_v8 = vmax.f32 %v5998_v57, 0.0  ;;  %8212 = vmatmul.msk.bf16.gmra.mxu1 %vm2675_vm4, %v3225_v24  ;;  %v5712_v41 = vsel %vm14972_vm14, %v14822_v33, %v14959_v49 }
 0x3aa   : > { %3534 = vmatmul.bf16.gmra.mxu0 %v19962_v22  ;;  %v3976_v56 = vrot.slane %v19966_v4, 1  ;;  %v14986_v37 = vrot.slane %v19968_v34, 1  ;;  %v3673_v59 = vadd.f32 %v14787_v30, %v3496_v5  ;;  %v5997_v44 = vadd.f32 %v5856_v10, %v14716_v21 }
 0x3ab   : > { %vm15012_vm15 = vcmp.eq.f32.partialorder %v5713_v17, 8.507059e+37  ;;  %v4831_v35 = vrot.slane %v14990_v14, 1  ;;  %v5727_v60 = vsel %vm14995_vm13, %v14859_v46, %v5723_v40  ;;  %v5728_v48 = vand.u32 2147483647, %v14793_v39 }
 0x3ac   : > { %v3978_v16 = vsel %vm717_vm2, %v3976_v56, %v19971_v32  ;;  %v3980_v30 = vsel %vm717_vm2, %v19971_v32, %v14986_v37  ;;  %v4560_v9 = vrot.slane %v3673_v59, 2  ;;  %v5731_v26 = vor.u32 1.1754944e-38, %v5730_v15  ;;  %v15040_v15 = vpop.f32.mrf.mxu1  ;;  %v15042_v22 = vpop.f32.mrf.mxu2 }
 0x3ad   : > { %v4150_v21 = vpack.c.bf16 %v3980_v30, %v3978_v16  ;;  %v6050_v17 = vmax.f32 %v5996_v51, 0.0  ;;  %vm6112_vm11 = vcmp.lt.s32.totalorder %v19884_v43, 17  ;;  %v6051_v39 = vmax.f32 %v5997_v44, 0.0 }
 0x3ae   : > { %v15022_v27 = vsel %vm886_vm3, %v4558_v23, %v4560_v9  ;;  %v15026_v33 = vsel %vm18854_vm1, %v4560_v9, 0.0  ;;  %v6182_v40 = vrot.slane %v6052_v8, 3  ;;  %v5394_v54 = vadd.f32 %v5340_v50, %v14990_v14 }
 0x3af   : > { %v3497_v49 = vpop.f32.mrf.mxu0  ;;  %8251 = vmatmul.msk.bf16.gmra.mxu2 %vm2675_vm4, %v4150_v21  ;;  %v4832_v5 = vrot.slane %v15022_v27, 1  ;;  %v15032_v46 = vrot.slane %v15026_v33, 1  ;;  %v5030_v23 = vrot.slane %v15022_v27, 2  ;;  %v15036_v52 = vrot.slane %v15026_v33, 2 }
 0x3b0   : > { %v5395_v57 = vadd.f32 %v5341_v12, %v15022_v27  ;;  %v5396_v25 = vadd.f32 %v5342_v28, %v15026_v33  ;;  %vm5729_vm9 = vcmp.eq.f32.partialorder %v5728_v48, 8.507059e+37  ;;  %v5029_v63 = vrot.slane %v14990_v14, 2 }
 0x3b1   : > { %v15046_v20 = vsel %vm717_vm2, %v4831_v35, %v4832_v5  ;;  %v15050_v24 = vsel %vm717_vm2, %v4832_v5, %v15032_v46  ;;  %vm6101_vm12 = vcmp.ge.s32.totalorder %v19885_v42, 1  ;;  %vm6173_vm14 = vcmask 1044480  }
 0x3b2   : > { %v6179_v12 = vrot.slane %v6050_v17, 3  ;;  %v5459_v28 = vadd.f32 %v5394_v54, %v15046_v20  ;;  %v5460_v4 = vadd.f32 %v5395_v57, %v15050_v24  ;;  %v5461_v50 = vadd.f32 %v5396_v25, %v15032_v46 }
 0x3b3   : > { %v6323_v56 = vsel %vm6112_vm11, %v6182_v40, 0.0  ;;  %v15060_v45 = vsel %vm886_vm3, %v5029_v63, %v5030_v23  ;;  %v15064_v34 = vsel %vm886_vm3, %v5030_v23, %v15036_v52  ;;  %v15066_v59 = vsel %vm5729_vm9, %v5731_v26, %v5727_v60 }
 0x3b4   : > { %v6180_v2 = vrot.slane %v6051_v39, 3  ;;  %v5521_v10 = vadd.f32 %v5459_v28, %v15060_v45  ;;  %v5522_v51 = vadd.f32 %v5460_v4, %v15064_v34  ;;  %v5523_v44 = vadd.f32 %v5461_v50, %v15036_v52  ;;  %v15095_v17 = vpop.f32.mrf.mxu1  ;;  %v15097_v5 = vpop.f32.mrf.mxu2 }
 0x3b5   : > { %v15074_v8 = vsel %vm15012_vm15, %v14937_v1, %v5712_v41  ;;  %v15078_v32 = vadd.f32 %v14673_v31, %v14867_v7  ;;  %v6508_v9 = vrot.slane %v6323_v56, 2  ;;  %v6428_v1 = vrot.slane %v6323_v56, 1 }
 0x3b6   : > { %v6181_v16 = vsel %vm6173_vm14, %v6179_v12, %v6180_v2  ;;  %v15082_v30 = vsel %vm6173_vm14, %v6180_v2, %v6182_v40  ;;  %v5733_v35 = vmul.f32 %v15066_v59, %v5522_v51  ;;  %v5748_v60 = vmul.f32 %v14907_v55, %v5523_v44 }
 0x3b7   : > { %v3500_v21 = vpop.f32.mrf.mxu0  ;;  %v15088_v47 = vsel %vm6101_vm12, %v6181_v16, 0.0  ;;  %v3498_v41 = vadd.f32 %v14544_v0, %v3497_v49  ;;  %v6506_v26 = vrot.slane %v15082_v30, 2  ;;  %v5718_v39 = vmul.f32 %v15074_v8, %v5521_v10  ;;  %v19976_v16 = vld [vmem:[#allocation185_spill] sm:$0xff] }
 0x3b8   : > { %v9621_v7 = vpack.i.bf16 %v15082_v30, %v15088_v47  ;;  %v6505_v48 = vrot.slane %v15088_v47, 2  ;;  %v5860_v40 = vrot.slane %v5733_v35, 5  ;;  %v6425_v23 = vrot.slane %v15088_v47, 1 }
 0x3b9   : > { %v6426_v57 = vrot.slane %v15082_v30, 1  ;;  %v19974_v25 = vpack.c.bf16 %v14311_v53, %v14308_v61  ;;  %v5862_v49 = vrot.slane %v5748_v60, 5  ;;  %v6509_v63 = vsel %vm886_vm3, %v6506_v26, %v6508_v9  ;;  %v335_v60 = vld [vmem:[%s10343_s30 + $0x1b8] sm:$0x3] }
 0x3ba   : > { %9622 = vrot.lane.b32.xlu2 %v9621_v7, %s10266_s9  ;;  %v6507_v54 = vsel %vm886_vm3, %v6505_v48, %v6506_v26  ;;  %v3501_v12 = vadd.f32 %v14544_v0, %v3500_v21  ;;  %v5218_v28 = vadd.f32 %v14944_v29, %v15026_v33  ;;  %v5216_v61 = vadd.f32 %v14942_v3, %v14990_v14  ;;  %v19975_v3 = vld [vmem:[#allocation184_spill] sm:$0xff] }
 0x3bb   : > { %3539 = vmatmul.bf16.gmra.mxu0 %v19974_v25  ;;  %v15111_v4 = vpack.i.bf16 %v6509_v63, %v6507_v54  ;;  %v6427_v50 = vsel %vm717_vm2, %v6425_v23, %v6426_v57  ;;  %v6429_v56 = vsel %vm717_vm2, %v6426_v57, %v6428_v1  ;;  %v3675_v53 = vadd.f32 %v14857_v36, %v3498_v41  ;;  %v19977_v23 = vld [vmem:[#allocation24_spill] sm:$0xff] }
 0x3bc   : > { %v9626_v2 = vpack.i.bf16 %v6429_v56, %v6427_v50  ;;  %v3678_v10 = vadd.f32 %v14916_v62, %v3501_v12  ;;  %v5217_v51 = vadd.f32 %v14947_v38, %v15022_v27  ;;  %v15125_v29 = vadd.f32 %v14673_v31, %v14922_v6  ;;  %v19978_v50 = vld [vmem:[#allocation66_spill] sm:$0xff] }
 0x3bd   : > { %9632 = vrot.lane.b32.xlu1 %v15111_v4, %s10268_s11  ;;  %v15129_v44 = vadd.f32 %v14673_v31, %v14963_v13  ;;  %v3227_v36 = vpack.c.bf16 %v19976_v16, %v19975_v3  ;;  %v4969_v62 = vadd.f32 %v15032_v46, %v15026_v33  ;;  %v5859_v21 = vrot.slane %v5718_v39, 5  ;;  %v15148_v39 = vpop.f32.mrf.mxu1 }
 0x3be   : > { %9627 = vrot.lane.b32.xlu0 %v9626_v2, %s10267_s10  ;;  %v4563_v38 = vrot.slane %v3678_v10, 2  ;;  %v5863_v35 = vsel %vm5848_vm10, %v5860_v40, %v5862_v49  ;;  %v4968_v6 = vadd.f32 %v15050_v24, %v15022_v27  ;;  %v5283_v13 = vadd.f32 %v5218_v28, %v15032_v46 }
 0x3bf   : > { %v3502_v9 = vpop.f32.mrf.mxu0  ;;  %8213 = vmatmul.msk.bf16.gmra.mxu1 %vm2675_vm4, %v3227_v36  ;;  %v6001_v7 = vadd.f32 %v5863_v35, %v14853_v19  ;;  %v4562_v33 = vrot.slane %v3675_v53, 2  ;;  %v4967_v41 = vadd.f32 %v15046_v20, %v14990_v14  ;;  %v5861_v48 = vsel %vm5848_vm10, %v5859_v21, %v5860_v40  ;;  %v15158_v40 = vpop.f32.mrf.mxu2 }
 0x3c0   : > { %v3503_v1 = vadd.f32 %v14544_v0, %v3502_v9  ;;  %v5999_v26 = vadd.f32 %v5859_v21, %v14845_v58  ;;  %v5282_v27 = vadd.f32 %v5217_v51, %v15050_v24  ;;  %v6000_v57 = vadd.f32 %v5861_v48, %v19977_v23  ;;  %v19984_v48 = vld [vmem:[#allocation193_spill] sm:$0xff] }
 0x3c1   : > { %v439_v25 = vmax.f32 %v335_v60, 0.0  ;;  %v15154_v49 = vadd.f32 %v15036_v52, %v4969_v62  ;;  %v4564_v19 = vsel %vm886_vm3, %v4562_v33, %v4563_v38  ;;  %v5281_v14 = vadd.f32 %v5216_v61, %v15046_v20  ;;  %v19982_v33 = vld [vmem:[#allocation111_spill] sm:$0xff] }
 0x3c2   : > { %v3680_v46 = vadd.f32 %v14955_v18, %v3503_v1  ;;  %v6055_v54 = vmax.f32 %v6001_v7, 0.0  ;;  %v6053_v63 = vmax.f32 %v5999_v26, 0.0  ;;  %v6054_v12 = vmax.f32 %v6000_v57, 0.0  ;;  %v19985_v26 = vld [vmem:[#allocation194_spill] sm:$0xff] }
 0x3c3   : > { %v5166_v24 = vadd.f32 %v15064_v34, %v4968_v6  ;;  %v5165_v18 = vadd.f32 %v15060_v45, %v4967_v41  ;;  %v5345_v28 = vadd.f32 %v5283_v13, %v15036_v52  ;;  %v19979_v56 = vmax.f32 %v19978_v50, 0.0 }
 0x3c4   : > { %v4565_v58 = vrot.slane %v3680_v46, 2  ;;  %v15167_v10 = vsel %vm4459_vm0, %v4564_v19, 0.0  ;;  %v3981_v51 = vrot.slane %v439_v25, 1  ;;  %v6184_v16 = vrot.slane %v6053_v63, 3 }
 0x3c5   : > { %v3983_v53 = vrot.slane %v19979_v56, 1  ;;  %9647 = vrot.lane.b32.xlu1 %v9626_v2, %s10264_s27  ;;  %v6185_v52 = vrot.slane %v6054_v12, 3  ;;  %v6187_v36 = vrot.slane %v6055_v54, 3  ;;  %v5343_v9 = vadd.f32 %v5281_v14, %v15060_v45  ;;  %v15200_v46 = vpop.f32.mrf.mxu1 }
 0x3c6   : > { %v15171_v20 = vsel %vm886_vm3, %v4563_v38, %v4565_v58  ;;  %v4714_v61 = vsel %vm18854_vm1, %v4565_v58, 0.0  ;;  %v5344_v21 = vadd.f32 %v5282_v27, %v15064_v34  ;;  %v15181_v2 = vadd.f32 %v14673_v31, %v15042_v22  ;;  %v19980_v34 = vld [vmem:[#allocation83_spill] sm:$0xff] }
 0x3c7   : > { %v15175_v3 = vrot.slane %v4714_v61, 1  ;;  %v3505_v62 = vpop.f32.mrf.mxu0  ;;  %v5399_v35 = vadd.f32 %v5345_v28, %v4714_v61  ;;  %v4836_v38 = vrot.slane %v15167_v10, 1  ;;  %v5219_v60 = vadd.f32 %v5165_v18, %v15167_v10  ;;  %v19981_v22 = vld [vmem:[#allocation139_spill] sm:$0xff]  ;;  %v15226_v28 = vpop.f32.mrf.mxu2 }
 0x3c8   : > { %v4837_v6 = vrot.slane %v15171_v20, 1  ;;  %v15188_v13 = vadd.f32 %v14673_v31, %v15097_v5  ;;  %v5397_v1 = vadd.f32 %v5343_v9, %v15167_v10  ;;  %v3982_v45 = vsel %vm717_vm2, %v14986_v37, %v3981_v51 }
 0x3c9   : > { %v3985_v7 = vsel %vm717_vm2, %v3983_v53, %v19980_v34  ;;  %v19983_v41 = vpack.c.bf16 %v19981_v22, %v19982_v33  ;;  %v3229_v27 = vpack.c.bf16 %v19985_v26, %v19984_v48  ;;  %v5035_v5 = vrot.slane %v15171_v20, 2 }
 0x3ca   : > { %v5464_v23 = vadd.f32 %v5399_v35, %v15175_v3  ;;  %v6186_v57 = vsel %vm6173_vm14, %v6184_v16, %v6185_v52  ;;  %v15206_v37 = vsel %vm6173_vm14, %v6185_v52, %v6187_v36  ;;  %v15208_v25 = vrot.slane %v4714_v61, 2 }
 0x3cb   : > { %3544 = vmatmul.bf16.gmra.mxu0 %v19983_v41  ;;  %v5398_v19 = vadd.f32 %v5344_v21, %v15171_v20  ;;  %v15213_v14 = vsel %vm6101_vm12, %v6186_v57, 0.0  ;;  %v15217_v54 = vsel %vm6112_vm11, %v6187_v36, 0.0  ;;  %v4838_v58 = vsel %vm717_vm2, %v4836_v38, %v4837_v6  ;;  %v339_v41 = vld [vmem:[%s10343_s30 + $0x1d8] sm:$0x3] }
 0x3cc   : > { %v15222_v63 = vpack.i.bf16 %v15206_v37, %v15213_v14  ;;  %v6430_v12 = vrot.slane %v15213_v14, 1  ;;  %v6431_v18 = vrot.slane %v15206_v37, 1  ;;  %v4840_v50 = vsel %vm717_vm2, %v4837_v6, %v15175_v3 }
 0x3cd   : > { %v3506_v56 = vadd.f32 %v14544_v0, %v3505_v62  ;;  %v6433_v53 = vrot.slane %v15217_v54, 1  ;;  %v4151_v51 = vpack.c.bf16 %v3985_v7, %v3982_v45  ;;  %v5220_v16 = vadd.f32 %v5166_v24, %v15171_v20  ;;  %v15250_v48 = vpop.f32.mrf.mxu1 }
 0x3ce   : > { %v5526_v52 = vadd.f32 %v5464_v23, %v15208_v25  ;;  %9637 = vrot.lane.b32.xlu2 %v15222_v63, %s10269_s12  ;;  %v6432_v36 = vsel %vm717_vm2, %v6430_v12, %v6431_v18  ;;  %v5034_v21 = vrot.slane %v15167_v10, 2  ;;  %v5462_v35 = vadd.f32 %v5397_v1, %v4838_v58 }
 0x3cf   : > { %v3507_v9 = vpop.f32.mrf.mxu0  ;;  %v6434_v38 = vsel %vm717_vm2, %v6431_v18, %v6433_v53  ;;  %8252 = vmatmul.msk.bf16.gmra.mxu2 %vm2675_vm4, %v4151_v51  ;;  %8214 = vmatmul.msk.bf16.gmra.mxu1 %vm2675_vm4, %v3229_v27  ;;  %v5221_v24 = vadd.f32 %v15154_v49, %v4714_v61  ;;  %v5463_v6 = vadd.f32 %v5398_v19, %v4840_v50  ;;  %v443_v19 = vmax.f32 %v339_v41, 0.0 }
 0x3d0   : > { %v3508_v62 = vadd.f32 %v14544_v0, %v3507_v9  ;;  %v15243_v45 = vpack.i.bf16 %v6434_v38, %v6432_v36  ;;  %v4972_v7 = vadd.f32 %v15175_v3, %v4714_v61  ;;  %v5036_v22 = vsel %vm886_vm3, %v5034_v21, %v5035_v5 }
 0x3d1   : > { %v3683_v33 = vadd.f32 %v15040_v15, %v3506_v56  ;;  %v4971_v0 = vadd.f32 %v4840_v50, %v15171_v20  ;;  %v5285_v26 = vadd.f32 %v5220_v16, %v4840_v50  ;;  %v5751_v27 = vmul.f32 %v14907_v55, %v5526_v52  ;;  %v19986_v20 = vld [vmem:[#allocation60_spill] sm:$0xff] }
 0x3d2   : > { %v3685_v1 = vadd.f32 %v15095_v17, %v3508_v62  ;;  %9662 = vrot.lane.b32.xlu1 %v15243_v45, %s10267_s10  ;;  %9642 = vrot.lane.b32.xlu0 %v15243_v45, %s10270_s13  ;;  %v5524_v49 = vadd.f32 %v5462_v35, %v5036_v22  ;;  %v4970_v15 = vadd.f32 %v4838_v58, %v15167_v10  ;;  %v19987_v12 = vmax.f32 %v19986_v20, 0.0  ;;  %v19993_v20 = vld [vmem:[#allocation197_spill] sm:$0xff] }
 0x3d3   : > { %v5038_v17 = vsel %vm886_vm3, %v5035_v5, %v15208_v25  ;;  %v5284_v23 = vadd.f32 %v5219_v60, %v4838_v58  ;;  %v4567_v50 = vrot.slane %v3683_v33, 2  ;;  %v6510_v56 = vrot.slane %v15213_v14, 2  ;;  %v4350_v58 = vpop.f32.mrf.mxu2  ;;  %v19990_v33 = vld [vmem:[#allocation280_spill] sm:$0xff] }
 0x3d4   : > { %v4568_v61 = vrot.slane %v3685_v1, 2  ;;  %v5525_v57 = vadd.f32 %v5463_v6, %v5038_v17  ;;  %v3986_v18 = vrot.slane %v19987_v12, 1  ;;  %v6511_v53 = vrot.slane %v15206_v37, 2  ;;  %v19991_v1 = vld [vmem:[#allocation112_spill] sm:$0xff]  ;;  %v19994_v12 = vld [vmem:[#allocation198_spill] sm:$0xff] }
 0x3d5   : > { %v6513_v51 = vrot.slane %v15217_v54, 2  ;;  %v5286_v16 = vadd.f32 %v5221_v24, %v15175_v3  ;;  %v5867_v52 = vrot.slane %v5751_v27, 5  ;;  %v3988_v5 = vrot.slane %v443_v19, 1  ;;  %v15276_v54 = vld [vmem:[%s18291_s2] ss:$0 sm:$0xff]  ;;  %v15294_v27 = vpop.f32.mrf.mxu1 }
 0x3d6   : > { %9652 = vrot.lane.b32.xlu2 %v15111_v4, %s10265_s8  ;;  %v5750_v60 = vmul.f32 %v15066_v59, %v5525_v57  ;;  %v4569_v36 = vsel %vm886_vm3, %v4567_v50, %v4568_v61  ;;  %v5168_v9 = vadd.f32 %v5036_v22, %v4970_v15  ;;  %v3987_v21 = vsel %vm717_vm2, %v19980_v34, %v3986_v18 }
 0x3d7   : > { %v3510_v10 = vpop.f32.mrf.mxu0  ;;  %v3989_v4 = vsel %vm717_vm2, %v3986_v18, %v3988_v5  ;;  %v5749_v38 = vmul.f32 %v15074_v8, %v5524_v49  ;;  %v5346_v62 = vadd.f32 %v5284_v23, %v5036_v22  ;;  %v15283_v24 = vadd.f32 %v14673_v31, %v15158_v40 }
 0x3d8   : > { %v3511_v3 = vadd.f32 %v15276_v54, %v3510_v10  ;;  %v5865_v35 = vrot.slane %v5750_v60, 5  ;;  %v15286_v6 = vsel %vm886_vm3, %v6510_v56, %v6511_v53  ;;  %v15289_v34 = vsel %vm886_vm3, %v6511_v53, %v6513_v51 }
 0x3d9   : > { %19988 = vst [vmem:[#allocation55_spill] sm:$0xff] %v15286_v6  ;;  %v19992_v41 = vpack.c.bf16 %v19990_v33, %v19991_v1  ;;  %v15300_v40 = vadd.f32 %v15208_v25, %v4972_v7  ;;  %v5864_v49 = vrot.slane %v5749_v38, 5  ;;  %v15305_v23 = vsel %vm4459_vm0, %v4569_v36, 0.0 }
 0x3da   : > { %19989 = vst [vmem:[#allocation289_spill] sm:$0xff] %v15289_v34  ;;  %9657 = vrot.lane.b32.xlu0 %v15222_v63, %s10266_s9  ;;  %v3688_v22 = vadd.f32 %v15148_v39, %v3511_v3  ;;  %v5868_v15 = vsel %vm5848_vm10, %v5865_v35, %v5867_v52  ;;  %v4152_v57 = vpack.c.bf16 %v3989_v4, %v3987_v21  ;;  %v19995_v4 = vld [vmem:[#allocation63_spill] sm:$0xff]  ;;  %vm20071_vm13 = vcmask 785408  }
 0x3db   : > { %3549 = vmatmul.bf16.gmra.mxu0 %v19992_v41  ;;  %v6004_v19 = vadd.f32 %v5868_v15, %v15129_v44  ;;  %v3231_v18 = vpack.c.bf16 %v19994_v12, %v19993_v20  ;;  %v15312_v63 = vpack.i.bf16 %v15289_v34, %v15286_v6  ;;  %v5866_v7 = vsel %vm5848_vm10, %v5864_v49, %v5865_v35  ;;  %v4353_v21 = vpop.f32.mrf.mxu2  ;;  %vm20073_vm15 = vmmov %vm20071_vm13 }
 0x3dc   : > { %v4570_v39 = vrot.slane %v3688_v22, 2  ;;  %v6002_v50 = vadd.f32 %v5864_v49, %v15078_v32  ;;  %v5169_v56 = vadd.f32 %v5038_v17, %v4971_v0  ;;  %v5347_v53 = vadd.f32 %v5285_v26, %v5038_v17  ;;  %v19997_v49 = vld [vmem:[#allocation61_spill] sm:$0xff] }
 0x3dd   : > { %v5348_v51 = vadd.f32 %v5286_v16, %v15208_v25  ;;  %v15319_v52 = vadd.f32 %v14673_v31, %v15226_v28  ;;  %v4841_v44 = vrot.slane %v15305_v23, 1  ;;  %v6003_v32 = vadd.f32 %v5866_v7, %v15125_v29  ;;  %v15340_v1 = vpop.f32.mrf.mxu1 }
 0x3de   : > { %9667 = vrot.lane.b32.xlu2 %v15312_v63, %s10268_s11  ;;  %v4571_v10 = vsel %vm886_vm3, %v4568_v61, %v4570_v39  ;;  %v4717_v60 = vsel %vm18854_vm1, %v4570_v39, 0.0  ;;  %v6056_v25 = vmax.f32 %v6002_v50, 0.0  ;;  %v6058_v28 = vmax.f32 %v6004_v19, 0.0 }
 0x3df   : > { %v3512_v0 = vpop.f32.mrf.mxu0  ;;  %v4842_v26 = vrot.slane %v4571_v10, 1  ;;  %v15328_v17 = vrot.slane %v4717_v60, 1  ;;  %8253 = vmatmul.msk.bf16.gmra.mxu2 %vm2675_vm4, %v4152_v57  ;;  %8215 = vmatmul.msk.bf16.gmra.mxu1 %vm2675_vm4, %v3231_v18  ;;  %v5040_v16 = vrot.slane %v4571_v10, 2  ;;  %v15332_v5 = vrot.slane %v4717_v60, 2 }
 0x3e0   : > { %v5401_v36 = vadd.f32 %v5347_v53, %v4571_v10  ;;  %v5402_v61 = vadd.f32 %v5348_v51, %v4717_v60  ;;  %v5400_v3 = vadd.f32 %v5346_v62, %v15305_v23  ;;  %v19996_v38 = vmax.f32 %v19995_v4, 0.0  ;;  %v19999_v51 = vld [vmem:[#allocation77_spill] sm:$0xff] }
 0x3e1   : > { %v4843_v29 = vsel %vm717_vm2, %v4841_v44, %v4842_v26  ;;  %v4845_v35 = vsel %vm717_vm2, %v4842_v26, %v15328_v17  ;;  %v5039_v41 = vrot.slane %v15305_v23, 2  ;;  %v5222_v22 = vadd.f32 %v5168_v9, %v15305_v23 }
 0x3e2   : > { %v3990_v33 = vrot.slane %v19996_v38, 1  ;;  %v19998_v15 = vmax.f32 %v19997_v49, 0.0  ;;  %v5465_v19 = vadd.f32 %v5400_v3, %v4843_v29  ;;  %v5466_v62 = vadd.f32 %v5401_v36, %v4845_v35 }
 0x3e3   : > { %v5467_v20 = vadd.f32 %v5402_v61, %v15328_v17  ;;  %v15350_v12 = vadd.f32 %v14673_v31, %v4350_v58  ;;  %v15354_v18 = vsel %vm886_vm3, %v5040_v16, %v15332_v5  ;;  %v6057_v39 = vmax.f32 %v6003_v32, 0.0 }
 0x3e4   : > { %v15346_v57 = vrot.slane %v19998_v15, 1  ;;  %v6189_v7 = vrot.slane %v6056_v25, 3  ;;  %v6192_v50 = vrot.slane %v6058_v28, 3  ;;  %v5528_v9 = vadd.f32 %v5466_v62, %v15354_v18  ;;  %v20003_v15 = vld [vmem:[#allocation231_spill] sm:$0xff] }
 0x3e5   : > { %v5529_v53 = vadd.f32 %v5467_v20, %v15332_v5  ;;  %v3992_v44 = vsel %vm717_vm2, %v3990_v33, %v19999_v51  ;;  %v5041_v26 = vsel %vm886_vm3, %v5039_v41, %v5040_v16  ;;  %v6190_v31 = vrot.slane %v6057_v39, 3  ;;  %v15374_v16 = vld [vmem:[%s18293_s4] ss:$0 sm:$0xff]  ;;  %v15394_v62 = vpop.f32.mrf.mxu1 }
 0x3e6   : > { %9682 = vrot.lane.b32.xlu2 %v15243_v45, %s10264_s27  ;;  %v15365_v58 = vsel %vm6112_vm11, %v6192_v50, 0.0  ;;  %v3994_v25 = vsel %vm717_vm2, %v19999_v51, %v15346_v57  ;;  %v5223_v28 = vadd.f32 %v5169_v56, %v4571_v10  ;;  %v5527_v36 = vadd.f32 %v5465_v19, %v5041_v26 }
 0x3e7   : > { %v3515_v32 = vpop.f32.mrf.mxu0  ;;  %v3513_v61 = vadd.f32 %v15276_v54, %v3512_v0  ;;  %v15377_v45 = vadd.f32 %v15374_v16, %v4353_v21  ;;  %v6191_v3 = vsel %vm6173_vm14, %v6189_v7, %v6190_v31  ;;  %v15381_v4 = vsel %vm6173_vm14, %v6190_v31, %v6192_v50  ;;  %v20002_v21 = vld [vmem:[#allocation259_spill] sm:$0xff] }
 0x3e8   : > { %20000 = vst [vmem:[#allocation56_spill] sm:$0xff] %v15381_v4  ;;  %v6438_v38 = vrot.slane %v15365_v58, 1  ;;  %v3516_v56 = vadd.f32 %v15276_v54, %v3515_v32  ;;  %v5753_v33 = vmul.f32 %v15066_v59, %v5528_v9  ;;  %v5754_v0 = vmul.f32 %v14907_v55, %v5529_v53  ;;  %v4355_v9 = vpop.f32.mrf.mxu2 }
 0x3e9   : > { %v15389_v41 = vsel %vm6101_vm12, %v6191_v3, 0.0  ;;  %v4153_v49 = vpack.c.bf16 %v3994_v25, %v3992_v44  ;;  %v20004_v19 = vpack.c.bf16 %v20002_v21, %v20003_v15  ;;  %v6436_v7 = vrot.slane %v15381_v4, 1 }
 0x3ea   : > { %20001 = vst [vmem:[#allocation41_spill] sm:$0xff] %v15389_v41  ;;  %v9671_v20 = vpack.i.bf16 %v15381_v4, %v15389_v41  ;;  %v6435_v39 = vrot.slane %v15389_v41, 1  ;;  %v3693_v50 = vadd.f32 %v15250_v48, %v3516_v56  ;;  %v4974_v53 = vadd.f32 %v4845_v35, %v4571_v10 }
 0x3eb   : > { %3554 = vmatmul.bf16.gmra.mxu0 %v20004_v19  ;;  %v4975_v51 = vadd.f32 %v15328_v17, %v4717_v60  ;;  %v5224_v44 = vadd.f32 %v15300_v40, %v4717_v60  ;;  %v5288_v31 = vadd.f32 %v5223_v28, %v4845_v35  ;;  %v5752_v32 = vmul.f32 %v15074_v8, %v5527_v36  ;;  %v20005_v35 = vld [vmem:[#allocation195_spill] sm:$0xff]  ;;  %v20006_v28 = vld [vmem:[#allocation196_spill] sm:$0xff] }
 0x3ec   : > { %9672 = vrot.lane.b32.xlu0 %v9671_v20, %s10269_s12  ;;  %v3690_v25 = vadd.f32 %v15200_v46, %v3513_v61  ;;  %v6437_v3 = vsel %vm717_vm2, %v6435_v39, %v6436_v7  ;;  %v6439_v21 = vsel %vm717_vm2, %v6436_v7, %v6438_v38  ;;  %v5870_v15 = vrot.slane %v5753_v33, 5 }
 0x3ed   : > { %v5872_v19 = vrot.slane %v5754_v0, 5  ;;  %v15408_v48 = vpack.i.bf16 %v6439_v21, %v6437_v3  ;;  %v4573_v10 = vrot.slane %v3693_v50, 2  ;;  %v4973_v56 = vadd.f32 %v4843_v29, %v15305_v23  ;;  %v15431_v50 = vpop.f32.mrf.mxu1 }
 0x3ee   : > { %v5287_v40 = vadd.f32 %v5222_v22, %v4843_v29  ;;  %v3233_v36 = vpack.c.bf16 %v20006_v28, %v20005_v35  ;;  %v15414_v34 = vadd.f32 %v15332_v5, %v4975_v51  ;;  %v5289_v46 = vadd.f32 %v5224_v44, %v15328_v17  ;;  %v343_v17 = vld [vmem:[%s10343_s30 + $0x1f8] sm:$0x3] }
 0x3ef   : > { %v3517_v60 = vpop.f32.mrf.mxu0  ;;  %9677 = vrot.lane.b32.xlu1 %v15408_v48, %s10270_s13  ;;  %9697 = vrot.lane.b32.xlu2 %v15408_v48, %s10267_s10  ;;  %v5172_v23 = vadd.f32 %v15354_v18, %v4974_v53  ;;  %v4572_v29 = vrot.slane %v3690_v25, 2  ;;  %v6515_v22 = vrot.slane %v15389_v41, 2  ;;  %v6516_v38 = vrot.slane %v15381_v4, 2 }
 0x3f0   : > { %v3518_v61 = vadd.f32 %v15276_v54, %v3517_v60  ;;  %8254 = vmatmul.msk.bf16.gmra.mxu2 %vm2675_vm4, %v4153_v49  ;;  %8216 = vmatmul.msk.bf16.gmra.mxu1 %vm2675_vm4, %v3233_v36  ;;  %v6518_v33 = vrot.slane %v15365_v58, 2  ;;  %v5869_v39 = vrot.slane %v5752_v32, 5  ;;  %v5873_v7 = vsel %vm5848_vm10, %v5870_v15, %v5872_v19  ;;  %v4358_v19 = vpop.f32.mrf.mxu2 }
 0x3f1   : > { %v4574_v53 = vsel %vm886_vm3, %v4572_v29, %v4573_v10  ;;  %v5171_v51 = vadd.f32 %v5041_v26, %v4973_v56  ;;  %v5349_v49 = vadd.f32 %v5287_v40, %v5041_v26  ;;  %v6007_v44 = vadd.f32 %v5873_v7, %v15283_v24 }
 0x3f2   : > { %v3695_v0 = vadd.f32 %v15294_v27, %v3518_v61  ;;  %v5871_v3 = vsel %vm5848_vm10, %v5869_v39, %v5870_v15  ;;  %v6005_v21 = vadd.f32 %v5869_v39, %v15181_v2  ;;  %v447_v60 = vmax.f32 %v343_v17, 0.0  ;;  %v20011_v17 = vld [vmem:[#allocation100_spill] sm:$0xff] }
 0x3f3   : > { %v15440_v27 = vsel %vm886_vm3, %v6515_v22, %v6516_v38  ;;  %v5350_v58 = vadd.f32 %v5288_v31, %v15354_v18  ;;  %v5351_v32 = vadd.f32 %v5289_v46, %v15332_v5  ;;  %v15446_v24 = vsel %vm4459_vm0, %v4574_v53, 0.0 }
 0x3f4   : > { %v4575_v25 = vrot.slane %v3695_v0, 2  ;;  %9687 = vrot.lane.b32.xlu0 %v15312_v63, %s10265_s8  ;;  %20007 = vst [vmem:[#allocation148_spill] sm:$0xff] %v15440_v27  ;;  %v15449_v26 = vsel %vm886_vm3, %v6516_v38, %v6518_v33  ;;  %v20009_v63 = vld [vmem:[#allocation75_spill] sm:$0xff]  ;;  %v6006_v18 = vadd.f32 %v5871_v3, %v15188_v13  ;;  %v6059_v31 = vmax.f32 %v6005_v21, 0.0  ;;  %v20013_v0 = vld [vmem:[#allocation150_spill] sm:$0xff] }
 0x3f5   : > { %20008 = vst [vmem:[#allocation149_spill] sm:$0xff] %v15449_v26  ;;  %v20010_v15 = vmax.f32 %v20009_v63, 0.0  ;;  %v15467_v36 = vadd.f32 %v15374_v16, %v4355_v9  ;;  %v6061_v46 = vmax.f32 %v6007_v44, 0.0  ;;  %v3995_v61 = vrot.slane %v447_v60, 1  ;;  %v20012_v33 = vld [vmem:[#allocation151_spill] sm:$0xff]  ;;  %v15483_v7 = vpop.f32.mrf.mxu1 }
 0x3f6   : > { %v15453_v2 = vsel %vm18854_vm1, %v4575_v25, 0.0  ;;  %v15458_v40 = vsel %vm886_vm3, %v4573_v10, %v4575_v25  ;;  %v4846_v29 = vrot.slane %v15446_v24, 1  ;;  %v5044_v10 = vrot.slane %v15446_v24, 2 }
 0x3f7   : > { %v3997_v56 = vrot.slane %v20010_v15, 1  ;;  %v15461_v5 = vrot.slane %v15453_v2, 1  ;;  %v3520_v35 = vpop.f32.mrf.mxu0  ;;  %9692 = vrot.lane.b32.xlu1 %v9671_v20, %s10266_s9  ;;  %v5405_v28 = vadd.f32 %v5351_v32, %v15453_v2  ;;  %v5225_v22 = vadd.f32 %v5171_v51, %v15446_v24 }
 0x3f8   : > { %v5403_v38 = vadd.f32 %v5349_v49, %v15446_v24  ;;  %v15475_v13 = vpack.i.bf16 %v15449_v26, %v15440_v27  ;;  %v4847_v20 = vrot.slane %v15458_v40, 1  ;;  %v20014_v39 = vpack.c.bf16 %v20012_v33, %v20013_v0 }
 0x3f9   : > { %v3999_v9 = vsel %vm717_vm2, %v3997_v56, %v20011_v17  ;;  %v5470_v53 = vadd.f32 %v5405_v28, %v15461_v5  ;;  %v6060_v51 = vmax.f32 %v6006_v18, 0.0  ;;  %v6194_v44 = vrot.slane %v6059_v31, 3  ;;  %v20015_v31 = vld [vmem:[#allocation208_spill] sm:$0xff] }
 0x3fa   : > { %v15487_v49 = vadd.f32 %v15374_v16, %v4358_v19  ;;  %v5045_v25 = vrot.slane %v15458_v40, 2  ;;  %v6197_v3 = vrot.slane %v6061_v46, 3  ;;  %v3996_v21 = vsel %vm717_vm2, %v15346_v57, %v3995_v61  ;;  %v20016_v57 = vld [vmem:[#allocation209_spill] sm:$0xff] }
 0x3fb   : > { %3559 = vmatmul.bf16.gmra.mxu0 %v20014_v39  ;;  %v15495_v60 = vrot.slane %v15453_v2, 2  ;;  %v5226_v32 = vadd.f32 %v5172_v23, %v15458_v40  ;;  %v6195_v63 = vrot.slane %v6060_v51, 3  ;;  %v4154_v15 = vpack.c.bf16 %v3999_v9, %v3996_v21 }
 0x3fc   : > { %9702 = vrot.lane.b32.xlu0 %v15475_v13, %s10268_s11  ;;  %v4848_v56 = vsel %vm717_vm2, %v4846_v29, %v4847_v20  ;;  %v3521_v19 = vadd.f32 %v15276_v54, %v3520_v35  ;;  %v15502_v18 = vsel %vm6112_vm11, %v6197_v3, 0.0  ;;  %v3235_v28 = vpack.c.bf16 %v20016_v57, %v20015_v31  ;;  %v4360_v29 = vpop.f32.mrf.mxu2 }
 0x3fd   : > { %v5532_v46 = vadd.f32 %v5470_v53, %v15495_v60  ;;  %v6196_v61 = vsel %vm6173_vm14, %v6194_v44, %v6195_v63  ;;  %v15509_v33 = vsel %vm6173_vm14, %v6195_v63, %v6197_v3  ;;  %v6443_v23 = vrot.slane %v15502_v18, 1 }
 0x3fe   : > { %20017 = vst [vmem:[#allocation54_spill] sm:$0xff] %v15509_v33  ;;  %v5227_v35 = vadd.f32 %v15414_v34, %v15453_v2  ;;  %v15516_v0 = vsel %vm6101_vm12, %v6196_v61, 0.0  ;;  %v6441_v39 = vrot.slane %v15509_v33, 1  ;;  %v4850_v51 = vsel %vm717_vm2, %v4847_v20, %v15461_v5 }
 0x3ff   : > { %v3522_v9 = vpop.f32.mrf.mxu0  ;;  %20018 = vst [vmem:[#allocation40_spill] sm:$0xff] %v15516_v0  ;;  %v5404_v44 = vadd.f32 %v5350_v58, %v15458_v40  ;;  %v15525_v3 = vpack.i.bf16 %v15509_v33, %v15516_v0  ;;  %v6440_v21 = vrot.slane %v15516_v0, 1  ;;  %v5468_v34 = vadd.f32 %v5403_v38, %v4848_v56 }
 0x400   : > { %v3523_v53 = vadd.f32 %v15276_v54, %v3522_v9  ;;  %8255 = vmatmul.msk.bf16.gmra.mxu2 %vm2675_vm4, %v4154_v15  ;;  %8217 = vmatmul.msk.bf16.gmra.mxu1 %vm2675_vm4, %v3235_v28  ;;  %v3698_v63 = vadd.f32 %v15340_v1, %v3521_v19  ;;  %v6444_v31 = vsel %vm717_vm2, %v6441_v39, %v6443_v23  ;;  %v9613_v28 = vpop.permute.xlu0 %9612  ;;  %vm20074_vm9 = vcmask 916480  }
 0x401   : > { %v15536_v58 = vmul.f32 %v14907_v55, %v5532_v46  ;;  %9707 = vrot.lane.b32.xlu1 %v15525_v3, %s10269_s12  ;;  %v6442_v20 = vsel %vm717_vm2, %v6440_v21, %v6441_v39  ;;  %v4976_v15 = vadd.f32 %v4848_v56, %v15446_v24  ;;  %v5290_v61 = vadd.f32 %v5225_v22, %v4848_v56  ;;  %v15552_v46 = vpop.f32.mrf.mxu1 }
 0x402   : > { %v15533_v57 = vadd.f32 %v15394_v62, %v3523_v53  ;;  %v15544_v1 = vadd.f32 %v15461_v5, %v15453_v2  ;;  %v5046_v62 = vsel %vm886_vm3, %v5044_v10, %v5045_v25  ;;  %v15549_v38 = vpack.i.bf16 %v6444_v31, %v6442_v20  ;;  %v20019_v53 = vld [vmem:[#allocation224_spill] sm:$0xff] }
 0x403   : > { %v4977_v23 = vadd.f32 %v4850_v51, %v15458_v40  ;;  %v5291_v9 = vadd.f32 %v5226_v32, %v4850_v51  ;;  %v5292_v24 = vadd.f32 %v5227_v35, %v15461_v5  ;;  %v5469_v22 = vadd.f32 %v5404_v44, %v4850_v51  ;;  %v347_v44 = vld [vmem:[%s10343_s30 + $0x218] sm:$0x3] }
 0x404   : > { %v4578_v19 = vrot.slane %v15533_v57, 2  ;;  %9717 = vrot.lane.b32.xlu0 %v15408_v48, %s10264_s27  ;;  %v5530_v2 = vadd.f32 %v5468_v34, %v5046_v62  ;;  %v4577_v56 = vrot.slane %v3698_v63, 2  ;;  %9712 = vrot.lane.b32.xlu2 %v15549_v38, %s10270_s13  ;;  %v9615_v10 = vunpack.i.h.bf16 %v9613_v28  ;;  %v9618_v57 = vpop.permute.xlu1 %9617 }
 0x405   : > { %v9614_v39 = vunpack.i.l.bf16 %v9613_v28  ;;  %v5174_v21 = vadd.f32 %v5046_v62, %v4976_v15  ;;  %v5352_v31 = vadd.f32 %v5290_v61, %v5046_v62  ;;  %v6520_v35 = vrot.slane %v15516_v0, 2  ;;  %v4363_v15 = vpop.f32.mrf.mxu2 }
 0x406   : > { %v4579_v5 = vsel %vm886_vm3, %v4577_v56, %v4578_v19  ;;  %v6521_v51 = vrot.slane %v15509_v33, 2  ;;  %v6523_v48 = vrot.slane %v15502_v18, 2  ;;  %v15567_v34 = vadd.f32 %v15374_v16, %v4360_v29  ;;  %v20020_v18 = vld [vmem:[#allocation14_spill] sm:$0xff] }
 0x407   : > { %v3525_v32 = vpop.f32.mrf.mxu0  ;;  %v5048_v20 = vsel %vm886_vm3, %v5045_v25, %v15495_v60  ;;  %v7311_v61 = vsel %vm2675_vm4, 0.0, %v9615_v10  ;;  %v7310_v28 = vsel %vm2675_vm4, 0.0, %v9614_v39  ;;  %v9620_v62 = vunpack.i.h.bf16 %v9618_v57 }
 0x408   : > { %v3526_v63 = vadd.f32 %v15276_v54, %v3525_v32  ;;  %v5531_v56 = vadd.f32 %v5469_v22, %v5048_v20  ;;  %v20021_v26 = vpack.c.bf16 %v20019_v53, %v20020_v18  ;;  %v15583_v29 = vsel %vm4459_vm0, %v4579_v5, 0.0 }
 0x409   : > { %9722 = vrot.lane.b32.xlu1 %v15475_v13, %s10265_s8  ;;  %v9619_v40 = vunpack.i.l.bf16 %v9618_v57  ;;  %v451_v32 = vmax.f32 %v347_v44, 0.0  ;;  %v15587_v10 = vsel %vm886_vm3, %v6520_v35, %v6521_v51  ;;  %v15590_v22 = vsel %vm886_vm3, %v6521_v51, %v6523_v48  ;;  %v20027_v44 = vld [vmem:[#allocation205_spill] sm:$0xff]  ;;  %v15600_v35 = vpop.f32.mrf.mxu1 }
 0x40a   : > { %v3703_v25 = vadd.f32 %v15431_v50, %v3526_v63  ;;  %20022 = vst [vmem:[#allocation42_spill] sm:$0xff] %v15587_v10  ;;  %v5756_v39 = vmul.f32 %v15066_v59, %v5531_v56  ;;  %v5755_v57 = vmul.f32 %v15074_v8, %v5530_v2  ;;  %v20026_v50 = vld [vmem:[#allocation204_spill] sm:$0xff]  ;;  %v4851_v51 = vrot.slane %v15583_v29, 1 }
 0x40b   : > { %3564 = vmatmul.bf16.gmra.mxu0 %v20021_v26  ;;  %20023 = vst [vmem:[#allocation9_spill] sm:$0xff] %v15590_v22  ;;  %v20024_v26 = vld [vmem:[#allocation76_spill] sm:$0xff]  ;;  %v4002_v5 = vrot.slane %v451_v32, 1  ;;  %v3237_v63 = vpack.c.bf16 %v20027_v44, %v20026_v50  ;;  %v5049_v48 = vrot.slane %v15583_v29, 2  ;;  %v15605_v56 = vadd.f32 %v5174_v21, %v15583_v29 }
 0x40c   : > { %v20025_v53 = vmax.f32 %v20024_v26, 0.0  ;;  %9732 = vrot.lane.b32.xlu0 %v15549_v38, %s10267_s10  ;;  %v4580_v13 = vrot.slane %v3703_v25, 2  ;;  %9727 = vrot.lane.b32.xlu2 %v15525_v3, %s10266_s9  ;;  %v5175_v26 = vadd.f32 %v5048_v20, %v4977_v23  ;;  %v15611_v25 = vpack.i.bf16 %v15590_v22, %v15587_v10 }
 0x40d   : > { %v5354_v21 = vadd.f32 %v5292_v24, %v15495_v60  ;;  %v5875_v6 = vrot.slane %v5756_v39, 5  ;;  %v5874_v10 = vrot.slane %v5755_v57, 5  ;;  %v5406_v11 = vadd.f32 %v5352_v31, %v15583_v29 }
 0x40e   : > { %v4000_v18 = vrot.slane %v20025_v53, 1  ;;  %v4581_v2 = vsel %vm886_vm3, %v4578_v19, %v4580_v13  ;;  %v4723_v32 = vsel %vm18854_vm1, %v4580_v13, 0.0  ;;  %v5353_v53 = vadd.f32 %v5291_v9, %v5048_v20 }
 0x40f   : > { %v3527_v50 = vpop.f32.mrf.mxu0  ;;  %v4852_v44 = vrot.slane %v4581_v2, 1  ;;  %v15616_v27 = vrot.slane %v4723_v32, 1  ;;  %v5050_v9 = vrot.slane %v4581_v2, 2  ;;  %v15625_v20 = vrot.slane %v4723_v32, 2 }
 0x410   : > { %v4001_v3 = vsel %vm717_vm2, %v20011_v17, %v4000_v18  ;;  %v5407_v23 = vadd.f32 %v5353_v53, %v4581_v2  ;;  %v4003_v22 = vsel %vm717_vm2, %v4000_v18, %v4002_v5  ;;  %8218 = vmatmul.msk.bf16.gmra.mxu1 %vm2675_vm4, %v3237_v63  ;;  %v5408_v13 = vadd.f32 %v5354_v21, %v4723_v32  ;;  %v4365_v18 = vpop.f32.mrf.mxu2 }
 0x411   : > { %v4855_v19 = vsel %vm717_vm2, %v4852_v44, %v15616_v27  ;;  %9737 = vrot.lane.b32.xlu1 %v15611_v25, %s10268_s11  ;;  %v15631_v17 = vsel %vm2748_vm5, %v7311_v61, %v9620_v62  ;;  %v15634_v24 = vsel %vm2748_vm5, %v7310_v28, %v9619_v40  ;;  %v5176_v39 = vadd.f32 %v15495_v60, %v15544_v1  ;;  %v8347_v60 = vld [vmem:[%s18294_s5 + $0x38] sm:$0xff]  ;;  %v20029_v40 = vld [vmem:[#allocation79_spill] sm:$0xff] }
 0x412   : > { %v5472_v5 = vadd.f32 %v5407_v23, %v4855_v19  ;;  %v15639_v57 = vadd.f32 %v15374_v16, %v4363_v15  ;;  %v15642_v63 = vadd.f32 %v15374_v16, %v4365_v18  ;;  %v15645_v31 = vsel %vm717_vm2, %v4851_v51, %v4852_v44  ;;  %7690 = vmatpush.bf16.msra.mxu3 %v8347_v60 }
 0x413   : > { %v4155_v53 = vpack.c.bf16 %v4003_v22, %v4001_v3  ;;  %v5876_v61 = vsel %vm5848_vm10, %v5874_v10, %v5875_v6  ;;  %v20028_v28 = vrot.slane %v15536_v58, 5  ;;  %v15656_v1 = vsel %vm886_vm3, %v5050_v9, %v15625_v20  ;;  %v20031_v3 = vld [vmem:[#allocation78_spill] sm:$0xff] }
 0x414   : > { %v5473_v15 = vadd.f32 %v5408_v13, %v15616_v27  ;;  %v20030_v51 = vmax.f32 %v20029_v40, 0.0  ;;  %v6008_v22 = vadd.f32 %v5874_v10, %v15319_v52  ;;  %v6009_v58 = vadd.f32 %v5876_v61, %v15350_v12  ;;  %v8346_v13 = vld [vmem:[%s18294_s5 + $0x30] sm:$0xff] }
 0x415   : > { %v5878_v62 = vsel %vm5848_vm10, %v5875_v6, %v20028_v28  ;;  %8256 = vmatmul.msk.bf16.gmra.mxu2 %vm2675_vm4, %v4155_v53  ;;  %v20032_v23 = vmax.f32 %v20031_v3, 0.0  ;;  %v15669_v28 = vpop.f32.mrf.mxu1  ;;  %v5229_v40 = vadd.f32 %v5175_v26, %v4581_v2  ;;  %v5230_v53 = vadd.f32 %v5176_v39, %v4723_v32  ;;  %v20033_v26 = vld [vmem:[#allocation226_spill] sm:$0xff]  ;;  %v20034_v39 = vld [vmem:[#allocation108_spill] sm:$0xff] }
 0x416   : > { %v4004_v44 = vrot.slane %v20030_v51, 1  ;;  %v6010_v6 = vadd.f32 %v5878_v62, %v15377_v45  ;;  %v5471_v52 = vadd.f32 %v5406_v11, %v15645_v31  ;;  %v5534_v12 = vadd.f32 %v5472_v5, %v15656_v1  ;;  %7691 = vmatpush.bf16.msra.mxu3 %v8346_v13 }
 0x417   : > { %v3530_v21 = vpop.f32.mrf.mxu0  ;;  %v15667_v18 = vrot.slane %v20032_v23, 1  ;;  %v4981_v45 = vadd.f32 %v15616_v27, %v4723_v32  ;;  %v6062_v10 = vmax.f32 %v6008_v22, 0.0  ;;  %v6063_v61 = vmax.f32 %v6009_v58, 0.0 }
 0x418   : > { %v6064_v62 = vmax.f32 %v6010_v6, 0.0  ;;  %v15678_v51 = vsel %vm886_vm3, %v5049_v48, %v5050_v9  ;;  %v5535_v60 = vadd.f32 %v5473_v15, %v15625_v20  ;;  %v3528_v3 = vadd.f32 %v15276_v54, %v3527_v50  ;;  %v8345_v48 = vld [vmem:[%s18294_s5 + $0x28] sm:$0xff]  ;;  %v4368_v6 = vpop.f32.mrf.mxu2 }
 0x419   : > { %v3531_v23 = vadd.f32 %v15276_v54, %v3530_v21  ;;  %v20035_v0 = vpack.c.bf16 %v20033_v26, %v20034_v39  ;;  %v4980_v11 = vadd.f32 %v4855_v19, %v4581_v2  ;;  %v6199_v5 = vrot.slane %v6062_v10, 3  ;;  %9752 = vrot.lane.b32.xlu1 %v15549_v38, %s10264_s27  ;;  %v9623_v2 = vpop.permute.xlu2 %9622 }
 0x41a   : > { %v6200_v33 = vrot.slane %v6063_v61, 3  ;;  %v6202_v32 = vrot.slane %v6064_v62, 3  ;;  %v15691_v9 = vadd.f32 %v5229_v40, %v4855_v19  ;;  %v5533_v50 = vadd.f32 %v5471_v52, %v15678_v51  ;;  %7692 = vmatpush.bf16.msra.mxu3 %v8345_v48  ;;  %v8344_v61 = vld [vmem:[%s18294_s5 + $0x20] sm:$0xff] }
 0x41b   : > { %3569 = vmatmul.bf16.gmra.mxu0 %v20035_v0  ;;  %v15695_v15 = vmul.f32 %v15066_v59, %v5534_v12  ;;  %v15698_v0 = vadd.f32 %v15552_v46, %v3531_v23  ;;  %v3705_v58 = vadd.f32 %v15483_v7, %v3528_v3  ;;  %v5760_v21 = vmul.f32 %v14907_v55, %v5535_v60  ;;  %v20038_v3 = vld [vmem:[#allocation103_spill] sm:$0xff] }
 0x41c   : > { %v6201_v22 = vsel %vm6173_vm14, %v6199_v5, %v6200_v33  ;;  %v15702_v38 = vsel %vm6173_vm14, %v6200_v33, %v6202_v32  ;;  %v15707_v19 = vsel %vm6112_vm11, %v6202_v32, 0.0  ;;  %v5295_v33 = vadd.f32 %v5230_v53, %v15616_v27 }
 0x41d   : > { %20036 = vst [vmem:[#allocation74_spill] sm:$0xff] %v15702_v38  ;;  %v15712_v13 = vsel %vm6101_vm12, %v6201_v22, 0.0  ;;  %v6446_v46 = vrot.slane %v15702_v38, 1  ;;  %v6448_v40 = vrot.slane %v15707_v19, 1  ;;  %v4583_v12 = vrot.slane %v15698_v0, 2  ;;  %v15736_v32 = vpop.f32.mrf.mxu1 }
 0x41e   : > { %20037 = vst [vmem:[#allocation232_spill] sm:$0xff] %v15712_v13  ;;  %v15719_v7 = vpack.i.bf16 %v15702_v38, %v15712_v13  ;;  %v6445_v52 = vrot.slane %v15712_v13, 1  ;;  %v9625_v62 = vunpack.i.h.bf16 %v9623_v2  ;;  %v4006_v27 = vsel %vm717_vm2, %v4004_v44, %v20038_v3  ;;  %7693 = vmatpush.bf16.msra.mxu3 %v8344_v61 }
 0x41f   : > { %v3532_v10 = vpop.f32.mrf.mxu0  ;;  %v6449_v60 = vsel %vm717_vm2, %v6446_v46, %v6448_v40  ;;  %v4008_v53 = vsel %vm717_vm2, %v20038_v3, %v15667_v18  ;;  %v5758_v23 = vmul.f32 %v15074_v8, %v5533_v50  ;;  %v9624_v26 = vunpack.i.l.bf16 %v9623_v2 }
 0x420   : > { %9742 = vrot.lane.b32.xlu2 %v15719_v7, %s10269_s12  ;;  %v4582_v39 = vrot.slane %v3705_v58, 2  ;;  %v6447_v5 = vsel %vm717_vm2, %v6445_v52, %v6446_v46  ;;  %v5880_v48 = vrot.slane %v15695_v15, 5  ;;  %v5882_v0 = vrot.slane %v5760_v21, 5  ;;  %v20040_v21 = vld [vmem:[#allocation203_spill] sm:$0xff] }
 0x421   : > { %v15739_v22 = vpack.i.bf16 %v6449_v60, %v6447_v5  ;;  %v4979_v40 = vadd.f32 %v15645_v31, %v15583_v29  ;;  %v5293_v50 = vadd.f32 %v15605_v56, %v15645_v31  ;;  %v4156_v2 = vpack.c.bf16 %v4008_v53, %v4006_v27  ;;  %v8343_v29 = vld [vmem:[%s18294_s5 + $0x18] sm:$0xff] }
 0x422   : > { %v4584_v44 = vsel %vm886_vm3, %v4582_v39, %v4583_v12  ;;  %v15747_v58 = vadd.f32 %v15656_v1, %v4980_v11  ;;  %v15750_v46 = vadd.f32 %v15625_v20, %v4981_v45  ;;  %v3533_v15 = vadd.f32 %v15276_v54, %v3532_v10  ;;  %v20039_v11 = vld [vmem:[#allocation202_spill] sm:$0xff]  ;;  %v4370_v39 = vpop.f32.mrf.mxu2  ;;  %7694 = vmatpush.bf16.msra.mxu3 %v8343_v29 }
 0x423   : > { %9747 = vrot.lane.b32.xlu0 %v15739_v22, %s10270_s13  ;;  %9767 = vrot.lane.b32.xlu1 %v15739_v22, %s10267_s10  ;;  %v15762_v56 = vsel %vm2821_vm6, %v15631_v17, %v9625_v62  ;;  %v6525_v31 = vrot.slane %v15712_v13, 2  ;;  %v6526_v45 = vrot.slane %v15702_v38, 2  ;;  %v3239_v52 = vpack.c.bf16 %v20040_v21, %v20039_v11 }
 0x424   : > { %v15770_v61 = vsel %vm4459_vm0, %v4584_v44, 0.0  ;;  %v3710_v10 = vadd.f32 %v15600_v35, %v3533_v15  ;;  %v5879_v60 = vrot.slane %v5758_v23, 5  ;;  %v5883_v3 = vsel %vm5848_vm10, %v5880_v48, %v5882_v0  ;;  %v351_v35 = vld [vmem:[%s10343_s30 + $0x238] sm:$0x3] }
 0x425   : > { %v15776_v17 = vsel %vm2821_vm6, %v15634_v24, %v9624_v26  ;;  %v5177_v62 = vadd.f32 %v15678_v51, %v4979_v40  ;;  %v5355_v27 = vadd.f32 %v5293_v50, %v15678_v51  ;;  %8257 = vmatmul.msk.bf16.gmra.mxu2 %vm2675_vm4, %v4156_v2  ;;  %v6528_v53 = vrot.slane %v15707_v19, 2  ;;  %8219 = vmatmul.msk.bf16.gmra.mxu1 %vm2675_vm4, %v3239_v52  ;;  %v20043_v15 = vld [vmem:[#allocation29_spill] sm:$0xff] }
 0x426   : > { %v4585_v23 = vrot.slane %v3710_v10, 2  ;;  %v5881_v0 = vsel %vm5848_vm10, %v5879_v60, %v5880_v48  ;;  %v6013_v44 = vadd.f32 %v5883_v3, %v15567_v34  ;;  %v4856_v24 = vrot.slane %v15770_v61, 1  ;;  %v8342_v34 = vld [vmem:[%s18294_s5 + $0x10] sm:$0xff]  ;;  %v20046_v52 = vld [vmem:[#allocation101_spill] sm:$0xff]  ;;  %v15817_v3 = vpop.f32.mrf.mxu1 }
 0x427   : > { %v3535_v5 = vpop.f32.mrf.mxu0  ;;  %v5054_v51 = vrot.slane %v15770_v61, 2  ;;  %v15791_v19 = vadd.f32 %v15374_v16, %v4368_v6  ;;  %v15794_v26 = vsel %vm886_vm3, %v6525_v31, %v6526_v45  ;;  %v5357_v50 = vadd.f32 %v5295_v33, %v15625_v20  ;;  %v20042_v6 = vld [vmem:[#allocation28_spill] sm:$0xff]  ;;  %7695 = vmatpush.bf16.msra.mxu3 %v8342_v34 }
 0x428   : > { %9757 = vrot.lane.b32.xlu2 %v15611_v25, %s10265_s8  ;;  %20041 = vst [vmem:[#allocation69_spill] sm:$0xff] %v15794_v26  ;;  %v15796_v40 = vpop.permute.xlu2 %9637  ;;  %v15802_v48 = vsel %vm886_vm3, %v4583_v12, %v4585_v23  ;;  %v4726_v25 = vsel %vm18854_vm1, %v4585_v23, 0.0  ;;  %v455_v2 = vmax.f32 %v351_v35, 0.0  ;;  %v20044_v29 = vpack.c.bf16 %v20042_v6, %v20043_v15  ;;  %v20049_v6 = vld [vmem:[#allocation121_spill] sm:$0xff] }
 0x429   : > { %v15811_v31 = vsel %vm886_vm3, %v6526_v45, %v6528_v53  ;;  %v6011_v11 = vadd.f32 %v5879_v60, %v15467_v36  ;;  %v6012_v21 = vadd.f32 %v5881_v0, %v15487_v49  ;;  %v20047_v12 = vmax.f32 %v20046_v52, 0.0 }
 0x42a   : > { %20045 = vst [vmem:[#allocation23_spill] sm:$0xff] %v15811_v31  ;;  %v4857_v20 = vrot.slane %v15802_v48, 1  ;;  %v4859_v33 = vrot.slane %v4726_v25, 1  ;;  %v5411_v35 = vadd.f32 %v5357_v50, %v4726_v25  ;;  %v6067_v23 = vmax.f32 %v6013_v44, 0.0 }
 0x42b   : > { %3574 = vmatmul.bf16.gmra.mxu0 %v20044_v29  ;;  %v4011_v10 = vrot.slane %v20047_v12, 1  ;;  %9762 = vrot.lane.b32.xlu0 %v15719_v7, %s10266_s9  ;;  %v15823_v45 = vadd.f32 %v5177_v62, %v15770_v61  ;;  %v5409_v36 = vadd.f32 %v5355_v27, %v15770_v61  ;;  %v5356_v49 = vadd.f32 %v15691_v9, %v15656_v1  ;;  %v8341_v1 = vld [vmem:[%s18294_s5 + $0x8] sm:$0xff] }
 0x42c   : > { %v15829_v60 = vadd.f32 %v15374_v16, %v4370_v39  ;;  %v15833_v7 = vpack.i.bf16 %v15811_v31, %v15794_v26  ;;  %v3536_v53 = vadd.f32 %v15276_v54, %v3535_v5  ;;  %v4009_v0 = vrot.slane %v455_v2, 1  ;;  %7696 = vmatpush.bf16.msra.mxu3 %v8341_v1 }
 0x42d   : > { %v6065_v62 = vmax.f32 %v6011_v11, 0.0  ;;  %v6066_v50 = vmax.f32 %v6012_v21, 0.0  ;;  %v4013_v27 = vsel %vm717_vm2, %v4011_v10, %v20049_v6  ;;  %v4860_v9 = vsel %vm717_vm2, %v4857_v20, %v4859_v33  ;;  %v4373_v10 = vpop.f32.mrf.mxu2 }
 0x42e   : > { %20048 = vst [vmem:[#allocation58_spill] sm:$0xff] %v15829_v60  ;;  %v5232_v39 = vadd.f32 %v15747_v58, %v15802_v48  ;;  %v5476_v34 = vadd.f32 %v5411_v35, %v4859_v33  ;;  %v6207_v2 = vrot.slane %v6067_v23, 3  ;;  %v15849_v29 = vrot.slane %v4726_v25, 2  ;;  %v8340_v58 = vld [vmem:[%s18294_s5] sm:$0xff] }
 0x42f   : > { %v3537_v15 = vpop.f32.mrf.mxu0  ;;  %v15845_v5 = vpop.permute.xlu1 %9632  ;;  %v5233_v11 = vadd.f32 %v15750_v46, %v4726_v25  ;;  %v6204_v52 = vrot.slane %v6065_v62, 3  ;;  %v4858_v35 = vsel %vm717_vm2, %v4856_v24, %v4857_v20  ;;  %v15859_v23 = vadd.f32 %v4859_v33, %v4726_v25 }
 0x430   : > { %9772 = vrot.lane.b32.xlu2 %v15833_v7, %s10268_s11  ;;  %v15853_v12 = vpop.permute.xlu2 %9652  ;;  %v5410_v44 = vadd.f32 %v5356_v49, %v15802_v48  ;;  %v6205_v31 = vrot.slane %v6066_v50, 3  ;;  %v15863_v46 = vadd.f32 %v4860_v9, %v15802_v48  ;;  %v20050_v62 = vrot.slane %v15802_v48, 2  ;;  %v9628_v49 = vpop.permute.xlu0 %9627  ;;  %7697 = vmatpush.bf16.msra.mxu3 %v8340_v58 }
 0x431   : > { %v15872_v1 = vsel %vm6112_vm11, %v6207_v2, 0.0  ;;  %v4010_v24 = vsel %vm717_vm2, %v15667_v18, %v4009_v0  ;;  %v15876_v25 = vadd.f32 %v5232_v39, %v4860_v9  ;;  %v5538_v20 = vadd.f32 %v5476_v34, %v15849_v29  ;;  %v15889_v18 = vpop.f32.mrf.mxu1 }
 0x432   : > { %v15868_v21 = vsel %vm886_vm3, %v5054_v51, %v20050_v62  ;;  %v6206_v50 = vsel %vm6173_vm14, %v6204_v52, %v6205_v31  ;;  %v15881_v26 = vsel %vm6173_vm14, %v6205_v31, %v6207_v2  ;;  %v5474_v13 = vadd.f32 %v5409_v36, %v4858_v35 }
 0x433   : > { %20051 = vst [vmem:[#allocation162_spill] sm:$0xff] %v15881_v26  ;;  %v15885_v51 = vsel %vm6101_vm12, %v6206_v50, 0.0  ;;  %v6451_v62 = vrot.slane %v15881_v26, 1  ;;  %v6453_v38 = vrot.slane %v15872_v1, 1  ;;  %v3713_v39 = vadd.f32 %v15669_v28, %v3536_v53 }
 0x434   : > { %20052 = vst [vmem:[#allocation73_spill] sm:$0xff] %v15885_v51  ;;  %v15893_v0 = vpack.i.bf16 %v15881_v26, %v15885_v51  ;;  %v6450_v31 = vrot.slane %v15885_v51, 1  ;;  %v4157_v36 = vpack.c.bf16 %v4013_v27, %v4010_v24  ;;  %v9630_v34 = vunpack.i.h.bf16 %v9628_v49 }
 0x435   : > { %v9629_v2 = vunpack.i.l.bf16 %v9628_v49  ;;  %v6454_v52 = vsel %vm717_vm2, %v6451_v62, %v6453_v38  ;;  %v3538_v50 = vadd.f32 %v15276_v54, %v3537_v15  ;;  %v15899_v4 = vadd.f32 %v5233_v11, %v4859_v33 }
 0x436   : > { %v15902_v58 = vmul.f32 %v14907_v55, %v5538_v20  ;;  %9777 = vrot.lane.b32.xlu0 %v15893_v0, %s10269_s12  ;;  %v6452_v28 = vsel %vm717_vm2, %v6450_v31, %v6451_v62  ;;  %8258 = vmatmul.msk.bf16.gmra.mxu2 %vm2675_vm4, %v4157_v36  ;;  %v5475_v53 = vadd.f32 %v5410_v44, %v4860_v9  ;;  %v4587_v11 = vrot.slane %v3713_v39, 2  ;;  %v20054_v44 = vld [vmem:[#allocation45_spill] sm:$0xff]  ;;  %v20058_v36 = vld [vmem:[#allocation215_spill] sm:$0xff] }
 0x437   : > { %v15910_v38 = vadd.f32 %v5474_v13, %v15868_v21  ;;  %v15915_v33 = vpack.i.bf16 %v6454_v52, %v6452_v28  ;;  %v9648_v20 = vpop.permute.xlu1 %9647  ;;  %v3715_v49 = vadd.f32 %v15736_v32, %v3538_v50  ;;  %v20055_v13 = vld [vmem:[#allocation128_spill] sm:$0xff]  ;;  %v15927_v31 = vsel %vm2894_vm7, %v15762_v56, %v9630_v34  ;;  %v20057_v32 = vld [vmem:[#allocation214_spill] sm:$0xff]  ;;  %v4375_v50 = vpop.f32.mrf.mxu2 }
 0x438   : > { %v3540_v41 = vpop.f32.mrf.mxu0  ;;  %9787 = vrot.lane.b32.xlu2 %v15739_v22, %s10264_s27  ;;  %v15920_v62 = vpop.permute.xlu2 %9667  ;;  %v20056_v9 = vpack.c.bf16 %v20054_v44, %v20055_v13  ;;  %v15931_v22 = vsel %vm2894_vm7, %v15776_v17, %v9629_v2  ;;  %v3241_v52 = vpack.c.bf16 %v20058_v36, %v20057_v32  ;;  %v4982_v13 = vadd.f32 %v4858_v35, %v15770_v61 }
 0x439   : > { %20053 = vst [vmem:[#allocation59_spill] sm:$0xff] %v15920_v62  ;;  %9782 = vrot.lane.b32.xlu1 %v15915_v33, %s10270_s13  ;;  %v4588_v44 = vrot.slane %v3715_v49, 2  ;;  %v5296_v56 = vadd.f32 %v15823_v45, %v4858_v35  ;;  %v9650_v34 = vunpack.i.h.bf16 %v9648_v20  ;;  %v15942_v17 = vadd.f32 %v15374_v16, %v4373_v10  ;;  %v20064_v62 = vld [vmem:[#allocation6_spill] sm:$0xff] }
 0x43a   : > { %8220 = vmatmul.msk.bf16.gmra.mxu1 %vm2675_vm4, %v3241_v52  ;;  %v3541_v2 = vadd.f32 %v15276_v54, %v3540_v41  ;;  %v6530_v39 = vrot.slane %v15885_v51, 2  ;;  %v6531_v32 = vrot.slane %v15881_v26, 2  ;;  %v6533_v36 = vrot.slane %v15872_v1, 2 }
 0x43b   : > { %3579 = vmatmul.bf16.gmra.mxu0 %v20056_v9  ;;  %v9649_v9 = vunpack.i.l.bf16 %v9648_v20  ;;  %v4589_v49 = vsel %vm886_vm3, %v4587_v11, %v4588_v44  ;;  %v5180_v10 = vadd.f32 %v15868_v21, %v4982_v13  ;;  %v5358_v54 = vadd.f32 %v5296_v56, %v15868_v21 }
 0x43c   : > { %v3718_v61 = vadd.f32 %v15817_v3, %v3541_v2  ;;  %v15953_v35 = vpop.f32.mrf.mxu1  ;;  %v20059_v1 = vrot.slane %v15802_v48, 2  ;;  %v15966_v3 = vsel %vm2675_vm4, %v15082_v30, %v9650_v34  ;;  %v15976_v52 = vsel %vm4459_vm0, %v4589_v49, 0.0 }
 0x43d   : > { %v15970_v20 = vsel %vm2675_vm4, %v15088_v47, %v9649_v9  ;;  %v15980_v13 = vsel %vm886_vm3, %v6530_v39, %v6531_v32  ;;  %v15983_v30 = vsel %vm886_vm3, %v6531_v32, %v6533_v36  ;;  %v15988_v47 = vadd.f32 %v15374_v16, %v4375_v50  ;;  %v355_v9 = vld [vmem:[%s10343_s30 + $0x258] sm:$0x3] }
 0x43e   : > { %9792 = vrot.lane.b32.xlu0 %v15833_v7, %s10265_s8  ;;  %v5058_v11 = vsel %vm886_vm3, %v20059_v1, %v15849_v29  ;;  %v4590_v7 = vrot.slane %v3718_v61, 2  ;;  %20060 = vst [vmem:[#allocation135_spill] sm:$0xff] %v15980_v13  ;;  %v5182_v34 = vadd.f32 %v15849_v29, %v15859_v23  ;;  %v5360_v36 = vadd.f32 %v15899_v4, %v15849_v29  ;;  %v20062_v4 = vld [vmem:[#allocation96_spill] sm:$0xff] }
 0x43f   : > { %v5537_v21 = vadd.f32 %v5475_v53, %v5058_v11  ;;  %20061 = vst [vmem:[#allocation288_spill] sm:$0xff] %v15983_v30  ;;  %v5181_v32 = vadd.f32 %v5058_v11, %v15863_v46  ;;  %v4861_v50 = vrot.slane %v15976_v52, 1  ;;  %v5359_v49 = vadd.f32 %v15876_v25, %v5058_v11  ;;  %v4378_v61 = vpop.f32.mrf.mxu2 }
 0x440   : > { %v15951_v45 = vpop.f32.mrf.mxu0  ;;  %9802 = vrot.lane.b32.xlu2 %v15915_v33, %s10267_s10  ;;  %v4591_v53 = vsel %vm886_vm3, %v4588_v44, %v4590_v7  ;;  %v4729_v56 = vsel %vm18854_vm1, %v4590_v7, 0.0  ;;  %v16004_v44 = vpack.i.bf16 %v15983_v30, %v15980_v13  ;;  %v5059_v1 = vrot.slane %v15976_v52, 2  ;;  %vm20075_vm1 = vmmov %vm20074_vm9 }
 0x441   : > { %9797 = vrot.lane.b32.xlu1 %v15893_v0, %s10266_s9  ;;  %v4862_v39 = vrot.slane %v4591_v53, 1  ;;  %v4864_v2 = vrot.slane %v4729_v56, 1  ;;  %v15999_v0 = vpop.permute.xlu2 %9682  ;;  %v5762_v23 = vmul.f32 %v15066_v59, %v5537_v21  ;;  %v16010_v46 = vadd.f32 %v5180_v10, %v15976_v52 }
 0x442   : > { %v459_v7 = vmax.f32 %v355_v9, 0.0  ;;  %v20063_v29 = vmax.f32 %v20062_v4, 0.0  ;;  %v5412_v48 = vadd.f32 %v5358_v54, %v15976_v52  ;;  %v5060_v24 = vrot.slane %v4591_v53, 2 }
 0x443   : > { %v16015_v60 = vrot.slane %v4729_v56, 2  ;;  %v9685_v27 = vunpack.i.h.bf16 %v15999_v0  ;;  %v4865_v11 = vsel %vm717_vm2, %v4862_v39, %v4864_v2  ;;  %v4987_v10 = vadd.f32 %v4864_v2, %v4729_v56 }
 0x444   : > { %v4014_v41 = vrot.slane %v20063_v29, 1  ;;  %v5235_v21 = vadd.f32 %v5181_v32, %v4591_v53  ;;  %v5236_v9 = vadd.f32 %v5182_v34, %v4729_v56  ;;  %v5413_v15 = vadd.f32 %v5359_v49, %v4591_v53  ;;  %v16026_v28 = vpop.f32.mrf.mxu1  ;;  %v20065_v32 = vld [vmem:[#allocation7_spill] sm:$0xff] }
 0x445   : > { %v5885_v4 = vrot.slane %v5762_v23, 5  ;;  %v9684_v29 = vunpack.i.l.bf16 %v15999_v0  ;;  %v5761_v54 = vmul.f32 %v15074_v8, %v15910_v38  ;;  %v5414_v30 = vadd.f32 %v5360_v36, %v4729_v56  ;;  %v9643_v23 = vpop.permute.xlu0 %9642 }
 0x446   : > { %9807 = vrot.lane.b32.xlu0 %v16004_v44, %s10268_s11  ;;  %v4015_v13 = vsel %vm717_vm2, %v20049_v6, %v4014_v41  ;;  %v4016_v51 = vrot.slane %v459_v7, 1  ;;  %v16031_v26 = vadd.f32 %v15374_v16, %v4378_v61  ;;  %v20066_v34 = vpack.c.bf16 %v20064_v62, %v20065_v32 }
 0x447   : > { %v16037_v49 = vsel %vm717_vm2, %v4861_v50, %v4862_v39  ;;  %v4986_v0 = vadd.f32 %v4865_v11, %v4591_v53  ;;  %v16040_v38 = vsel %vm886_vm3, %v5059_v1, %v5060_v24  ;;  %v16044_v56 = vsel %vm886_vm3, %v5060_v24, %v16015_v60 }
 0x448   : > { %v16018_v25 = vpop.f32.mrf.mxu0  ;;  %v16047_v6 = vadd.f32 %v16015_v60, %v4987_v10  ;;  %v16049_v16 = vadd.f32 %v5235_v21, %v4865_v11  ;;  %v16051_v36 = vadd.f32 %v5236_v9, %v4864_v2  ;;  %v4017_v62 = vsel %vm717_vm2, %v4014_v41, %v4016_v51 }
 0x449   : > { %v5478_v39 = vadd.f32 %v5413_v15, %v4865_v11  ;;  %v4158_v50 = vpack.c.bf16 %v4017_v62, %v4015_v13  ;;  %v5884_v53 = vrot.slane %v5761_v54, 5  ;;  %v20067_v61 = vrot.slane %v15902_v58, 5  ;;  %v16062_v15 = vpop.f32.mrf.mxu2 }
 0x44a   : > { %v5477_v24 = vadd.f32 %v5412_v48, %v16037_v49  ;;  %v5479_v7 = vadd.f32 %v5414_v30, %v4864_v2  ;;  %v9645_v21 = vunpack.i.h.bf16 %v9643_v23  ;;  %v9644_v9 = vunpack.i.l.bf16 %v9643_v23 }
 0x44b   : > { %3584 = vmatmul.bf16.gmra.mxu0 %v20066_v34  ;;  %v5888_v1 = vsel %vm5848_vm10, %v5885_v4, %v20067_v61  ;;  %8259 = vmatmul.msk.bf16.gmra.mxu2 %vm2675_vm4, %v4158_v50  ;;  %v5886_v32 = vsel %vm5848_vm10, %v5884_v53, %v5885_v4  ;;  %v6014_v51 = vadd.f32 %v5884_v53, %v15639_v57  ;;  %v20070_v34 = vunpack.i.l.bf16 %v15796_v40 }
 0x44c   : > { %v6016_v10 = vadd.f32 %v5888_v1, %v15791_v19  ;;  %v16065_v41 = vadd.f32 %v16044_v56, %v4986_v0  ;;  %v6015_v58 = vadd.f32 %v5886_v32, %v15642_v63  ;;  %v20068_v19 = vunpack.i.l.bf16 %v15845_v5 }
 0x44d   : > { %v5540_v57 = vadd.f32 %v5478_v39, %v16044_v56  ;;  %v16079_v2 = vsel %vm2675_vm4, %v15206_v37, %v9685_v27  ;;  %v6068_v11 = vmax.f32 %v6014_v51, 0.0  ;;  %v20069_v63 = vunpack.i.h.bf16 %v15845_v5  ;;  %v16092_v37 = vpop.permute.xlu1 %9662 }
 0x44e   : > { %v6070_v13 = vmax.f32 %v6016_v10, 0.0  ;;  %9822 = vrot.lane.b32.xlu0 %v15915_v33, %s10264_s27  ;;  %v7438_v48 = vsel %vm2967_vm8, %v15931_v22, %v20068_v19  ;;  %v6069_v33 = vmax.f32 %v6015_v58, 0.0  ;;  %v20072_v0 = vunpack.i.h.bf16 %v15796_v40 }
 0x44f   : > { %v7439_v4 = vsel %vm2967_vm8, %v15927_v31, %v20069_v63  ;;  %v7470_v22 = vsel %vm20071_vm13, %v7438_v48, %v20070_v34  ;;  %v5541_v23 = vadd.f32 %v5479_v7, %v16015_v60  ;;  %v6209_v27 = vrot.slane %v6068_v11, 3  ;;  %v16096_v31 = vpop.f32.mrf.mxu1  ;;  %v16110_v7 = vld [vmem:[%s18291_s2] ss:$0 sm:$0xff] }
 0x450   : > { %v16074_v30 = vpop.f32.mrf.mxu0  ;;  %v6212_v54 = vrot.slane %v6070_v13, 3  ;;  %v7471_v62 = vsel %vm20073_vm15, %v7439_v4, %v20072_v0  ;;  %v7502_v5 = vsel %vm20074_vm9, %v7470_v22, %v9644_v9  ;;  %v5539_v50 = vadd.f32 %v5477_v24, %v16040_v38  ;;  %v20077_v9 = vld [vmem:[#allocation140_spill] sm:$0xff]  ;;  %v9658_v13 = vpop.permute.xlu0 %9657  ;;  %vm20103_vm15 = vmmov %vm20071_vm13 }
 0x451   : > { %v7503_v39 = vsel %vm20075_vm1, %v7471_v62, %v9645_v21  ;;  %v6210_v53 = vrot.slane %v6069_v33, 3  ;;  %v16105_v1 = vsel %vm2675_vm4, %v15213_v14, %v9684_v29  ;;  %v3543_v10 = vadd.f32 %v16110_v7, %v15951_v45  ;;  %v20076_v21 = vld [vmem:[#allocation211_spill] sm:$0xff] }
 0x452   : > { %v16101_v61 = vsel %vm6112_vm11, %v6212_v54, 0.0  ;;  %v7534_v40 = vpack.c.bf16 %v7503_v39, %v7502_v5  ;;  %v3243_v32 = vpack.c.bf16 %v20077_v9, %v20076_v21  ;;  %v9665_v51 = vunpack.i.h.bf16 %v16092_v37  ;;  %v4383_v62 = vpop.f32.mrf.mxu2 }
 0x453   : > { %v6458_v24 = vrot.slane %v16101_v61, 1  ;;  %v9664_v58 = vunpack.i.l.bf16 %v16092_v37  ;;  %v6211_v14 = vsel %vm6173_vm14, %v6209_v27, %v6210_v53  ;;  %v16121_v29 = vsel %vm6173_vm14, %v6210_v53, %v6212_v54  ;;  %v20080_v27 = vld [vmem:[#allocation98_spill] sm:$0xff] }
 0x454   : > { %20078 = vst [vmem:[#allocation57_spill] sm:$0xff] %v16121_v29  ;;  %7698 = vmatmul.bf16.vlgmr.msra.gmra.mxu3 %v7534_v40  ;;  %v16124_v19 = vmul.f32 %v15066_v59, %v5540_v57  ;;  %v5766_v45 = vmul.f32 %v14907_v55, %v5541_v23  ;;  %v16129_v48 = vsel %vm6101_vm12, %v6211_v14, 0.0  ;;  %v6456_v11 = vrot.slane %v16121_v29, 1  ;;  %8221 = vmatmul.msk.bf16.gmra.mxu1 %vm2675_vm4, %v3243_v32  ;;  %v16158_v14 = vpop.permute.xlu2 %9697 }
 0x455   : > { %20079 = vst [vmem:[#allocation86_spill] sm:$0xff] %v16129_v48  ;;  %v16134_v63 = vmul.f32 %v15074_v8, %v5539_v50  ;;  %v9811_v4 = vpack.i.bf16 %v16121_v29, %v16129_v48  ;;  %v6455_v33 = vrot.slane %v16129_v48, 1  ;;  %v3546_v57 = vadd.f32 %v16110_v7, %v16018_v25  ;;  %v20082_v50 = vld [vmem:[#allocation97_spill] sm:$0xff] }
 0x456   : > { %v3720_v54 = vadd.f32 %v15889_v18, %v3543_v10  ;;  %v6459_v34 = vsel %vm717_vm2, %v6456_v11, %v6458_v24  ;;  %v9660_v22 = vunpack.i.h.bf16 %v9658_v13  ;;  %v9659_v0 = vunpack.i.l.bf16 %v9658_v13  ;;  %v20084_v18 = vld [vmem:[#allocation81_spill] sm:$0xff] }
 0x457   : > { %9812 = vrot.lane.b32.xlu1 %v9811_v4, %s10269_s12  ;;  %v6457_v23 = vsel %vm717_vm2, %v6455_v33, %v6456_v11  ;;  %v3723_v37 = vadd.f32 %v15953_v35, %v3546_v57  ;;  %v20081_v5 = vmax.f32 %v20080_v27, 0.0  ;;  %v20083_v53 = vmax.f32 %v20082_v50, 0.0  ;;  %v20085_v10 = vld [vmem:[#allocation229_spill] sm:$0xff]  ;;  %v20088_v57 = vld [vmem:[#allocation120_spill] sm:$0xff] }
 0x458   : > { %v16152_v25 = vpop.f32.mrf.mxu0  ;;  %v20086_v24 = vpack.c.bf16 %v20084_v18, %v20085_v10  ;;  %v5890_v21 = vrot.slane %v16124_v19, 5  ;;  %v5892_v32 = vrot.slane %v5766_v45, 5  ;;  %v16160_v13 = vpack.i.bf16 %v6459_v34, %v6457_v23  ;;  %v16180_v23 = vpop.f32.mrf.mxu1 }
 0x459   : > { %v4018_v39 = vrot.slane %v20081_v5, 1  ;;  %v16150_v40 = vrot.slane %v20083_v53, 1  ;;  %v20087_v35 = vunpack.i.h.bf16 %v15853_v12  ;;  %v4593_v33 = vrot.slane %v3723_v37, 2 }
 0x45a   : > { %v4592_v50 = vrot.slane %v3720_v54, 2  ;;  %9817 = vrot.lane.b32.xlu2 %v16160_v13, %s10270_s13  ;;  %v20089_v19 = vunpack.i.l.bf16 %v15853_v12  ;;  %9837 = vrot.lane.b32.xlu0 %v16160_v13, %s10267_s10  ;;  %v3548_v12 = vadd.f32 %v16110_v7, %v16074_v30  ;;  %v6535_v30 = vrot.slane %v16129_v48, 2 }
 0x45b   : > { %3589 = vmatmul.bf16.gmra.mxu0 %v20086_v24  ;;  %v7345_v11 = vsel %vm2748_vm5, %v15966_v3, %v20087_v35  ;;  %v4020_v27 = vsel %vm717_vm2, %v4018_v39, %v20088_v57  ;;  %v4022_v5 = vsel %vm717_vm2, %v20088_v57, %v16150_v40  ;;  %v4985_v39 = vadd.f32 %v16037_v49, %v15976_v52 }
 0x45c   : > { %v7344_v45 = vsel %vm2748_vm5, %v15970_v20, %v20089_v19  ;;  %v7377_v34 = vsel %vm2821_vm6, %v7345_v11, %v9660_v22  ;;  %v4159_v3 = vpack.c.bf16 %v4022_v5, %v4020_v27  ;;  %v16192_v22 = vld [vmem:[%s18293_s4] ss:$0 sm:$0xff]  ;;  %v4594_v18 = vsel %vm886_vm3, %v4592_v50, %v4593_v33 }
 0x45d   : > { %v7376_v54 = vsel %vm2821_vm6, %v7344_v45, %v9659_v0  ;;  %v16196_v53 = vadd.f32 %v16192_v22, %v16062_v15  ;;  %v5299_v0 = vadd.f32 %v16010_v46, %v16037_v49  ;;  %v16203_v52 = vsel %vm2894_vm7, %v7377_v34, %v9665_v51 }
 0x45e   : > { %8260 = vmatmul.msk.bf16.gmra.mxu2 %vm2675_vm4, %v4159_v3  ;;  %v6536_v10 = vrot.slane %v16121_v29, 2  ;;  %v16208_v24 = vsel %vm2894_vm7, %v7376_v54, %v9664_v58  ;;  %v6538_v15 = vrot.slane %v16101_v61, 2  ;;  %v3725_v35 = vadd.f32 %v16026_v28, %v3548_v12  ;;  %v4385_v28 = vpop.f32.mrf.mxu2  ;;  %v16233_v50 = vpop.permute.xlu0 %9672  ;;  %v20094_v12 = vld [vmem:[#allocation62_spill] sm:$0xff] }
 0x45f   : > { %9827 = vrot.lane.b32.xlu1 %v16004_v44, %s10265_s8  ;;  %v16216_v46 = vsel %vm4459_vm0, %v4594_v18, 0.0  ;;  %v5183_v49 = vadd.f32 %v16040_v38, %v4985_v39  ;;  %v5889_v51 = vrot.slane %v16134_v63, 5  ;;  %v5893_v11 = vsel %vm5848_vm10, %v5890_v21, %v5892_v32 }
 0x460   : > { %v5361_v58 = vadd.f32 %v5299_v0, %v16040_v38  ;;  %v16223_v57 = vadd.f32 %v16192_v22, %v4383_v62  ;;  %v4595_v61 = vrot.slane %v3725_v35, 2  ;;  %v6019_v27 = vadd.f32 %v5893_v11, %v15988_v47  ;;  %v16236_v32 = vpop.f32.mrf.mxu0  ;;  %v16267_v18 = vpop.f32.mrf.mxu1 }
 0x461   : > { %v16227_v44 = vsel %vm886_vm3, %v6535_v30, %v6536_v10  ;;  %v5362_v5 = vadd.f32 %v16049_v16, %v16044_v56  ;;  %v5363_v63 = vadd.f32 %v16051_v36, %v16015_v60  ;;  %v5891_v38 = vsel %vm5848_vm10, %v5889_v51, %v5890_v21  ;;  %v16256_v36 = vpop.permute.xlu2 %9712  ;;  %v9678_v21 = vpop.permute.xlu1 %9677 }
 0x462   : > { %20090 = vst [vmem:[#allocation71_spill] sm:$0xff] %v16227_v44  ;;  %v4866_v62 = vrot.slane %v16216_v46, 1  ;;  %9832 = vrot.lane.b32.xlu2 %v9811_v4, %s10266_s9  ;;  %v16241_v47 = vsel %vm886_vm3, %v6536_v10, %v6538_v15  ;;  %vm20092_vm1 = vcmp.lt.s32.totalorder %v19884_v43, 18  ;;  %v16248_v56 = vadd.f32 %v16192_v22, %v4385_v28  ;;  %v20093_v4 = vld [vmem:[#allocation58_spill] sm:$0xff] }
 0x463   : > { %20091 = vst [vmem:[#allocation234_spill] sm:$0xff] %v16241_v47  ;;  %v16245_v19 = vsel %vm20092_vm1, %v4595_v61, 0.0  ;;  %v16251_v60 = vsel %vm886_vm3, %v4593_v33, %v4595_v61  ;;  %v6017_v45 = vadd.f32 %v5889_v51, %v20093_v4  ;;  %v6018_v34 = vadd.f32 %v5891_v38, %v15942_v17  ;;  %vm20104_vm1 = vmmov %vm20074_vm9 }
 0x464   : > { %v16254_v16 = vrot.slane %v16245_v19, 1  ;;  %v16262_v54 = vadd.f32 %v5183_v49, %v16216_v46  ;;  %v5417_v39 = vadd.f32 %v5363_v63, %v16245_v19  ;;  %8222 = vmatmul.msk.bf16.gmra.mxu1 %vm2675_vm4, %v20094_v12  ;;  %v6073_v33 = vmax.f32 %v6019_v27, 0.0  ;;  %v20095_v27 = vld [vmem:[#allocation39_spill] sm:$0xff]  ;;  %v20096_v63 = vld [vmem:[#allocation25_spill] sm:$0xff] }
 0x465   : > { %v5415_v0 = vadd.f32 %v5361_v58, %v16216_v46  ;;  %v16272_v30 = vpack.i.bf16 %v16241_v47, %v16227_v44  ;;  %v9675_v17 = vunpack.i.h.bf16 %v16233_v50  ;;  %v9674_v10 = vunpack.i.l.bf16 %v16233_v50 }
 0x466   : > { %v4867_v15 = vrot.slane %v16251_v60, 1  ;;  %v9680_v51 = vunpack.i.h.bf16 %v9678_v21  ;;  %v5482_v11 = vadd.f32 %v5417_v39, %v16254_v16  ;;  %v9679_v58 = vunpack.i.l.bf16 %v9678_v21 }
 0x467   : > { %9842 = vrot.lane.b32.xlu1 %v16272_v30, %s10268_s11  ;;  %v6071_v61 = vmax.f32 %v6017_v45, 0.0  ;;  %v6072_v28 = vmax.f32 %v6018_v34, 0.0  ;;  %v20097_v38 = vpack.c.bf16 %v20095_v27, %v20096_v63  ;;  %v6217_v4 = vrot.slane %v6073_v33, 3 }
 0x468   : > { %v3551_v35 = vadd.f32 %v16110_v7, %v16152_v25  ;;  %v16289_v49 = vrot.slane %v16245_v19, 2  ;;  %v5238_v39 = vadd.f32 %v16065_v41, %v16251_v60  ;;  %v16294_v34 = vsel %vm717_vm2, %v4866_v62, %v4867_v15  ;;  %v9688_v62 = vpop.permute.xlu0 %9687  ;;  %v16311_v37 = vpop.f32.mrf.mxu0 }
 0x469   : > { %v6214_v21 = vrot.slane %v6071_v61, 3  ;;  %v6215_v45 = vrot.slane %v6072_v28, 3  ;;  %v5239_v27 = vadd.f32 %v16047_v6, %v16245_v19  ;;  %v5416_v63 = vadd.f32 %v5362_v5, %v16251_v60  ;;  %v359_v28 = vld [vmem:[%s10343_s30 + $0x278] sm:$0x3] }
 0x46a   : > { %v16301_v33 = vsel %vm6112_vm11, %v6217_v4, 0.0  ;;  %v4870_v25 = vsel %vm717_vm2, %v4867_v15, %v16254_v16  ;;  %v20100_v15 = vld [vmem:[#allocation59_spill] sm:$0xff]  ;;  %v5480_v48 = vadd.f32 %v5415_v0, %v16294_v34  ;;  %v4388_v0 = vpop.f32.mrf.mxu2 }
 0x46b   : > { %3594 = vmatmul.bf16.gmra.mxu0 %v20097_v38  ;;  %v5544_v38 = vadd.f32 %v5482_v11, %v16289_v49  ;;  %v6216_v41 = vsel %vm6173_vm14, %v6214_v21, %v6215_v45  ;;  %v16308_v61 = vsel %vm6173_vm14, %v6215_v45, %v6217_v4  ;;  %v6463_v20 = vrot.slane %v16301_v33, 1 }
 0x46c   : > { %20098 = vst [vmem:[#allocation163_spill] sm:$0xff] %v16308_v61  ;;  %v16315_v6 = vsel %vm6101_vm12, %v6216_v41, 0.0  ;;  %v6461_v5 = vrot.slane %v16308_v61, 1  ;;  %v20101_v3 = vunpack.i.l.bf16 %v20100_v15  ;;  %v20102_v45 = vunpack.i.h.bf16 %v20100_v15 }
 0x46d   : > { %20099 = vst [vmem:[#allocation164_spill] sm:$0xff] %v16315_v6  ;;  %v16325_v4 = vpack.i.bf16 %v16308_v61, %v16315_v6  ;;  %v6460_v21 = vrot.slane %v16315_v6, 1 }
 0x46e   : > { %v7440_v11 = vsel %vm2967_vm8, %v16208_v24, %v20101_v3  ;;  %v7441_v41 = vsel %vm2967_vm8, %v16203_v52, %v20102_v45  ;;  %v6464_v47 = vsel %vm717_vm2, %v6461_v5, %v6463_v20  ;;  %v463_v24 = vmax.f32 %v359_v28, 0.0  ;;  %v16336_v3 = vpop.f32.mrf.mxu1  ;;  %v20105_v20 = vld [vmem:[#allocation119_spill] sm:$0xff] }
 0x46f   : > { %v7472_v50 = vsel %vm20071_vm13, %v7440_v11, %v9674_v10  ;;  %v7473_v44 = vsel %vm20103_vm15, %v7441_v41, %v9675_v17  ;;  %9847 = vrot.lane.b32.xlu2 %v16325_v4, %s10269_s12  ;;  %9857 = vrot.lane.b32.xlu1 %v16160_v13, %s10264_s27  ;;  %v6462_v52 = vsel %vm717_vm2, %v6460_v21, %v6461_v5  ;;  %v20106_v15 = vmax.f32 %v20105_v20, 0.0  ;;  %v20109_v21 = vld [vmem:[#allocation134_spill] sm:$0xff]  ;;  %v16372_v20 = vpop.permute.xlu2 %9727 }
 0x470   : > { %v7504_v9 = vsel %vm20074_vm9, %v7472_v50, %v9679_v58  ;;  %v7505_v10 = vsel %vm20104_vm1, %v7473_v44, %v9680_v51  ;;  %v3728_v58 = vadd.f32 %v16096_v31, %v3551_v35  ;;  %v16348_v50 = vpack.i.bf16 %v6464_v47, %v6462_v52  ;;  %v9693_v47 = vpop.permute.xlu1 %9692  ;;  %vm20125_vm9 = vmmov %vm20103_vm15 }
 0x471   : > { %v4025_v17 = vrot.slane %v20106_v15, 1  ;;  %v7536_v28 = vpack.c.bf16 %v7505_v10, %v7504_v9  ;;  %v4023_v11 = vrot.slane %v463_v24, 1  ;;  %v16351_v45 = vadd.f32 %v4870_v25, %v16251_v60 }
 0x472   : > { %v16355_v13 = vadd.f32 %v16254_v16, %v16245_v19  ;;  %v20107_v5 = vrot.slane %v16251_v60, 2  ;;  %v20108_v44 = vrot.slane %v16216_v46, 2  ;;  %v16365_v9 = vmul.f32 %v14907_v55, %v5544_v38  ;;  %9852 = vrot.lane.b32.xlu0 %v16348_v50, %s10270_s13 }
 0x473   : > { %v4027_v31 = vsel %vm717_vm2, %v4025_v17, %v20109_v21  ;;  %v9690_v35 = vunpack.i.h.bf16 %v9688_v62  ;;  %v9689_v41 = vunpack.i.l.bf16 %v9688_v62  ;;  %7703 = vmatmul.bf16.gmra.mxu3 %v7536_v28  ;;  %v4024_v19 = vsel %vm717_vm2, %v16150_v40, %v4023_v11 }
 0x474   : > { %v5066_v51 = vsel %vm886_vm3, %v20108_v44, %v20107_v5  ;;  %v5303_v24 = vadd.f32 %v5238_v39, %v4870_v25  ;;  %v5304_v52 = vadd.f32 %v5239_v27, %v16254_v16  ;;  %v4160_v10 = vpack.c.bf16 %v4027_v31, %v4024_v19  ;;  %8223 = vmatmul.msk.bf16.gmra.mxu1 %vm2675_vm4, %v20094_v12  ;;  %v9703_v16 = vpop.permute.xlu0 %9702  ;;  %v16382_v27 = vpop.f32.mrf.mxu0 }
 0x475   : > { %v3553_v15 = vadd.f32 %v16110_v7, %v16236_v32  ;;  %v5481_v38 = vadd.f32 %v5416_v63, %v4870_v25  ;;  %v16376_v17 = vadd.f32 %v5480_v48, %v5066_v51  ;;  %v4597_v62 = vrot.slane %v3728_v58, 2 }
 0x476   : > { %v9694_v5 = vunpack.i.l.bf16 %v9693_v47  ;;  %8261 = vmatmul.msk.bf16.gmra.mxu2 %vm2675_vm4, %v4160_v10  ;;  %v9695_v40 = vunpack.i.h.bf16 %v9693_v47  ;;  %v7347_v32 = vsel %vm2748_vm5, %v16079_v2, %v9690_v35  ;;  %v7346_v48 = vsel %vm2748_vm5, %v16105_v1, %v9689_v41  ;;  %v16400_v31 = vpop.f32.mrf.mxu1  ;;  %v20110_v47 = vld [vmem:[#allocation11_spill] sm:$0xff] }
 0x477   : > { %v3730_v39 = vadd.f32 %v16180_v23, %v3553_v15  ;;  %9862 = vrot.lane.b32.xlu2 %v16272_v30, %s10265_s8  ;;  %9872 = vrot.lane.b32.xlu1 %v16348_v50, %s10267_s10  ;;  %v6540_v25 = vrot.slane %v16315_v6, 2  ;;  %v6541_v58 = vrot.slane %v16308_v61, 2  ;;  %v6543_v11 = vrot.slane %v16301_v33, 2  ;;  %v20111_v30 = vld [vmem:[#allocation44_spill] sm:$0xff] }
 0x478   : > { %v7378_v2 = vsel %vm2821_vm6, %v7346_v48, %v9694_v5  ;;  %v9705_v44 = vunpack.i.h.bf16 %v9703_v16  ;;  %v3556_v1 = vadd.f32 %v16110_v7, %v16311_v37  ;;  %v20112_v35 = vpack.c.bf16 %v20110_v47, %v20111_v30  ;;  %v4390_v37 = vpop.f32.mrf.mxu2 }
 0x479   : > { %v4598_v23 = vrot.slane %v3730_v39, 2  ;;  %v7379_v41 = vsel %vm2821_vm6, %v7347_v32, %v9695_v40  ;;  %v4988_v19 = vadd.f32 %v16294_v34, %v16216_v46  ;;  %v5302_v33 = vadd.f32 %v16262_v54, %v16294_v34 }
 0x47a   : > { %v9704_v10 = vunpack.i.l.bf16 %v9703_v16  ;;  %9867 = vrot.lane.b32.xlu0 %v16325_v4, %s10266_s9  ;;  %v16414_v5 = vsel %vm886_vm3, %v6540_v25, %v6541_v58  ;;  %v16417_v39 = vsel %vm886_vm3, %v6541_v58, %v6543_v11  ;;  %v3733_v40 = vadd.f32 %v16267_v18, %v3556_v1 }
 0x47b   : > { %3599 = vmatmul.bf16.gmra.mxu0 %v20112_v35  ;;  %v4599_v15 = vsel %vm886_vm3, %v4597_v62, %v4598_v23  ;;  %20113 = vst [vmem:[#allocation173_spill] sm:$0xff] %v16414_v5  ;;  %v16422_v32 = vadd.f32 %v16192_v22, %v4388_v0  ;;  %v20115_v54 = vunpack.i.l.bf16 %v16158_v14  ;;  %v20116_v4 = vrot.slane %v16251_v60, 2  ;;  %v16454_v35 = vpop.permute.xlu2 %9742 }
 0x47c   : > { %20114 = vst [vmem:[#allocation285_spill] sm:$0xff] %v16417_v39  ;;  %v20117_v16 = vunpack.i.h.bf16 %v16158_v14  ;;  %v16435_v18 = vadd.f32 %v16192_v22, %v4390_v37  ;;  %v4600_v25 = vrot.slane %v3733_v40, 2  ;;  %v16439_v0 = vsel %vm4459_vm0, %v4599_v15, 0.0  ;;  %v16445_v1 = vpop.f32.mrf.mxu0 }
 0x47d   : > { %v7410_v34 = vsel %vm2894_vm7, %v7378_v2, %v20115_v54  ;;  %v5068_v62 = vsel %vm886_vm3, %v20116_v4, %v16289_v49  ;;  %v5186_v11 = vadd.f32 %v5066_v51, %v4988_v19  ;;  %v5364_v2 = vadd.f32 %v5302_v33, %v5066_v51  ;;  %v16466_v54 = vpop.permute.xlu0 %9717 }
 0x47e   : > { %v7411_v48 = vsel %vm2894_vm7, %v7379_v41, %v20117_v16  ;;  %v5543_v58 = vadd.f32 %v5481_v38, %v5068_v62  ;;  %v16443_v60 = vpack.i.bf16 %v16417_v39, %v16414_v5  ;;  %v7442_v14 = vsel %vm2967_vm8, %v7410_v34, %v9704_v10  ;;  %v363_v10 = vld [vmem:[%s10343_s30 + $0x298] sm:$0x3] }
 0x47f   : > { %v7443_v47 = vsel %vm2967_vm8, %v7411_v48, %v9705_v44  ;;  %v16450_v30 = vsel %vm886_vm3, %v4598_v23, %v4600_v25  ;;  %vm20118_vm13 = vcmp.lt.s32.totalorder %v19884_v43, 18  ;;  %v5187_v51 = vadd.f32 %v5068_v62, %v16351_v45  ;;  %v9708_v44 = vpop.permute.xlu1 %9707 }
 0x480   : > { %v4735_v38 = vsel %vm20118_vm13, %v4600_v25, 0.0  ;;  %9877 = vrot.lane.b32.xlu2 %v16443_v60, %s10268_s11  ;;  %v5188_v41 = vadd.f32 %v16289_v49, %v16355_v13  ;;  %v5365_v19 = vadd.f32 %v5303_v24, %v5068_v62  ;;  %v5366_v33 = vadd.f32 %v5304_v52, %v16289_v49  ;;  %v16474_v24 = vpop.f32.mrf.mxu1  ;;  %v16485_v28 = vpop.f32.mrf.mxu2  ;;  %v20119_v52 = vld [vmem:[#allocation115_spill] sm:$0xff]  ;;  %vm20128_vm13 = vmmov %vm20104_vm1 }
 0x481   : > { %v4871_v23 = vrot.slane %v16439_v0, 1  ;;  %v4872_v15 = vrot.slane %v16450_v30, 1  ;;  %v4874_v37 = vrot.slane %v4735_v38, 1  ;;  %v5768_v40 = vmul.f32 %v15066_v59, %v5543_v58 }
 0x482   : > { %v5069_v34 = vrot.slane %v16439_v0, 2  ;;  %v16470_v45 = vadd.f32 %v5186_v11, %v16439_v0  ;;  %v5418_v13 = vadd.f32 %v5364_v2, %v16439_v0  ;;  %v9710_v4 = vunpack.i.h.bf16 %v9708_v44 }
 0x483   : > { %v9709_v62 = vunpack.i.l.bf16 %v9708_v44  ;;  %v467_v16 = vmax.f32 %v363_v10, 0.0  ;;  %v5070_v48 = vrot.slane %v16450_v30, 2  ;;  %v5419_v25 = vadd.f32 %v5365_v19, %v16450_v30 }
 0x484   : > { %v9720_v58 = vunpack.i.h.bf16 %v16466_v54  ;;  %v4875_v63 = vsel %vm717_vm2, %v4872_v15, %v4874_v37  ;;  %v16482_v2 = vrot.slane %v4735_v38, 2  ;;  %v5241_v49 = vadd.f32 %v5187_v51, %v16450_v30  ;;  %8224 = vmatmul.msk.bf16.gmra.mxu1 %vm2675_vm4, %v20094_v12 }
 0x485   : > { %v5895_v46 = vrot.slane %v5768_v40, 5  ;;  %v16490_v44 = vsel %vm717_vm2, %v4871_v23, %v4872_v15  ;;  %v5242_v19 = vadd.f32 %v5188_v41, %v4735_v38  ;;  %v5420_v10 = vadd.f32 %v5366_v33, %v4735_v38  ;;  %v16502_v15 = vpop.f32.mrf.mxu0  ;;  %v16511_v33 = vpop.permute.xlu2 %9757 }
 0x486   : > { %v20120_v39 = vmax.f32 %v20119_v52, 0.0  ;;  %v4993_v5 = vadd.f32 %v4874_v37, %v4735_v38  ;;  %v4030_v29 = vrot.slane %v467_v16, 1  ;;  %v5767_v6 = vmul.f32 %v15074_v8, %v16376_v17  ;;  %v20123_v52 = vld [vmem:[#allocation223_spill] sm:$0xff] }
 0x487   : > { %v4992_v51 = vadd.f32 %v4875_v63, %v16450_v30  ;;  %v16498_v40 = vsel %vm886_vm3, %v5069_v34, %v5070_v48  ;;  %v5484_v61 = vadd.f32 %v5419_v25, %v4875_v63  ;;  %v20121_v38 = vrot.slane %v16365_v9, 5  ;;  %v20122_v34 = vld [vmem:[#allocation89_spill] sm:$0xff] }
 0x488   : > { %v4028_v11 = vrot.slane %v20120_v39, 1  ;;  %9892 = vrot.lane.b32.xlu2 %v16348_v50, %s10264_s27  ;;  %v5894_v39 = vrot.slane %v5767_v6, 5  ;;  %v7474_v30 = vsel %vm20103_vm15, %v7442_v14, %v9709_v62  ;;  %v20124_v16 = vpack.c.bf16 %v20122_v34, %v20123_v52 }
 0x489   : > { %v5898_v17 = vsel %vm5848_vm10, %v5895_v46, %v20121_v38  ;;  %v5485_v25 = vadd.f32 %v5420_v10, %v4874_v37  ;;  %v7475_v9 = vsel %vm20125_vm9, %v7443_v47, %v9710_v4  ;;  %v20126_v14 = vunpack.i.l.bf16 %v16256_v36  ;;  %v9723_v38 = vpop.permute.xlu1 %9722  ;;  %v16533_v10 = vpop.f32.mrf.mxu1 }
 0x48a   : > { %v4029_v23 = vsel %vm717_vm2, %v20109_v21, %v4028_v11  ;;  %v4031_v41 = vsel %vm717_vm2, %v4028_v11, %v4030_v29  ;;  %v5483_v21 = vadd.f32 %v5418_v13, %v16490_v44  ;;  %v6022_v11 = vadd.f32 %v5898_v17, %v16223_v57 }
 0x48b   : > { %3604 = vmatmul.bf16.gmra.mxu0 %v20124_v16  ;;  %v4161_v29 = vpack.c.bf16 %v4031_v41, %v4029_v23  ;;  %v5896_v6 = vsel %vm5848_vm10, %v5894_v39, %v5895_v46  ;;  %v6020_v50 = vadd.f32 %v5894_v39, %v16031_v26  ;;  %v7506_v62 = vsel %vm20104_vm1, %v7474_v30, %v20126_v14  ;;  %vm20144_vm1 = vmmov %vm20125_vm9 }
 0x48c   : > { %v16526_v34 = vsel %vm886_vm3, %v5070_v48, %v16482_v2  ;;  %v6021_v13 = vadd.f32 %v5896_v6, %v16196_v53  ;;  %v6076_v57 = vmax.f32 %v6022_v11, 0.0  ;;  %v20127_v46 = vunpack.i.h.bf16 %v16256_v36  ;;  %v20131_v6 = vld [vmem:[#allocation41_spill] sm:$0xff] }
 0x48d   : > { %8262 = vmatmul.msk.bf16.gmra.mxu2 %vm2675_vm4, %v4161_v29  ;;  %v16535_v47 = vadd.f32 %v5241_v49, %v4875_v63  ;;  %v5546_v4 = vadd.f32 %v5484_v61, %v16526_v34  ;;  %v6074_v23 = vmax.f32 %v6020_v50, 0.0  ;;  %v16538_v39 = vadd.f32 %v5242_v19, %v4874_v37  ;;  %v4395_v49 = vpop.f32.mrf.mxu2  ;;  %v20129_v61 = vld [vmem:[#allocation56_spill] sm:$0xff]  ;;  %v16571_v14 = vpop.f32.mrf.mxu0 }
 0x48e   : > { %v7507_v26 = vsel %vm20128_vm13, %v7475_v9, %v20127_v46  ;;  %v5547_v48 = vadd.f32 %v5485_v25, %v16482_v2  ;;  %v6075_v17 = vmax.f32 %v6021_v13, 0.0  ;;  %v6222_v30 = vrot.slane %v6076_v57, 3  ;;  %v16585_v57 = vpop.permute.xlu2 %9772 }
 0x48f   : > { %v7538_v41 = vpack.c.bf16 %v7507_v26, %v7506_v62  ;;  %v16542_v53 = vadd.f32 %v16526_v34, %v4992_v51  ;;  %v16545_v36 = vadd.f32 %v16482_v2, %v4993_v5  ;;  %v5545_v52 = vadd.f32 %v5483_v21, %v16498_v40 }
 0x490   : > { %v6219_v63 = vrot.slane %v6074_v23, 3  ;;  %v7317_v16 = vsel %vm2675_vm4, %v20129_v61, %v9720_v58  ;;  %v6220_v37 = vrot.slane %v6075_v17, 3  ;;  %v3558_v19 = vadd.f32 %v16110_v7, %v16382_v27 }
 0x491   : > { %7708 = vmatmul.bf16.gmra.mxu3 %v7538_v41  ;;  %v16554_v25 = vsel %vm6112_vm11, %v6222_v30, 0.0  ;;  %v16557_v51 = vmul.f32 %v15066_v59, %v5546_v4  ;;  %v9725_v5 = vunpack.i.h.bf16 %v9723_v38  ;;  %v9724_v29 = vunpack.i.l.bf16 %v9723_v38  ;;  %v9733_v4 = vpop.permute.xlu0 %9732 }
 0x492   : > { %v6468_v21 = vrot.slane %v16554_v25, 1  ;;  %v16561_v11 = vmul.f32 %v14907_v55, %v5547_v48  ;;  %v20130_v58 = vunpack.i.l.bf16 %v16466_v54  ;;  %v6221_v27 = vsel %vm6173_vm14, %v6219_v63, %v6220_v37  ;;  %v16599_v63 = vpop.f32.mrf.mxu1 }
 0x493   : > { %v16569_v9 = vsel %vm6173_vm14, %v6220_v37, %v6222_v30  ;;  %v16574_v62 = vmul.f32 %v15074_v8, %v5545_v52  ;;  %v16578_v38 = vadd.f32 %v16192_v22, %v16485_v28  ;;  %v16582_v54 = vsel %vm6101_vm12, %v6221_v27, 0.0  ;;  %v9738_v52 = vpop.permute.xlu1 %9737 }
 0x494   : > { %v7316_v50 = vsel %vm2675_vm4, %v20131_v6, %v20130_v58  ;;  %20132 = vst [vmem:[#allocation124_spill] sm:$0xff] %v16582_v54  ;;  %v6466_v13 = vrot.slane %v16569_v9, 1  ;;  %v16589_v46 = vpack.i.bf16 %v16569_v9, %v16582_v54  ;;  %v3735_v26 = vadd.f32 %v16336_v3, %v3558_v19  ;;  %8225 = vmatmul.msk.bf16.gmra.mxu1 %vm2675_vm4, %v20094_v12 }
 0x495   : > { %v6465_v23 = vrot.slane %v16582_v54, 1  ;;  %v3561_v28 = vadd.f32 %v16110_v7, %v16445_v1  ;;  %v5900_v41 = vrot.slane %v16557_v51, 5  ;;  %v7348_v48 = vsel %vm2748_vm5, %v7316_v50, %v9724_v29 }
 0x496   : > { %v7349_v17 = vsel %vm2748_vm5, %v7317_v16, %v9725_v5  ;;  %v6469_v30 = vsel %vm717_vm2, %v6466_v13, %v6468_v21  ;;  %v5902_v3 = vrot.slane %v16561_v11, 5  ;;  %9882 = vrot.lane.b32.xlu0 %v16589_v46, %s10269_s12  ;;  %v9735_v19 = vunpack.i.h.bf16 %v9733_v4 }
 0x497   : > { %v6467_v61 = vsel %vm717_vm2, %v6465_v23, %v6466_v13  ;;  %v3738_v37 = vadd.f32 %v16400_v31, %v3561_v28  ;;  %v4602_v29 = vrot.slane %v3735_v26, 2  ;;  %v20133_v21 = vunpack.i.l.bf16 %v16372_v20 }
 0x498   : > { %v16610_v5 = vpack.i.bf16 %v6469_v30, %v6467_v61  ;;  %v20134_v6 = vunpack.i.h.bf16 %v16372_v20  ;;  %v9734_v1 = vunpack.i.l.bf16 %v9733_v4  ;;  %v16621_v31 = vadd.f32 %v16192_v22, %v4395_v49  ;;  %v4398_v20 = vpop.f32.mrf.mxu2  ;;  %v20139_v30 = vld [vmem:[#allocation232_spill] sm:$0xff] }
 0x499   : > { %v7380_v58 = vsel %vm2821_vm6, %v7348_v48, %v20133_v21  ;;  %v4603_v27 = vrot.slane %v3738_v37, 2  ;;  %v4991_v13 = vadd.f32 %v16490_v44, %v16439_v0  ;;  %v5305_v26 = vadd.f32 %v16470_v45, %v16490_v44  ;;  %v16639_v37 = vpop.f32.mrf.mxu0 }
 0x49a   : > { %v7381_v50 = vsel %vm2821_vm6, %v7349_v17, %v20134_v6  ;;  %9887 = vrot.lane.b32.xlu1 %v16610_v5, %s10270_s13  ;;  %9907 = vrot.lane.b32.xlu2 %v16610_v5, %s10267_s10  ;;  %v9740_v28 = vunpack.i.h.bf16 %v9738_v52  ;;  %v9739_v4 = vunpack.i.l.bf16 %v9738_v52  ;;  %v3563_v48 = vadd.f32 %v16110_v7, %v16502_v15 }
 0x49b   : > { %v4604_v23 = vsel %vm886_vm3, %v4602_v29, %v4603_v27  ;;  %v7412_v49 = vsel %vm2894_vm7, %v7380_v58, %v9734_v1  ;;  %v7413_v17 = vsel %vm2894_vm7, %v7381_v50, %v9735_v19  ;;  %v6545_v0 = vrot.slane %v16582_v54, 2  ;;  %v9788_v29 = vpop.permute.xlu2 %9787 }
 0x49c   : > { %v6546_v45 = vrot.slane %v16569_v9, 2  ;;  %v6548_v44 = vrot.slane %v16554_v25, 2  ;;  %v16643_v52 = vsel %vm4459_vm0, %v4604_v23, 0.0  ;;  %v5189_v15 = vadd.f32 %v16498_v40, %v4991_v13  ;;  %v9753_v13 = vpop.permute.xlu1 %9752 }
 0x49d   : > { %v5367_v1 = vadd.f32 %v5305_v26, %v16498_v40  ;;  %v3740_v19 = vadd.f32 %v16474_v24, %v3563_v48  ;;  %v7444_v21 = vsel %vm2967_vm8, %v7412_v49, %v9739_v4  ;;  %v7445_v25 = vsel %vm2967_vm8, %v7413_v17, %v9740_v28  ;;  %v16660_v26 = vpop.f32.mrf.mxu1 }
 0x49e   : > { %9897 = vrot.lane.b32.xlu0 %v16443_v60, %s10265_s8  ;;  %v16653_v58 = vadd.f32 %v16192_v22, %v4398_v20  ;;  %v5368_v50 = vadd.f32 %v16535_v47, %v16526_v34  ;;  %v5369_v40 = vadd.f32 %v16538_v39, %v16482_v2  ;;  %v5899_v24 = vrot.slane %v16574_v62, 5  ;;  %v9748_v47 = vpop.permute.xlu0 %9747 }
 0x49f   : > { %v4605_v6 = vrot.slane %v3740_v19, 2  ;;  %v4876_v60 = vrot.slane %v16643_v52, 1  ;;  %v16664_v23 = vsel %vm886_vm3, %v6545_v0, %v6546_v45  ;;  %v16667_v20 = vsel %vm886_vm3, %v6546_v45, %v6548_v44 }
 0x4a0   : > { %20135 = vst [vmem:[#allocation237_spill] sm:$0xff] %v16664_v23  ;;  %v9790_v28 = vunpack.i.h.bf16 %v9788_v29  ;;  %v16671_v34 = vadd.f32 %v5189_v15, %v16643_v52  ;;  %v9789_v2 = vunpack.i.l.bf16 %v9788_v29  ;;  %v5901_v39 = vsel %vm5848_vm10, %v5899_v24, %v5900_v41  ;;  %v4400_v44 = vpop.f32.mrf.mxu2  ;;  %v20138_v15 = vld [vmem:[#allocation74_spill] sm:$0xff] }
 0x4a1   : > { %20136 = vst [vmem:[#allocation235_spill] sm:$0xff] %v16667_v20  ;;  %v16679_v62 = vsel %vm886_vm3, %v4603_v27, %v4605_v6  ;;  %vm20137_vm15 = vcmp.lt.s32.totalorder %v19884_v43, 18  ;;  %v9755_v49 = vunpack.i.h.bf16 %v9753_v13  ;;  %v6023_v17 = vadd.f32 %v5899_v24, %v16248_v56 }
 0x4a2   : > { %9902 = vrot.lane.b32.xlu1 %v16589_v46, %s10266_s9  ;;  %v4738_v48 = vsel %vm20137_vm15, %v4605_v6, 0.0  ;;  %v16685_v0 = vadd.f32 %v5367_v1, %v16643_v52  ;;  %v16689_v46 = vpack.i.bf16 %v16667_v20, %v16664_v23  ;;  %v9754_v45 = vunpack.i.l.bf16 %v9753_v13  ;;  %vm20145_vm15 = vmmov %vm20128_vm13 }
 0x4a3   : > { %v5903_v27 = vsel %vm5848_vm10, %v5900_v41, %v5902_v3  ;;  %v16698_v19 = vsel %vm2675_vm4, %v20138_v15, %v9790_v28  ;;  %v9750_v56 = vunpack.i.h.bf16 %v9748_v47  ;;  %v9749_v29 = vunpack.i.l.bf16 %v9748_v47  ;;  %v20140_v41 = vld [vmem:[#allocation54_spill] sm:$0xff]  ;;  %v16718_v47 = vpop.f32.mrf.mxu0 }
 0x4a4   : > { %v6024_v1 = vadd.f32 %v5901_v39, %v16422_v32  ;;  %v4877_v6 = vrot.slane %v16679_v62, 1  ;;  %v4879_v24 = vrot.slane %v4738_v48, 1  ;;  %v16704_v13 = vsel %vm2675_vm4, %v20139_v30, %v9789_v2  ;;  %8226 = vmatmul.msk.bf16.gmra.mxu1 %vm2675_vm4, %v20094_v12  ;;  %v20141_v2 = vld [vmem:[#allocation40_spill] sm:$0xff] }
 0x4a5   : > { %v16707_v11 = vadd.f32 %v16192_v22, %v4400_v44  ;;  %v5423_v51 = vadd.f32 %v5369_v40, %v4738_v48  ;;  %v16715_v32 = vsel %vm2675_vm4, %v20140_v41, %v9755_v49  ;;  %v6025_v3 = vadd.f32 %v5903_v27, %v16435_v18  ;;  %v16730_v41 = vpop.f32.mrf.mxu1 }
 0x4a6   : > { %9912 = vrot.lane.b32.xlu0 %v16689_v46, %s10268_s11  ;;  %v6077_v28 = vmax.f32 %v6023_v17, 0.0  ;;  %v7318_v39 = vsel %vm2675_vm4, %v20141_v2, %v9754_v45  ;;  %v6078_v44 = vmax.f32 %v6024_v1, 0.0  ;;  %v16723_v15 = vrot.slane %v4738_v48, 2 }
 0x4a7   : > { %v5244_v40 = vadd.f32 %v16542_v53, %v16679_v62  ;;  %v6079_v61 = vmax.f32 %v6025_v3, 0.0  ;;  %v4880_v49 = vsel %vm717_vm2, %v4877_v6, %v4879_v24  ;;  %v5245_v18 = vadd.f32 %v16545_v36, %v4738_v48 }
 0x4a8   : > { %v6224_v4 = vrot.slane %v6077_v28, 3  ;;  %v5422_v17 = vadd.f32 %v5368_v50, %v16679_v62  ;;  %v6225_v27 = vrot.slane %v6078_v44, 3  ;;  %v5488_v30 = vadd.f32 %v5423_v51, %v4879_v24 }
 0x4a9   : > { %v6227_v16 = vrot.slane %v6079_v61, 3  ;;  %v20142_v45 = vunpack.i.l.bf16 %v16454_v35  ;;  %v20143_v2 = vunpack.i.h.bf16 %v16454_v35  ;;  %v3566_v36 = vadd.f32 %v16110_v7, %v16571_v14 }
 0x4aa   : > { %v6226_v3 = vsel %vm6173_vm14, %v6224_v4, %v6225_v27  ;;  %v4878_v51 = vsel %vm717_vm2, %v4876_v60, %v4877_v6  ;;  %v16763_v6 = vadd.f32 %v4880_v49, %v16679_v62  ;;  %v16765_v44 = vadd.f32 %v4879_v24, %v4738_v48 }
 0x4ab   : > { %v7476_v1 = vsel %vm20125_vm9, %v7444_v21, %v20142_v45  ;;  %v7477_v53 = vsel %vm20144_vm1, %v7445_v25, %v20143_v2  ;;  %v16745_v61 = vsel %vm6173_vm14, %v6225_v27, %v6227_v16  ;;  %v16749_v21 = vsel %vm6101_vm12, %v6226_v3, 0.0  ;;  %v16770_v27 = vpop.permute.xlu2 %9802 }
 0x4ac   : > { %v7508_v50 = vsel %vm20128_vm13, %v7476_v1, %v9749_v29  ;;  %v7509_v28 = vsel %vm20145_vm15, %v7477_v53, %v9750_v56  ;;  %v16753_v35 = vsel %vm6112_vm11, %v6227_v16, 0.0  ;;  %v16757_v14 = vpack.i.bf16 %v16745_v61, %v16749_v21  ;;  %v9763_v56 = vpop.permute.xlu0 %9762  ;;  %v4403_v29 = vpop.f32.mrf.mxu2  ;;  %vm20156_vm13 = vmmov %vm20144_vm1 }
 0x4ad   : > { %v6470_v25 = vrot.slane %v16749_v21, 1  ;;  %v6471_v4 = vrot.slane %v16745_v61, 1  ;;  %v6473_v60 = vrot.slane %v16753_v35, 1  ;;  %v5550_v16 = vadd.f32 %v5488_v30, %v16723_v15  ;;  %v9768_v53 = vpop.permute.xlu1 %9767 }
 0x4ae   : > { %9927 = vrot.lane.b32.xlu0 %v16610_v5, %s10264_s27  ;;  %v7540_v45 = vpack.c.bf16 %v7509_v28, %v7508_v50  ;;  %v16772_v1 = vadd.f32 %v5244_v40, %v4880_v49  ;;  %9917 = vrot.lane.b32.xlu1 %v16757_v14, %s10269_s12  ;;  %v3743_v2 = vadd.f32 %v16533_v10, %v3566_v36  ;;  %v9765_v5 = vunpack.i.h.bf16 %v9763_v56  ;;  %v16782_v50 = vpop.f32.mrf.mxu0 }
 0x4af   : > { %v6472_v3 = vsel %vm717_vm2, %v6470_v25, %v6471_v4  ;;  %v6474_v48 = vsel %vm717_vm2, %v6471_v4, %v6473_v60  ;;  %v5310_v20 = vadd.f32 %v5245_v18, %v4879_v24  ;;  %v5486_v30 = vadd.f32 %v16685_v0, %v4878_v51 }
 0x4b0   : > { %v16780_v23 = vpack.i.bf16 %v6474_v48, %v6472_v3  ;;  %7713 = vmatmul.bf16.gmra.mxu3 %v7540_v45  ;;  %v5487_v40 = vadd.f32 %v5422_v17, %v4880_v49  ;;  %v9764_v54 = vunpack.i.l.bf16 %v9763_v56  ;;  %v3568_v10 = vadd.f32 %v16110_v7, %v16639_v37  ;;  %v16801_v56 = vpop.f32.mrf.mxu1 }
 0x4b1   : > { %v16788_v36 = vmul.f32 %v14907_v55, %v5550_v16  ;;  %v9770_v18 = vunpack.i.h.bf16 %v9768_v53  ;;  %v9769_v0 = vunpack.i.l.bf16 %v9768_v53  ;;  %v4607_v25 = vrot.slane %v3743_v2, 2 }
 0x4b2   : > { %9922 = vrot.lane.b32.xlu2 %v16780_v23, %s10270_s13  ;;  %v20146_v4 = vunpack.i.l.bf16 %v16511_v33  ;;  %v20147_v17 = vunpack.i.h.bf16 %v16511_v33  ;;  %v3745_v60 = vadd.f32 %v16599_v63, %v3568_v10  ;;  %v3571_v45 = vadd.f32 %v16110_v7, %v16718_v47 }
 0x4b3   : > { %v4994_v3 = vadd.f32 %v4878_v51, %v16643_v52  ;;  %v6551_v33 = vrot.slane %v16745_v61, 2  ;;  %v6553_v63 = vrot.slane %v16753_v35, 2  ;;  %v20148_v7 = vrot.slane %v16679_v62, 2 }
 0x4b4   : > { %v7350_v49 = vsel %vm2748_vm5, %v7318_v39, %v20146_v4  ;;  %v7351_v37 = vsel %vm2748_vm5, %v16715_v32, %v20147_v17  ;;  %v4608_v53 = vrot.slane %v3745_v60, 2  ;;  %v6550_v39 = vrot.slane %v16749_v21, 2  ;;  %8227 = vmatmul.msk.bf16.gmra.mxu1 %vm2675_vm4, %v20094_v12 }
 0x4b5   : > { %v7383_v16 = vsel %vm2821_vm6, %v7351_v37, %v9765_v5  ;;  %v7382_v2 = vsel %vm2821_vm6, %v7350_v49, %v9764_v54  ;;  %v3748_v32 = vadd.f32 %v16660_v26, %v3571_v45  ;;  %v5078_v54 = vsel %vm886_vm3, %v20148_v7, %v16723_v15  ;;  %v4405_v26 = vpop.f32.mrf.mxu2 }
 0x4b6   : > { %9942 = vrot.lane.b32.xlu0 %v16780_v23, %s10267_s10  ;;  %v5907_v47 = vrot.slane %v16788_v36, 5  ;;  %v16822_v48 = vadd.f32 %v16192_v22, %v4403_v29  ;;  %9932 = vrot.lane.b32.xlu1 %v16689_v46, %s10265_s8  ;;  %v20149_v5 = vmov %v20148_v7  ;;  %v20150_v10 = vrot.slane %v16643_v52, 2  ;;  %v16833_v36 = vpop.f32.mrf.mxu0 }
 0x4b7   : > { %v5549_v4 = vadd.f32 %v5487_v40, %v5078_v54  ;;  %v4609_v49 = vsel %vm886_vm3, %v4607_v25, %v4608_v53  ;;  %v5308_v17 = vadd.f32 %v16671_v34, %v4878_v51  ;;  %v4610_v37 = vrot.slane %v3748_v32, 2 }
 0x4b8   : > { %v5076_v35 = vsel %vm886_vm3, %v20150_v10, %v20149_v5  ;;  %v16836_v29 = vsel %vm2894_vm7, %v7383_v16, %v9770_v18  ;;  %v16839_v46 = vsel %vm2894_vm7, %v7382_v2, %v9769_v0  ;;  %v16842_v52 = vadd.f32 %v16192_v22, %v4405_v26  ;;  %v16855_v0 = vpop.permute.xlu0 %9777  ;;  %v8348_v16 = vld [vmem:[%s18294_s5 + $0x40] sm:$0xff]  ;;  %v16881_v10 = vpop.permute.xlu2 %9817 }
 0x4b9   : > { %v5192_v62 = vadd.f32 %v5076_v35, %v4994_v3  ;;  %v16847_v40 = vsel %vm886_vm3, %v6550_v39, %v6551_v33  ;;  %v16850_v34 = vsel %vm886_vm3, %v6551_v33, %v6553_v63  ;;  %v4611_v51 = vsel %vm886_vm3, %v4608_v53, %v4610_v37  ;;  %v16869_v39 = vpop.f32.mrf.mxu1  ;;  %7786 = vmatpush.bf16.msrb.mxu3 %v8348_v16 }
 0x4ba   : > { %9937 = vrot.lane.b32.xlu2 %v16757_v14, %s10266_s9  ;;  %20151 = vst [vmem:[#allocation72_spill] sm:$0xff] %v16847_v40  ;;  %vm20153_vm9 = vcmp.lt.s32.totalorder %v19884_v43, 18  ;;  %v16859_v22 = vsel %vm4459_vm0, %v4609_v49, 0.0  ;;  %v4882_v25 = vrot.slane %v4611_v51, 1  ;;  %v5774_v14 = vmul.f32 %v15066_v59, %v5549_v4 }
 0x4bb   : > { %20152 = vst [vmem:[#allocation8_spill] sm:$0xff] %v16850_v34  ;;  %v4741_v18 = vsel %vm20153_vm9, %v4610_v37, 0.0  ;;  %v5370_v45 = vadd.f32 %v5308_v17, %v5076_v35  ;;  %v5548_v2 = vadd.f32 %v5486_v30, %v5076_v35  ;;  %v5371_v53 = vadd.f32 %v16772_v1, %v5078_v54  ;;  %v9783_v17 = vpop.permute.xlu1 %9782  ;;  %vm20157_vm9 = vmmov %vm20145_vm15 }
 0x4bc   : > { %v16861_v60 = vrot.slane %v4741_v18, 1  ;;  %v5372_v3 = vadd.f32 %v5310_v20, %v16723_v15  ;;  %v16873_v33 = vpack.i.bf16 %v16850_v34, %v16847_v40  ;;  %v5193_v63 = vadd.f32 %v5078_v54, %v16763_v6 }
 0x4bd   : > { %v5194_v32 = vadd.f32 %v16723_v15, %v16765_v44  ;;  %v9780_v7 = vunpack.i.h.bf16 %v16855_v0  ;;  %v4881_v30 = vrot.slane %v16859_v22, 1  ;;  %v5425_v5 = vadd.f32 %v5371_v53, %v4611_v51  ;;  %v16898_v53 = vpop.f32.mrf.mxu2 }
 0x4be   : > { %v5426_v1 = vadd.f32 %v5372_v3, %v4741_v18  ;;  %v9779_v20 = vunpack.i.l.bf16 %v16855_v0  ;;  %9947 = vrot.lane.b32.xlu1 %v16873_v33, %s10268_s11  ;;  %v4885_v6 = vsel %vm717_vm2, %v4882_v25, %v16861_v60  ;;  %v5080_v54 = vrot.slane %v4611_v51, 2 }
 0x4bf   : > { %v16887_v35 = vrot.slane %v4741_v18, 2  ;;  %v5905_v15 = vrot.slane %v5774_v14, 5  ;;  %v5079_v44 = vrot.slane %v16859_v22, 2  ;;  %v16891_v26 = vadd.f32 %v5192_v62, %v16859_v22  ;;  %v16901_v14 = vpop.f32.mrf.mxu0 }
 0x4c0   : > { %v5424_v4 = vadd.f32 %v5370_v45, %v16859_v22  ;;  %v5247_v49 = vadd.f32 %v5193_v63, %v4611_v51  ;;  %v16895_v37 = vsel %vm717_vm2, %v4881_v30, %v4882_v25  ;;  %v5248_v0 = vadd.f32 %v5194_v32, %v4741_v18 }
 0x4c1   : > { %v5773_v3 = vmul.f32 %v15074_v8, %v5548_v2  ;;  %v16904_v28 = vadd.f32 %v16861_v60, %v4741_v18  ;;  %v5490_v62 = vadd.f32 %v5425_v5, %v4885_v6  ;;  %v5491_v45 = vadd.f32 %v5426_v1, %v16861_v60 }
 0x4c2   : > { %v5908_v63 = vsel %vm5848_vm10, %v5905_v15, %v5907_v47  ;;  %v16908_v24 = vadd.f32 %v4885_v6, %v4611_v51  ;;  %v16911_v25 = vsel %vm886_vm3, %v5079_v44, %v5080_v54  ;;  %v16915_v32 = vsel %vm886_vm3, %v5080_v54, %v16887_v35 }
 0x4c3   : > { %v5904_v2 = vrot.slane %v5773_v3, 5  ;;  %v16917_v30 = vadd.f32 %v5247_v49, %v4885_v6  ;;  %v5489_v18 = vadd.f32 %v5424_v4, %v16895_v37  ;;  %v9785_v16 = vunpack.i.h.bf16 %v9783_v17  ;;  %v9793_v3 = vpop.permute.xlu0 %9792  ;;  %v16928_v4 = vpop.f32.mrf.mxu1 }
 0x4c4   : > { %v6028_v5 = vadd.f32 %v5908_v63, %v16653_v58  ;;  %v9784_v1 = vunpack.i.l.bf16 %v9783_v17  ;;  %8228 = vmatmul.msk.bf16.gmra.mxu1 %vm2675_vm4, %v20094_v12  ;;  %v5552_v44 = vadd.f32 %v5490_v62, %v16915_v32  ;;  %v5553_v54 = vadd.f32 %v5491_v45, %v16887_v35 }
 0x4c5   : > { %v5906_v47 = vsel %vm5848_vm10, %v5904_v2, %v5905_v15  ;;  %v6026_v51 = vadd.f32 %v5904_v2, %v16578_v38  ;;  %v16935_v38 = vld [vmem:[%s18291_s2] ss:$0 sm:$0xff]  ;;  %v20154_v15 = vunpack.i.l.bf16 %v16585_v57  ;;  %v20155_v17 = vunpack.i.h.bf16 %v16585_v57 }
 0x4c6   : > { %v6027_v6 = vadd.f32 %v5906_v47, %v16621_v31  ;;  %v6082_v49 = vmax.f32 %v6028_v5, 0.0  ;;  %9962 = vrot.lane.b32.xlu1 %v16780_v23, %s10264_s27  ;;  %v3573_v58 = vadd.f32 %v16935_v38, %v16782_v50  ;;  %v16950_v5 = vadd.f32 %v5248_v0, %v16861_v60  ;;  %v4410_v0 = vpop.f32.mrf.mxu2 }
 0x4c7   : > { %v6080_v34 = vmax.f32 %v6026_v51, 0.0  ;;  %v7446_v31 = vsel %vm2967_vm8, %v16839_v46, %v20154_v15  ;;  %v7447_v62 = vsel %vm2967_vm8, %v16836_v29, %v20155_v17  ;;  %v5551_v46 = vadd.f32 %v5489_v18, %v16911_v25 }
 0x4c8   : > { %v6081_v45 = vmax.f32 %v6027_v6, 0.0  ;;  %v6232_v23 = vrot.slane %v6082_v49, 3  ;;  %v7478_v63 = vsel %vm20144_vm1, %v7446_v31, %v9779_v20  ;;  %v7479_v2 = vsel %vm20156_vm13, %v7447_v62, %v9780_v7  ;;  %v9798_v49 = vpop.permute.xlu1 %9797 }
 0x4c9   : > { %v6229_v50 = vrot.slane %v6080_v34, 3  ;;  %v7510_v47 = vsel %vm20145_vm15, %v7478_v63, %v9784_v1  ;;  %v7511_v51 = vsel %vm20157_vm9, %v7479_v2, %v9785_v16  ;;  %v16960_v20 = vmul.f32 %v15066_v59, %v5552_v44  ;;  %v16966_v16 = vpop.f32.mrf.mxu0  ;;  %v16985_v63 = vpop.permute.xlu2 %9832  ;;  %vm20167_vm15 = vmmov %vm20156_vm13 }
 0x4ca   : > { %v6230_v57 = vrot.slane %v6081_v45, 3  ;;  %v16957_v29 = vsel %vm6112_vm11, %v6232_v23, 0.0  ;;  %v7542_v6 = vpack.c.bf16 %v7511_v51, %v7510_v47  ;;  %v16963_v60 = vmul.f32 %v14907_v55, %v5553_v54 }
 0x4cb   : > { %v9795_v34 = vunpack.i.h.bf16 %v9793_v3  ;;  %v6478_v7 = vrot.slane %v16957_v29, 1  ;;  %v3750_v15 = vadd.f32 %v16730_v41, %v3573_v58  ;;  %v3576_v44 = vadd.f32 %v16935_v38, %v16833_v36  ;;  %v17002_v51 = vpop.f32.mrf.mxu1 }
 0x4cc   : > { %v6231_v18 = vsel %vm6173_vm14, %v6229_v50, %v6230_v57  ;;  %v16970_v1 = vsel %vm6173_vm14, %v6230_v57, %v6232_v23  ;;  %7718 = vmatmul.bf16.gmra.mxu3 %v7542_v6  ;;  %v9794_v31 = vunpack.i.l.bf16 %v9793_v3  ;;  %v9800_v62 = vunpack.i.h.bf16 %v9798_v49  ;;  %v16995_v3 = vld [vmem:[%s18293_s4] ss:$0 sm:$0xff] }
 0x4cd   : > { %20158 = vst [vmem:[#allocation70_spill] sm:$0xff] %v16970_v1  ;;  %v16977_v54 = vsel %vm6101_vm12, %v6231_v18, 0.0  ;;  %v6476_v17 = vrot.slane %v16970_v1, 1  ;;  %v9799_v41 = vunpack.i.l.bf16 %v9798_v49  ;;  %v3753_v58 = vadd.f32 %v16801_v56, %v3576_v44  ;;  %v9808_v49 = vpop.permute.xlu0 %9807 }
 0x4ce   : > { %20159 = vst [vmem:[#allocation106_spill] sm:$0xff] %v16977_v54  ;;  %v16982_v45 = vpack.i.bf16 %v16970_v1, %v16977_v54  ;;  %v6475_v23 = vrot.slane %v16977_v54, 1  ;;  %v16989_v36 = vmul.f32 %v15074_v8, %v5551_v46  ;;  %v16999_v50 = vadd.f32 %v16995_v3, %v16898_v53 }
 0x4cf   : > { %v6479_v47 = vsel %vm717_vm2, %v6476_v17, %v6478_v7  ;;  %v7353_v46 = vsel %vm2748_vm5, %v16698_v19, %v9795_v34  ;;  %v4613_v6 = vrot.slane %v3753_v58, 2  ;;  %v4612_v18 = vrot.slane %v3750_v15, 2 }
 0x4d0   : > { %9952 = vrot.lane.b32.xlu2 %v16982_v45, %s10269_s12  ;;  %v6477_v57 = vsel %vm717_vm2, %v6475_v23, %v6476_v17  ;;  %v7352_v53 = vsel %vm2748_vm5, %v16704_v13, %v9794_v31  ;;  %v5912_v7 = vrot.slane %v16963_v60, 5  ;;  %v7385_v56 = vsel %vm2821_vm6, %v7353_v46, %v9800_v62 }
 0x4d1   : > { %v17012_v44 = vpack.i.bf16 %v6479_v47, %v6477_v57  ;;  %v7384_v2 = vsel %vm2821_vm6, %v7352_v53, %v9799_v41  ;;  %v4997_v12 = vadd.f32 %v16895_v37, %v16859_v22  ;;  %v4614_v19 = vsel %vm886_vm3, %v4612_v18, %v4613_v6  ;;  %v4413_v41 = vpop.f32.mrf.mxu2 }
 0x4d2   : > { %v5311_v13 = vadd.f32 %v16891_v26, %v16895_v37  ;;  %v9810_v34 = vunpack.i.h.bf16 %v9808_v49  ;;  %v9809_v60 = vunpack.i.l.bf16 %v9808_v49  ;;  %v6555_v31 = vrot.slane %v16977_v54, 2  ;;  %v17036_v26 = vpop.f32.mrf.mxu0  ;;  %v17049_v49 = vpop.permute.xlu2 %9847 }
 0x4d3   : > { %9957 = vrot.lane.b32.xlu0 %v17012_v44, %s10270_s13  ;;  %9977 = vrot.lane.b32.xlu1 %v17012_v44, %s10267_s10  ;;  %v6556_v17 = vrot.slane %v16970_v1, 2  ;;  %v6558_v22 = vrot.slane %v16957_v29, 2  ;;  %v17032_v23 = vadd.f32 %v16995_v3, %v4410_v0  ;;  %v3578_v58 = vadd.f32 %v16935_v38, %v16901_v14 }
 0x4d4   : > { %v17040_v37 = vsel %vm4459_vm0, %v4614_v19, 0.0  ;;  %v5195_v47 = vadd.f32 %v16911_v25, %v4997_v12  ;;  %v20160_v46 = vunpack.i.l.bf16 %v16770_v27  ;;  %v20161_v57 = vunpack.i.h.bf16 %v16770_v27 }
 0x4d5   : > { %v5373_v14 = vadd.f32 %v5311_v13, %v16911_v25  ;;  %v3755_v19 = vadd.f32 %v16869_v39, %v3578_v58  ;;  %v17058_v12 = vadd.f32 %v16995_v3, %v4413_v41  ;;  %v17061_v27 = vsel %vm886_vm3, %v6555_v31, %v6556_v17  ;;  %v17066_v25 = vpop.f32.mrf.mxu1 }
 0x4d6   : > { %v7416_v29 = vsel %vm2894_vm7, %v7384_v2, %v20160_v46  ;;  %v7417_v0 = vsel %vm2894_vm7, %v7385_v56, %v20161_v57  ;;  %20162 = vst [vmem:[#allocation85_spill] sm:$0xff] %v17061_v27  ;;  %v17064_v2 = vsel %vm886_vm3, %v6556_v17, %v6558_v22  ;;  %v9813_v56 = vpop.permute.xlu1 %9812  ;;  %v4886_v13 = vrot.slane %v17040_v37, 1  ;;  %v9823_v57 = vpop.permute.xlu0 %9822 }
 0x4d7   : > { %v7448_v18 = vsel %vm2967_vm8, %v7416_v29, %v9809_v60  ;;  %v7449_v53 = vsel %vm2967_vm8, %v7417_v0, %v9810_v34  ;;  %20163 = vst [vmem:[#allocation104_spill] sm:$0xff] %v17064_v2  ;;  %v5084_v34 = vrot.slane %v17040_v37, 2  ;;  %v4615_v39 = vrot.slane %v3755_v19, 2 }
 0x4d8   : > { %9967 = vrot.lane.b32.xlu2 %v16873_v33, %s10265_s8  ;;  %v5909_v60 = vrot.slane %v16989_v36, 5  ;;  %v17072_v33 = vadd.f32 %v5195_v47, %v17040_v37  ;;  %v5427_v41 = vadd.f32 %v5373_v14, %v17040_v37  ;;  %v5196_v31 = vadd.f32 %v16915_v32, %v16908_v24 }
 0x4d9   : > { %v20164_v17 = vrot.slane %v16960_v20, 5  ;;  %v17084_v58 = vpack.i.bf16 %v17064_v2, %v17061_v27  ;;  %v17087_v36 = vsel %vm886_vm3, %v4613_v6, %v4615_v39  ;;  %vm20165_vm1 = vcmp.lt.s32.totalorder %v19884_v43, 18 }
 0x4da   : > { %v4744_v47 = vsel %vm20165_vm1, %v4615_v39, 0.0  ;;  %v9814_v46 = vunpack.i.l.bf16 %v9813_v56  ;;  %v4887_v24 = vrot.slane %v17087_v36, 1  ;;  %v9815_v0 = vunpack.i.h.bf16 %v9813_v56  ;;  %v4415_v56 = vpop.f32.mrf.mxu2  ;;  %vm20170_vm1 = vmmov %vm20157_vm9 }
 0x4db   : > { %v5913_v22 = vsel %vm5848_vm10, %v20164_v17, %v5912_v7  ;;  %9972 = vrot.lane.b32.xlu0 %v16982_v45, %s10266_s9  ;;  %v17092_v29 = vrot.slane %v4744_v47, 1  ;;  %v5197_v7 = vadd.f32 %v16887_v35, %v16904_v28  ;;  %v5374_v45 = vadd.f32 %v16917_v30, %v16915_v32 }
 0x4dc   : > { %v20166_v14 = vmov %v20164_v17  ;;  %v6029_v19 = vadd.f32 %v5909_v60, %v16707_v11  ;;  %v6031_v39 = vadd.f32 %v5913_v22, %v16842_v52  ;;  %v5375_v17 = vadd.f32 %v16950_v5, %v16887_v35  ;;  %v17111_v11 = vpop.f32.mrf.mxu0  ;;  %v17122_v22 = vpop.permute.xlu2 %9862 }
 0x4dd   : > { %v5911_v6 = vsel %vm5848_vm10, %v5909_v60, %v20166_v14  ;;  %v5428_v15 = vadd.f32 %v5374_v45, %v17087_v36  ;;  %v4890_v32 = vsel %vm717_vm2, %v4887_v24, %v17092_v29  ;;  %v9825_v30 = vunpack.i.h.bf16 %v9823_v57  ;;  %v17131_v27 = vpop.f32.mrf.mxu1 }
 0x4de   : > { %v9824_v20 = vunpack.i.l.bf16 %v9823_v57  ;;  %v7480_v14 = vsel %vm20156_vm13, %v7448_v18, %v9814_v46  ;;  %v17116_v52 = vsel %vm717_vm2, %v4886_v13, %v4887_v24  ;;  %v5085_v35 = vrot.slane %v17087_v36, 2 }
 0x4df   : > { %v17119_v5 = vrot.slane %v4744_v47, 2  ;;  %v6030_v60 = vadd.f32 %v5911_v6, %v16822_v48  ;;  %v5429_v45 = vadd.f32 %v5375_v17, %v4744_v47  ;;  %v6083_v57 = vmax.f32 %v6029_v19, 0.0  ;;  %v20172_v17 = vld [vmem:[#allocation73_spill] sm:$0xff] }
 0x4e0   : > { %9982 = vrot.lane.b32.xlu2 %v17084_v58, %s10268_s11  ;;  %v6085_v28 = vmax.f32 %v6031_v39, 0.0  ;;  %v7481_v18 = vsel %vm20167_vm15, %v7449_v53, %v9815_v0  ;;  %v5493_v46 = vadd.f32 %v5428_v15, %v4890_v32  ;;  %v17126_v62 = vadd.f32 %v16995_v3, %v4415_v56  ;;  %v9828_v53 = vpop.permute.xlu1 %9827  ;;  %v20171_v15 = vld [vmem:[#allocation162_spill] sm:$0xff] }
 0x4e1   : > { %v6084_v2 = vmax.f32 %v6030_v60, 0.0  ;;  %v20168_v13 = vunpack.i.l.bf16 %v16881_v10  ;;  %v5492_v48 = vadd.f32 %v5427_v41, %v17116_v52  ;;  %v6234_v6 = vrot.slane %v6083_v57, 3 }
 0x4e2   : > { %v6237_v40 = vrot.slane %v6085_v28, 3  ;;  %v20169_v19 = vunpack.i.h.bf16 %v16881_v10  ;;  %v7323_v0 = vsel %vm2675_vm4, %v20171_v15, %v9825_v30  ;;  %v7322_v56 = vsel %vm2675_vm4, %v20172_v17, %v9824_v20 }
 0x4e3   : > { %v7512_v24 = vsel %vm20157_vm9, %v7480_v14, %v20168_v13  ;;  %v6235_v60 = vrot.slane %v6084_v2, 3  ;;  %v17142_v14 = vsel %vm886_vm3, %v5084_v34, %v5085_v35  ;;  %v17146_v41 = vsel %vm886_vm3, %v5085_v35, %v17119_v5  ;;  %vm20187_vm9 = vmmov %vm20167_vm15 }
 0x4e4   : > { %v7513_v39 = vsel %vm20170_vm1, %v7481_v18, %v20169_v19  ;;  %v5494_v28 = vadd.f32 %v5429_v45, %v17092_v29  ;;  %v5555_v57 = vadd.f32 %v5493_v46, %v17146_v41  ;;  %v3581_v2 = vadd.f32 %v16935_v38, %v16966_v16  ;;  %v17178_v19 = vpop.f32.mrf.mxu0  ;;  %v17190_v15 = vpop.permute.xlu2 %9877 }
 0x4e5   : > { %v7544_v10 = vpack.c.bf16 %v7513_v39, %v7512_v24  ;;  %v6236_v18 = vsel %vm6173_vm14, %v6234_v6, %v6235_v60  ;;  %v17152_v30 = vsel %vm6173_vm14, %v6235_v60, %v6237_v40  ;;  %v5250_v34 = vadd.f32 %v5196_v31, %v17087_v36 }
 0x4e6   : > { %20173 = vst [vmem:[#allocation236_spill] sm:$0xff] %v17152_v30  ;;  %v5251_v20 = vadd.f32 %v5197_v7, %v4744_v47  ;;  %v5554_v13 = vadd.f32 %v5492_v48, %v17142_v14  ;;  %v17160_v35 = vsel %vm6101_vm12, %v6236_v18, 0.0  ;;  %v9830_v46 = vunpack.i.h.bf16 %v9828_v53  ;;  %v9838_v18 = vpop.permute.xlu0 %9837 }
 0x4e7   : > { %20174 = vst [vmem:[#allocation127_spill] sm:$0xff] %v17160_v35  ;;  %7723 = vmatmul.bf16.gmra.mxu3 %v7544_v10  ;;  %v17166_v45 = vpack.i.bf16 %v17152_v30, %v17160_v35  ;;  %v9829_v24 = vunpack.i.l.bf16 %v9828_v53  ;;  %v17170_v16 = vsel %vm6112_vm11, %v6237_v40, 0.0  ;;  %v17173_v31 = vadd.f32 %v17092_v29, %v4744_v47 }
 0x4e8   : > { %9997 = vrot.lane.b32.xlu2 %v17012_v44, %s10264_s27  ;;  %v5556_v7 = vadd.f32 %v5494_v28, %v17119_v5  ;;  %v6480_v48 = vrot.slane %v17160_v35, 1  ;;  %v6481_v6 = vrot.slane %v17152_v30, 1  ;;  %v4418_v44 = vpop.f32.mrf.mxu2  ;;  %v17181_v39 = vadd.f32 %v4890_v32, %v17087_v36 }
 0x4e9   : > { %v17184_v53 = vmul.f32 %v15066_v59, %v5555_v57  ;;  %9987 = vrot.lane.b32.xlu0 %v17166_v45, %s10269_s12  ;;  %v3758_v40 = vadd.f32 %v16928_v4, %v3581_v2  ;;  %v6483_v47 = vrot.slane %v17170_v16, 1  ;;  %v17192_v17 = vadd.f32 %v5250_v34, %v4890_v32  ;;  %v17206_v32 = vpop.f32.mrf.mxu1 }
 0x4ea   : > { %v17195_v60 = vadd.f32 %v5251_v20, %v17092_v29  ;;  %v17198_v36 = vmul.f32 %v15074_v8, %v5554_v13  ;;  %v6482_v28 = vsel %vm717_vm2, %v6480_v48, %v6481_v6  ;;  %v7354_v10 = vsel %vm2748_vm5, %v7322_v56, %v9829_v24  ;;  %v9843_v56 = vpop.permute.xlu1 %9842 }
 0x4eb   : > { %v7355_v57 = vsel %vm2748_vm5, %v7323_v0, %v9830_v46  ;;  %v6484_v4 = vsel %vm717_vm2, %v6481_v6, %v6483_v47  ;;  %v3583_v2 = vadd.f32 %v16935_v38, %v17036_v26  ;;  %v17209_v29 = vmul.f32 %v14907_v55, %v5556_v7 }
 0x4ec   : > { %v17213_v13 = vpack.i.bf16 %v6484_v4, %v6482_v28  ;;  %v4617_v46 = vrot.slane %v3758_v40, 2  ;;  %v9840_v48 = vunpack.i.h.bf16 %v9838_v18  ;;  %v9839_v6 = vunpack.i.l.bf16 %v9838_v18  ;;  %v17236_v4 = vpop.f32.mrf.mxu0 }
 0x4ed   : > { %v3760_v24 = vadd.f32 %v17002_v51, %v3583_v2  ;;  %v20175_v26 = vunpack.i.l.bf16 %v16985_v63  ;;  %v20176_v7 = vunpack.i.h.bf16 %v16985_v63  ;;  %v5000_v51 = vadd.f32 %v17116_v52, %v17040_v37 }
 0x4ee   : > { %9992 = vrot.lane.b32.xlu1 %v17213_v13, %s10270_s13  ;;  %v5314_v40 = vadd.f32 %v17072_v33, %v17116_v52  ;;  %v6560_v18 = vrot.slane %v17160_v35, 2  ;;  %v6563_v63 = vrot.slane %v17170_v16, 2  ;;  %v5917_v2 = vrot.slane %v17209_v29, 5 }
 0x4ef   : > { %v7386_v47 = vsel %vm2821_vm6, %v7354_v10, %v20175_v26  ;;  %v7387_v34 = vsel %vm2821_vm6, %v7355_v57, %v20176_v7  ;;  %v4618_v28 = vrot.slane %v3760_v24, 2  ;;  %v6561_v10 = vrot.slane %v17152_v30, 2 }
 0x4f0   : > { %10012 = vrot.lane.b32.xlu2 %v17213_v13, %s10267_s10  ;;  %v3586_v57 = vadd.f32 %v16935_v38, %v17111_v11  ;;  %v17240_v24 = vadd.f32 %v16995_v3, %v4418_v44  ;;  %v9845_v37 = vunpack.i.h.bf16 %v9843_v56  ;;  %v9844_v33 = vunpack.i.l.bf16 %v9843_v56  ;;  %v4420_v7 = vpop.f32.mrf.mxu2  ;;  %v20181_v44 = vld [vmem:[#allocation164_spill] sm:$0xff] }
 0x4f1   : > { %10002 = vrot.lane.b32.xlu0 %v17084_v58, %s10265_s8  ;;  %v7418_v52 = vsel %vm2894_vm7, %v7386_v47, %v9839_v6  ;;  %v7419_v26 = vsel %vm2894_vm7, %v7387_v34, %v9840_v48  ;;  %v4619_v16 = vsel %vm886_vm3, %v4617_v46, %v4618_v28  ;;  %v5198_v20 = vadd.f32 %v17142_v14, %v5000_v51  ;;  %v9893_v58 = vpop.permute.xlu2 %9892  ;;  %v17252_v35 = vpop.f32.mrf.mxu1 }
 0x4f2   : > { %v3763_v11 = vadd.f32 %v17066_v25, %v3586_v57  ;;  %v5376_v29 = vadd.f32 %v5314_v40, %v17142_v14  ;;  %v17255_v56 = vsel %vm886_vm3, %v6560_v18, %v6561_v10  ;;  %v17258_v34 = vsel %vm886_vm3, %v6561_v10, %v6563_v63  ;;  %v17278_v10 = vpop.permute.xlu1 %9857 }
 0x4f3   : > { %20177 = vst [vmem:[#allocation126_spill] sm:$0xff] %v17255_v56  ;;  %v17262_v25 = vsel %vm4459_vm0, %v4619_v16, 0.0  ;;  %v7450_v14 = vsel %vm2967_vm8, %v7418_v52, %v9844_v33  ;;  %v7451_v48 = vsel %vm2967_vm8, %v7419_v26, %v9845_v37  ;;  %v17267_v6 = vadd.f32 %v16995_v3, %v4420_v7  ;;  %v9853_v37 = vpop.permute.xlu0 %9852 }
 0x4f4   : > { %20178 = vst [vmem:[#allocation161_spill] sm:$0xff] %v17258_v34  ;;  %v4620_v46 = vrot.slane %v3763_v11, 2  ;;  %vm20179_vm13 = vcmp.lt.s32.totalorder %v19884_v43, 18  ;;  %v5199_v40 = vadd.f32 %v17146_v41, %v17181_v39  ;;  %v9895_v18 = vunpack.i.h.bf16 %v9893_v58  ;;  %v17295_v16 = vpop.f32.mrf.mxu0  ;;  %v20180_v11 = vld [vmem:[#allocation163_spill] sm:$0xff] }
 0x4f5   : > { %v17282_v63 = vpack.i.bf16 %v17258_v34, %v17255_v56  ;;  %v5200_v57 = vadd.f32 %v17119_v5, %v17173_v31  ;;  %v4891_v33 = vrot.slane %v17262_v25, 1  ;;  %v17291_v39 = vadd.f32 %v5198_v20, %v17262_v25 }
 0x4f6   : > { %10007 = vrot.lane.b32.xlu1 %v17166_v45, %s10266_s9  ;;  %v17272_v47 = vsel %vm886_vm3, %v4618_v28, %v4620_v46  ;;  %v4747_v51 = vsel %vm20179_vm13, %v4620_v46, 0.0  ;;  %v5377_v45 = vadd.f32 %v17192_v17, %v17146_v41  ;;  %v9894_v28 = vunpack.i.l.bf16 %v9893_v58  ;;  %vm20188_vm13 = vmmov %vm20170_vm1 }
 0x4f7   : > { %v5378_v26 = vadd.f32 %v17195_v60, %v17119_v5  ;;  %v5430_v7 = vadd.f32 %v5376_v29, %v17262_v25  ;;  %v4892_v41 = vrot.slane %v17272_v47, 1  ;;  %v17301_v31 = vrot.slane %v4747_v51, 1 }
 0x4f8   : > { %v9860_v17 = vunpack.i.h.bf16 %v17278_v10  ;;  %v17306_v20 = vsel %vm2675_vm4, %v20180_v11, %v9895_v18  ;;  %v9859_v58 = vunpack.i.l.bf16 %v17278_v10  ;;  %v9855_v5 = vunpack.i.h.bf16 %v9853_v37  ;;  %v4423_v10 = vpop.f32.mrf.mxu2 }
 0x4f9   : > { %10017 = vrot.lane.b32.xlu0 %v17282_v63, %s10268_s11  ;;  %v9854_v60 = vunpack.i.l.bf16 %v9853_v37  ;;  %v5432_v29 = vadd.f32 %v5378_v26, %v4747_v51  ;;  %v17312_v0 = vsel %vm2675_vm4, %v20181_v44, %v9894_v28  ;;  %v5914_v52 = vrot.slane %v17198_v36, 5  ;;  %v3772_v34 = vpop.f32.mrf.mxu1 }
 0x4fa   : > { %v17315_v56 = vrot.slane %v4747_v51, 2  ;;  %v17318_v30 = vadd.f32 %v5199_v40, %v17272_v47  ;;  %v17320_v18 = vadd.f32 %v5200_v57, %v4747_v51  ;;  %v20182_v37 = vrot.slane %v17184_v53, 5 }
 0x4fb   : > { %v17327_v26 = vsel %vm717_vm2, %v4892_v41, %v17301_v31  ;;  %v6032_v34 = vadd.f32 %v5914_v52, %v16999_v50  ;;  %v17335_v57 = vsel %vm717_vm2, %v4891_v33, %v4892_v41  ;;  %v17338_v28 = vadd.f32 %v17301_v31, %v4747_v51  ;;  %v20184_v50 = vld [vmem:[#allocation57_spill] sm:$0xff] }
 0x4fc   : > { %v5918_v11 = vsel %vm5848_vm10, %v20182_v37, %v5917_v2  ;;  %v20183_v44 = vmov %v20182_v37  ;;  %v5431_v2 = vadd.f32 %v5377_v45, %v17272_v47  ;;  %v5497_v46 = vadd.f32 %v5432_v29, %v17301_v31  ;;  %v3595_v41 = vpop.f32.mrf.mxu0 }
 0x4fd   : > { %v5916_v36 = vsel %vm5848_vm10, %v5914_v52, %v20183_v44  ;;  %v6034_v40 = vadd.f32 %v5918_v11, %v17058_v12  ;;  %v6086_v54 = vmax.f32 %v6032_v34, 0.0  ;;  %v17345_v44 = vadd.f32 %v17327_v26, %v17272_v47 }
 0x4fe   : > { %v6033_v37 = vadd.f32 %v5916_v36, %v17032_v23  ;;  %v7325_v12 = vsel %vm2675_vm4, %v20184_v50, %v9860_v17  ;;  %v20185_v52 = vunpack.i.l.bf16 %v17049_v49  ;;  %v20186_v23 = vunpack.i.h.bf16 %v17049_v49 }
 0x4ff   : > { %v6088_v53 = vmax.f32 %v6034_v40, 0.0  ;;  %v6239_v45 = vrot.slane %v6086_v54, 3  ;;  %v5495_v34 = vadd.f32 %v5430_v7, %v17335_v57  ;;  %v17360_v17 = vadd.f32 %v5431_v2, %v17327_v26 }
 0x500   : > { %v6087_v33 = vmax.f32 %v6033_v37, 0.0  ;;  %v7482_v51 = vsel %vm20167_vm15, %v7450_v14, %v20185_v52  ;;  %v7483_v29 = vsel %vm20187_vm9, %v7451_v48, %v20186_v23  ;;  %v17362_v37 = vpop.permute.xlu2 %9907  ;;  %v5559_v14 = vadd.f32 %v5497_v46, %v17315_v56 }
 0x501   : > { %v6242_v11 = vrot.slane %v6088_v53, 3  ;;  %10032 = vrot.lane.b32.xlu0 %v17213_v13, %s10264_s27  ;;  %v7514_v36 = vsel %vm20170_vm1, %v7482_v51, %v9854_v60  ;;  %v7515_v54 = vsel %vm20188_vm13, %v7483_v29, %v9855_v5  ;;  %v3588_v13 = vadd.f32 %v16935_v38, %v17178_v19  ;;  %v9868_v60 = vpop.permute.xlu0 %9867  ;;  %v3774_v7 = vpop.f32.mrf.mxu1  ;;  %v20189_v53 = vld [vmem:[#allocation86_spill] sm:$0xff]  ;;  %vm20203_vm13 = vmmov %vm20170_vm1 }
 0x502   : > { %v6240_v40 = vrot.slane %v6087_v33, 3  ;;  %v7546_v48 = vpack.c.bf16 %v7515_v54, %v7514_v36  ;;  %v7324_v2 = vsel %vm2675_vm4, %v20189_v53, %v9859_v58  ;;  %v17380_v46 = vadd.f32 %v16995_v3, %v4423_v10  ;;  %v9873_v51 = vpop.permute.xlu1 %9872  ;;  %v4425_v29 = vpop.f32.mrf.mxu2 }
 0x503   : > { %v17370_v49 = vsel %vm6112_vm11, %v6242_v11, 0.0  ;;  %v9869_v23 = vunpack.i.l.bf16 %v9868_v60  ;;  %v17392_v10 = vmul.f32 %v14907_v55, %v5559_v14  ;;  %v3765_v36 = vadd.f32 %v17131_v27, %v3588_v13 }
 0x504   : > { %v6241_v50 = vsel %vm6173_vm14, %v6239_v45, %v6240_v40  ;;  %v17376_v33 = vsel %vm6173_vm14, %v6240_v40, %v6242_v11  ;;  %v6488_v5 = vrot.slane %v17370_v49, 1  ;;  %7728 = vmatmul.bf16.gmra.mxu3 %v7546_v48  ;;  %v9870_v11 = vunpack.i.h.bf16 %v9868_v60  ;;  %v3597_v14 = vpop.f32.mrf.mxu0 }
 0x505   : > { %v17384_v19 = vsel %vm6101_vm12, %v6241_v50, 0.0  ;;  %v6486_v41 = vrot.slane %v17376_v33, 1  ;;  %v3591_v54 = vadd.f32 %v16935_v38, %v17236_v4  ;;  %v9875_v7 = vunpack.i.h.bf16 %v9873_v51 }
 0x506   : > { %v10021_v58 = vpack.i.bf16 %v17376_v33, %v17384_v19  ;;  %v6485_v45 = vrot.slane %v17384_v19, 1  ;;  %v20190_v60 = vunpack.i.l.bf16 %v17122_v22  ;;  %v20191_v27 = vunpack.i.h.bf16 %v17122_v22 }
 0x507   : > { %v6489_v40 = vsel %vm717_vm2, %v6486_v41, %v6488_v5  ;;  %v3768_v4 = vadd.f32 %v17206_v32, %v3591_v54  ;;  %v9874_v5 = vunpack.i.l.bf16 %v9873_v51  ;;  %v5003_v32 = vadd.f32 %v17335_v57, %v17262_v25 }
 0x508   : > { %10022 = vrot.lane.b32.xlu1 %v10021_v58, %s10269_s12  ;;  %v6487_v53 = vsel %vm717_vm2, %v6485_v45, %v6486_v41  ;;  %v7356_v50 = vsel %vm2748_vm5, %v7324_v2, %v20190_v60  ;;  %v7357_v13 = vsel %vm2748_vm5, %v7325_v12, %v20191_v27  ;;  %v20192_v41 = vrot.slane %v17272_v47, 2 }
 0x509   : > { %v17404_v52 = vpack.i.bf16 %v6489_v40, %v6487_v53  ;;  %v7389_v1 = vsel %vm2821_vm6, %v7357_v13, %v9870_v11  ;;  %v7388_v48 = vsel %vm2821_vm6, %v7356_v50, %v9869_v23  ;;  %v20193_v45 = vrot.slane %v17262_v25, 2  ;;  %v3777_v11 = vpop.f32.mrf.mxu1 }
 0x50a   : > { %v4623_v22 = vrot.slane %v3768_v4, 2  ;;  %v5317_v12 = vadd.f32 %v17291_v39, %v17335_v57  ;;  %v5922_v23 = vrot.slane %v17392_v10, 5  ;;  %v4622_v40 = vrot.slane %v3765_v36, 2  ;;  %v20196_v10 = vld [vmem:[#allocation2_spill] sm:$0xff] }
 0x50b   : > { %v5091_v2 = vsel %vm886_vm3, %v20193_v45, %v20192_v41  ;;  %10027 = vrot.lane.b32.xlu2 %v17404_v52, %s10270_s13  ;;  %10047 = vrot.lane.b32.xlu0 %v17404_v52, %s10267_s10  ;;  %v17427_v54 = vadd.f32 %v16995_v3, %v4425_v29  ;;  %v3593_v53 = vadd.f32 %v16935_v38, %v17295_v16  ;;  %v6565_v50 = vrot.slane %v17384_v19, 2 }
 0x50c   : > { %v5557_v51 = vadd.f32 %v5495_v34, %v5091_v2  ;;  %v17432_v60 = vsel %vm2894_vm7, %v7389_v1, %v9875_v7  ;;  %v6566_v25 = vrot.slane %v17376_v33, 2  ;;  %v6568_v39 = vrot.slane %v17370_v49, 2  ;;  %v17445_v1 = vpop.f32.mrf.mxu2  ;;  %v3600_v27 = vpop.f32.mrf.mxu0 }
 0x50d   : > { %v17438_v57 = vsel %vm2894_vm7, %v7388_v48, %v9874_v5  ;;  %v4624_v34 = vsel %vm886_vm3, %v4622_v40, %v4623_v22  ;;  %v3770_v29 = vadd.f32 %v17252_v35, %v3593_v53  ;;  %v5201_v36 = vadd.f32 %v5091_v2, %v5003_v32  ;;  %v17471_v32 = vpop.permute.xlu0 %9882 }
 0x50e   : > { %v5379_v14 = vadd.f32 %v5317_v12, %v5091_v2  ;;  %v5782_v38 = vmul.f32 %v15074_v8, %v5557_v51  ;;  %v20194_v49 = vmov %v20192_v41  ;;  %v5318_v7 = vadd.f32 %v17318_v30, %v17327_v26 }
 0x50f   : > { %v4625_v16 = vrot.slane %v3770_v29, 2  ;;  %v5093_v48 = vsel %vm886_vm3, %v20194_v49, %v17315_v56  ;;  %v5319_v35 = vadd.f32 %v17320_v18, %v17301_v31  ;;  %v4748_v13 = vsel %vm4459_vm0, %v4624_v34, 0.0  ;;  %vm20201_vm0 = vmmov %vm20187_vm9 }
 0x510   : > { %10037 = vrot.lane.b32.xlu1 %v17282_v63, %s10265_s8  ;;  %v17458_v63 = vsel %vm886_vm3, %v6565_v50, %v6566_v25  ;;  %v17461_v4 = vsel %vm886_vm3, %v6566_v25, %v6568_v39  ;;  %v5558_v47 = vadd.f32 %v17360_v17, %v5093_v48  ;;  %vm20195_vm15 = vcmp.lt.s32.totalorder %v19884_v43, 18  ;;  %vm20202_vm9 = vmmov %vm20201_vm0 }
 0x511   : > { %v4626_v5 = vsel %vm886_vm3, %v4623_v22, %v4625_v16  ;;  %v4750_v30 = vsel %vm20195_vm15, %v4625_v16, 0.0  ;;  %v5380_v26 = vadd.f32 %v5318_v7, %v5093_v48  ;;  %v5381_v31 = vadd.f32 %v5319_v35, %v17315_v56  ;;  %v3779_v12 = vpop.f32.mrf.mxu1  ;;  %vm20208_vm15 = vmmov %vm20201_vm0 }
 0x512   : > { %v4897_v18 = vrot.slane %v4626_v5, 1  ;;  %v4899_v41 = vrot.slane %v4750_v30, 1  ;;  %v5095_v45 = vrot.slane %v4626_v5, 2  ;;  %v17469_v2 = vrot.slane %v4750_v30, 2 }
 0x513   : > { %10042 = vrot.lane.b32.xlu2 %v10021_v58, %s10266_s9  ;;  %v5202_v17 = vadd.f32 %v5093_v48, %v17345_v44  ;;  %v5203_v22 = vadd.f32 %v17315_v56, %v17338_v28  ;;  %v5434_v51 = vadd.f32 %v5380_v26, %v4626_v5  ;;  %v5435_v11 = vadd.f32 %v5381_v31, %v4750_v30 }
 0x514   : > { %v5919_v40 = vrot.slane %v5782_v38, 5  ;;  %v17478_v53 = vpack.i.bf16 %v17461_v4, %v17458_v63  ;;  %v4900_v58 = vsel %vm717_vm2, %v4897_v18, %v4899_v41  ;;  %v5783_v50 = vmul.f32 %v15066_v59, %v5558_v47  ;;  %v17487_v38 = vpop.permute.xlu1 %9887  ;;  %v4430_v31 = vpop.f32.mrf.mxu2 }
 0x515   : > { %v4896_v25 = vrot.slane %v4748_v13, 1  ;;  %v5094_v39 = vrot.slane %v4748_v13, 2  ;;  %v5255_v34 = vadd.f32 %v5201_v36, %v4748_v13  ;;  %v5499_v29 = vadd.f32 %v5434_v51, %v4900_v58 }
 0x516   : > { %v5433_v16 = vadd.f32 %v5379_v14, %v4748_v13  ;;  %v17484_v44 = vsel %vm886_vm3, %v5095_v45, %v17469_v2  ;;  %v5920_v56 = vrot.slane %v5783_v50, 5  ;;  %v9885_v28 = vunpack.i.h.bf16 %v17471_v32  ;;  %v3602_v14 = vpop.f32.mrf.mxu0 }
 0x517   : > { %v5500_v49 = vadd.f32 %v5435_v11, %v4899_v41  ;;  %v5561_v48 = vadd.f32 %v5499_v29, %v17484_v44  ;;  %v9884_v7 = vunpack.i.l.bf16 %v17471_v32  ;;  %v4898_v36 = vsel %vm717_vm2, %v4896_v25, %v4897_v18 }
 0x518   : > { %10052 = vrot.lane.b32.xlu1 %v17478_v53, %s10268_s11  ;;  %v5256_v35 = vadd.f32 %v5202_v17, %v4626_v5  ;;  %v5320_v27 = vadd.f32 %v5255_v34, %v4898_v36  ;;  %v5498_v13 = vadd.f32 %v5433_v16, %v4898_v36  ;;  %v5921_v47 = vsel %vm5848_vm10, %v5919_v40, %v5920_v56  ;;  %v17511_v34 = vpop.permute.xlu0 %9897  ;;  %v20197_v16 = vld [vmem:[#allocation140_spill] sm:$0xff] }
 0x519   : > { %v5257_v26 = vadd.f32 %v5203_v22, %v4750_v30  ;;  %v5096_v12 = vsel %vm886_vm3, %v5094_v39, %v5095_v45  ;;  %v5923_v51 = vsel %vm5848_vm10, %v5920_v56, %v5922_v23  ;;  %v6035_v11 = vadd.f32 %v5919_v40, %v17126_v62  ;;  %v3782_v17 = vpop.f32.mrf.mxu1 }
 0x51a   : > { %v5382_v50 = vadd.f32 %v5320_v27, %v5096_v12  ;;  %v5560_v32 = vadd.f32 %v5498_v13, %v5096_v12  ;;  %v6036_v18 = vadd.f32 %v5921_v47, %v17240_v24  ;;  %v6037_v5 = vadd.f32 %v5923_v51, %v17267_v6 }
 0x51b   : > { %v5562_v25 = vadd.f32 %v5500_v49, %v17469_v2  ;;  %v17504_v30 = vmul.f32 %v15066_v59, %v5561_v48  ;;  %v9890_v45 = vunpack.i.h.bf16 %v17487_v38  ;;  %v6089_v22 = vmax.f32 %v6035_v11, 0.0 }
 0x51c   : > { %v5501_v39 = vadd.f32 %v5382_v50, %v20196_v10  ;;  %v17509_v23 = vmul.f32 %v15074_v8, %v5560_v32  ;;  %v6090_v62 = vmax.f32 %v6036_v18, 0.0  ;;  %v6091_v40 = vmax.f32 %v6037_v5, 0.0 }
 0x51d   : > { %v5321_v24 = vadd.f32 %v5256_v35, %v4900_v58  ;;  %v5322_v6 = vadd.f32 %v5257_v26, %v4899_v41  ;;  %v6244_v29 = vrot.slane %v6089_v22, 3  ;;  %v5787_v36 = vmul.f32 %v14907_v55, %v5562_v25  ;;  %v20198_v41 = vld [vmem:[#allocation123_spill] sm:$0xff]  ;;  %v4433_v25 = vpop.f32.mrf.mxu2  ;;  %v17556_v22 = vpop.permute.xlu2 %9922 }
 0x51e   : > { %v5563_v56 = vadd.f32 %v5501_v39, %v20197_v16  ;;  %v5924_v59 = vrot.slane %v17509_v23, 5  ;;  %v6245_v49 = vrot.slane %v6090_v62, 3  ;;  %v6247_v48 = vrot.slane %v6091_v40, 3  ;;  %v3605_v58 = vpop.f32.mrf.mxu0 }
 0x51f   : > { %v5925_v14 = vrot.slane %v17504_v30, 5  ;;  %v9889_v8 = vunpack.i.l.bf16 %v17487_v38  ;;  %v4431_v27 = vadd.f32 %v16995_v3, %v4430_v31  ;;  %v20199_v47 = vunpack.i.l.bf16 %v17190_v15  ;;  %v9903_v31 = vpop.permute.xlu1 %9902 }
 0x520   : > { %10067 = vrot.lane.b32.xlu1 %v17404_v52, %s10264_s27  ;;  %v17522_v35 = vmul.f32 %v20198_v41, %v5563_v56  ;;  %v6246_v13 = vsel %vm6173_vm14, %v6244_v29, %v6245_v49  ;;  %v20200_v26 = vunpack.i.h.bf16 %v17190_v15  ;;  %v6038_v12 = vadd.f32 %v5924_v59, %v17380_v46 }
 0x521   : > { %v7452_v55 = vsel %vm2967_vm8, %v17438_v57, %v20199_v47  ;;  %v17535_v52 = vsel %vm6173_vm14, %v6245_v49, %v6247_v48  ;;  %v17539_v51 = vsel %vm6101_vm12, %v6246_v13, 0.0  ;;  %v17543_v11 = vsel %vm6112_vm11, %v6247_v48, 0.0  ;;  %v3784_v50 = vpop.f32.mrf.mxu1 }
 0x522   : > { %v7453_v38 = vsel %vm2967_vm8, %v17432_v60, %v20200_v26  ;;  %v5929_v57 = vrot.slane %v17522_v35, 5  ;;  %v17548_v15 = vpack.i.bf16 %v17535_v52, %v17539_v51  ;;  %v6490_v60 = vrot.slane %v17539_v51, 1 }
 0x523   : > { %v7484_v46 = vsel %vm20201_vm0, %v7452_v55, %v9884_v7  ;;  %v6491_v32 = vrot.slane %v17535_v52, 1  ;;  %v6493_v18 = vrot.slane %v17543_v11, 1  ;;  %v7485_v5 = vsel %vm20202_vm9, %v7453_v38, %v9885_v28  ;;  %vm20209_vm9 = vmmov %vm20170_vm1 }
 0x524   : > { %v7516_v17 = vsel %vm20170_vm1, %v7484_v46, %v9889_v8  ;;  %v5927_v30 = vrot.slane %v5787_v36, 5  ;;  %10057 = vrot.lane.b32.xlu2 %v17548_v15, %s10269_s12  ;;  %v9900_v39 = vunpack.i.h.bf16 %v17511_v34  ;;  %v9899_v7 = vunpack.i.l.bf16 %v17511_v34  ;;  %v9913_v8 = vpop.permute.xlu0 %9912 }
 0x525   : > { %v7517_v23 = vsel %vm20203_vm13, %v7485_v5, %v9890_v45  ;;  %v6092_v62 = vmax.f32 %v6038_v12, 0.0  ;;  %v6492_v40 = vsel %vm717_vm2, %v6490_v60, %v6491_v32  ;;  %v6494_v28 = vsel %vm717_vm2, %v6491_v32, %v6493_v18  ;;  %v20204_v18 = vld [vmem:[#allocation27_spill] sm:$0xff]  ;;  %vm20214_vm13 = vmmov %vm20170_vm1 }
 0x526   : > { %v7548_v29 = vpack.c.bf16 %v7517_v23, %v7516_v17  ;;  %v4429_v56 = vadd.f32 %v16995_v3, %v17445_v1  ;;  %v17569_v49 = vadd.f32 %v5929_v57, %v4431_v27  ;;  %v17571_v48 = vpack.i.bf16 %v6494_v28, %v6492_v40  ;;  %v3607_v41 = vpop.f32.mrf.mxu0  ;;  %v20207_v28 = vld [vmem:[#allocation129_spill] sm:$0xff] }
 0x527   : > { %v9905_v36 = vunpack.i.h.bf16 %v9903_v31  ;;  %v5384_v34 = vadd.f32 %v5322_v6, %v17469_v2  ;;  %v9925_v45 = vunpack.i.h.bf16 %v17556_v22  ;;  %v5383_v58 = vadd.f32 %v5321_v24, %v17484_v44  ;;  %v9918_v55 = vpop.permute.xlu1 %9917 }
 0x528   : > { %7733 = vmatmul.bf16.gmra.mxu3 %v7548_v29  ;;  %v5928_v13 = vsel %vm5848_vm10, %v5925_v14, %v5927_v30  ;;  %v9924_v1 = vunpack.i.l.bf16 %v17556_v22  ;;  %v7359_v27 = vsel %vm2748_vm5, %v17306_v20, %v9900_v39  ;;  %10062 = vrot.lane.b32.xlu0 %v17571_v48, %s10270_s13  ;;  %v9904_v47 = vunpack.i.l.bf16 %v9903_v31  ;;  %v4435_v30 = vpop.f32.mrf.mxu2 }
 0x529   : > { %v5926_v2 = vsel %vm5848_vm10, %v5924_v59, %v5925_v14  ;;  %v6249_v6 = vrot.slane %v6092_v62, 3  ;;  %v7358_v26 = vsel %vm2748_vm5, %v17312_v0, %v9899_v7  ;;  %v5502_v44 = vadd.f32 %v5383_v58, %v20196_v10  ;;  %10082 = vrot.lane.b32.xlu1 %v17571_v48, %s10267_s10  ;;  %v3787_v12 = vpop.f32.mrf.mxu1 }
 0x52a   : > { %v6095_v24 = vmax.f32 %v17569_v49, 0.0  ;;  %v7391_v20 = vsel %vm2821_vm6, %v7359_v27, %v9905_v36  ;;  %v4434_v38 = vadd.f32 %v16995_v3, %v4433_v25  ;;  %v9915_v60 = vunpack.i.h.bf16 %v9913_v8 }
 0x52b   : > { %v5564_v31 = vadd.f32 %v5502_v44, %v20197_v16  ;;  %v5503_v59 = vadd.f32 %v5384_v34, %v20196_v10  ;;  %v6570_v14 = vrot.slane %v17539_v51, 2  ;;  %v7390_v0 = vsel %vm2821_vm6, %v7358_v26, %v9904_v47 }
 0x52c   : > { %10072 = vrot.lane.b32.xlu2 %v17478_v53, %s10265_s8  ;;  %v9914_v46 = vunpack.i.l.bf16 %v9913_v8  ;;  %v6571_v50 = vrot.slane %v17535_v52, 2  ;;  %v6573_v32 = vrot.slane %v17543_v11, 2  ;;  %v20205_v17 = vunpack.i.h.bf16 %v17362_v37  ;;  %v9928_v8 = vpop.permute.xlu0 %9927 }
 0x52d   : > { %v5789_v5 = vmul.f32 %v20204_v18, %v5564_v31  ;;  %v5565_v10 = vadd.f32 %v5503_v59, %v20197_v16  ;;  %v9919_v22 = vunpack.i.l.bf16 %v9918_v55  ;;  %v9920_v7 = vunpack.i.h.bf16 %v9918_v55 }
 0x52e   : > { %v7423_v25 = vsel %vm2894_vm7, %v7391_v20, %v20205_v17  ;;  %v17605_v39 = vsel %vm886_vm3, %v6570_v14, %v6571_v50  ;;  %v17608_v53 = vsel %vm886_vm3, %v6571_v50, %v6573_v32  ;;  %v20206_v11 = vunpack.i.l.bf16 %v17362_v37  ;;  %v9938_v32 = vpop.permute.xlu2 %9937 }
 0x52f   : > { %v5930_v23 = vrot.slane %v5789_v5, 5  ;;  %v7455_v40 = vsel %vm2967_vm8, %v7423_v25, %v9915_v60  ;;  %v5790_v29 = vmul.f32 %v20207_v28, %v5565_v10  ;;  %v4436_v16 = vadd.f32 %v16995_v3, %v4435_v30  ;;  %v9933_v26 = vpop.permute.xlu1 %9932  ;;  %v20210_v5 = vld [vmem:[#allocation124_spill] sm:$0xff] }
 0x530   : > { %v7422_v62 = vsel %vm2894_vm7, %v7390_v0, %v20206_v11  ;;  %10077 = vrot.lane.b32.xlu0 %v17548_v15, %s10266_s9  ;;  %v17621_v36 = vpack.i.bf16 %v17608_v53, %v17605_v39  ;;  %v6039_v37 = vadd.f32 %v5926_v2, %v17427_v54  ;;  %v6040_v41 = vadd.f32 %v5928_v13, %v4429_v56 }
 0x531   : > { %v7454_v49 = vsel %vm2967_vm8, %v7422_v62, %v9914_v46  ;;  %v5931_v34 = vsel %vm5848_vm10, %v5929_v57, %v5930_v23  ;;  %v5932_v58 = vrot.slane %v5790_v29, 5  ;;  %v7487_v15 = vsel %vm20201_vm0, %v7455_v40, %v9920_v7  ;;  %v3788_v44 = vpop.f32.mrf.mxu1 }
 0x532   : > { %v7486_v27 = vsel %vm20208_vm15, %v7454_v49, %v9919_v22  ;;  %v6042_v47 = vadd.f32 %v5931_v34, %v4434_v38  ;;  %v6093_v55 = vmax.f32 %v6039_v37, 0.0  ;;  %v6094_v12 = vmax.f32 %v6040_v41, 0.0  ;;  %vm20217_vm15 = vmmov %vm20201_vm0 }
 0x533   : > { %v7518_v3 = vsel %vm20209_vm9, %v7486_v27, %v9924_v1  ;;  %v5933_v20 = vsel %vm5848_vm10, %v5930_v23, %v5932_v58  ;;  %v7519_v54 = vsel %vm20170_vm1, %v7487_v15, %v9925_v45  ;;  %v6254_v13 = vrot.slane %v6095_v24, 3  ;;  %vm20211_vm10 = vmmov %vm20201_vm0 }
 0x534   : > { %v6096_v35 = vmax.f32 %v6042_v47, 0.0  ;;  %v6043_v2 = vadd.f32 %v5933_v20, %v4436_v16  ;;  %10087 = vrot.lane.b32.xlu2 %v17621_v36, %s10268_s11  ;;  %v6250_v57 = vrot.slane %v6093_v55, 3  ;;  %v7550_v56 = vpack.c.bf16 %v7519_v54, %v7518_v3  ;;  %v9943_v25 = vpop.permute.xlu0 %9942 }
 0x535   : > { %v6252_v38 = vrot.slane %v6094_v12, 3  ;;  %v9930_v31 = vunpack.i.h.bf16 %v9928_v8  ;;  %v9929_v60 = vunpack.i.l.bf16 %v9928_v8  ;;  %v9935_v59 = vunpack.i.h.bf16 %v9933_v26 }
 0x536   : > { %v6251_v1 = vsel %vm6173_vm14, %v6249_v6, %v6250_v57  ;;  %v6255_v14 = vrot.slane %v6096_v35, 3  ;;  %v9934_v46 = vunpack.i.l.bf16 %v9933_v26  ;;  %v6097_v50 = vmax.f32 %v6043_v2, 0.0  ;;  %v9953_v15 = vpop.permute.xlu2 %9952 }
 0x537   : > { %v17636_v0 = vsel %vm6173_vm14, %v6250_v57, %v6252_v38  ;;  %v17640_v45 = vsel %vm6101_vm12, %v6251_v1, 0.0  ;;  %v6365_v18 = vsel %vm6112_vm11, %v6252_v38, 0.0  ;;  %v7329_v6 = vsel %vm2675_vm4, %v16569_v9, %v9930_v31  ;;  %v9948_v40 = vpop.permute.xlu1 %9947 }
 0x538   : > { %7738 = vmatmul.bf16.gmra.mxu3 %v7550_v56  ;;  %v10091_v24 = vpack.i.bf16 %v17636_v0, %v17640_v45  ;;  %v7328_v17 = vsel %vm2675_vm4, %v20210_v5, %v9929_v60  ;;  %v6256_v10 = vsel %vm6173_vm14, %v6254_v13, %v6255_v14  ;;  %v7361_v7 = vsel %vm2748_vm5, %v7329_v6, %v9935_v59 }
 0x539   : > { %v3790_v30 = vpop.f32.mrf.mxu1  ;;  %v7360_v22 = vsel %vm2748_vm5, %v7328_v17, %v9934_v46  ;;  %v6257_v23 = vrot.slane %v6097_v50, 3  ;;  %v6495_v11 = vrot.slane %v17640_v45, 1  ;;  %v6496_v9 = vrot.slane %v17636_v0, 1 }
 0x53a   : > { %10092 = vrot.lane.b32.xlu0 %v10091_v24, %s10269_s12  ;;  %v6498_v62 = vrot.slane %v6365_v18, 1  ;;  %v9940_v28 = vunpack.i.h.bf16 %v9938_v32  ;;  %v9939_v29 = vunpack.i.l.bf16 %v9938_v32  ;;  %v9945_v49 = vunpack.i.h.bf16 %v9943_v25 }
 0x53b   : > { %v17660_v16 = vsel %vm6101_vm12, %v6256_v10, 0.0  ;;  %v9944_v8 = vunpack.i.l.bf16 %v9943_v25  ;;  %v6497_v37 = vsel %vm717_vm2, %v6495_v11, %v6496_v9  ;;  %v9949_v27 = vunpack.i.l.bf16 %v9948_v40  ;;  %vm20213_vm12 = vmmov %vm20170_vm1 }
 0x53c   : > { %10102 = vrot.lane.b32.xlu2 %v17571_v48, %s10264_s27  ;;  %v6499_v34 = vsel %vm717_vm2, %v6496_v9, %v6498_v62  ;;  %v7392_v48 = vsel %vm2821_vm6, %v7360_v22, %v9939_v29  ;;  %v7393_v58 = vsel %vm2821_vm6, %v7361_v7, %v9940_v28  ;;  %v17667_v47 = vsel %vm6173_vm14, %v6255_v14, %v6257_v23  ;;  %v17707_v62 = vpop.f32.mrf.mxu3 }
 0x53d   : > { %v10096_v41 = vpack.i.bf16 %v6499_v34, %v6497_v37  ;;  %v17671_v55 = vsel %vm6112_vm11, %v6257_v23, 0.0  ;;  %v9950_v42 = vunpack.i.h.bf16 %v9948_v40  ;;  %v6575_v3 = vrot.slane %v17640_v45, 2  ;;  %vm20212_vm11 = vmmov %vm20201_vm0 }
 0x53e   : > { %v6576_v26 = vrot.slane %v17636_v0, 2  ;;  %v6578_v44 = vrot.slane %v6365_v18, 2  ;;  %v7424_v20 = vsel %vm2894_vm7, %v7392_v48, %v9944_v8  ;;  %v7425_v12 = vsel %vm2894_vm7, %v7393_v58, %v9945_v49  ;;  %v9968_v7 = vpop.permute.xlu2 %9967 }
 0x53f   : > { %10097 = vrot.lane.b32.xlu1 %v10096_v41, %s10270_s13  ;;  %v6584_v43 = vrot.slane %v17667_v47, 1  ;;  %v6586_v35 = vrot.slane %v17671_v55, 1  ;;  %v7456_v2 = vsel %vm2967_vm8, %v7424_v20, %v9949_v27  ;;  %v6583_v57 = vrot.slane %v17660_v16, 1  ;;  %v9963_v10 = vpop.permute.xlu1 %9962 }
 0x540   : > { %v9954_v13 = vunpack.i.l.bf16 %v9953_v15  ;;  %v7457_v38 = vsel %vm2967_vm8, %v7425_v12, %v9950_v42  ;;  %v9955_v60 = vunpack.i.h.bf16 %v9953_v15  ;;  %v17687_v1 = vsel %vm886_vm3, %v6575_v3, %v6576_v26 }
 0x541   : > { %v3791_v54 = vpop.f32.mrf.mxu1  ;;  %v6585_v46 = vsel %vm717_vm2, %v6583_v57, %v6584_v43  ;;  %v6587_v50 = vsel %vm717_vm2, %v6584_v43, %v6586_v35  ;;  %v10126_v22 = vpack.i.bf16 %v17667_v47, %v17660_v16  ;;  %v9965_v23 = vunpack.i.h.bf16 %v9963_v10 }
 0x542   : > { %10107 = vrot.lane.b32.xlu0 %v17621_v36, %s10265_s8  ;;  %v17690_v36 = vsel %vm886_vm3, %v6576_v26, %v6578_v44  ;;  %v7488_v14 = vsel %vm20211_vm10, %v7456_v2, %v9954_v13  ;;  %v7489_v32 = vsel %vm20212_vm11, %v7457_v38, %v9955_v60  ;;  %v10131_v25 = vpack.i.bf16 %v6587_v50, %v6585_v46  ;;  %v20218_v50 = vld [vmem:[#allocation4_spill] sm:$0xff] }
 0x543   : > { %v10121_v6 = vpack.i.bf16 %v17690_v36, %v17687_v1  ;;  %v9964_v11 = vunpack.i.l.bf16 %v9963_v10  ;;  %v7331_v40 = vsel %vm2675_vm4, %v16745_v61, %v9965_v23  ;;  %v6589_v8 = vrot.slane %v17667_v47, 2 }
 0x544   : > { %10117 = vrot.lane.b32.xlu2 %v10096_v41, %s10267_s10  ;;  %v9970_v37 = vunpack.i.h.bf16 %v9968_v7  ;;  %v9969_v34 = vunpack.i.l.bf16 %v9968_v7  ;;  %v6591_v58 = vrot.slane %v17671_v55, 2  ;;  %v20215_v55 = vmov 0.0   ;;  %v17731_v20 = vpop.f32.mrf.mxu3 }
 0x545   : > { %v9958_v56 = vpop.permute.xlu0 %9957  ;;  %v7330_v28 = vsel %vm2675_vm4, %v16749_v21, %v9964_v11 }
 0x546   : > { %v9960_v31 = vunpack.i.h.bf16 %v9958_v56  ;;  %v9959_v59 = vunpack.i.l.bf16 %v9958_v56  ;;  %v7362_v27 = vsel %vm2748_vm5, %v7330_v28, %v9969_v34  ;;  %v7363_v61 = vsel %vm2748_vm5, %v7331_v40, %v9970_v37  ;;  %v9983_v15 = vpop.permute.xlu2 %9982 }
 0x547   : > { %10112 = vrot.lane.b32.xlu1 %v10091_v24, %s10266_s9  ;;  %v9978_v48 = vpop.permute.xlu1 %9977  ;;  %v17729_v44 = vsel %vm886_vm3, %v6589_v8, %v6591_v58  ;;  %v9985_v2 = vunpack.i.h.bf16 %v9983_v15  ;;  %v9984_v57 = vunpack.i.l.bf16 %v9983_v15 }
 0x548   : > { %v7520_v18 = vsel %vm20213_vm12, %v7488_v14, %v9959_v59  ;;  %v7521_v5 = vsel %vm20214_vm13, %v7489_v32, %v9960_v31  ;;  %v9980_v3 = vunpack.i.h.bf16 %v9978_v48  ;;  %v9979_v26 = vunpack.i.l.bf16 %v9978_v48 }
 0x549   : > { %v7552_v17 = vpack.c.bf16 %v7521_v5, %v7520_v18  ;;  %v3793_v30 = vpop.f32.mrf.mxu1 }
 0x54a   : > { %10122 = vrot.lane.b32.xlu0 %v10121_v6, %s10268_s11 }
 0x54b   : > { %7743 = vmatmul.bf16.gmra.mxu3 %v7552_v17 }
 0x54c   : > { %10132 = vrot.lane.b32.xlu2 %v10131_v25, %s10270_s13  ;;  %v17748_v5 = vpop.f32.mrf.mxu3 }
 0x54d   : > { %v9973_v24 = vpop.permute.xlu0 %9972 }
 0x54e   : > { %v9975_v29 = vunpack.i.h.bf16 %v9973_v24  ;;  %v9974_v49 = vunpack.i.l.bf16 %v9973_v24  ;;  %v9998_v17 = vpop.permute.xlu2 %9997 }
 0x54f   : > { %10127 = vrot.lane.b32.xlu1 %v10126_v22, %s10269_s12  ;;  %v10000_v7 = vunpack.i.h.bf16 %v9998_v17  ;;  %v9999_v23 = vunpack.i.l.bf16 %v9998_v17 }
 0x550   : > { %v7395_v42 = vsel %vm2821_vm6, %v7363_v61, %v9975_v29  ;;  %v7394_v21 = vsel %vm2821_vm6, %v7362_v27, %v9974_v49  ;;  %v20221_v29 = vld [vmem:[#allocation70_spill] sm:$0xff] }
 0x551   : > { %v3794_v9 = vpop.f32.mrf.mxu1  ;;  %v7427_v12 = vsel %vm2894_vm7, %v7395_v42, %v9980_v3  ;;  %v7426_v54 = vsel %vm2894_vm7, %v7394_v21, %v9979_v26  ;;  %v7333_v49 = vsel %vm2675_vm4, %v20221_v29, %v10000_v7 }
 0x552   : > { %10137 = vrot.lane.b32.xlu0 %v10096_v41, %s10264_s27  ;;  %v6588_v41 = vrot.slane %v17660_v16, 2  ;;  %v7458_v60 = vsel %vm2967_vm8, %v7426_v54, %v9984_v57  ;;  %v7459_v59 = vsel %vm2967_vm8, %v7427_v12, %v9985_v2 }
 0x554   : > { %10147 = vrot.lane.b32.xlu2 %v10126_v22, %s10266_s9  ;;  %v17726_v16 = vsel %vm886_vm3, %v6588_v41, %v6589_v8  ;;  %vm20216_vm3 = vmmov %vm20201_vm0  ;;  %v17754_v30 = vpop.f32.mrf.mxu3  ;;  %v20222_v8 = vld [vmem:[#allocation106_spill] sm:$0xff]  ;;  %s8329_s9 = sshll.u32 %s20295_s25, 8 }
 0x555   : > { %v10156_v56 = vpack.i.bf16 %v17729_v44, %v17726_v16  ;;  %vm20219_vm0 = vmmov %vm20170_vm1  ;;  %v7332_v37 = vsel %vm2675_vm4, %v20222_v8, %v9999_v23  ;;  %v20228_v23 = vld [vmem:[#allocation127_spill] sm:$0xff] }
 0x556   : > { %vm20220_vm9 = vmmov %vm20219_vm0  ;;  %v10013_v10 = vpop.permute.xlu2 %10012 }
 0x557   : > { %10142 = vrot.lane.b32.xlu1 %v10121_v6, %s10265_s8  ;;  %v10015_v21 = vunpack.i.h.bf16 %v10013_v10  ;;  %vm20223_vm1 = vmmov %vm20216_vm3 }
 0x558   : > { %vm20224_vm10 = vmmov %vm20223_vm1 }
 0x559   : > { %vm20225_vm11 = vmmov %vm20219_vm0 }
 0x55a   : > { %10152 = vrot.lane.b32.xlu0 %v10131_v25, %s10267_s10  ;;  %vm20226_vm12 = vmmov %vm20219_vm0 }
 0x55b   : > { %v9988_v47 = vpop.permute.xlu0 %9987  ;;  %vm20229_vm13 = vmmov %vm20223_vm1 }
 0x55c   : > { %10162 = vrot.lane.b32.xlu2 %v20215_v55, %s10269_s12  ;;  %v9990_v43 = vunpack.i.h.bf16 %v9988_v47  ;;  %v9989_v35 = vunpack.i.l.bf16 %v9988_v47  ;;  %v17762_v58 = vpop.f32.mrf.mxu3  ;;  %v10014_v47 = vunpack.i.l.bf16 %v10013_v10  ;;  %s18011_s12 = scalar_lea.vmem %s18296_s7, %s8329_s9 }
 0x55e   : > { %v7490_v14 = vsel %vm20216_vm3, %v7458_v60, %v9989_v35  ;;  %v7491_v46 = vsel %vm20217_vm15, %v7459_v59, %v9990_v43  ;;  %vm20230_vm3 = vmmov %vm20223_vm1 }
 0x55f   : > { %10157 = vrot.lane.b32.xlu1 %v10156_v56, %s10268_s11  ;;  %vm20231_vm15 = vmmov %vm20219_vm0 }
 0x560   : > { %v9993_v13 = vpop.permute.xlu1 %9992 }
 0x561   : > { %v9995_v38 = vunpack.i.h.bf16 %v9993_v13  ;;  %v9994_v31 = vunpack.i.l.bf16 %v9993_v13 }
 0x562   : > { %10167 = vrot.lane.b32.xlu0 %v20218_v50, %s10270_s13 }
 0x563   : > { %v7522_v32 = vsel %vm20219_vm0, %v7490_v14, %v9994_v31  ;;  %v7523_v18 = vsel %vm20220_vm9, %v7491_v46, %v9995_v38  ;;  %v10003_v25 = vpop.permute.xlu0 %10002  ;;  %vm20232_vm9 = vmmov %vm20223_vm1 }
 0x564   : > { %v7554_v6 = vpack.c.bf16 %v7523_v18, %v7522_v32  ;;  %10177 = vrot.lane.b32.xlu2 %v20218_v50, %s10270_s13  ;;  %v10005_v11 = vunpack.i.h.bf16 %v10003_v25  ;;  %v10004_v24 = vunpack.i.l.bf16 %v10003_v25  ;;  %v17774_v59 = vpop.f32.mrf.mxu3 }
 0x565   : > { %v10028_v15 = vpop.permute.xlu2 %10027 }
 0x566   : > { %7748 = vmatmul.bf16.gmra.mxu3 %v7554_v6  ;;  %v7365_v34 = vsel %vm2748_vm5, %v7333_v49, %v10005_v11  ;;  %v7364_v48 = vsel %vm2748_vm5, %v7332_v37, %v10004_v24  ;;  %v10030_v43 = vunpack.i.h.bf16 %v10028_v15  ;;  %v10029_v35 = vunpack.i.l.bf16 %v10028_v15 }
 0x567   : > { %10172 = vrot.lane.b32.xlu1 %v20218_v50, %s10270_s13 }
 0x568   : > { %v10008_v22 = vpop.permute.xlu1 %10007 }
 0x569   : > { %v10010_v9 = vunpack.i.h.bf16 %v10008_v22  ;;  %v10009_v40 = vunpack.i.l.bf16 %v10008_v22  ;;  %v20227_v22 = vld [vmem:[#allocation236_spill] sm:$0xff] }
 0x56a   : > { %10182 = vrot.lane.b32.xlu0 %v20218_v50, %s10270_s13 }
 0x56b   : > { %v10018_v28 = vpop.permute.xlu0 %10017  ;;  %v7396_v41 = vsel %vm2821_vm6, %v7364_v48, %v10009_v40  ;;  %v7397_v27 = vsel %vm2821_vm6, %v7365_v34, %v10010_v9 }
 0x56c   : > { %v10020_v61 = vunpack.i.h.bf16 %v10018_v28  ;;  %v10019_v42 = vunpack.i.l.bf16 %v10018_v28  ;;  %v7428_v26 = vsel %vm2894_vm7, %v7396_v41, %v10014_v47  ;;  %v7429_v55 = vsel %vm2894_vm7, %v7397_v27, %v10015_v21  ;;  %v17776_v32 = vpop.f32.mrf.mxu3 }
 0x56d   : > { %v10043_v14 = vpop.permute.xlu2 %10042 }
 0x56e   : > { %v7460_v2 = vsel %vm2967_vm8, %v7428_v26, %v10019_v42  ;;  %v7461_v57 = vsel %vm2967_vm8, %v7429_v55, %v10020_v61  ;;  %v10045_v49 = vunpack.i.h.bf16 %v10043_v14  ;;  %v10044_v8 = vunpack.i.l.bf16 %v10043_v14 }
 0x573   : > { %v10033_v46 = vpop.permute.xlu0 %10032 }
 0x574   : > { %v10035_v6 = vunpack.i.h.bf16 %v10033_v46  ;;  %v10034_v17 = vunpack.i.l.bf16 %v10033_v46  ;;  %v17784_v29 = vpop.f32.mrf.mxu3 }
 0x576   : > { %v7335_v7 = vsel %vm2675_vm4, %v20227_v22, %v10035_v6  ;;  %v7334_v11 = vsel %vm2675_vm4, %v20228_v23, %v10034_v17 }
 0x57a   : > { %v10023_v3 = vpop.permute.xlu1 %10022 }
 0x57b   : > { %v10025_v12 = vunpack.i.h.bf16 %v10023_v3  ;;  %v10024_v54 = vunpack.i.l.bf16 %v10023_v3 }
 0x57d   : > { %v7492_v56 = vsel %vm20223_vm1, %v7460_v2, %v10024_v54  ;;  %v7493_v13 = vsel %vm20224_vm10, %v7461_v57, %v10025_v12  ;;  %v10048_v40 = vpop.permute.xlu0 %10047  ;;  %v17792_v54 = vpop.f32.mrf.mxu3  ;;  %vm20233_vm10 = vmmov %vm20219_vm0 }
 0x57e   : > { %v7524_v38 = vsel %vm20225_vm11, %v7492_v56, %v10029_v35  ;;  %v7525_v31 = vsel %vm20226_vm12, %v7493_v13, %v10030_v43  ;;  %v10058_v18 = vpop.permute.xlu2 %10057  ;;  %v10050_v61 = vunpack.i.h.bf16 %v10048_v40  ;;  %v10049_v42 = vunpack.i.l.bf16 %v10048_v40  ;;  %vm20234_vm11 = vmmov %vm20219_vm0 }
 0x57f   : > { %v7556_v60 = vpack.c.bf16 %v7525_v31, %v7524_v38  ;;  %v10060_v26 = vunpack.i.h.bf16 %v10058_v18  ;;  %v10059_v55 = vunpack.i.l.bf16 %v10058_v18  ;;  %vm20235_vm12 = vmmov %vm20223_vm1 }
 0x581   : > { %7753 = vmatmul.bf16.gmra.mxu3 %v7556_v60 }
 0x582   : > { %v10038_v50 = vpop.permute.xlu1 %10037 }
 0x583   : > { %v10040_v25 = vunpack.i.h.bf16 %v10038_v50  ;;  %v10039_v10 = vunpack.i.l.bf16 %v10038_v50 }
 0x585   : > { %v7366_v24 = vsel %vm2748_vm5, %v7334_v11, %v10039_v10  ;;  %v7367_v9 = vsel %vm2748_vm5, %v7335_v7, %v10040_v25  ;;  %v17798_v46 = vpop.f32.mrf.mxu3 }
 0x586   : > { %v7398_v37 = vsel %vm2821_vm6, %v7366_v24, %v10044_v8  ;;  %v7399_v34 = vsel %vm2821_vm6, %v7367_v9, %v10045_v49  ;;  %v10073_v27 = vpop.permute.xlu2 %10072 }
 0x587   : > { %v7430_v21 = vsel %vm2894_vm7, %v7398_v37, %v10049_v42  ;;  %v7431_v47 = vsel %vm2894_vm7, %v7399_v34, %v10050_v61  ;;  %v10075_v7 = vunpack.i.h.bf16 %v10073_v27  ;;  %v10074_v23 = vunpack.i.l.bf16 %v10073_v27 }
 0x58a   : > { %v10053_v28 = vpop.permute.xlu1 %10052 }
 0x58b   : > { %v10055_v48 = vunpack.i.h.bf16 %v10053_v28  ;;  %v10054_v41 = vunpack.i.l.bf16 %v10053_v28 }
 0x58d   : > { %v7462_v15 = vsel %vm2967_vm8, %v7430_v21, %v10054_v41  ;;  %v7463_v3 = vsel %vm2967_vm8, %v7431_v47, %v10055_v48  ;;  %v17804_v9 = vpop.f32.mrf.mxu3 }
 0x58e   : > { %v7494_v2 = vsel %vm20229_vm13, %v7462_v15, %v10059_v55  ;;  %v7495_v57 = vsel %vm20230_vm3, %v7463_v3, %v10060_v26  ;;  %v10088_v31 = vpop.permute.xlu2 %10087  ;;  %vm20236_vm13 = vmmov %vm20223_vm1 }
 0x58f   : > { %v10090_v27 = vunpack.i.h.bf16 %v10088_v31  ;;  %v10089_v61 = vunpack.i.l.bf16 %v10088_v31  ;;  %vm20237_vm3 = vmmov %vm20219_vm0 }
 0x592   : > { %v10068_v60 = vpop.permute.xlu1 %10067 }
 0x593   : > { %v10070_v50 = vunpack.i.h.bf16 %v10068_v60  ;;  %v10069_v18 = vunpack.i.l.bf16 %v10068_v60 }
 0x595   : > { %v7337_v17 = vsel %vm2675_vm4, %v17376_v33, %v10070_v50  ;;  %v7336_v25 = vsel %vm2675_vm4, %v17384_v19, %v10069_v18 }
 0x596   : > { %v10103_v6 = vpop.permute.xlu2 %10102  ;;  %v7368_v40 = vsel %vm2748_vm5, %v7336_v25, %v10074_v23  ;;  %v7369_v28 = vsel %vm2748_vm5, %v7337_v17, %v10075_v7 }
 0x59a   : > { %v10063_v12 = vpop.permute.xlu0 %10062 }
 0x59b   : > { %v10065_v43 = vunpack.i.h.bf16 %v10063_v12  ;;  %v10064_v35 = vunpack.i.l.bf16 %v10063_v12  ;;  %v10083_v11 = vpop.permute.xlu1 %10082 }
 0x59c   : > { %v10085_v33 = vunpack.i.h.bf16 %v10083_v11  ;;  %v10084_v37 = vunpack.i.l.bf16 %v10083_v11 }
 0x59d   : > { %v7526_v56 = vsel %vm20231_vm15, %v7494_v2, %v10064_v35  ;;  %v7527_v13 = vsel %vm20219_vm0, %v7495_v57, %v10065_v43  ;;  %v17818_v57 = vpop.f32.mrf.mxu3  ;;  %vm20238_vm15 = vmmov %vm20219_vm0 }
 0x59e   : > { %v7558_v38 = vpack.c.bf16 %v7527_v13, %v7526_v56  ;;  %v10118_v21 = vpop.permute.xlu2 %10117  ;;  %v10105_v13 = vunpack.i.h.bf16 %v10103_v6  ;;  %vm20243_vm0 = vmmov %vm20223_vm1 }
 0x5a0   : > { %7758 = vmatmul.bf16.gmra.mxu3 %v7558_v38  ;;  %v10104_v38 = vunpack.i.l.bf16 %v10103_v6 }
 0x5a2   : > { %v10078_v14 = vpop.permute.xlu0 %10077  ;;  %v7338_v7 = vsel %vm2675_vm4, %v17539_v51, %v10104_v38  ;;  %v20239_v38 = vld [vmem:[#allocation228_spill] sm:$0xff] }
 0x5a3   : > { %v10080_v10 = vunpack.i.h.bf16 %v10078_v14  ;;  %v10079_v22 = vunpack.i.l.bf16 %v10078_v14 }
 0x5a5   : > { %v7401_v49 = vsel %vm2821_vm6, %v7369_v28, %v10080_v10  ;;  %v7400_v8 = vsel %vm2821_vm6, %v7368_v40, %v10079_v22  ;;  %v17820_v10 = vpop.f32.mrf.mxu3  ;;  %v7339_v22 = vsel %vm2675_vm4, %v17535_v52, %v10105_v13 }
 0x5a6   : > { %v7433_v19 = vsel %vm2894_vm7, %v7401_v49, %v10085_v33  ;;  %v7432_v34 = vsel %vm2894_vm7, %v7400_v8, %v10084_v37  ;;  %v10133_v25 = vpop.permute.xlu2 %10132  ;;  %v10120_v49 = vunpack.i.h.bf16 %v10118_v21  ;;  %v10119_v8 = vunpack.i.l.bf16 %v10118_v21 }
 0x5a7   : > { %v7464_v47 = vsel %vm2967_vm8, %v7432_v34, %v10089_v61  ;;  %v7465_v15 = vsel %vm2967_vm8, %v7433_v19, %v10090_v27 }
 0x5ac   : > { %v10093_v24 = vpop.permute.xlu0 %10092 }
 0x5ad   : > { %v10095_v48 = vunpack.i.h.bf16 %v10093_v24  ;;  %v10094_v41 = vunpack.i.l.bf16 %v10093_v24 }
 0x5af   : > { %v7496_v12 = vsel %vm20232_vm9, %v7464_v47, %v10094_v41  ;;  %v7497_v43 = vsel %vm20223_vm1, %v7465_v15, %v10095_v48  ;;  %v10135_v48 = vunpack.i.h.bf16 %v10133_v25  ;;  %v10134_v41 = vunpack.i.l.bf16 %v10133_v25  ;;  %vm20244_vm9 = vmmov %vm20243_vm0 }
 0x5b0   : > { %vm20246_vm1 = vmmov %vm20237_vm3 }
 0x5b1   : > { %v10098_v42 = vpop.permute.xlu1 %10097 }
 0x5b2   : > { %v10100_v3 = vunpack.i.h.bf16 %v10098_v42  ;;  %v10099_v26 = vunpack.i.l.bf16 %v10098_v42 }
 0x5b4   : > { %v10108_v55 = vpop.permute.xlu0 %10107  ;;  %v7528_v35 = vsel %vm20233_vm10, %v7496_v12, %v10099_v26  ;;  %v7529_v2 = vsel %vm20234_vm11, %v7497_v43, %v10100_v3  ;;  %v10148_v3 = vpop.permute.xlu2 %10147  ;;  %vm20247_vm10 = vmmov %vm20246_vm1 }
 0x5b5   : > { %v7560_v56 = vpack.c.bf16 %v7529_v2, %v7528_v35  ;;  %v10110_v60 = vunpack.i.h.bf16 %v10108_v55  ;;  %v10109_v14 = vunpack.i.l.bf16 %v10108_v55  ;;  %v17838_v55 = vpop.f32.mrf.mxu3  ;;  %vm20249_vm11 = vmmov %vm20243_vm0 }
 0x5b7   : > { %7763 = vmatmul.bf16.gmra.mxu3 %v7560_v56  ;;  %v7371_v23 = vsel %vm2748_vm5, %v7339_v22, %v10110_v60  ;;  %v7370_v11 = vsel %vm2748_vm5, %v7338_v7, %v10109_v14  ;;  %v8534_v60 = vunpack.i.l.bf16 %v20239_v38  ;;  %v20240_v14 = vld [vmem:[#allocation261_spill] sm:$0xff] }
 0x5b9   : > { %v10113_v31 = vpop.permute.xlu1 %10112 }
 0x5ba   : > { %v10115_v18 = vunpack.i.h.bf16 %v10113_v31  ;;  %v10114_v17 = vunpack.i.l.bf16 %v10113_v31  ;;  %v8535_v31 = vunpack.i.h.bf16 %v20239_v38 }
 0x5bc   : > { %v10123_v50 = vpop.permute.xlu0 %10122  ;;  %v7402_v6 = vsel %vm2821_vm6, %v7370_v11, %v10114_v17  ;;  %v7403_v24 = vsel %vm2821_vm6, %v7371_v23, %v10115_v18 }
 0x5bd   : > { %v10125_v40 = vunpack.i.h.bf16 %v10123_v50  ;;  %v10124_v28 = vunpack.i.l.bf16 %v10123_v50  ;;  %v7434_v37 = vsel %vm2894_vm7, %v7402_v6, %v10119_v8  ;;  %v7435_v52 = vsel %vm2894_vm7, %v7403_v24, %v10120_v49  ;;  %v17847_v25 = vpop.f32.mrf.mxu3  ;;  %v10163_v49 = vpop.permute.xlu2 %10162 }
 0x5be   : > { %v8714_v50 = vunpack.i.l.bf16 %v20240_v14  ;;  %v2743_v6 = vsel %vm2675_vm4, 0.0, %v8535_v31  ;;  %v2742_v24 = vsel %vm2675_vm4, 0.0, %v8534_v60 }
 0x5bf   : > { %v7466_v27 = vsel %vm2967_vm8, %v7434_v37, %v10124_v28  ;;  %v7467_v61 = vsel %vm2967_vm8, %v7435_v52, %v10125_v40  ;;  %v10150_v40 = vunpack.i.h.bf16 %v10148_v3  ;;  %v10149_v28 = vunpack.i.l.bf16 %v10148_v3 }
 0x5c0   : > { %v2815_v8 = vsel %vm2748_vm5, %v2742_v24, %v8714_v50 }
 0x5c1   : > { %v10128_v33 = vpop.permute.xlu1 %10127 }
 0x5c2   : > { %v10130_v19 = vunpack.i.h.bf16 %v10128_v33  ;;  %v10129_v34 = vunpack.i.l.bf16 %v10128_v33  ;;  %v10164_v33 = vunpack.i.l.bf16 %v10163_v49 }
 0x5c4   : > { %v10138_v51 = vpop.permute.xlu0 %10137  ;;  %v7498_v42 = vsel %vm20235_vm12, %v7466_v27, %v10129_v34  ;;  %v7499_v47 = vsel %vm20236_vm13, %v7467_v61, %v10130_v19  ;;  %vm20250_vm12 = vmmov %vm20243_vm0 }
 0x5c5   : > { %v7530_v21 = vsel %vm20237_vm3, %v7498_v42, %v10134_v41  ;;  %v7531_v15 = vsel %vm20238_vm15, %v7499_v47, %v10135_v48  ;;  %v10140_v43 = vunpack.i.h.bf16 %v10138_v51  ;;  %v10139_v35 = vunpack.i.l.bf16 %v10138_v51  ;;  %v20241_v47 = vld [vmem:[#allocation84_spill] sm:$0xff]  ;;  %vm20251_vm13 = vmmov %vm20246_vm1 }
 0x5c6   : > { %v7562_v26 = vpack.c.bf16 %v7531_v15, %v7530_v21  ;;  %v8895_v21 = vunpack.i.h.bf16 %v20241_v47  ;;  %v8894_v15 = vunpack.i.l.bf16 %v20241_v47  ;;  %vm20252_vm3 = vmmov %vm20246_vm1 }
 0x5c7   : > { %v7341_v18 = vsel %vm2675_vm4, %v17636_v0, %v10140_v43  ;;  %v7340_v17 = vsel %vm2675_vm4, %v17640_v45, %v10139_v35  ;;  %v8715_v0 = vunpack.i.h.bf16 %v20240_v14  ;;  %v10165_v45 = vunpack.i.h.bf16 %v10163_v49  ;;  %vm20261_vm15 = vmmov %vm20243_vm0 }
 0x5c8   : > { %7768 = vmatmul.bf16.gmra.mxu3 %v7562_v26 }
 0x5c9   : > { %v10143_v12 = vpop.permute.xlu1 %10142  ;;  %v2816_v50 = vsel %vm2748_vm5, %v2743_v6, %v8715_v0 }
 0x5ca   : > { %v10145_v56 = vunpack.i.h.bf16 %v10143_v12  ;;  %v10144_v13 = vunpack.i.l.bf16 %v10143_v12  ;;  %v20242_v12 = vld [vmem:[#allocation284_spill] sm:$0xff] }
 0x5cb   : > { %v9075_v43 = vunpack.i.h.bf16 %v20242_v12  ;;  %v9074_v35 = vunpack.i.l.bf16 %v20242_v12 }
 0x5cc   : > { %v10153_v2 = vpop.permute.xlu0 %10152  ;;  %v7372_v22 = vsel %vm2748_vm5, %v7340_v17, %v10144_v13  ;;  %v7373_v7 = vsel %vm2748_vm5, %v7341_v18, %v10145_v56  ;;  %v20245_v13 = vld [vmem:[#allocation102_spill] sm:$0xff] }
 0x5cd   : > { %v10155_v23 = vunpack.i.h.bf16 %v10153_v2  ;;  %v10154_v11 = vunpack.i.l.bf16 %v10153_v2  ;;  %v7404_v52 = vsel %vm2821_vm6, %v7372_v22, %v10149_v28  ;;  %v7405_v19 = vsel %vm2821_vm6, %v7373_v7, %v10150_v40  ;;  %v20248_v18 = vld [vmem:[#allocation258_spill] sm:$0xff]  ;;  %v17878_v28 = vpop.f32.mrf.mxu3 }
 0x5ce   : > { %v9325_v38 = vunpack.i.h.bf16 %v20245_v13  ;;  %v9324_v31 = vunpack.i.l.bf16 %v20245_v13  ;;  %v9560_v17 = vunpack.i.h.bf16 %v20248_v18  ;;  %v9559_v22 = vunpack.i.l.bf16 %v20248_v18  ;;  %v20257_v13 = vld [vmem:[#allocation99_spill] sm:$0xff] }
 0x5cf   : > { %v7436_v41 = vsel %vm2894_vm7, %v7404_v52, %v10154_v11  ;;  %v7437_v27 = vsel %vm2894_vm7, %v7405_v19, %v10155_v23  ;;  %v2889_v23 = vsel %vm2821_vm6, %v2816_v50, %v8895_v21  ;;  %v2888_v11 = vsel %vm2821_vm6, %v2815_v8, %v8894_v15  ;;  %v20255_v21 = vld [vmem:[#allocation88_spill] sm:$0xff] }
 0x5d0   : > { %v2962_v24 = vsel %vm2894_vm7, %v2889_v23, %v9075_v43  ;;  %v2961_v40 = vsel %vm2894_vm7, %v2888_v11, %v9074_v35  ;;  %v8900_v15 = vunpack.i.h.bf16 %v20255_v21  ;;  %v10178_v35 = vpop.permute.xlu2 %10177  ;;  %v20258_v50 = vld [vmem:[#allocation220_spill] sm:$0xff] }
 0x5d1   : > { %v10158_v37 = vpop.permute.xlu1 %10157  ;;  %v3035_v6 = vsel %vm2967_vm8, %v2962_v24, %v9325_v38  ;;  %v9350_v38 = vunpack.i.h.bf16 %v20257_v13  ;;  %v9565_v18 = vunpack.i.h.bf16 %v20258_v50  ;;  %v10180_v23 = vunpack.i.h.bf16 %v10178_v35 }
 0x5d2   : > { %v10160_v34 = vunpack.i.h.bf16 %v10158_v37  ;;  %v10159_v51 = vunpack.i.l.bf16 %v10158_v37  ;;  %v3108_v37 = vsel %vm20249_vm11, %v3035_v6, %v9560_v17  ;;  %v9564_v17 = vunpack.i.l.bf16 %v20258_v50  ;;  %vm20274_vm11 = vmmov %vm20246_vm1 }
 0x5d3   : > { %v10179_v11 = vunpack.i.l.bf16 %v10178_v35 }
 0x5d4   : > { %v10168_v48 = vpop.permute.xlu0 %10167  ;;  %v7468_v3 = vsel %vm2967_vm8, %v7436_v41, %v10159_v51  ;;  %v7469_v26 = vsel %vm2967_vm8, %v7437_v27, %v10160_v34  ;;  %v20253_v51 = vld [vmem:[#allocation227_spill] sm:$0xff]  ;;  %v20254_v27 = vld [vmem:[#allocation260_spill] sm:$0xff] }
 0x5d5   : > { %v10170_v61 = vunpack.i.h.bf16 %v10168_v48  ;;  %v10169_v42 = vunpack.i.l.bf16 %v10168_v48  ;;  %v7500_v2 = vsel %vm20243_vm0, %v7468_v3, %v10164_v33  ;;  %v7501_v56 = vsel %vm20244_vm9, %v7469_v26, %v10165_v45  ;;  %v17890_v47 = vpop.f32.mrf.mxu3  ;;  %v20256_v26 = vld [vmem:[#allocation283_spill] sm:$0xff]  ;;  %vm20262_vm9 = vmmov %vm20246_vm1 }
 0x5d6   : > { %v3034_v45 = vsel %vm2967_vm8, %v2961_v40, %v9324_v31  ;;  %v8540_v48 = vunpack.i.h.bf16 %v20253_v51  ;;  %v8539_v41 = vunpack.i.l.bf16 %v20253_v51  ;;  %v8899_v3 = vunpack.i.l.bf16 %v20255_v21 }
 0x5d7   : > { %v7532_v60 = vsel %vm20246_vm1, %v7500_v2, %v10169_v42  ;;  %v7533_v14 = vsel %vm20247_vm10, %v7501_v56, %v10170_v61  ;;  %v3107_v52 = vsel %vm20250_vm12, %v3034_v45, %v9559_v22  ;;  %v8720_v61 = vunpack.i.h.bf16 %v20254_v27  ;;  %v20260_v45 = vld [vmem:[#allocation289_spill] sm:$0xff]  ;;  %vm20272_vm10 = vmmov %vm20243_vm0 }
 0x5d8   : > { %v7564_v7 = vpack.c.bf16 %v7533_v14, %v7532_v60  ;;  %v8719_v42 = vunpack.i.l.bf16 %v20254_v27  ;;  %v9080_v12 = vunpack.i.h.bf16 %v20256_v26  ;;  %v9079_v43 = vunpack.i.l.bf16 %v20256_v26 }
 0x5d9   : > { %v10173_v49 = vpop.permute.xlu1 %10172  ;;  %v2745_v2 = vsel %vm2675_vm4, 0.0, %v8540_v48  ;;  %v2744_v56 = vsel %vm2675_vm4, 0.0, %v8539_v41  ;;  %v9349_v31 = vunpack.i.l.bf16 %v20257_v13  ;;  %v20263_v48 = vld [vmem:[#allocation217_spill] sm:$0xff] }
 0x5da   : > { %7773 = vmatmul.bf16.gmra.mxu3 %v7564_v7  ;;  %v10175_v0 = vunpack.i.h.bf16 %v10173_v49  ;;  %v10174_v33 = vunpack.i.l.bf16 %v10173_v49  ;;  %v2817_v60 = vsel %vm2748_vm5, %v2744_v56, %v8719_v42  ;;  %v2818_v14 = vsel %vm2748_vm5, %v2745_v2, %v8720_v61  ;;  %v20259_v49 = vld [vmem:[#allocation55_spill] sm:$0xff]  ;;  %v20264_v61 = vld [vmem:[#allocation250_spill] sm:$0xff] }
 0x5db   : > { %v2890_v22 = vsel %vm2821_vm6, %v2817_v60, %v8899_v3  ;;  %v2891_v7 = vsel %vm2821_vm6, %v2818_v14, %v8900_v15  ;;  %v7535_v6 = vpack.c.bf16 %v20260_v45, %v20259_v49  ;;  %v8545_v41 = vunpack.i.h.bf16 %v20263_v48  ;;  %v20265_v15 = vld [vmem:[#allocation93_spill] sm:$0xff] }
 0x5dc   : > { %v3180_v8 = vsel %vm20251_vm13, %v3107_v52, %v10174_v33  ;;  %v3181_v19 = vsel %vm20252_vm3, %v3108_v37, %v10175_v0  ;;  %v2963_v24 = vsel %vm2894_vm7, %v2890_v22, %v9079_v43  ;;  %v2964_v40 = vsel %vm2894_vm7, %v2891_v7, %v9080_v12  ;;  %v20266_v12 = vld [vmem:[#allocation274_spill] sm:$0xff]  ;;  %v10183_v56 = vpop.permute.xlu0 %10182 }
 0x5dd   : > { %v3252_v34 = vpack.c.bf16 %v3181_v19, %v3180_v8  ;;  %v3036_v0 = vsel %vm2967_vm8, %v2963_v24, %v9349_v31  ;;  %v3037_v33 = vsel %vm2967_vm8, %v2964_v40, %v9350_v38  ;;  %v8544_v27 = vunpack.i.l.bf16 %v20263_v48  ;;  %v20267_v31 = vld [vmem:[#allocation95_spill] sm:$0xff] }
 0x5de   : > { %v3109_v37 = vsel %vm20261_vm15, %v3036_v0, %v9564_v17  ;;  %v3110_v52 = vsel %vm20243_vm0, %v3037_v33, %v9565_v18  ;;  %v8725_v42 = vunpack.i.h.bf16 %v20264_v61  ;;  %v8724_v21 = vunpack.i.l.bf16 %v20264_v61  ;;  %v20268_v17 = vld [vmem:[#allocation105_spill] sm:$0xff] }
 0x5df   : > { %3609 = vmatmul.bf16.gmra.mxu0 %v3252_v34  ;;  %v3182_v8 = vsel %vm20262_vm9, %v3109_v37, %v10179_v11  ;;  %v3183_v19 = vsel %vm20246_vm1, %v3110_v52, %v10180_v23  ;;  %v17917_v34 = vpop.f32.mrf.mxu3  ;;  %v8905_v3 = vunpack.i.h.bf16 %v20265_v15  ;;  %v8904_v26 = vunpack.i.l.bf16 %v20265_v15  ;;  %v20270_v0 = vld [vmem:[#allocation149_spill] sm:$0xff] }
 0x5e0   : > { %v3254_v51 = vpack.c.bf16 %v3183_v19, %v3182_v8  ;;  %v9085_v43 = vunpack.i.h.bf16 %v20266_v12  ;;  %v9084_v35 = vunpack.i.l.bf16 %v20266_v12  ;;  %v2747_v13 = vsel %vm2675_vm4, 0.0, %v8545_v41  ;;  %v20277_v12 = vld [vmem:[#allocation69_spill] sm:$0xff] }
 0x5e1   : > { %v2746_v38 = vsel %vm2675_vm4, 0.0, %v8544_v27  ;;  %v9365_v60 = vunpack.i.h.bf16 %v20267_v31  ;;  %v9364_v14 = vunpack.i.l.bf16 %v20267_v31  ;;  %v2820_v18 = vsel %vm2748_vm5, %v2747_v13, %v8725_v42  ;;  %v20275_v42 = vld [vmem:[#allocation42_spill] sm:$0xff]  ;;  %v20279_v13 = vld [vmem:[#allocation135_spill] sm:$0xff] }
 0x5e2   : > { %v2819_v50 = vsel %vm2748_vm5, %v2746_v38, %v8724_v21  ;;  %v9575_v22 = vunpack.i.h.bf16 %v20268_v17  ;;  %v9574_v7 = vunpack.i.l.bf16 %v20268_v17  ;;  %v2893_v11 = vsel %vm2821_vm6, %v2820_v18, %v8905_v3  ;;  %vm20271_vm5 = vmmov %vm20243_vm0  ;;  %v20276_v21 = vld [vmem:[#allocation9_spill] sm:$0xff]  ;;  %v20280_v38 = vld [vmem:[#allocation288_spill] sm:$0xff] }
 0x5e3   : > { %v2892_v23 = vsel %vm2821_vm6, %v2819_v50, %v8904_v26  ;;  %v10185_v24 = vunpack.i.h.bf16 %v10183_v56  ;;  %v10184_v40 = vunpack.i.l.bf16 %v10183_v56  ;;  %v2966_v45 = vsel %vm2894_vm7, %v2893_v11, %v9085_v43  ;;  %vm20273_vm6 = vmmov %vm20246_vm1  ;;  %v20278_v43 = vld [vmem:[#allocation23_spill] sm:$0xff]  ;;  %v20282_v18 = vld [vmem:[#allocation234_spill] sm:$0xff] }
 0x5e4   : > { %v2965_v49 = vsel %vm2894_vm7, %v2892_v23, %v9084_v35  ;;  %v3039_v37 = vsel %vm2967_vm8, %v2966_v45, %v9365_v60  ;;  %v7539_v15 = vpack.c.bf16 %v20276_v21, %v20275_v42  ;;  %v7541_v35 = vpack.c.bf16 %v20278_v43, %v20277_v12  ;;  %v20281_v50 = vld [vmem:[#allocation71_spill] sm:$0xff]  ;;  %v20283_v23 = vld [vmem:[#allocation173_spill] sm:$0xff]  ;;  %v364_v12 = vld [vmem:[%s10343_s30 + $0x2a0] sm:$0xff] }
 0x5e5   : > { %v3038_v52 = vsel %vm2967_vm8, %v2965_v49, %v9364_v14  ;;  %v3112_v19 = vsel %vm20272_vm10, %v3039_v37, %v9575_v22  ;;  %v7543_v31 = vpack.c.bf16 %v20280_v38, %v20279_v13  ;;  %v7545_v17 = vpack.c.bf16 %v20282_v18, %v20281_v50  ;;  %v20284_v11 = vld [vmem:[#allocation285_spill] sm:$0xff]  ;;  %v365_v43 = vld [vmem:[%s10343_s30 + $0x2a8] sm:$0xff] }
 0x5e6   : > { %v3111_v8 = vsel %vm20271_vm5, %v3038_v52, %v9574_v7  ;;  %v3185_v48 = vsel %vm20274_vm11, %v3112_v19, %v10185_v24  ;;  %v7547_v24 = vpack.c.bf16 %v20284_v11, %v20283_v23  ;;  %v20285_v45 = vld [vmem:[#allocation237_spill] sm:$0xff]  ;;  %v17997_v19 = vld [vmem:[%s18295_s6] ss:$0 sm:$0xff]  ;;  %v468_v38 = vmax.f32 %v364_v12, 0.0 }
 0x5e7   : > { %v17927_v2 = vpop.f32.mrf.mxu3  ;;  %v7700_v42 = vadd.f32 %v17997_v19, %v17707_v62  ;;  %vm8044_vm7 = vcmask 130053   ;;  %v10207_v62 = vld [vmem:[%s10343_s30 + $0xa0] sm:$0xff]  ;;  %vm8047_vm8 = vcmask 126976  }
 0x5ea   : > { %8311 = vmatmul.msk.bf16.vlgmr.msrb.gmra.mxu3 %vm2675_vm4, %v7535_v6  ;;  %v20269_v6 = vld [vmem:[#allocation148_spill] sm:$0xff] }
 0x5eb   : > { %v7537_v33 = vpack.c.bf16 %v20270_v0, %v20269_v6  ;;  %v20286_v6 = vld [vmem:[#allocation235_spill] sm:$0xff] }
 0x5ec   : > { %v7549_v0 = vpack.c.bf16 %v20286_v6, %v20285_v45 }
 0x5ef   : > { %3612 = vmatmul.bf16.gmra.mxu0 %v3254_v51  ;;  %v3184_v51 = vsel %vm20273_vm6, %v3111_v8, %v10184_v40  ;;  %v17950_v41 = vpop.f32.mrf.mxu3 }
 0x5f0   : > { %v3256_v27 = vpack.c.bf16 %v3185_v48, %v3184_v51  ;;  %v20287_v51 = vld [vmem:[#allocation72_spill] sm:$0xff] }
 0x5f1   : > { %v20288_v48 = vld [vmem:[#allocation8_spill] sm:$0xff] }
 0x5f7   : > { %v17952_v61 = vpop.f32.mrf.mxu3 }
 0x5fa   : > { %8312 = vmatmul.msk.bf16.gmra.mxu3 %vm2675_vm4, %v7537_v33 }
 0x5ff   : > { %3615 = vmatmul.bf16.gmra.mxu0 %v3256_v27  ;;  %v17957_v3 = vpop.f32.mrf.mxu3  ;;  %v7551_v27 = vpack.c.bf16 %v20288_v48, %v20287_v51 }
 0x607   : > { %v17959_v26 = vpop.f32.mrf.mxu3 }
 0x60a   : > { %8313 = vmatmul.msk.bf16.gmra.mxu3 %vm2675_vm4, %v7539_v15 }
 0x60f   : > { %v17964_v56 = vpop.f32.mrf.mxu3 }
 0x61a   : > { %8314 = vmatmul.msk.bf16.gmra.mxu3 %vm2675_vm4, %v7541_v35  ;;  %v366_v35 = vld [vmem:[%s10343_s30 + $0x2b0] sm:$0xff] }
 0x61b   : > { %v470_v50 = vmax.f32 %v366_v35, 0.0  ;;  %v10209_v35 = vld [vmem:[%s10343_s30 + $0xa8] sm:$0xff] }
 0x61d   : > { %v4035_v11 = vrot.slane %v470_v50, 1 }
 0x623   : > { %v17968_v60 = vpop.f32.mrf.mxu3 }
 0x62a   : > { %8315 = vmatmul.msk.bf16.gmra.mxu3 %vm2675_vm4, %v7543_v31  ;;  %v469_v31 = vmax.f32 %v365_v43, 0.0 }
 0x62b   : > { %v17971_v14 = vpop.f32.mrf.mxu3 }
 0x62c   : > { %v4033_v23 = vrot.slane %v469_v31, 1 }
 0x62e   : > { %v4036_v6 = vsel %vm717_vm2, %v4033_v23, %v4035_v11 }
 0x63a   : > { %8316 = vmatmul.msk.bf16.gmra.mxu3 %vm2675_vm4, %v7545_v17  ;;  %v17976_v22 = vpop.f32.mrf.mxu3  ;;  %v4032_v17 = vrot.slane %v468_v38, 1  ;;  %v7705_v38 = vadd.f32 %v17997_v19, %v17748_v5 }
 0x63c   : > { %v4034_v45 = vsel %vm717_vm2, %v4032_v17, %v4033_v23  ;;  %v367_v17 = vld [vmem:[%s10343_s30 + $0x2b8] sm:$0x3]  ;;  %v368_v23 = vld [vmem:[%s10343_s30 + $0x2c0] sm:$0xff] }
 0x642   : > { %v17978_v7 = vpop.f32.mrf.mxu3 }
 0x64a   : > { %8317 = vmatmul.msk.bf16.gmra.mxu3 %vm2675_vm4, %v7547_v24 }
 0x64b   : > { %v17983_v40 = vpop.f32.mrf.mxu3 }
 0x653   : > { %v17985_v49 = vpop.f32.mrf.mxu3 }
 0x65a   : > { %8318 = vmatmul.msk.bf16.gmra.mxu3 %vm2675_vm4, %v7549_v0  ;;  %v4162_v0 = vpack.c.bf16 %v4036_v6, %v4034_v45  ;;  %v472_v45 = vmax.f32 %v368_v23, 0.0 }
 0x65c   : > { %v3610_v33 = vpop.f32.mrf.mxu0  ;;  %8263 = vmatmul.msk.bf16.gmra.mxu2 %vm2675_vm4, %v4162_v0 }
 0x65d   : > { %v17990_v37 = vpop.f32.mrf.mxu3  ;;  %v7702_v33 = vadd.f32 %v17997_v19, %v17731_v20  ;;  %v10208_v20 = vld [vmem:[%s10343_s30 + $0xb0] sm:$0xff] }
 0x664   : > { %v3611_v52 = vpop.f32.mrf.mxu0 }
 0x665   : > { %v17992_v8 = vpop.f32.mrf.mxu3 }
 0x66a   : > { %8319 = vmatmul.msk.bf16.gmra.mxu3 %vm2675_vm4, %v7551_v27 }
 0x66c   : > { %v3613_v21 = vpop.f32.mrf.mxu0 }
 0x66d   : > { %v7788_v15 = vpop.f32.mrf.mxu3  ;;  %v20290_v21 = vld [vmem:[#allocation104_spill] sm:$0xff] }
 0x66e   : > { %v7789_v13 = vadd.f32 %v7788_v15, %v7700_v42  ;;  %v20289_v42 = vld [vmem:[#allocation85_spill] sm:$0xff] }
 0x66f   : > { %v7553_v15 = vpack.c.bf16 %v20290_v21, %v20289_v42 }
 0x670   : > { %v7900_v18 = vrot.slane %v7789_v13, 3 }
 0x672   : > { %v7996_v24 = vadd.f32 %v10207_v62, %v7900_v18 }
 0x674   : > { %8045 = vst.msk [vmem:[%s18011_s12 - $0x5] sm:$0xe0] %vm8044_vm7, %v7996_v24  ;;  %v3614_v52 = vpop.f32.mrf.mxu0  ;;  %v471_v24 = vmax.f32 %v367_v17, 0.0 }
 0x675   : > { %v7790_v51 = vpop.f32.mrf.mxu3  ;;  %v4039_v52 = vrot.slane %v472_v45, 1  ;;  %v371_v45 = vld [vmem:[%s10343_s30 + $0x2d8] sm:$0x3] }
 0x676   : > { %v7791_v48 = vadd.f32 %v7790_v51, %v7702_v33  ;;  %v4037_v33 = vrot.slane %v471_v24, 1  ;;  %v10210_v51 = vld [vmem:[%s10343_s30 + $0xc0] sm:$0xff]  ;;  %v370_v24 = vld [vmem:[%s10343_s30 + $0x2d0] sm:$0xff] }
 0x678   : > { %v7901_v27 = vrot.slane %v7791_v48, 3 }
 0x67a   : > { %v7902_v12 = vsel %vm6173_vm14, %v7900_v18, %v7901_v27  ;;  %v7998_v43 = vadd.f32 %v10208_v20, %v7901_v27  ;;  %8320 = vmatmul.msk.bf16.gmra.mxu3 %vm2675_vm4, %v7553_v15  ;;  %v369_v18 = vld [vmem:[%s10343_s30 + $0x2c8] sm:$0xff]  ;;  %v4038_v27 = vsel %vm717_vm2, %v4035_v11, %v4037_v33  ;;  %v7707_v15 = vadd.f32 %v17997_v19, %v17754_v30  ;;  %v20292_v11 = vld [vmem:[#allocation161_spill] sm:$0xff] }
 0x67b   : > { %v7997_v13 = vadd.f32 %v10209_v35, %v7902_v12  ;;  %v473_v6 = vmax.f32 %v369_v18, 0.0  ;;  %v10212_v30 = vld [vmem:[%s10343_s30 + $0xc8] sm:$0xff]  ;;  %v7710_v18 = vadd.f32 %v17997_v19, %v17762_v58  ;;  %v475_v33 = vmax.f32 %v371_v45, 0.0 }
 0x67c   : > { %8048 = vst.msk [vmem:[%s18011_s12 + $0xb] sm:$0x1f] %vm8047_vm8, %v7998_v43  ;;  %v3616_v31 = vpop.f32.mrf.mxu0 }
 0x67d   : > { %8046 = vst.msk [vmem:[%s18011_s12 + $0x3] sm:$0xff] %vm2675_vm4, %v7997_v13  ;;  %v7793_v50 = vpop.f32.mrf.mxu3  ;;  %v4040_v5 = vrot.slane %v473_v6, 1  ;;  %v20291_v13 = vld [vmem:[#allocation126_spill] sm:$0xff] }
 0x67e   : > { %v7794_v62 = vadd.f32 %v7793_v50, %v7705_v38  ;;  %v7555_v38 = vpack.c.bf16 %v20292_v11, %v20291_v13  ;;  %v10211_v50 = vld [vmem:[%s10343_s30 + $0xd0] sm:$0xff] }
 0x67f   : > { %v4041_v42 = vsel %vm717_vm2, %v4039_v52, %v4040_v5  ;;  %v10214_v11 = vld [vmem:[%s10343_s30 + $0xf0] sm:$0xff] }
 0x680   : > { %v7903_v0 = vrot.slane %v7794_v62, 3  ;;  %v4163_v21 = vpack.c.bf16 %v4041_v42, %v4038_v27  ;;  %v10213_v27 = vld [vmem:[%s10343_s30 + $0xe0] sm:$0xff] }
 0x682   : > { %v7999_v48 = vadd.f32 %v10210_v51, %v7903_v0  ;;  %8264 = vmatmul.msk.bf16.gmra.mxu2 %vm2675_vm4, %v4163_v21 }
 0x684   : > { %8049 = vst.msk [vmem:[%s18011_s12 + $0xb] sm:$0xe0] %vm8044_vm7, %v7999_v48  ;;  %v3617_v12 = vpop.f32.mrf.mxu0  ;;  %v4044_v48 = vrot.slane %v475_v33, 1 }
 0x685   : > { %v7795_v20 = vpop.f32.mrf.mxu3  ;;  %v7712_v12 = vadd.f32 %v17997_v19, %v17774_v59  ;;  %v10215_v59 = vld [vmem:[%s10343_s30 + $0xe8] sm:$0xff] }
 0x686   : > { %v7796_v43 = vadd.f32 %v7795_v20, %v7707_v15 }
 0x688   : > { %v7904_v35 = vrot.slane %v7796_v43, 3 }
 0x68a   : > { %v7905_v31 = vsel %vm6173_vm14, %v7903_v0, %v7904_v35  ;;  %v8001_v17 = vadd.f32 %v10211_v50, %v7904_v35  ;;  %8321 = vmatmul.msk.bf16.gmra.mxu3 %vm2675_vm4, %v7555_v38  ;;  %v474_v0 = vmax.f32 %v370_v24, 0.0  ;;  %v7715_v50 = vadd.f32 %v17997_v19, %v17776_v32 }
 0x68b   : > { %v8000_v23 = vadd.f32 %v10212_v30, %v7905_v31  ;;  %v372_v30 = vld [vmem:[%s10343_s30 + $0x2e0] sm:$0xff] }
 0x68c   : > { %8051 = vst.msk [vmem:[%s18011_s12 + $0x1b] sm:$0x1f] %vm8047_vm8, %v8001_v17  ;;  %v4042_v51 = vrot.slane %v474_v0, 1 }
 0x68d   : > { %8050 = vst.msk [vmem:[%s18011_s12 + $0x13] sm:$0xff] %vm2675_vm4, %v8000_v23  ;;  %v7798_v62 = vpop.f32.mrf.mxu3  ;;  %v373_v23 = vld [vmem:[%s10343_s30 + $0x2e8] sm:$0xff] }
 0x68e   : > { %v7799_v6 = vadd.f32 %v7798_v62, %v7710_v18  ;;  %v4043_v58 = vsel %vm717_vm2, %v4040_v5, %v4042_v51  ;;  %v4045_v21 = vsel %vm717_vm2, %v4042_v51, %v4044_v48  ;;  %v7557_v5 = vpack.c.bf16 %v17461_v4, %v17458_v63  ;;  %v374_v63 = vld [vmem:[%s10343_s30 + $0x2f0] sm:$0xff] }
 0x68f   : > { %v4164_v15 = vpack.c.bf16 %v4045_v21, %v4043_v58  ;;  %v476_v18 = vmax.f32 %v372_v30, 0.0  ;;  %v477_v62 = vmax.f32 %v373_v23, 0.0  ;;  %v478_v24 = vmax.f32 %v374_v63, 0.0 }
 0x690   : > { %v7906_v52 = vrot.slane %v7799_v6, 3 }
 0x691   : > { %v4046_v6 = vrot.slane %v476_v18, 1  ;;  %v4047_v0 = vrot.slane %v477_v62, 1  ;;  %v4049_v33 = vrot.slane %v478_v24, 1  ;;  %v10219_v18 = vld [vmem:[%s10343_s30 + $0x120] sm:$0xff] }
 0x692   : > { %v8002_v42 = vadd.f32 %v10213_v27, %v7906_v52  ;;  %8265 = vmatmul.msk.bf16.gmra.mxu2 %vm2675_vm4, %v4164_v15 }
 0x693   : > { %v4048_v51 = vsel %vm717_vm2, %v4046_v6, %v4047_v0  ;;  %v4050_v48 = vsel %vm717_vm2, %v4047_v0, %v4049_v33  ;;  %v7722_v6 = vadd.f32 %v17997_v19, %v17798_v46  ;;  %v10221_v46 = vld [vmem:[%s10343_s30 + $0x128] sm:$0xff] }
 0x694   : > { %8052 = vst.msk [vmem:[%s18011_s12 + $0x1b] sm:$0xe0] %vm8044_vm7, %v8002_v42  ;;  %v4165_v27 = vpack.c.bf16 %v4050_v48, %v4048_v51  ;;  %v7717_v42 = vadd.f32 %v17997_v19, %v17784_v29  ;;  %v10218_v29 = vld [vmem:[%s10343_s30 + $0x108] sm:$0xff]  ;;  %v10220_v48 = vld [vmem:[%s10343_s30 + $0x130] sm:$0xff] }
 0x695   : > { %v7800_v20 = vpop.f32.mrf.mxu3 }
 0x696   : > { %v7801_v43 = vadd.f32 %v7800_v20, %v7712_v12  ;;  %v7559_v12 = vpack.c.bf16 %v17608_v53, %v17605_v39  ;;  %v377_v39 = vld [vmem:[%s10343_s30 + $0x308] sm:$0xff] }
 0x698   : > { %v7907_v35 = vrot.slane %v7801_v43, 3  ;;  %v10217_v43 = vld [vmem:[%s10343_s30 + $0x110] sm:$0xff] }
 0x69a   : > { %v7908_v13 = vsel %vm6173_vm14, %v7906_v52, %v7907_v35  ;;  %v8004_v38 = vadd.f32 %v10214_v11, %v7907_v35  ;;  %8322 = vmatmul.msk.bf16.gmra.mxu3 %vm2675_vm4, %v7557_v5  ;;  %v10216_v52 = vld [vmem:[%s10343_s30 + $0x100] sm:$0xff] }
 0x69b   : > { %v8003_v31 = vadd.f32 %v10215_v59, %v7908_v13  ;;  %v7720_v13 = vadd.f32 %v17997_v19, %v17792_v54  ;;  %v376_v59 = vld [vmem:[%s10343_s30 + $0x300] sm:$0xff] }
 0x69c   : > { %8054 = vst.msk [vmem:[%s18011_s12 + $0x2b] sm:$0x1f] %vm8047_vm8, %v8004_v38  ;;  %v375_v38 = vld [vmem:[%s10343_s30 + $0x2f8] sm:$0x3] }
 0x69d   : > { %8053 = vst.msk [vmem:[%s18011_s12 + $0x23] sm:$0xff] %vm2675_vm4, %v8003_v31  ;;  %v7803_v17 = vpop.f32.mrf.mxu3  ;;  %v479_v31 = vmax.f32 %v375_v38, 0.0 }
 0x69e   : > { %v7804_v4 = vadd.f32 %v7803_v17, %v7715_v50  ;;  %v480_v50 = vmax.f32 %v376_v59, 0.0  ;;  %v481_v17 = vmax.f32 %v377_v39, 0.0  ;;  %v7727_v59 = vadd.f32 %v17997_v19, %v17818_v57 }
 0x69f   : > { %v4051_v23 = vrot.slane %v479_v31, 1 }
 0x6a0   : > { %v7909_v45 = vrot.slane %v7804_v4, 3  ;;  %v4053_v63 = vrot.slane %v480_v50, 1  ;;  %v4054_v4 = vrot.slane %v481_v17, 1  ;;  %v7563_v50 = vpack.c.bf16 %v17729_v44, %v17726_v16 }
 0x6a1   : > { %v4052_v62 = vsel %vm717_vm2, %v4049_v33, %v4051_v23  ;;  %v7561_v33 = vpack.c.bf16 %v17690_v36, %v17687_v1  ;;  %v379_v1 = vld [vmem:[%s10343_s30 + $0x318] sm:$0x3] }
 0x6a2   : > { %v8005_v32 = vadd.f32 %v10216_v52, %v7909_v45  ;;  %8266 = vmatmul.msk.bf16.gmra.mxu2 %vm2675_vm4, %v4165_v27  ;;  %v4055_v24 = vsel %vm717_vm2, %v4053_v63, %v4054_v4  ;;  %v10224_v63 = vld [vmem:[%s10343_s30 + $0x148] sm:$0xff] }
 0x6a4   : > { %8055 = vst.msk [vmem:[%s18011_s12 + $0x2b] sm:$0xe0] %vm8044_vm7, %v8005_v32 }
 0x6a5   : > { %v7805_v58 = vpop.f32.mrf.mxu3 }
 0x6a6   : > { %v7806_v21 = vadd.f32 %v7805_v58, %v7717_v42  ;;  %v7725_v58 = vadd.f32 %v17997_v19, %v17804_v9 }
 0x6a8   : > { %v7910_v15 = vrot.slane %v7806_v21, 3 }
 0x6aa   : > { %v7911_v20 = vsel %vm6173_vm14, %v7909_v45, %v7910_v15  ;;  %v8007_v35 = vadd.f32 %v10217_v43, %v7910_v15  ;;  %8323 = vmatmul.msk.bf16.gmra.mxu3 %vm2675_vm4, %v7559_v12  ;;  %v4166_v45 = vpack.c.bf16 %v4055_v24, %v4052_v62  ;;  %v378_v15 = vld [vmem:[%s10343_s30 + $0x310] sm:$0xff]  ;;  %v7732_v24 = vadd.f32 %v17997_v19, %v17838_v55 }
 0x6ab   : > { %v8006_v5 = vadd.f32 %v10218_v29, %v7911_v20  ;;  %v482_v12 = vmax.f32 %v378_v15, 0.0  ;;  %v483_v20 = vmax.f32 %v379_v1, 0.0  ;;  %v7735_v55 = vadd.f32 %v17997_v19, %v17847_v25 }
 0x6ac   : > { %8057 = vst.msk [vmem:[%s18011_s12 + $0x3b] sm:$0x1f] %vm8047_vm8, %v8007_v35  ;;  %v7737_v15 = vadd.f32 %v17997_v19, %v17878_v28 }
 0x6ad   : > { %8056 = vst.msk [vmem:[%s18011_s12 + $0x33] sm:$0xff] %vm2675_vm4, %v8006_v5  ;;  %v7808_v11 = vpop.f32.mrf.mxu3  ;;  %v4056_v35 = vrot.slane %v482_v12, 1  ;;  %v4058_v29 = vrot.slane %v483_v20, 1  ;;  %v10222_v5 = vld [vmem:[%s10343_s30 + $0x140] sm:$0xff]  ;;  %v10229_v20 = vld [vmem:[%s10343_s30 + $0x190] sm:$0xff] }
 0x6ae   : > { %v7809_v53 = vadd.f32 %v7808_v11, %v7720_v13 }
 0x6af   : > { %v4057_v9 = vsel %vm717_vm2, %v4054_v4, %v4056_v35  ;;  %v4059_v11 = vsel %vm717_vm2, %v4056_v35, %v4058_v29  ;;  %v7730_v4 = vadd.f32 %v17997_v19, %v17820_v10  ;;  %v10230_v35 = vld [vmem:[%s10343_s30 + $0x188] sm:$0xff] }
 0x6b0   : > { %v7912_v30 = vrot.slane %v7809_v53, 3  ;;  %v4167_v38 = vpack.c.bf16 %v4059_v11, %v4057_v9  ;;  %v10231_v11 = vld [vmem:[%s10343_s30 + $0x1a0] sm:$0xff] }
 0x6b2   : > { %v8008_v54 = vadd.f32 %v10219_v18, %v7912_v30  ;;  %8267 = vmatmul.msk.bf16.gmra.mxu2 %vm2675_vm4, %v4166_v45 }
 0x6b4   : > { %8058 = vst.msk [vmem:[%s18011_s12 + $0x3b] sm:$0xe0] %vm8044_vm7, %v8008_v54  ;;  %v10225_v54 = vld [vmem:[%s10343_s30 + $0x160] sm:$0xff] }
 0x6b5   : > { %v7810_v0 = vpop.f32.mrf.mxu3 }
 0x6b6   : > { %v7811_v52 = vadd.f32 %v7810_v0, %v7722_v6 }
 0x6b8   : > { %v7913_v32 = vrot.slane %v7811_v52, 3  ;;  %v10226_v52 = vld [vmem:[%s10343_s30 + $0x170] sm:$0xff] }
 0x6ba   : > { %v7914_v51 = vsel %vm6173_vm14, %v7912_v30, %v7913_v32  ;;  %v8010_v27 = vadd.f32 %v10220_v48, %v7913_v32  ;;  %8324 = vmatmul.msk.bf16.gmra.mxu3 %vm2675_vm4, %v7561_v33  ;;  %v10223_v30 = vld [vmem:[%s10343_s30 + $0x150] sm:$0xff]  ;;  %v20293_v33 = vld [vmem:[#allocation62_spill] sm:$0xff] }
 0x6bb   : > { %v8009_v42 = vadd.f32 %v10221_v46, %v7914_v51  ;;  %v10227_v51 = vld [vmem:[%s10343_s30 + $0x168] sm:$0xff] }
 0x6bc   : > { %8060 = vst.msk [vmem:[%s18011_s12 + $0x4b] sm:$0x1f] %vm8047_vm8, %v8010_v27 }
 0x6bd   : > { %8059 = vst.msk [vmem:[%s18011_s12 + $0x43] sm:$0xff] %vm2675_vm4, %v8009_v42  ;;  %v7813_v21 = vpop.f32.mrf.mxu3 }
 0x6be   : > { %v7814_v36 = vadd.f32 %v7813_v21, %v7725_v58  ;;  %v10228_v58 = vld [vmem:[%s10343_s30 + $0x180] sm:$0xff] }
 0x6c0   : > { %v7915_v43 = vrot.slane %v7814_v36, 3 }
 0x6c2   : > { %v8011_v13 = vadd.f32 %v10222_v5, %v7915_v43  ;;  %8268 = vmatmul.msk.bf16.gmra.mxu2 %vm2675_vm4, %v4167_v38  ;;  %v7740_v5 = vadd.f32 %v17997_v19, %v17890_v47 }
 0x6c4   : > { %8061 = vst.msk [vmem:[%s18011_s12 + $0x4b] sm:$0xe0] %vm8044_vm7, %v8011_v13 }
 0x6c5   : > { %v7815_v39 = vpop.f32.mrf.mxu3 }
 0x6c6   : > { %v7816_v53 = vadd.f32 %v7815_v39, %v7727_v59  ;;  %v7742_v59 = vadd.f32 %v17997_v19, %v17917_v34 }
 0x6c8   : > { %v7916_v31 = vrot.slane %v7816_v53, 3 }
 0x6ca   : > { %v7917_v17 = vsel %vm6173_vm14, %v7915_v43, %v7916_v31  ;;  %v8013_v23 = vadd.f32 %v10223_v30, %v7916_v31  ;;  %8325 = vmatmul.msk.bf16.gmra.mxu3 %vm2675_vm4, %v7563_v50 }
 0x6cb   : > { %v8012_v57 = vadd.f32 %v10224_v63, %v7917_v17  ;;  %v10232_v17 = vld [vmem:[%s10343_s30 + $0x1b0] sm:$0xff] }
 0x6cc   : > { %8063 = vst.msk [vmem:[%s18011_s12 + $0x5b] sm:$0x1f] %vm8047_vm8, %v8013_v23  ;;  %v10233_v23 = vld [vmem:[%s10343_s30 + $0x1a8] sm:$0xff] }
 0x6cd   : > { %8062 = vst.msk [vmem:[%s18011_s12 + $0x53] sm:$0xff] %vm2675_vm4, %v8012_v57  ;;  %v7818_v18 = vpop.f32.mrf.mxu3  ;;  %v7745_v57 = vadd.f32 %v17997_v19, %v17927_v2 }
 0x6ce   : > { %v7819_v16 = vadd.f32 %v7818_v18, %v7730_v4 }
 0x6d0   : > { %v7918_v44 = vrot.slane %v7819_v16, 3 }
 0x6d2   : > { %v8014_v62 = vadd.f32 %v10225_v54, %v7918_v44 }
 0x6d4   : > { %8064 = vst.msk [vmem:[%s18011_s12 + $0x5b] sm:$0xe0] %vm8044_vm7, %v8014_v62  ;;  %v7747_v62 = vadd.f32 %v17997_v19, %v17950_v41 }
 0x6d5   : > { %v7820_v45 = vpop.f32.mrf.mxu3 }
 0x6d6   : > { %v7821_v10 = vadd.f32 %v7820_v45, %v7732_v24 }
 0x6d8   : > { %v7919_v6 = vrot.slane %v7821_v10, 3 }
 0x6da   : > { %v7920_v0 = vsel %vm6173_vm14, %v7918_v44, %v7919_v6  ;;  %v8016_v32 = vadd.f32 %v10226_v52, %v7919_v6  ;;  %8326 = vmatmul.msk.bf16.gmra.mxu3 %vm2675_vm4, %v20293_v33  ;;  %v10234_v44 = vld [vmem:[%s10343_s30 + $0x1c0] sm:$0xff] }
 0x6db   : > { %v8015_v48 = vadd.f32 %v10227_v51, %v7920_v0  ;;  %v10235_v0 = vld [vmem:[%s10343_s30 + $0x1d0] sm:$0xff]  ;;  %v7750_v51 = vadd.f32 %v17997_v19, %v17952_v61 }
 0x6dc   : > { %8066 = vst.msk [vmem:[%s18011_s12 + $0x6b] sm:$0x1f] %vm8047_vm8, %v8016_v32  ;;  %v10236_v32 = vld [vmem:[%s10343_s30 + $0x1c8] sm:$0xff] }
 0x6dd   : > { %8065 = vst.msk [vmem:[%s18011_s12 + $0x63] sm:$0xff] %vm2675_vm4, %v8015_v48  ;;  %v7823_v27 = vpop.f32.mrf.mxu3 }
 0x6de   : > { %v7824_v46 = vadd.f32 %v7823_v27, %v7735_v55 }
 0x6df   : > { %v4438_v31 = vpop.f32.mrf.mxu2 }
 0x6e0   : > { %v7921_v42 = vrot.slane %v7824_v46, 3  ;;  %v10237_v46 = vld [vmem:[%s10343_s30 + $0x1e0] sm:$0xff] }
 0x6e2   : > { %v8017_v21 = vadd.f32 %v10228_v58, %v7921_v42  ;;  %v7752_v58 = vadd.f32 %v17997_v19, %v17957_v3 }
 0x6e4   : > { %8067 = vst.msk [vmem:[%s18011_s12 + $0x6b] sm:$0xe0] %vm8044_vm7, %v8017_v21 }
 0x6e5   : > { %v7825_v1 = vpop.f32.mrf.mxu3 }
 0x6e6   : > { %v7826_v25 = vadd.f32 %v7825_v1, %v7737_v15 }
 0x6e7   : > { %v4440_v16 = vpop.f32.mrf.mxu2 }
 0x6e8   : > { %v7922_v36 = vrot.slane %v7826_v25, 3 }
 0x6ea   : > { %v7923_v12 = vsel %vm6173_vm14, %v7921_v42, %v7922_v36  ;;  %v8019_v43 = vadd.f32 %v10229_v20, %v7922_v36  ;;  %v10238_v36 = vld [vmem:[%s10343_s30 + $0x1f0] sm:$0xff]  ;;  %v10239_v20 = vld [vmem:[%s10343_s30 + $0x1e8] sm:$0xff] }
 0x6eb   : > { %v8018_v29 = vadd.f32 %v10230_v35, %v7923_v12  ;;  %v7755_v35 = vadd.f32 %v17997_v19, %v17959_v26 }
 0x6ec   : > { %8069 = vst.msk [vmem:[%s18011_s12 + $0x7b] sm:$0x1f] %vm8047_vm8, %v8019_v43 }
 0x6ed   : > { %8068 = vst.msk [vmem:[%s18011_s12 + $0x73] sm:$0xff] %vm2675_vm4, %v8018_v29  ;;  %v7828_v28 = vpop.f32.mrf.mxu3 }
 0x6ee   : > { %v7829_v13 = vadd.f32 %v7828_v28, %v7740_v5 }
 0x6f0   : > { %v7924_v9 = vrot.slane %v7829_v13, 3  ;;  %v10240_v13 = vld [vmem:[%s10343_s30 + $0x200] sm:$0xff] }
 0x6f2   : > { %v8020_v38 = vadd.f32 %v10231_v11, %v7924_v9  ;;  %v7757_v11 = vadd.f32 %v17997_v19, %v17964_v56 }
 0x6f4   : > { %8070 = vst.msk [vmem:[%s18011_s12 + $0x7b] sm:$0xe0] %vm8044_vm7, %v8020_v38 }
 0x6f5   : > { %v7830_v39 = vpop.f32.mrf.mxu3 }
 0x6f6   : > { %v7831_v47 = vadd.f32 %v7830_v39, %v7742_v59 }
 0x6f8   : > { %v7925_v53 = vrot.slane %v7831_v47, 3 }
 0x6fa   : > { %v7926_v50 = vsel %vm6173_vm14, %v7924_v9, %v7925_v53  ;;  %v8022_v30 = vadd.f32 %v10232_v17, %v7925_v53  ;;  %v10241_v53 = vld [vmem:[%s10343_s30 + $0x210] sm:$0xff] }
 0x6fb   : > { %v8021_v63 = vadd.f32 %v10233_v23, %v7926_v50  ;;  %v10242_v50 = vld [vmem:[%s10343_s30 + $0x208] sm:$0xff] }
 0x6fc   : > { %8072 = vst.msk [vmem:[%s18011_s12 + $0x8b] sm:$0x1f] %vm8047_vm8, %v8022_v30  ;;  %v7760_v30 = vadd.f32 %v17997_v19, %v17968_v60 }
 0x6fd   : > { %8071 = vst.msk [vmem:[%s18011_s12 + $0x83] sm:$0xff] %vm2675_vm4, %v8021_v63  ;;  %v7833_v34 = vpop.f32.mrf.mxu3 }
 0x6fe   : > { %v7834_v4 = vadd.f32 %v7833_v34, %v7745_v57  ;;  %v10243_v34 = vld [vmem:[%s10343_s30 + $0x220] sm:$0xff] }
 0x700   : > { %v7927_v18 = vrot.slane %v7834_v4, 3 }
 0x702   : > { %v8023_v54 = vadd.f32 %v10234_v44, %v7927_v18 }
 0x704   : > { %8073 = vst.msk [vmem:[%s18011_s12 + $0x8b] sm:$0xe0] %vm8044_vm7, %v8023_v54 }
 0x705   : > { %v7835_v2 = vpop.f32.mrf.mxu3  ;;  %v4443_v10 = vpop.f32.mrf.mxu2 }
 0x706   : > { %v7836_v24 = vadd.f32 %v7835_v2, %v7747_v62  ;;  %v10244_v2 = vld [vmem:[%s10343_s30 + $0x230] sm:$0xff] }
 0x708   : > { %v7928_v45 = vrot.slane %v7836_v24, 3 }
 0x70a   : > { %v7929_v6 = vsel %vm6173_vm14, %v7927_v18, %v7928_v45  ;;  %v8025_v52 = vadd.f32 %v10235_v0, %v7928_v45  ;;  %v7762_v18 = vadd.f32 %v17997_v19, %v17971_v14  ;;  %v10245_v45 = vld [vmem:[%s10343_s30 + $0x228] sm:$0xff] }
 0x70b   : > { %v8024_v33 = vadd.f32 %v10236_v32, %v7929_v6  ;;  %v7765_v6 = vadd.f32 %v17997_v19, %v17976_v22 }
 0x70c   : > { %8075 = vst.msk [vmem:[%s18011_s12 + $0x9b] sm:$0x1f] %vm8047_vm8, %v8025_v52 }
 0x70d   : > { %8074 = vst.msk [vmem:[%s18011_s12 + $0x93] sm:$0xff] %vm2675_vm4, %v8024_v33  ;;  %v7838_v41 = vpop.f32.mrf.mxu3  ;;  %v4445_v27 = vpop.f32.mrf.mxu2  ;;  %v10246_v33 = vld [vmem:[%s10343_s30 + $0x240] sm:$0xff] }
 0x70e   : > { %v7839_v48 = vadd.f32 %v7838_v41, %v7750_v51  ;;  %v7767_v41 = vadd.f32 %v17997_v19, %v17978_v7 }
 0x710   : > { %v7930_v55 = vrot.slane %v7839_v48, 3 }
 0x712   : > { %v8026_v42 = vadd.f32 %v10237_v46, %v7930_v55 }
 0x714   : > { %8076 = vst.msk [vmem:[%s18011_s12 + $0x9b] sm:$0xe0] %vm8044_vm7, %v8026_v42  ;;  %v10247_v42 = vld [vmem:[%s10343_s30 + $0x250] sm:$0xff] }
 0x715   : > { %v7840_v61 = vpop.f32.mrf.mxu3  ;;  %v4447_v1 = vpop.f32.mrf.mxu2 }
 0x716   : > { %v7841_v21 = vadd.f32 %v7840_v61, %v7752_v58  ;;  %v10248_v61 = vld [vmem:[%s10343_s30 + $0x248] sm:$0xff] }
 0x718   : > { %v7931_v15 = vrot.slane %v7841_v21, 3 }
 0x71a   : > { %v7932_v25 = vsel %vm6173_vm14, %v7930_v55, %v7931_v15  ;;  %v8028_v12 = vadd.f32 %v10238_v36, %v7931_v15  ;;  %v7770_v15 = vadd.f32 %v17997_v19, %v17983_v40 }
 0x71b   : > { %v8027_v43 = vadd.f32 %v10239_v20, %v7932_v25 }
 0x71c   : > { %8078 = vst.msk [vmem:[%s18011_s12 + $0xab] sm:$0x1f] %vm8047_vm8, %v8028_v12  ;;  %v10249_v12 = vld [vmem:[%s10343_s30 + $0x260] sm:$0xff] }
 0x71d   : > { %8077 = vst.msk [vmem:[%s18011_s12 + $0xa3] sm:$0xff] %vm2675_vm4, %v8027_v43  ;;  %v7843_v3 = vpop.f32.mrf.mxu3  ;;  %v4448_v28 = vpop.f32.mrf.mxu2  ;;  %v7772_v43 = vadd.f32 %v17997_v19, %v17985_v49 }
 0x71e   : > { %v7844_v29 = vadd.f32 %v7843_v3, %v7755_v35 }
 0x720   : > { %v7933_v5 = vrot.slane %v7844_v29, 3 }
 0x722   : > { %v8029_v9 = vadd.f32 %v10240_v13, %v7933_v5  ;;  %v10251_v13 = vld [vmem:[%s10343_s30 + $0x268] sm:$0xff] }
 0x724   : > { %8079 = vst.msk [vmem:[%s18011_s12 + $0xab] sm:$0xe0] %vm8044_vm7, %v8029_v9 }
 0x725   : > { %v7845_v26 = vpop.f32.mrf.mxu3  ;;  %v4450_v39 = vpop.f32.mrf.mxu2 }
 0x726   : > { %v7846_v38 = vadd.f32 %v7845_v26, %v7757_v11  ;;  %v7775_v11 = vadd.f32 %v17997_v19, %v17990_v37 }
 0x728   : > { %v7934_v59 = vrot.slane %v7846_v38, 3 }
 0x72a   : > { %v7935_v47 = vsel %vm6173_vm14, %v7933_v5, %v7934_v59  ;;  %v8031_v31 = vadd.f32 %v10241_v53, %v7934_v59  ;;  %v10250_v5 = vld [vmem:[%s10343_s30 + $0x270] sm:$0xff]  ;;  %v10252_v59 = vld [vmem:[%s10343_s30 + $0x280] sm:$0xff] }
 0x72b   : > { %v8030_v17 = vadd.f32 %v10242_v50, %v7935_v47  ;;  %v7777_v47 = vadd.f32 %v17997_v19, %v17992_v8 }
 0x72c   : > { %8081 = vst.msk [vmem:[%s18011_s12 + $0xbb] sm:$0x1f] %vm8047_vm8, %v8031_v31 }
 0x72d   : > { %8080 = vst.msk [vmem:[%s18011_s12 + $0xb3] sm:$0xff] %vm2675_vm4, %v8030_v17  ;;  %v7848_v56 = vpop.f32.mrf.mxu3  ;;  %v4451_v57 = vpop.f32.mrf.mxu2  ;;  %v10253_v17 = vld [vmem:[%s10343_s30 + $0x290] sm:$0xff] }
 0x72e   : > { %v7849_v23 = vadd.f32 %v7848_v56, %v7760_v30  ;;  %v10254_v56 = vld [vmem:[%s10343_s30 + $0x288] sm:$0xff] }
 0x730   : > { %v7936_v63 = vrot.slane %v7849_v23, 3 }
 0x732   : > { %v8032_v4 = vadd.f32 %v10243_v34, %v7936_v63 }
 0x734   : > { %8082 = vst.msk [vmem:[%s18011_s12 + $0xbb] sm:$0xe0] %vm8044_vm7, %v8032_v4 }
 0x735   : > { %v7850_v60 = vpop.f32.mrf.mxu3  ;;  %v4453_v54 = vpop.f32.mrf.mxu2 }
 0x736   : > { %v7851_v16 = vadd.f32 %v7850_v60, %v7762_v18 }
 0x738   : > { %v7937_v44 = vrot.slane %v7851_v16, 3 }
 0x73a   : > { %v7938_v62 = vsel %vm6173_vm14, %v7936_v63, %v7937_v44  ;;  %v8034_v24 = vadd.f32 %v10244_v2, %v7937_v44 }
 0x73b   : > { %v8033_v10 = vadd.f32 %v10245_v45, %v7938_v62 }
 0x73c   : > { %8084 = vst.msk [vmem:[%s18011_s12 + $0xcb] sm:$0x1f] %vm8047_vm8, %v8034_v24 }
 0x73d   : > { %8083 = vst.msk [vmem:[%s18011_s12 + $0xc3] sm:$0xff] %vm2675_vm4, %v8033_v10  ;;  %v7853_v14 = vpop.f32.mrf.mxu3  ;;  %v4454_v32 = vpop.f32.mrf.mxu2 }
 0x73e   : > { %v7854_v0 = vadd.f32 %v7853_v14, %v7765_v6 }
 0x740   : > { %v7939_v52 = vrot.slane %v7854_v0, 3 }
 0x742   : > { %v8035_v51 = vadd.f32 %v10246_v33, %v7939_v52 }
 0x744   : > { %8085 = vst.msk [vmem:[%s18011_s12 + $0xcb] sm:$0xe0] %vm8044_vm7, %v8035_v51 }
 0x745   : > { %v7855_v22 = vpop.f32.mrf.mxu3  ;;  %v4456_v27 = vpop.f32.mrf.mxu2 }
 0x746   : > { %v7856_v48 = vadd.f32 %v7855_v22, %v7767_v41 }
 0x748   : > { %v7940_v55 = vrot.slane %v7856_v48, 3 }
 0x74a   : > { %v7941_v46 = vsel %vm6173_vm14, %v7939_v52, %v7940_v55  ;;  %v8037_v58 = vadd.f32 %v10247_v42, %v7940_v55 }
 0x74b   : > { %v8036_v21 = vadd.f32 %v10248_v61, %v7941_v46 }
 0x74c   : > { %8087 = vst.msk [vmem:[%s18011_s12 + $0xdb] sm:$0x1f] %vm8047_vm8, %v8037_v58 }
 0x74d   : > { %8086 = vst.msk [vmem:[%s18011_s12 + $0xd3] sm:$0xff] %vm2675_vm4, %v8036_v21  ;;  %v7858_v7 = vpop.f32.mrf.mxu3  ;;  %v4457_v36 = vpop.f32.mrf.mxu2 }
 0x74e   : > { %v7859_v1 = vadd.f32 %v7858_v7, %v7770_v15 }
 0x750   : > { %v7942_v25 = vrot.slane %v7859_v1, 3 }
 0x752   : > { %v8038_v20 = vadd.f32 %v10249_v12, %v7942_v25 }
 0x754   : > { %8088 = vst.msk [vmem:[%s18011_s12 + $0xdb] sm:$0xe0] %vm8044_vm7, %v8038_v20 }
 0x755   : > { %v7860_v40 = vpop.f32.mrf.mxu3 }
 0x756   : > { %v7861_v35 = vadd.f32 %v7860_v40, %v7772_v43 }
 0x758   : > { %v7943_v3 = vrot.slane %v7861_v35, 3 }
 0x75a   : > { %v7944_v29 = vsel %vm6173_vm14, %v7942_v25, %v7943_v3  ;;  %v8040_v28 = vadd.f32 %v10250_v5, %v7943_v3 }
 0x75b   : > { %v8039_v9 = vadd.f32 %v10251_v13, %v7944_v29 }
 0x75c   : > { %8090 = vst.msk [vmem:[%s18011_s12 + $0xeb] sm:$0x1f] %vm8047_vm8, %v8040_v28 }
 0x75d   : > { %8089 = vst.msk [vmem:[%s18011_s12 + $0xe3] sm:$0xff] %vm2675_vm4, %v8039_v9  ;;  %v7863_v49 = vpop.f32.mrf.mxu3 }
 0x75e   : > { %v7864_v26 = vadd.f32 %v7863_v49, %v7775_v11 }
 0x760   : > { %v7945_v38 = vrot.slane %v7864_v26, 3 }
 0x762   : > { %v8041_v39 = vadd.f32 %v10252_v59, %v7945_v38 }
 0x764   : > { %8091 = vst.msk [vmem:[%s18011_s12 + $0xeb] sm:$0xe0] %vm8044_vm7, %v8041_v39 }
 0x765   : > { %v7865_v53 = vpop.f32.mrf.mxu3 }
 0x766   : > { %v7866_v31 = vadd.f32 %v7865_v53, %v7777_v47 }
 0x768   : > { %v7946_v37 = vrot.slane %v7866_v31, 3 }
 0x76a   : > { %v7947_v50 = vsel %vm6173_vm14, %v7945_v38, %v7946_v37  ;;  %v8043_v30 = vadd.f32 %v10253_v17, %v7946_v37 }
 0x76b   : > { %v8042_v23 = vadd.f32 %v10254_v56, %v7947_v50 }
 0x76c   : > { %8093 = vst.msk [vmem:[%s18011_s12 + $0xfb] sm:$0x1f] %vm8047_vm8, %v8043_v30 }
 0x76d   : > { %8092 = vst.msk [vmem:[%s18011_s12 + $0xf3] sm:$0xff] %vm2675_vm4, %v8042_v23 }
 0x76e PF: > { %s17_s24 = sadd.s32 1, %s10261_s24  }
 0x76f   : > { %p14_p4 = scmp.ge.s32.totalorder %s17_s24, 4  }
 0x771   :  { %16 = sbr.rel (!%p14_p4) target bundleno = 1 (0x1), region = 78 }

</bundles_post_ra>
